<compile_context>
chip_gen: v7x
topology: tpu7x:2x2x1
jax: 0.10.0
libtpu: 0.0.40
codegen_flags: <defaults>
</compile_context>

<pallas_src>
import jax
import jax.numpy as jnp
from jax.experimental import pallas as pl
from jax.experimental.pallas import tpu as pltpu


_CIN_PAD = 8  # layer-1 input channels padded 4 -> 8 (K: 64 -> 128)


def _round_up(x: int, m: int) -> int:
    return ((x + m - 1) // m) * m


# ----------------------------------------------------------------------------
# Pallas kernel: (patches @ weight) * (1/sigma) + bias, then LeakyReLU(0.2)
# ----------------------------------------------------------------------------
def _sn_conv_mm_kernel(sig_ref, p_ref, w_ref, b_ref, o_ref):
    # sig_ref: (1,) f32 in SMEM   p_ref: (tm, K) bf16   w_ref: (K, N) bf16
    # b_ref:   (1, N) f32         o_ref: (tm, N) bf16
    acc = jnp.dot(p_ref[...], w_ref[...], preferred_element_type=jnp.float32)
    acc = acc * sig_ref[0] + b_ref[...]
    o_ref[...] = jnp.where(acc > 0.0, acc, 0.2 * acc).astype(o_ref.dtype)


def _sn_conv_matmul(patches, w_mat, bias, sigma_inv):
    """patches: (M, K) bf16, w_mat: (K, N) bf16, bias: (N,) f32 -> (M, N) bf16."""
    M, K = patches.shape
    N = w_mat.shape[1]

    tm = min(512, _round_up(M, 8))
    M_pad = _round_up(M, tm)
    if M_pad != M:
        patches = jnp.pad(patches, ((0, M_pad - M), (0, 0)))

    bias2d = bias.reshape(1, N).astype(jnp.float32)
    sig = sigma_inv.reshape(1).astype(jnp.float32)

    out = pl.pallas_call(
        _sn_conv_mm_kernel,
        out_shape=jax.ShapeDtypeStruct((M_pad, N), jnp.bfloat16),
        grid_spec=pltpu.PrefetchScalarGridSpec(
            num_scalar_prefetch=0,
            grid=(M_pad // tm,),
            in_specs=[
                pl.BlockSpec(memory_space=pltpu.MemorySpace.SMEM),  # 1/sigma
                pl.BlockSpec((tm, K), lambda i: (i, 0)),            # patch rows
                pl.BlockSpec((K, N), lambda i: (0, 0)),             # full weight
                pl.BlockSpec((1, N), lambda i: (0, 0)),             # bias
            ],
            out_specs=pl.BlockSpec((tm, N), lambda i: (i, 0)),
        ),
        compiler_params=pltpu.CompilerParams(
            dimension_semantics=("parallel",)),
    )(sig, patches, w_mat, bias2d)
    return out[:M]


# ----------------------------------------------------------------------------
# XLA glue: im2col patch extraction (bf16) and spectral sigma (1 power iter)
# ----------------------------------------------------------------------------
def _extract_patches(x_nhwc, k=4, stride=2, pad=1):
    """x: (B, H, W, C) -> patches (B*Ho*Wo, k*k*C) ordered (dy, dx, c)."""
    xp = jnp.pad(x_nhwc, ((0, 0), (pad, pad), (pad, pad), (0, 0)))
    B, Hp, Wp, C = xp.shape
    Ho = (Hp - k) // stride + 1
    Wo = (Wp - k) // stride + 1
    cols = []
    for dy in range(k):
        for dx in range(k):
            cols.append(
                xp[:, dy:dy + stride * Ho:stride, dx:dx + stride * Wo:stride, :])
    patches = jnp.stack(cols, axis=3).reshape(B, Ho, Wo, k * k * C)
    return patches.reshape(B * Ho * Wo, k * k * C), Ho, Wo


def _spectral_sigma_inv(w_mat, u, eps=1e-12):
    """w_mat: (K, N) bf16 (= W^T of the (Cout, K) conv matrix), u: (N,) f32.

    One power iteration (PyTorch's per-step default) -> 1/sigma as f32 scalar.
    TODO(synk): u is not persisted/updated across calls (stateless forward).
    """
    ub = (u / (jnp.linalg.norm(u) + eps)).astype(jnp.bfloat16)
    v = jnp.dot(w_mat, ub, preferred_element_type=jnp.float32)   # W^T u, (K,)
    v = (v / (jnp.linalg.norm(v) + eps)).astype(jnp.bfloat16)
    wv = jnp.dot(v, w_mat, preferred_element_type=jnp.float32)   # W v, (N,)
    sigma = jnp.linalg.norm(wv) + eps                            # = u_new . W v
    return (1.0 / sigma).astype(jnp.float32)


def sn_conv2d_leaky(x_nhwc, w_mat, b, u):
    """One SpectralNormConv2d block (k=4, s=2, p=1) + LeakyReLU(0.2)."""
    B = x_nhwc.shape[0]
    cout = w_mat.shape[1]
    sigma_inv = _spectral_sigma_inv(w_mat, u)
    patches, Ho, Wo = _extract_patches(x_nhwc.astype(jnp.bfloat16))
    out = _sn_conv_matmul(patches, w_mat, b, sigma_inv)   # Pallas hot path
    return out.reshape(B, Ho, Wo, cout)


# ----------------------------------------------------------------------------
# Discriminator
# ----------------------------------------------------------------------------
def init_discriminator_params(key, in_channels=4):
    """Weights are stored pre-laid-out as (K=kh*kw*Cin, Cout) bf16 matrices
    (row order (dy, dx, c), layer-1 Cin zero-padded to _CIN_PAD)."""
    c = 64
    dims = [(in_channels, c), (c, 2 * c), (2 * c, 3 * c),
            (3 * c, 3 * c), (3 * c, 3 * c), (3 * c, 3 * c)]
    params = []
    for i, (ci, co) in enumerate(dims):
        kw_, kb_, ku_ = jax.random.split(jax.random.fold_in(key, i), 3)
        fan_in = ci * 4 * 4
        bound = 1.0 / (fan_in ** 0.5)
        w = jax.random.uniform(kw_, (co, ci, 4, 4), jnp.float32, -bound, bound)
        b = jax.random.uniform(kb_, (co,), jnp.float32, -bound, bound)
        u = jax.random.normal(ku_, (co,), jnp.float32)
        ci_pad = _CIN_PAD if i == 0 else ci
        if ci_pad != ci:                      # zero input channels: math unchanged
            w = jnp.pad(w, ((0, 0), (0, ci_pad - ci), (0, 0), (0, 0)))
        # (Cout, Cin, kh, kw) -> (kh, kw, Cin, Cout) -> (K, Cout): matches the
        # (dy, dx, c) patch ordering of _extract_patches.
        w_mat = jnp.transpose(w, (2, 3, 1, 0)).reshape(4 * 4 * ci_pad, co)
        params.append((w_mat.astype(jnp.bfloat16), b, u))
    return params


@jax.jit
def discriminator_forward(params, image_nchw, mask_nchw):
    # _normalize: (x - 127.5) / 127.5, then concat [image, mask] on channels.
    image = (image_nchw - 127.5) / 127.5
    x = jnp.concatenate([image, mask_nchw], axis=1)        # NCHW, C=4
    x = jnp.transpose(x, (0, 2, 3, 1))                     # -> NHWC
    x = jnp.pad(x, ((0, 0), (0, 0), (0, 0), (0, _CIN_PAD - x.shape[-1])))
    x = x.astype(jnp.bfloat16)
    for (w_mat, b, u) in params:
        x = sn_conv2d_leaky(x, w_mat, b, u)
    return jnp.transpose(x, (0, 3, 1, 2)).astype(jnp.float32)   # -> NCHW


if __name__ == "__main__":
    key = jax.random.PRNGKey(0)
    k_img, k_msk, k_par = jax.random.split(key, 3)

    B, H, W = 2, 64, 64                                    # 6 stride-2 convs -> 1x1
    image = jax.random.uniform(k_img, (B, 3, H, W), jnp.float32, 0.0, 255.0)
    mask = (jax.random.uniform(k_msk, (B, 1, H, W)) > 0.5).astype(jnp.float32)

    params = init_discriminator_params(k_par, in_channels=4)

    out = discriminator_forward(params, image, mask)
    jax.block_until_ready(out)
    assert out.shape == (B, 192, 1, 1), out.shape
    print("KERNEL_OK")
</pallas_src>

<mosaic_0001>
module attributes {stable_mosaic.version = 11 : i64} {
  func.func @_sn_conv_mm_kernel(%arg0: i32, %arg1: memref<1xf32, #tpu.memory_space<smem>>, %arg2: memref<512x128xbf16, #tpu.memory_space<vmem>>, %arg3: memref<128x64xbf16, #tpu.memory_space<vmem>>, %arg4: memref<1x64xf32, #tpu.memory_space<vmem>>, %arg5: memref<512x64xbf16, #tpu.memory_space<vmem>>) attributes {dimension_semantics = [#tpu.dimension_semantics<parallel>], iteration_bounds = array<i64: 4>, scalar_prefetch = 0 : i64, scratch_operands = 0 : i64, tpu.core_type = #tpu.core_type<tc>, window_params = [{transform_indices = @transform_0, window_bounds = array<i64: 1>}, {transform_indices = @transform_1, window_bounds = array<i64: 512, 128>}, {pipeline_mode = #tpu.pipeline_mode<synchronous>, transform_indices = @transform_2, window_bounds = array<i64: 128, 64>}, {pipeline_mode = #tpu.pipeline_mode<synchronous>, transform_indices = @transform_3, window_bounds = array<i64: 1, 64>}, {transform_indices = @transform_4, window_bounds = array<i64: 512, 64>}]} {
    %c0 = arith.constant 0 : index
    %c0_0 = arith.constant 0 : index
    %0 = vector.load %arg2[%c0, %c0_0] : memref<512x128xbf16, #tpu.memory_space<vmem>>, vector<512x128xbf16>
    %c0_1 = arith.constant 0 : index
    %c0_2 = arith.constant 0 : index
    %1 = vector.load %arg3[%c0_1, %c0_2] : memref<128x64xbf16, #tpu.memory_space<vmem>>, vector<128x64xbf16>
    %cst = arith.constant dense<0.000000e+00> : vector<512x64xf32>
    %2 = tpu.matmul %0, %1, %cst {dimension_numbers = #tpu.dot_dimension_numbers<[1], [0], [0], [1], [0, 0, 1, 1], [], []>} : vector<512x128xbf16>, vector<128x64xbf16>, vector<512x64xf32> -> vector<512x64xf32>
    %c0_3 = arith.constant 0 : index
    %3 = memref.load %arg1[%c0_3] : memref<1xf32, #tpu.memory_space<smem>>
    %4 = vector.broadcast %3 : f32 to vector<512x64xf32>
    %5 = arith.mulf %2, %4 : vector<512x64xf32>
    %c0_4 = arith.constant 0 : index
    %c0_5 = arith.constant 0 : index
    %6 = vector.load %arg4[%c0_4, %c0_5] : memref<1x64xf32, #tpu.memory_space<vmem>>, vector<1x64xf32>
    %7 = vector.broadcast %6 : vector<1x64xf32> to vector<512x64xf32>
    %8 = arith.addf %5, %7 : vector<512x64xf32>
    %cst_6 = arith.constant 0.000000e+00 : f32
    %9 = vector.broadcast %cst_6 : f32 to vector<512x64xf32>
    %10 = arith.cmpf ogt, %8, %9 : vector<512x64xf32>
    %cst_7 = arith.constant 2.000000e-01 : f32
    %11 = vector.broadcast %cst_7 : f32 to vector<512x64xf32>
    %12 = arith.mulf %11, %8 : vector<512x64xf32>
    %13 = arith.select %10, %8, %12 : vector<512x64xi1>, vector<512x64xf32>
    %14 = arith.truncf %13 : vector<512x64xf32> to vector<512x64xbf16>
    %c0_8 = arith.constant 0 : index
    %c0_9 = arith.constant 0 : index
    %15 = vector.load %arg5[%c0_8, %c0_9] : memref<512x64xbf16, #tpu.memory_space<vmem>>, vector<512x64xbf16>
    tpu.vector_store %arg5[%c0_8, %c0_9], %14 {strides = array<i32>} : memref<512x64xbf16, #tpu.memory_space<vmem>>, vector<512x64xbf16>,
    return
  }
  func.func @transform_0(%arg0: i32) -> i32 {
    %c0_i32 = arith.constant 0 : i32
    %c0_i32_0 = arith.constant 0 : i32
    return %c0_i32 : i32
  }
  func.func @transform_1(%arg0: i32) -> (i32, i32) {
    %c0_i32 = arith.constant 0 : i32
    %c0_i32_0 = arith.constant 0 : i32
    return %arg0, %c0_i32 : i32, i32
  }
  func.func @transform_2(%arg0: i32) -> (i32, i32) {
    %c0_i32 = arith.constant 0 : i32
    %c0_i32_0 = arith.constant 0 : i32
    %c0_i32_1 = arith.constant 0 : i32
    return %c0_i32, %c0_i32_0 : i32, i32
  }
  func.func @transform_3(%arg0: i32) -> (i32, i32) {
    %c0_i32 = arith.constant 0 : i32
    %c0_i32_0 = arith.constant 0 : i32
    %c0_i32_1 = arith.constant 0 : i32
    return %c0_i32, %c0_i32_0 : i32, i32
  }
  func.func @transform_4(%arg0: i32) -> (i32, i32) {
    %c0_i32 = arith.constant 0 : i32
    %c0_i32_0 = arith.constant 0 : i32
    return %arg0, %c0_i32 : i32, i32
  }
}

module attributes {stable_mosaic.version = 11 : i64} {
  func.func @_sn_conv_mm_kernel(%arg0: i32, %arg1: memref<1xf32, #tpu.memory_space<smem>>, %arg2: memref<512x1024xbf16, #tpu.memory_space<vmem>>, %arg3: memref<1024x128xbf16, #tpu.memory_space<vmem>>, %arg4: memref<1x128xf32, #tpu.memory_space<vmem>>, %arg5: memref<512x128xbf16, #tpu.memory_space<vmem>>) attributes {dimension_semantics = [#tpu.dimension_semantics<parallel>], iteration_bounds = array<i64: 1>, scalar_prefetch = 0 : i64, scratch_operands = 0 : i64, tpu.core_type = #tpu.core_type<tc>, window_params = [{transform_indices = @transform_0, window_bounds = array<i64: 1>}, {transform_indices = @transform_1, window_bounds = array<i64: 512, 1024>}, {pipeline_mode = #tpu.pipeline_mode<synchronous>, transform_indices = @transform_2, window_bounds = array<i64: 1024, 128>}, {pipeline_mode = #tpu.pipeline_mode<synchronous>, transform_indices = @transform_3, window_bounds = array<i64: 1, 128>}, {transform_indices = @transform_4, window_bounds = array<i64: 512, 128>}]} {
    %c0 = arith.constant 0 : index
    %c0_0 = arith.constant 0 : index
    %0 = vector.load %arg2[%c0, %c0_0] : memref<512x1024xbf16, #tpu.memory_space<vmem>>, vector<512x1024xbf16>
    %c0_1 = arith.constant 0 : index
    %c0_2 = arith.constant 0 : index
    %1 = vector.load %arg3[%c0_1, %c0_2] : memref<1024x128xbf16, #tpu.memory_space<vmem>>, vector<1024x128xbf16>
    %cst = arith.constant dense<0.000000e+00> : vector<512x128xf32>
    %2 = tpu.matmul %0, %1, %cst {dimension_numbers = #tpu.dot_dimension_numbers<[1], [0], [0], [1], [0, 0, 1, 1], [], []>} : vector<512x1024xbf16>, vector<1024x128xbf16>, vector<512x128xf32> -> vector<512x128xf32>
    %c0_3 = arith.constant 0 : index
    %3 = memref.load %arg1[%c0_3] : memref<1xf32, #tpu.memory_space<smem>>
    %4 = vector.broadcast %3 : f32 to vector<512x128xf32>
    %5 = arith.mulf %2, %4 : vector<512x128xf32>
    %c0_4 = arith.constant 0 : index
    %c0_5 = arith.constant 0 : index
    %6 = vector.load %arg4[%c0_4, %c0_5] : memref<1x128xf32, #tpu.memory_space<vmem>>, vector<1x128xf32>
    %7 = vector.broadcast %6 : vector<1x128xf32> to vector<512x128xf32>
    %8 = arith.addf %5, %7 : vector<512x128xf32>
    %cst_6 = arith.constant 0.000000e+00 : f32
    %9 = vector.broadcast %cst_6 : f32 to vector<512x128xf32>
    %10 = arith.cmpf ogt, %8, %9 : vector<512x128xf32>
    %cst_7 = arith.constant 2.000000e-01 : f32
    %11 = vector.broadcast %cst_7 : f32 to vector<512x128xf32>
    %12 = arith.mulf %11, %8 : vector<512x128xf32>
    %13 = arith.select %10, %8, %12 : vector<512x128xi1>, vector<512x128xf32>
    %14 = arith.truncf %13 : vector<512x128xf32> to vector<512x128xbf16>
    %c0_8 = arith.constant 0 : index
    %c0_9 = arith.constant 0 : index
    %15 = vector.load %arg5[%c0_8, %c0_9] : memref<512x128xbf16, #tpu.memory_space<vmem>>, vector<512x128xbf16>
    tpu.vector_store %arg5[%c0_8, %c0_9], %14 {strides = array<i32>} : memref<512x128xbf16, #tpu.memory_space<vmem>>, vector<512x128xbf16>,
    return
  }
  func.func @transform_0(%arg0: i32) -> i32 {
    %c0_i32 = arith.constant 0 : i32
    %c0_i32_0 = arith.constant 0 : i32
    return %c0_i32 : i32
  }
  func.func @transform_1(%arg0: i32) -> (i32, i32) {
    %c0_i32 = arith.constant 0 : i32
    %c0_i32_0 = arith.constant 0 : i32
    return %arg0, %c0_i32 : i32, i32
  }
  func.func @transform_2(%arg0: i32) -> (i32, i32) {
    %c0_i32 = arith.constant 0 : i32
    %c0_i32_0 = arith.constant 0 : i32
    %c0_i32_1 = arith.constant 0 : i32
    return %c0_i32, %c0_i32_0 : i32, i32
  }
  func.func @transform_3(%arg0: i32) -> (i32, i32) {
    %c0_i32 = arith.constant 0 : i32
    %c0_i32_0 = arith.constant 0 : i32
    %c0_i32_1 = arith.constant 0 : i32
    return %c0_i32, %c0_i32_0 : i32, i32
  }
  func.func @transform_4(%arg0: i32) -> (i32, i32) {
    %c0_i32 = arith.constant 0 : i32
    %c0_i32_0 = arith.constant 0 : i32
    return %arg0, %c0_i32 : i32, i32
  }
}

module attributes {stable_mosaic.version = 11 : i64} {
  func.func @_sn_conv_mm_kernel(%arg0: i32, %arg1: memref<1xf32, #tpu.memory_space<smem>>, %arg2: memref<128x2048xbf16, #tpu.memory_space<vmem>>, %arg3: memref<2048x192xbf16, #tpu.memory_space<vmem>>, %arg4: memref<1x192xf32, #tpu.memory_space<vmem>>, %arg5: memref<128x192xbf16, #tpu.memory_space<vmem>>) attributes {dimension_semantics = [#tpu.dimension_semantics<parallel>], iteration_bounds = array<i64: 1>, scalar_prefetch = 0 : i64, scratch_operands = 0 : i64, tpu.core_type = #tpu.core_type<tc>, window_params = [{transform_indices = @transform_0, window_bounds = array<i64: 1>}, {transform_indices = @transform_1, window_bounds = array<i64: 128, 2048>}, {pipeline_mode = #tpu.pipeline_mode<synchronous>, transform_indices = @transform_2, window_bounds = array<i64: 2048, 192>}, {pipeline_mode = #tpu.pipeline_mode<synchronous>, transform_indices = @transform_3, window_bounds = array<i64: 1, 192>}, {transform_indices = @transform_4, window_bounds = array<i64: 128, 192>}]} {
    %c0 = arith.constant 0 : index
    %c0_0 = arith.constant 0 : index
    %0 = vector.load %arg2[%c0, %c0_0] : memref<128x2048xbf16, #tpu.memory_space<vmem>>, vector<128x2048xbf16>
    %c0_1 = arith.constant 0 : index
    %c0_2 = arith.constant 0 : index
    %1 = vector.load %arg3[%c0_1, %c0_2] : memref<2048x192xbf16, #tpu.memory_space<vmem>>, vector<2048x192xbf16>
    %cst = arith.constant dense<0.000000e+00> : vector<128x192xf32>
    %2 = tpu.matmul %0, %1, %cst {dimension_numbers = #tpu.dot_dimension_numbers<[1], [0], [0], [1], [0, 0, 1, 1], [], []>} : vector<128x2048xbf16>, vector<2048x192xbf16>, vector<128x192xf32> -> vector<128x192xf32>
    %c0_3 = arith.constant 0 : index
    %3 = memref.load %arg1[%c0_3] : memref<1xf32, #tpu.memory_space<smem>>
    %4 = vector.broadcast %3 : f32 to vector<128x192xf32>
    %5 = arith.mulf %2, %4 : vector<128x192xf32>
    %c0_4 = arith.constant 0 : index
    %c0_5 = arith.constant 0 : index
    %6 = vector.load %arg4[%c0_4, %c0_5] : memref<1x192xf32, #tpu.memory_space<vmem>>, vector<1x192xf32>
    %7 = vector.broadcast %6 : vector<1x192xf32> to vector<128x192xf32>
    %8 = arith.addf %5, %7 : vector<128x192xf32>
    %cst_6 = arith.constant 0.000000e+00 : f32
    %9 = vector.broadcast %cst_6 : f32 to vector<128x192xf32>
    %10 = arith.cmpf ogt, %8, %9 : vector<128x192xf32>
    %cst_7 = arith.constant 2.000000e-01 : f32
    %11 = vector.broadcast %cst_7 : f32 to vector<128x192xf32>
    %12 = arith.mulf %11, %8 : vector<128x192xf32>
    %13 = arith.select %10, %8, %12 : vector<128x192xi1>, vector<128x192xf32>
    %14 = arith.truncf %13 : vector<128x192xf32> to vector<128x192xbf16>
    %c0_8 = arith.constant 0 : index
    %c0_9 = arith.constant 0 : index
    %15 = vector.load %arg5[%c0_8, %c0_9] : memref<128x192xbf16, #tpu.memory_space<vmem>>, vector<128x192xbf16>
    tpu.vector_store %arg5[%c0_8, %c0_9], %14 {strides = array<i32>} : memref<128x192xbf16, #tpu.memory_space<vmem>>, vector<128x192xbf16>,
    return
  }
  func.func @transform_0(%arg0: i32) -> i32 {
    %c0_i32 = arith.constant 0 : i32
    %c0_i32_0 = arith.constant 0 : i32
    return %c0_i32 : i32
  }
  func.func @transform_1(%arg0: i32) -> (i32, i32) {
    %c0_i32 = arith.constant 0 : i32
    %c0_i32_0 = arith.constant 0 : i32
    return %arg0, %c0_i32 : i32, i32
  }
  func.func @transform_2(%arg0: i32) -> (i32, i32) {
    %c0_i32 = arith.constant 0 : i32
    %c0_i32_0 = arith.constant 0 : i32
    %c0_i32_1 = arith.constant 0 : i32
    return %c0_i32, %c0_i32_0 : i32, i32
  }
  func.func @transform_3(%arg0: i32) -> (i32, i32) {
    %c0_i32 = arith.constant 0 : i32
    %c0_i32_0 = arith.constant 0 : i32
    %c0_i32_1 = arith.constant 0 : i32
    return %c0_i32, %c0_i32_0 : i32, i32
  }
  func.func @transform_4(%arg0: i32) -> (i32, i32) {
    %c0_i32 = arith.constant 0 : i32
    %c0_i32_0 = arith.constant 0 : i32
    return %arg0, %c0_i32 : i32, i32
  }
}

module attributes {stable_mosaic.version = 11 : i64} {
  func.func @_sn_conv_mm_kernel(%arg0: i32, %arg1: memref<1xf32, #tpu.memory_space<smem>>, %arg2: memref<32x3072xbf16, #tpu.memory_space<vmem>>, %arg3: memref<3072x192xbf16, #tpu.memory_space<vmem>>, %arg4: memref<1x192xf32, #tpu.memory_space<vmem>>, %arg5: memref<32x192xbf16, #tpu.memory_space<vmem>>) attributes {dimension_semantics = [#tpu.dimension_semantics<parallel>], iteration_bounds = array<i64: 1>, scalar_prefetch = 0 : i64, scratch_operands = 0 : i64, tpu.core_type = #tpu.core_type<tc>, window_params = [{transform_indices = @transform_0, window_bounds = array<i64: 1>}, {transform_indices = @transform_1, window_bounds = array<i64: 32, 3072>}, {pipeline_mode = #tpu.pipeline_mode<synchronous>, transform_indices = @transform_2, window_bounds = array<i64: 3072, 192>}, {pipeline_mode = #tpu.pipeline_mode<synchronous>, transform_indices = @transform_3, window_bounds = array<i64: 1, 192>}, {transform_indices = @transform_4, window_bounds = array<i64: 32, 192>}]} {
    %c0 = arith.constant 0 : index
    %c0_0 = arith.constant 0 : index
    %0 = vector.load %arg2[%c0, %c0_0] : memref<32x3072xbf16, #tpu.memory_space<vmem>>, vector<32x3072xbf16>
    %c0_1 = arith.constant 0 : index
    %c0_2 = arith.constant 0 : index
    %1 = vector.load %arg3[%c0_1, %c0_2] : memref<3072x192xbf16, #tpu.memory_space<vmem>>, vector<3072x192xbf16>
    %cst = arith.constant dense<0.000000e+00> : vector<32x192xf32>
    %2 = tpu.matmul %0, %1, %cst {dimension_numbers = #tpu.dot_dimension_numbers<[1], [0], [0], [1], [0, 0, 1, 1], [], []>} : vector<32x3072xbf16>, vector<3072x192xbf16>, vector<32x192xf32> -> vector<32x192xf32>
    %c0_3 = arith.constant 0 : index
    %3 = memref.load %arg1[%c0_3] : memref<1xf32, #tpu.memory_space<smem>>
    %4 = vector.broadcast %3 : f32 to vector<32x192xf32>
    %5 = arith.mulf %2, %4 : vector<32x192xf32>
    %c0_4 = arith.constant 0 : index
    %c0_5 = arith.constant 0 : index
    %6 = vector.load %arg4[%c0_4, %c0_5] : memref<1x192xf32, #tpu.memory_space<vmem>>, vector<1x192xf32>
    %7 = vector.broadcast %6 : vector<1x192xf32> to vector<32x192xf32>
    %8 = arith.addf %5, %7 : vector<32x192xf32>
    %cst_6 = arith.constant 0.000000e+00 : f32
    %9 = vector.broadcast %cst_6 : f32 to vector<32x192xf32>
    %10 = arith.cmpf ogt, %8, %9 : vector<32x192xf32>
    %cst_7 = arith.constant 2.000000e-01 : f32
    %11 = vector.broadcast %cst_7 : f32 to vector<32x192xf32>
    %12 = arith.mulf %11, %8 : vector<32x192xf32>
    %13 = arith.select %10, %8, %12 : vector<32x192xi1>, vector<32x192xf32>
    %14 = arith.truncf %13 : vector<32x192xf32> to vector<32x192xbf16>
    %c0_8 = arith.constant 0 : index
    %c0_9 = arith.constant 0 : index
    %15 = vector.load %arg5[%c0_8, %c0_9] : memref<32x192xbf16, #tpu.memory_space<vmem>>, vector<32x192xbf16>
    tpu.vector_store %arg5[%c0_8, %c0_9], %14 {strides = array<i32>} : memref<32x192xbf16, #tpu.memory_space<vmem>>, vector<32x192xbf16>,
    return
  }
  func.func @transform_0(%arg0: i32) -> i32 {
    %c0_i32 = arith.constant 0 : i32
    %c0_i32_0 = arith.constant 0 : i32
    return %c0_i32 : i32
  }
  func.func @transform_1(%arg0: i32) -> (i32, i32) {
    %c0_i32 = arith.constant 0 : i32
    %c0_i32_0 = arith.constant 0 : i32
    return %arg0, %c0_i32 : i32, i32
  }
  func.func @transform_2(%arg0: i32) -> (i32, i32) {
    %c0_i32 = arith.constant 0 : i32
    %c0_i32_0 = arith.constant 0 : i32
    %c0_i32_1 = arith.constant 0 : i32
    return %c0_i32, %c0_i32_0 : i32, i32
  }
  func.func @transform_3(%arg0: i32) -> (i32, i32) {
    %c0_i32 = arith.constant 0 : i32
    %c0_i32_0 = arith.constant 0 : i32
    %c0_i32_1 = arith.constant 0 : i32
    return %c0_i32, %c0_i32_0 : i32, i32
  }
  func.func @transform_4(%arg0: i32) -> (i32, i32) {
    %c0_i32 = arith.constant 0 : i32
    %c0_i32_0 = arith.constant 0 : i32
    return %arg0, %c0_i32 : i32, i32
  }
}

module attributes {stable_mosaic.version = 11 : i64} {
  func.func @_sn_conv_mm_kernel(%arg0: i32, %arg1: memref<1xf32, #tpu.memory_space<smem>>, %arg2: memref<8x3072xbf16, #tpu.memory_space<vmem>>, %arg3: memref<3072x192xbf16, #tpu.memory_space<vmem>>, %arg4: memref<1x192xf32, #tpu.memory_space<vmem>>, %arg5: memref<8x192xbf16, #tpu.memory_space<vmem>>) attributes {dimension_semantics = [#tpu.dimension_semantics<parallel>], iteration_bounds = array<i64: 1>, scalar_prefetch = 0 : i64, scratch_operands = 0 : i64, tpu.core_type = #tpu.core_type<tc>, window_params = [{transform_indices = @transform_0, window_bounds = array<i64: 1>}, {transform_indices = @transform_1, window_bounds = array<i64: 8, 3072>}, {pipeline_mode = #tpu.pipeline_mode<synchronous>, transform_indices = @transform_2, window_bounds = array<i64: 3072, 192>}, {pipeline_mode = #tpu.pipeline_mode<synchronous>, transform_indices = @transform_3, window_bounds = array<i64: 1, 192>}, {transform_indices = @transform_4, window_bounds = array<i64: 8, 192>}]} {
    %c0 = arith.constant 0 : index
    %c0_0 = arith.constant 0 : index
    %0 = vector.load %arg2[%c0, %c0_0] : memref<8x3072xbf16, #tpu.memory_space<vmem>>, vector<8x3072xbf16>
    %c0_1 = arith.constant 0 : index
    %c0_2 = arith.constant 0 : index
    %1 = vector.load %arg3[%c0_1, %c0_2] : memref<3072x192xbf16, #tpu.memory_space<vmem>>, vector<3072x192xbf16>
    %cst = arith.constant dense<0.000000e+00> : vector<8x192xf32>
    %2 = tpu.matmul %0, %1, %cst {dimension_numbers = #tpu.dot_dimension_numbers<[1], [0], [0], [1], [0, 0, 1, 1], [], []>} : vector<8x3072xbf16>, vector<3072x192xbf16>, vector<8x192xf32> -> vector<8x192xf32>
    %c0_3 = arith.constant 0 : index
    %3 = memref.load %arg1[%c0_3] : memref<1xf32, #tpu.memory_space<smem>>
    %4 = vector.broadcast %3 : f32 to vector<8x192xf32>
    %5 = arith.mulf %2, %4 : vector<8x192xf32>
    %c0_4 = arith.constant 0 : index
    %c0_5 = arith.constant 0 : index
    %6 = vector.load %arg4[%c0_4, %c0_5] : memref<1x192xf32, #tpu.memory_space<vmem>>, vector<1x192xf32>
    %7 = vector.broadcast %6 : vector<1x192xf32> to vector<8x192xf32>
    %8 = arith.addf %5, %7 : vector<8x192xf32>
    %cst_6 = arith.constant 0.000000e+00 : f32
    %9 = vector.broadcast %cst_6 : f32 to vector<8x192xf32>
    %10 = arith.cmpf ogt, %8, %9 : vector<8x192xf32>
    %cst_7 = arith.constant 2.000000e-01 : f32
    %11 = vector.broadcast %cst_7 : f32 to vector<8x192xf32>
    %12 = arith.mulf %11, %8 : vector<8x192xf32>
    %13 = arith.select %10, %8, %12 : vector<8x192xi1>, vector<8x192xf32>
    %14 = arith.truncf %13 : vector<8x192xf32> to vector<8x192xbf16>
    %c0_8 = arith.constant 0 : index
    %c0_9 = arith.constant 0 : index
    %15 = vector.load %arg5[%c0_8, %c0_9] : memref<8x192xbf16, #tpu.memory_space<vmem>>, vector<8x192xbf16>
    tpu.vector_store %arg5[%c0_8, %c0_9], %14 {strides = array<i32>} : memref<8x192xbf16, #tpu.memory_space<vmem>>, vector<8x192xbf16>,
    return
  }
  func.func @transform_0(%arg0: i32) -> i32 {
    %c0_i32 = arith.constant 0 : i32
    %c0_i32_0 = arith.constant 0 : i32
    return %c0_i32 : i32
  }
  func.func @transform_1(%arg0: i32) -> (i32, i32) {
    %c0_i32 = arith.constant 0 : i32
    %c0_i32_0 = arith.constant 0 : i32
    return %arg0, %c0_i32 : i32, i32
  }
  func.func @transform_2(%arg0: i32) -> (i32, i32) {
    %c0_i32 = arith.constant 0 : i32
    %c0_i32_0 = arith.constant 0 : i32
    %c0_i32_1 = arith.constant 0 : i32
    return %c0_i32, %c0_i32_0 : i32, i32
  }
  func.func @transform_3(%arg0: i32) -> (i32, i32) {
    %c0_i32 = arith.constant 0 : i32
    %c0_i32_0 = arith.constant 0 : i32
    %c0_i32_1 = arith.constant 0 : i32
    return %c0_i32, %c0_i32_0 : i32, i32
  }
  func.func @transform_4(%arg0: i32) -> (i32, i32) {
    %c0_i32 = arith.constant 0 : i32
    %c0_i32_0 = arith.constant 0 : i32
    return %arg0, %c0_i32 : i32, i32
  }
}

</mosaic_0001>

<bundles_post_ra>
// kernel: discriminator_forward.6
= control target key start
LH: loop header
LB: loop body
LE: loop exit
PB: predicated region body
PF: predicated region fallthrough
CT: control target
= control target key end

     0   :  { %s1918_s17 = smov 0   ;;  %s2395_s0 = inlined_call_operand.<no memory space> [shape: f32[1], index: 0, kind: input, shape index: {}]   ;;  %s2396_s1 = inlined_call_operand.vmem [shape: bf16[2048,128], index: 1, kind: input, shape index: {}]   ;;  %s2397_s2 = inlined_call_operand.vmem [shape: bf16[128,64], index: 2, kind: input, shape index: {}]   ;;  %s2398_s3 = inlined_call_operand.vmem [shape: f32[1,64], index: 3, kind: input, shape index: {}]   ;;  %s2399_s4 = inlined_call_operand.vmem [shape: bf16[2048,64], index: 4, kind: output, shape index: {}]  }
   0x1   :  { %9 = sst [smem:[#allocation2]] %s2395_s0 }
   0x2 LB: > { %s1518_s18 = sadd.s32 4294967295, %s1888_s17   ;;  %p1522_p0 = scmp.ge.s32.totalorder %s1888_s17, 1  ;;  %s1888_s17 = sphi %s1918_s17, %s15_s17  }
   0x3   : > { %p164_p1 = scmp.lt.s32.totalorder %s1888_s17, 5 }
   0x5   : > { %p165_p2 = pnand %p1522_p0, %p164_p1 }
   0x6   : > { %v1842_v0 = vld [vmem:[%s2397_s2] sm:$0xff] (!%p165_p2)   ;;  %s1523_s0 = sshll.u32 (!%p165_p2), %s1518_s18, 6  ;;  %v1843_v1 = vld [vmem:[%s2397_s2 + $0x8] sm:$0xff] (!%p165_p2)   ;;  %v1844_v2 = vld [vmem:[%s2397_s2 + $0x10] sm:$0xff] (!%p165_p2)   ;;  %s812_s13 = sld [smem:[#allocation2]] (!%p165_p2)  ;;  %vm1397_vm0 = vcmask (!%p165_p2), 519168  }
   0x7   : > { %168 = sbr.rel (%p165_p2) target bundleno = 353 (0x161), region = 36  ;;  %p191_p3 = scmp.lt.s32.totalorder (!%p165_p2), %s1523_s0, 255  ;;  %1738 = vmatprep.subr.bf16.mxu0 (!%p165_p2), %v1842_v0  ;;  %1818 = vmatprep.subr.bf16.mxu1 (!%p165_p2), %v1842_v0  ;;  %v1845_v3 = vld [vmem:[%s2397_s2 + $0x18] sm:$0xff] (!%p165_p2)   ;;  %v1846_v6 = vld [vmem:[%s2397_s2 + $0x20] sm:$0xff] (!%p165_p2)   ;;  %v1847_v7 = vld [vmem:[%s2397_s2 + $0x28] sm:$0xff] (!%p165_p2)  }
   0x8   : > { %1739 = vmatpush3.bf16.msra.mxu0 (!%p165_p2), %v1842_v0  ;;  %1826 = vmatpush3.bf16.msra.mxu1 (!%p165_p2), %v1842_v0  ;;  %v1848_v8 = vld [vmem:[%s2397_s2 + $0x30] sm:$0xff] (!%p165_p2)   ;;  %v1849_v9 = vld [vmem:[%s2397_s2 + $0x38] sm:$0xff] (!%p165_p2)   ;;  %v1997_v42 = vld [vmem:[%s2398_s3] ss:$0 sm:$0xff] (!%p165_p2) }
   0x9   : > { %1740 = vmatprep.subr.bf16.mxu0 (!%p165_p2), %v1843_v1  ;;  %1819 = vmatprep.subr.bf16.mxu1 (!%p165_p2), %v1843_v1 }
   0xc   : > { %1741 = vmatpush3.bf16.msra.mxu0 (!%p165_p2), %v1843_v1  ;;  %1827 = vmatpush3.bf16.msra.mxu1 (!%p165_p2), %v1843_v1  ;;  %v1992_v40 = vstv (!%p165_p2), %s812_s13 }
   0xd   : > { %1742 = vmatprep.subr.bf16.mxu0 (!%p165_p2), %v1844_v2  ;;  %1820 = vmatprep.subr.bf16.mxu1 (!%p165_p2), %v1844_v2 }
   0xe   : > { %s2401_s0 = smov (!%p191_p3, %s1523_s0), 255 }
   0xf   : > { %s1524_s25 = sshll.u32 %s2401_s0, 2 }
  0x10   : > { %s1943_s28 = scalar_lea.vmem %s2396_s1, %s1524_s25  ;;  %1743 = vmatpush3.bf16.msra.mxu0 %v1844_v2  ;;  %1828 = vmatpush3.bf16.msra.mxu1 %v1844_v2  ;;  %s2016_s19 = scalar_lea.vmem %s2399_s4, %s1524_s25 }
  0x11   : > { %v1850_v4 = vld [vmem:[%s1943_s28] sm:$0xff]   ;;  %1744 = vmatprep.subr.bf16.mxu0 %v1845_v3  ;;  %1821 = vmatprep.subr.bf16.mxu1 %v1845_v3  ;;  %v1852_v10 = vld [vmem:[%s1943_s28 + $0x8] sm:$0xff]   ;;  %v1854_v12 = vld [vmem:[%s1943_s28 + $0x10] sm:$0xff]  }
  0x12   : > { %v1851_v5 = vld [vmem:[%s1943_s28 + $0x80] sm:$0xff]   ;;  %1754 = vmatprep.mubr.bf16.mxu0 %v1850_v4  ;;  %v1853_v11 = vld [vmem:[%s1943_s28 + $0x88] sm:$0xff]   ;;  %v1855_v13 = vld [vmem:[%s1943_s28 + $0x90] sm:$0xff]  }
  0x13   : > { %1786 = vmatprep.mubr.bf16.mxu1 %v1851_v5  ;;  %v1856_v14 = vld [vmem:[%s1943_s28 + $0x18] sm:$0xff]   ;;  %v1858_v16 = vld [vmem:[%s1943_s28 + $0x20] sm:$0xff]   ;;  %v1860_v18 = vld [vmem:[%s1943_s28 + $0x28] sm:$0xff]  }
  0x14   : > { %1745 = vmatpush3.bf16.msra.mxu0 %v1845_v3  ;;  %1829 = vmatpush3.bf16.msra.mxu1 %v1845_v3  ;;  %v1857_v15 = vld [vmem:[%s1943_s28 + $0x98] sm:$0xff]   ;;  %v1859_v17 = vld [vmem:[%s1943_s28 + $0xa0] sm:$0xff]   ;;  %v1861_v19 = vld [vmem:[%s1943_s28 + $0xa8] sm:$0xff]  }
  0x15   : > { %1746 = vmatprep.subr.bf16.mxu0 %v1846_v6  ;;  %1822 = vmatprep.subr.bf16.mxu1 %v1846_v6  ;;  %v1862_v20 = vld [vmem:[%s1943_s28 + $0x30] sm:$0xff]   ;;  %v1864_v22 = vld [vmem:[%s1943_s28 + $0x38] sm:$0xff]   ;;  %v1866_v24 = vld [vmem:[%s1943_s28 + $0x40] sm:$0xff]  }
  0x16   : > { %v1863_v21 = vld [vmem:[%s1943_s28 + $0xb0] sm:$0xff]   ;;  %v1865_v23 = vld [vmem:[%s1943_s28 + $0xb8] sm:$0xff]   ;;  %v1867_v25 = vld [vmem:[%s1943_s28 + $0xc0] sm:$0xff]  }
  0x17   : > { %v1868_v26 = vld [vmem:[%s1943_s28 + $0x48] sm:$0xff]   ;;  %v1870_v28 = vld [vmem:[%s1943_s28 + $0x50] sm:$0xff]   ;;  %v1872_v30 = vld [vmem:[%s1943_s28 + $0x58] sm:$0xff]  }
  0x18   : > { %1747 = vmatpush3.bf16.msra.mxu0 %v1846_v6  ;;  %1830 = vmatpush3.bf16.msra.mxu1 %v1846_v6  ;;  %v1869_v27 = vld [vmem:[%s1943_s28 + $0xc8] sm:$0xff]   ;;  %v1871_v29 = vld [vmem:[%s1943_s28 + $0xd0] sm:$0xff]   ;;  %v1873_v31 = vld [vmem:[%s1943_s28 + $0xd8] sm:$0xff]  }
  0x19   : > { %1748 = vmatprep.subr.bf16.mxu0 %v1847_v7  ;;  %1823 = vmatprep.subr.bf16.mxu1 %v1847_v7  ;;  %v1874_v32 = vld [vmem:[%s1943_s28 + $0x60] sm:$0xff]   ;;  %v1876_v34 = vld [vmem:[%s1943_s28 + $0x68] sm:$0xff]   ;;  %v1878_v36 = vld [vmem:[%s1943_s28 + $0x70] sm:$0xff]  }
  0x1a   : > { %v1875_v33 = vld [vmem:[%s1943_s28 + $0xe0] sm:$0xff]   ;;  %v1877_v35 = vld [vmem:[%s1943_s28 + $0xe8] sm:$0xff]   ;;  %v1879_v37 = vld [vmem:[%s1943_s28 + $0xf0] sm:$0xff]  }
  0x1b   : > { %v1880_v38 = vld [vmem:[%s1943_s28 + $0x78] sm:$0xff]  }
  0x1c   : > { %1749 = vmatpush3.bf16.msra.mxu0 %v1847_v7  ;;  %1831 = vmatpush3.bf16.msra.mxu1 %v1847_v7  ;;  %v1881_v39 = vld [vmem:[%s1943_s28 + $0xf8] sm:$0xff]  }
  0x1d   : > { %1750 = vmatprep.subr.bf16.mxu0 %v1848_v8  ;;  %1824 = vmatprep.subr.bf16.mxu1 %v1848_v8 }
  0x20   : > { %1751 = vmatpush3.bf16.msra.mxu0 %v1848_v8  ;;  %1832 = vmatpush3.bf16.msra.mxu1 %v1848_v8 }
  0x21   : > { %1752 = vmatprep.subr.bf16.mxu0 %v1849_v9  ;;  %1825 = vmatprep.subr.bf16.mxu1 %v1849_v9 }
  0x24   : > { %1753 = vmatpush3.bf16.msra.mxu0 %v1849_v9  ;;  %1833 = vmatpush3.bf16.msra.mxu1 %v1849_v9 }
  0x27   : > { %1755 = vmatmul.mubr.bf16.vlgmr.msra.gmra.mrb[0].mxu0 %v1852_v10  ;;  %1787 = vmatmul.mubr.bf16.vlgmr.msra.gmra.mrb[0].mxu1 %v1853_v11 }
  0x28   : > { %1758 = vmatprep.mubr.bf16.mxu0 %v1854_v12  ;;  %1790 = vmatprep.mubr.bf16.mxu1 %v1855_v13 }
  0x2f   : > { %1759 = vmatmul.mubr.bf16.gmra.mrb[4].mxu0 %v1856_v14  ;;  %1791 = vmatmul.mubr.bf16.gmra.mrb[4].mxu1 %v1857_v15 }
  0x30   : > { %1762 = vmatprep.mubr.bf16.mxu0 %v1858_v16  ;;  %1794 = vmatprep.mubr.bf16.mxu1 %v1859_v17 }
  0x37   : > { %1763 = vmatmul.mubr.bf16.gmra.mrb[8].mxu0 %v1860_v18  ;;  %1795 = vmatmul.mubr.bf16.gmra.mrb[8].mxu1 %v1861_v19 }
  0x38   : > { %1766 = vmatprep.mubr.bf16.mxu0 %v1862_v20  ;;  %1798 = vmatprep.mubr.bf16.mxu1 %v1863_v21 }
  0x3f   : > { %1767 = vmatmul.mubr.bf16.gmra.mrb[12].mxu0 %v1864_v22  ;;  %1799 = vmatmul.mubr.bf16.gmra.mrb[12].mxu1 %v1865_v23 }
  0x40   : > { %1770 = vmatprep.mubr.bf16.mxu0 %v1866_v24  ;;  %1802 = vmatprep.mubr.bf16.mxu1 %v1867_v25 }
  0x47   : > { %1771 = vmatmul.mubr.bf16.gmra.mrb[16].mxu0 %v1868_v26  ;;  %1803 = vmatmul.mubr.bf16.gmra.mrb[16].mxu1 %v1869_v27 }
  0x48   : > { %1774 = vmatprep.mubr.bf16.mxu0 %v1870_v28  ;;  %1806 = vmatprep.mubr.bf16.mxu1 %v1871_v29 }
  0x4f   : > { %1775 = vmatmul.mubr.bf16.gmra.mrb[20].mxu0 %v1872_v30  ;;  %1807 = vmatmul.mubr.bf16.gmra.mrb[20].mxu1 %v1873_v31 }
  0x50   : > { %1778 = vmatprep.mubr.bf16.mxu0 %v1874_v32  ;;  %1810 = vmatprep.mubr.bf16.mxu1 %v1875_v33 }
  0x57   : > { %1779 = vmatmul.mubr.bf16.gmra.mrb[24].mxu0 %v1876_v34  ;;  %1811 = vmatmul.mubr.bf16.gmra.mrb[24].mxu1 %v1877_v35 }
  0x58   : > { %1782 = vmatprep.mubr.bf16.mxu0 %v1878_v36  ;;  %1814 = vmatprep.mubr.bf16.mxu1 %v1879_v37 }
  0x5f   : > { %1783 = vmatmul.mubr.bf16.gmra.mrb[28].mxu0 %v1880_v38  ;;  %1815 = vmatmul.mubr.bf16.gmra.mrb[28].mxu1 %v1881_v39 }
  0xfa   : > { %v1756_v41 = vpop.f32.mrb[0].mxu0  ;;  %v1788_v43 = vpop.f32.mrb[0].mxu1 }
  0xfb   : > { %v816_v44 = vmul.f32 %v1756_v41, %v1992_v40  ;;  %v848_v45 = vmul.f32 %v1788_v43, %v1992_v40  ;;  %v557_v46 = vpop.f32.mrb[1].mxu0  ;;  %v685_v47 = vpop.f32.mrb[1].mxu1 }
  0xfc   : > { %v814_v48 = vmul.f32 %v1992_v40, %v557_v46  ;;  %v846_v49 = vmul.f32 %v1992_v40, %v685_v47  ;;  %v1757_v50 = vpop.f32.mrb[2].mxu0  ;;  %v1789_v51 = vpop.f32.mrb[2].mxu1 }
  0xfd   : > { %v887_v52 = vadd.f32 %v1997_v42, %v816_v44  ;;  %v919_v53 = vadd.f32 %v1997_v42, %v848_v45  ;;  %v817_v54 = vmul.f32 %v1757_v50, %v1992_v40  ;;  %v849_v55 = vmul.f32 %v1789_v51, %v1992_v40  ;;  %v560_v56 = vpop.f32.mrb[3].mxu0  ;;  %v688_v57 = vpop.f32.mrb[3].mxu1 }
  0xfe   : > { %v885_v58 = vadd.f32 %v1997_v42, %v814_v48  ;;  %v917_v59 = vadd.f32 %v1997_v42, %v846_v49  ;;  %v815_v60 = vmul.f32 %v1992_v40, %v560_v56  ;;  %v847_v61 = vmul.f32 %v1992_v40, %v688_v57 }
  0xff   : > { %vm951_vm1 = vcmp.gt.f32.partialorder %v887_v52, 0.0  ;;  %v1015_v62 = vmul.f32 0.2, %v887_v52  ;;  %vm983_vm2 = vcmp.gt.f32.partialorder %v919_v53, 0.0  ;;  %v1047_v63 = vmul.f32 0.2, %v919_v53 }
 0x100   : > { %vm949_vm3 = vcmp.gt.f32.partialorder %v885_v58, 0.0  ;;  %v1013_v0 = vmul.f32 0.2, %v885_v58  ;;  %vm981_vm4 = vcmp.gt.f32.partialorder %v917_v59, 0.0  ;;  %v1045_v1 = vmul.f32 0.2, %v917_v59 }
 0x101   : > { %v1079_v2 = vsel %vm951_vm1, %v887_v52, %v1015_v62  ;;  %v1111_v3 = vsel %vm983_vm2, %v919_v53, %v1047_v63  ;;  %v888_v4 = vadd.f32 %v1997_v42, %v817_v54  ;;  %v920_v5 = vadd.f32 %v1997_v42, %v849_v55 }
 0x102   : > { %v1636_v6 = vpack.c.bf16 %v1079_v2, %v1079_v2  ;;  %v1668_v7 = vpack.c.bf16 %v1111_v3, %v1111_v3  ;;  %v1077_v8 = vsel %vm949_vm3, %v885_v58, %v1013_v0  ;;  %v1109_v9 = vsel %vm981_vm4, %v917_v59, %v1045_v1  ;;  %v1760_v10 = vpop.f32.mrb[4].mxu0  ;;  %v1792_v11 = vpop.f32.mrb[4].mxu1 }
 0x103   : > { %v1634_v12 = vpack.c.bf16 %v1077_v8, %v1077_v8  ;;  %v1666_v13 = vpack.c.bf16 %v1109_v9, %v1109_v9  ;;  %vm952_vm5 = vcmp.gt.f32.partialorder %v888_v4, 0.0  ;;  %v1016_v14 = vmul.f32 0.2, %v888_v4  ;;  %v573_v15 = vpop.f32.mrb[5].mxu0  ;;  %v701_v16 = vpop.f32.mrb[5].mxu1 }
 0x104   : > { %1400 = vst.msk [vmem:[%s2016_s19 + $0x8] sm:$0xf] %vm1397_vm0, %v1636_v6  ;;  %1432 = vst.msk [vmem:[%s2016_s19 + $0x88] sm:$0xf] %vm1397_vm0, %v1668_v7  ;;  %vm984_vm6 = vcmp.gt.f32.partialorder %v920_v5, 0.0  ;;  %v886_v18 = vadd.f32 %v1997_v42, %v815_v60  ;;  %v918_v19 = vadd.f32 %v1997_v42, %v847_v61  ;;  %v1761_v20 = vpop.f32.mrb[6].mxu0  ;;  %v820_v23 = vmul.f32 %v1760_v10, %v1992_v40 }
 0x105   : > { %v1048_v17 = vmul.f32 0.2, %v920_v5  ;;  %v1793_v21 = vpop.f32.mrb[6].mxu1  ;;  %1398 = vst.msk [vmem:[%s2016_s19] sm:$0xf] %vm1397_vm0, %v1634_v12  ;;  %v1080_v22 = vsel %vm952_vm5, %v888_v4, %v1016_v14  ;;  %v852_v24 = vmul.f32 %v1792_v11, %v1992_v40  ;;  %v818_v25 = vmul.f32 %v1992_v40, %v573_v15  ;;  %v576_v26 = vpop.f32.mrb[7].mxu0 }
 0x106   : > { %1430 = vst.msk [vmem:[%s2016_s19 + $0x80] sm:$0xf] %vm1397_vm0, %v1666_v13  ;;  %v704_v27 = vpop.f32.mrb[7].mxu1  ;;  %v1637_v28 = vpack.c.bf16 %v1080_v22, %v1080_v22  ;;  %vm950_vm7 = vcmp.gt.f32.partialorder %v886_v18, 0.0  ;;  %v1014_v30 = vmul.f32 0.2, %v886_v18  ;;  %v891_v33 = vadd.f32 %v1997_v42, %v820_v23 }
 0x107   : > { %v1112_v29 = vsel %vm984_vm6, %v920_v5, %v1048_v17  ;;  %vm982_vm8 = vcmp.gt.f32.partialorder %v918_v19, 0.0  ;;  %v1046_v32 = vmul.f32 0.2, %v918_v19  ;;  %v923_v35 = vadd.f32 %v1997_v42, %v852_v24 }
 0x108   : > { %v1669_v31 = vpack.c.bf16 %v1112_v29, %v1112_v29  ;;  %1401 = vst.msk [vmem:[%s2016_s19 + $0xc] sm:$0xf] %vm1397_vm0, %v1637_v28  ;;  %v1078_v34 = vsel %vm950_vm7, %v886_v18, %v1014_v30  ;;  %v889_v36 = vadd.f32 %v1997_v42, %v818_v25  ;;  %v850_v37 = vmul.f32 %v1992_v40, %v701_v16 }
 0x109   : > { %v1635_v38 = vpack.c.bf16 %v1078_v34, %v1078_v34  ;;  %v1110_v39 = vsel %vm982_vm8, %v918_v19, %v1046_v32  ;;  %vm955_vm9 = vcmp.gt.f32.partialorder %v891_v33, 0.0  ;;  %v1019_v41 = vmul.f32 0.2, %v891_v33 }
 0x10a   : > { %1433 = vst.msk [vmem:[%s2016_s19 + $0x8c] sm:$0xf] %vm1397_vm0, %v1669_v31  ;;  %v1667_v43 = vpack.c.bf16 %v1110_v39, %v1110_v39  ;;  %vm987_vm10 = vcmp.gt.f32.partialorder %v923_v35, 0.0  ;;  %v1051_v44 = vmul.f32 0.2, %v923_v35  ;;  %vm953_vm11 = vcmp.gt.f32.partialorder %v889_v36, 0.0 }
 0x10b   : > { %v1764_v45 = vpop.f32.mrb[8].mxu0  ;;  %v1796_v46 = vpop.f32.mrb[8].mxu1  ;;  %1399 = vst.msk [vmem:[%s2016_s19 + $0x4] sm:$0xf] %vm1397_vm0, %v1635_v38  ;;  %v1083_v47 = vsel %vm955_vm9, %v891_v33, %v1019_v41  ;;  %v1017_v48 = vmul.f32 0.2, %v889_v36  ;;  %v921_v49 = vadd.f32 %v1997_v42, %v850_v37  ;;  %v821_v50 = vmul.f32 %v1761_v20, %v1992_v40 }
 0x10c   : > { %v589_v51 = vpop.f32.mrb[9].mxu0  ;;  %v717_v52 = vpop.f32.mrb[9].mxu1  ;;  %1431 = vst.msk [vmem:[%s2016_s19 + $0x84] sm:$0xf] %vm1397_vm0, %v1667_v43  ;;  %v1640_v53 = vpack.c.bf16 %v1083_v47, %v1083_v47  ;;  %v1115_v54 = vsel %vm987_vm10, %v923_v35, %v1051_v44  ;;  %v853_v55 = vmul.f32 %v1793_v21, %v1992_v40  ;;  %v819_v56 = vmul.f32 %v1992_v40, %v576_v26 }
 0x10d   : > { %v1765_v57 = vpop.f32.mrb[10].mxu0  ;;  %v1797_v58 = vpop.f32.mrb[10].mxu1  ;;  %v1672_v59 = vpack.c.bf16 %v1115_v54, %v1115_v54  ;;  %v1081_v60 = vsel %vm953_vm11, %v889_v36, %v1017_v48  ;;  %vm985_vm12 = vcmp.gt.f32.partialorder %v921_v49, 0.0  ;;  %v1049_v61 = vmul.f32 0.2, %v921_v49 }
 0x10e   : > { %v2050_v62 = vpop.f32.mrb[11].mxu0  ;;  %v2052_v63 = vpop.f32.mrb[11].mxu1  ;;  %1404 = vst.msk [vmem:[%s2016_s19 + $0x18] sm:$0xf] %vm1397_vm0, %v1640_v53  ;;  %v1638_v0 = vpack.c.bf16 %v1081_v60, %v1081_v60  ;;  %v892_v1 = vadd.f32 %v1997_v42, %v821_v50  ;;  %v924_v2 = vadd.f32 %v1997_v42, %v853_v55  ;;  %v890_v3 = vadd.f32 %v1997_v42, %v819_v56 }
 0x10f   : > { %1436 = vst.msk [vmem:[%s2016_s19 + $0x98] sm:$0xf] %vm1397_vm0, %v1672_v59  ;;  %v1113_v4 = vsel %vm985_vm12, %v921_v49, %v1049_v61  ;;  %v851_v5 = vmul.f32 %v1992_v40, %v704_v27  ;;  %v824_v6 = vmul.f32 %v1764_v45, %v1992_v40  ;;  %v856_v7 = vmul.f32 %v1796_v46, %v1992_v40 }
 0x110   : > { %1402 = vst.msk [vmem:[%s2016_s19 + $0x10] sm:$0xf] %vm1397_vm0, %v1638_v0  ;;  %v1670_v8 = vpack.c.bf16 %v1113_v4, %v1113_v4  ;;  %vm956_vm13 = vcmp.gt.f32.partialorder %v892_v1, 0.0  ;;  %v1020_v9 = vmul.f32 0.2, %v892_v1  ;;  %vm988_vm14 = vcmp.gt.f32.partialorder %v924_v2, 0.0 }
 0x111   : > { %v1052_v10 = vmul.f32 0.2, %v924_v2  ;;  %vm954_vm15 = vcmp.gt.f32.partialorder %v890_v3, 0.0  ;;  %v1018_v11 = vmul.f32 0.2, %v890_v3  ;;  %v922_v12 = vadd.f32 %v1997_v42, %v851_v5 }
 0x112   : > { %1434 = vst.msk [vmem:[%s2016_s19 + $0x90] sm:$0xf] %vm1397_vm0, %v1670_v8  ;;  %v1084_v13 = vsel %vm956_vm13, %v892_v1, %v1020_v9  ;;  %v895_v14 = vadd.f32 %v1997_v42, %v824_v6  ;;  %v927_v15 = vadd.f32 %v1997_v42, %v856_v7  ;;  %v822_v16 = vmul.f32 %v1992_v40, %v589_v51  ;;  %v1768_v17 = vpop.f32.mrb[12].mxu0  ;;  %v2072_v18 = vpop.f32.mrb[12].mxu1 }
 0x113   : > { %v1641_v19 = vpack.c.bf16 %v1084_v13, %v1084_v13  ;;  %v1116_v20 = vsel %vm988_vm14, %v924_v2, %v1052_v10  ;;  %v1082_v21 = vsel %vm954_vm15, %v890_v3, %v1018_v11  ;;  %vm986_vm1 = vcmp.gt.f32.partialorder %v922_v12, 0.0  ;;  %v2074_v22 = vpop.f32.mrb[13].mxu0  ;;  %v2076_v23 = vpop.f32.mrb[13].mxu1 }
 0x114   : > { %v1673_v24 = vpack.c.bf16 %v1116_v20, %v1116_v20  ;;  %v1639_v25 = vpack.c.bf16 %v1082_v21, %v1082_v21  ;;  %v1050_v26 = vmul.f32 0.2, %v922_v12  ;;  %vm959_vm2 = vcmp.gt.f32.partialorder %v895_v14, 0.0  ;;  %v2078_v27 = vpop.f32.mrb[14].mxu0  ;;  %v2080_v28 = vpop.f32.mrb[14].mxu1 }
 0x115   : > { %1405 = vst.msk [vmem:[%s2016_s19 + $0x1c] sm:$0xf] %vm1397_vm0, %v1641_v19  ;;  %v1023_v29 = vmul.f32 0.2, %v895_v14  ;;  %vm991_vm3 = vcmp.gt.f32.partialorder %v927_v15, 0.0  ;;  %v893_v31 = vadd.f32 %v1997_v42, %v822_v16  ;;  %v2085_v32 = vpop.f32.mrb[15].mxu0  ;;  %v854_v34 = vmul.f32 %v1992_v40, %v717_v52 }
 0x116   : > { %v1055_v30 = vmul.f32 0.2, %v927_v15  ;;  %1437 = vst.msk [vmem:[%s2016_s19 + $0x9c] sm:$0xf] %vm1397_vm0, %v1673_v24  ;;  %1403 = vst.msk [vmem:[%s2016_s19 + $0x14] sm:$0xf] %vm1397_vm0, %v1639_v25  ;;  %v1114_v33 = vsel %vm986_vm1, %v922_v12, %v1050_v26  ;;  %v825_v35 = vmul.f32 %v1765_v57, %v1992_v40  ;;  %v857_v36 = vmul.f32 %v1797_v58, %v1992_v40 }
 0x117   : > { %v2095_v37 = vpop.f32.mrb[15].mxu1  ;;  %v1671_v38 = vpack.c.bf16 %v1114_v33, %v1114_v33  ;;  %v1087_v39 = vsel %vm959_vm2, %v895_v14, %v1023_v29  ;;  %vm957_vm4 = vcmp.gt.f32.partialorder %v893_v31, 0.0  ;;  %v1021_v45 = vmul.f32 0.2, %v893_v31 }
 0x118   : > { %v1119_v41 = vsel %vm991_vm3, %v927_v15, %v1055_v30  ;;  %v1644_v43 = vpack.c.bf16 %v1087_v39, %v1087_v39  ;;  %v925_v46 = vadd.f32 %v1997_v42, %v854_v34  ;;  %v896_v47 = vadd.f32 %v1997_v42, %v825_v35 }
 0x119   : > { %v1676_v44 = vpack.c.bf16 %v1119_v41, %v1119_v41  ;;  %1435 = vst.msk [vmem:[%s2016_s19 + $0x94] sm:$0xf] %vm1397_vm0, %v1671_v38  ;;  %v928_v48 = vadd.f32 %v1997_v42, %v857_v36  ;;  %v823_v49 = vmul.f32 %v1992_v40, %v2050_v62  ;;  %v855_v50 = vmul.f32 %v1992_v40, %v2052_v63 }
 0x11a   : > { %1408 = vst.msk [vmem:[%s2016_s19 + $0x28] sm:$0xf] %vm1397_vm0, %v1644_v43  ;;  %v1085_v51 = vsel %vm957_vm4, %v893_v31, %v1021_v45  ;;  %vm989_vm5 = vcmp.gt.f32.partialorder %v925_v46, 0.0  ;;  %v1053_v52 = vmul.f32 0.2, %v925_v46  ;;  %v828_v53 = vmul.f32 %v1768_v17, %v1992_v40  ;;  %v2112_v54 = vpop.f32.mrb[16].mxu0 }
 0x11b   : > { %1440 = vst.msk [vmem:[%s2016_s19 + $0xa8] sm:$0xf] %vm1397_vm0, %v1676_v44  ;;  %v2114_v55 = vpop.f32.mrb[16].mxu1  ;;  %v1642_v56 = vpack.c.bf16 %v1085_v51, %v1085_v51  ;;  %vm960_vm6 = vcmp.gt.f32.partialorder %v896_v47, 0.0  ;;  %v1024_v57 = vmul.f32 0.2, %v896_v47  ;;  %v894_v62 = vadd.f32 %v1997_v42, %v823_v49 }
 0x11c   : > { %vm992_vm7 = vcmp.gt.f32.partialorder %v928_v48, 0.0  ;;  %v2116_v58 = vpop.f32.mrb[17].mxu0  ;;  %v2118_v59 = vpop.f32.mrb[17].mxu1  ;;  %v1117_v60 = vsel %vm989_vm5, %v925_v46, %v1053_v52  ;;  %v1056_v61 = vmul.f32 0.2, %v928_v48  ;;  %v926_v63 = vadd.f32 %v1997_v42, %v855_v50 }
 0x11d   : > { %v2122_v0 = vpop.f32.mrb[18].mxu0  ;;  %v2124_v1 = vpop.f32.mrb[18].mxu1  ;;  %1406 = vst.msk [vmem:[%s2016_s19 + $0x20] sm:$0xf] %vm1397_vm0, %v1642_v56  ;;  %v1674_v2 = vpack.c.bf16 %v1117_v60, %v1117_v60  ;;  %v1088_v3 = vsel %vm960_vm6, %v896_v47, %v1024_v57  ;;  %v899_v4 = vadd.f32 %v1997_v42, %v828_v53  ;;  %v860_v5 = vmul.f32 %v2072_v18, %v1992_v40 }
 0x11e   : > { %v2131_v6 = vpop.f32.mrb[19].mxu0  ;;  %v2133_v7 = vpop.f32.mrb[19].mxu1  ;;  %v1645_v8 = vpack.c.bf16 %v1088_v3, %v1088_v3  ;;  %v1120_v9 = vsel %vm992_vm7, %v928_v48, %v1056_v61  ;;  %vm958_vm8 = vcmp.gt.f32.partialorder %v894_v62, 0.0  ;;  %v1022_v10 = vmul.f32 0.2, %v894_v62 }
 0x11f   : > { %1438 = vst.msk [vmem:[%s2016_s19 + $0xa0] sm:$0xf] %vm1397_vm0, %v1674_v2  ;;  %v1677_v11 = vpack.c.bf16 %v1120_v9, %v1120_v9  ;;  %vm990_vm9 = vcmp.gt.f32.partialorder %v926_v63, 0.0  ;;  %v1054_v12 = vmul.f32 0.2, %v926_v63  ;;  %vm963_vm10 = vcmp.gt.f32.partialorder %v899_v4, 0.0 }
 0x120   : > { %1409 = vst.msk [vmem:[%s2016_s19 + $0x2c] sm:$0xf] %vm1397_vm0, %v1645_v8  ;;  %v1086_v13 = vsel %vm958_vm8, %v894_v62, %v1022_v10  ;;  %v1027_v14 = vmul.f32 0.2, %v899_v4  ;;  %v931_v15 = vadd.f32 %v1997_v42, %v860_v5  ;;  %v826_v16 = vmul.f32 %v1992_v40, %v2074_v22 }
 0x121   : > { %1441 = vst.msk [vmem:[%s2016_s19 + $0xac] sm:$0xf] %vm1397_vm0, %v1677_v11  ;;  %v1643_v17 = vpack.c.bf16 %v1086_v13, %v1086_v13  ;;  %v1118_v18 = vsel %vm990_vm9, %v926_v63, %v1054_v12  ;;  %v858_v19 = vmul.f32 %v1992_v40, %v2076_v23  ;;  %v829_v20 = vmul.f32 %v2078_v27, %v1992_v40 }
 0x122   : > { %v1675_v21 = vpack.c.bf16 %v1118_v18, %v1118_v18  ;;  %v1091_v24 = vsel %vm963_vm10, %v899_v4, %v1027_v14  ;;  %vm995_vm11 = vcmp.gt.f32.partialorder %v931_v15, 0.0  ;;  %v1059_v25 = vmul.f32 0.2, %v931_v15  ;;  %v2149_v26 = vpop.f32.mrb[20].mxu0  ;;  %v2151_v29 = vpop.f32.mrb[20].mxu1 }
 0x123   : > { %1407 = vst.msk [vmem:[%s2016_s19 + $0x24] sm:$0xf] %vm1397_vm0, %v1643_v17  ;;  %v1648_v22 = vpack.c.bf16 %v1091_v24, %v1091_v24  ;;  %v897_v30 = vadd.f32 %v1997_v42, %v826_v16  ;;  %v929_v31 = vadd.f32 %v1997_v42, %v858_v19  ;;  %v900_v23 = vadd.f32 %v1997_v42, %v829_v20  ;;  %v2158_v33 = vpop.f32.mrb[21].mxu0  ;;  %v2160_v27 = vpop.f32.mrb[21].mxu1 }
 0x124   : > { %1439 = vst.msk [vmem:[%s2016_s19 + $0xa4] sm:$0xf] %vm1397_vm0, %v1675_v21  ;;  %v1123_v34 = vsel %vm995_vm11, %v931_v15, %v1059_v25  ;;  %v861_v35 = vmul.f32 %v2080_v28, %v1992_v40  ;;  %v827_v36 = vmul.f32 %v1992_v40, %v2085_v32  ;;  %v859_v38 = vmul.f32 %v1992_v40, %v2095_v37  ;;  %v2170_v39 = vpop.f32.mrb[22].mxu0  ;;  %v2172_v41 = vpop.f32.mrb[22].mxu1 }
 0x125   : > { %1412 = vst.msk [vmem:[%s2016_s19 + $0x38] sm:$0xf] %vm1397_vm0, %v1648_v22  ;;  %v1680_v43 = vpack.c.bf16 %v1123_v34, %v1123_v34  ;;  %vm961_vm12 = vcmp.gt.f32.partialorder %v897_v30, 0.0  ;;  %v1025_v44 = vmul.f32 0.2, %v897_v30  ;;  %vm993_vm13 = vcmp.gt.f32.partialorder %v929_v31, 0.0 }
 0x126   : > { %v2176_v45 = vpop.f32.mrb[23].mxu0  ;;  %v2178_v28 = vpop.f32.mrb[23].mxu1  ;;  %v1057_v46 = vmul.f32 0.2, %v929_v31  ;;  %vm964_vm14 = vcmp.gt.f32.partialorder %v900_v23, 0.0  ;;  %v932_v37 = vadd.f32 %v1997_v42, %v861_v35  ;;  %v898_v48 = vadd.f32 %v1997_v42, %v827_v36 }
 0x127   : > { %v1028_v32 = vmul.f32 0.2, %v900_v23  ;;  %1444 = vst.msk [vmem:[%s2016_s19 + $0xb8] sm:$0xf] %vm1397_vm0, %v1680_v43  ;;  %v1089_v47 = vsel %vm961_vm12, %v897_v30, %v1025_v44  ;;  %v930_v49 = vadd.f32 %v1997_v42, %v859_v38  ;;  %v832_v50 = vmul.f32 %v2112_v54, %v1992_v40 }
 0x128   : > { %v1646_v51 = vpack.c.bf16 %v1089_v47, %v1089_v47  ;;  %v1121_v52 = vsel %vm993_vm13, %v929_v31, %v1057_v46  ;;  %vm996_vm15 = vcmp.gt.f32.partialorder %v932_v37, 0.0  ;;  %v1060_v60 = vmul.f32 0.2, %v932_v37 }
 0x129   : > { %v1092_v53 = vsel %vm964_vm14, %v900_v23, %v1028_v32  ;;  %v1678_v56 = vpack.c.bf16 %v1121_v52, %v1121_v52  ;;  %vm962_vm1 = vcmp.gt.f32.partialorder %v898_v48, 0.0  ;;  %v1026_v61 = vmul.f32 0.2, %v898_v48 }
 0x12a   : > { %v1649_v57 = vpack.c.bf16 %v1092_v53, %v1092_v53  ;;  %1410 = vst.msk [vmem:[%s2016_s19 + $0x30] sm:$0xf] %vm1397_vm0, %v1646_v51  ;;  %vm994_vm2 = vcmp.gt.f32.partialorder %v930_v49, 0.0  ;;  %v1058_v62 = vmul.f32 0.2, %v930_v49  ;;  %v903_v63 = vadd.f32 %v1997_v42, %v832_v50  ;;  %v2190_v2 = vpop.f32.mrb[24].mxu0 }
 0x12b   : > { %1442 = vst.msk [vmem:[%s2016_s19 + $0xb0] sm:$0xf] %vm1397_vm0, %v1678_v56  ;;  %v1124_v54 = vsel %vm996_vm15, %v932_v37, %v1060_v60  ;;  %v864_v3 = vmul.f32 %v2114_v55, %v1992_v40  ;;  %v830_v4 = vmul.f32 %v1992_v40, %v2116_v58  ;;  %v862_v5 = vmul.f32 %v1992_v40, %v2118_v59  ;;  %v2202_v8 = vpop.f32.mrb[24].mxu1  ;;  %v2204_v9 = vpop.f32.mrb[25].mxu0 }
 0x12c   : > { %1413 = vst.msk [vmem:[%s2016_s19 + $0x3c] sm:$0xf] %vm1397_vm0, %v1649_v57  ;;  %v1681_v10 = vpack.c.bf16 %v1124_v54, %v1124_v54  ;;  %v1090_v11 = vsel %vm962_vm1, %v898_v48, %v1026_v61  ;;  %v1122_v12 = vsel %vm994_vm2, %v930_v49, %v1058_v62  ;;  %vm967_vm3 = vcmp.gt.f32.partialorder %v903_v63, 0.0  ;;  %v2207_v13 = vpop.f32.mrb[25].mxu1  ;;  %v2209_v55 = vpop.f32.mrb[26].mxu0 }
 0x12d   : > { %v1647_v58 = vpack.c.bf16 %v1090_v11, %v1090_v11  ;;  %v1679_v14 = vpack.c.bf16 %v1122_v12, %v1122_v12  ;;  %v1031_v15 = vmul.f32 0.2, %v903_v63  ;;  %v935_v59 = vadd.f32 %v1997_v42, %v864_v3  ;;  %v2212_v16 = vpop.f32.mrb[26].mxu1  ;;  %v2214_v17 = vpop.f32.mrb[27].mxu0 }
 0x12e   : > { %1445 = vst.msk [vmem:[%s2016_s19 + $0xbc] sm:$0xf] %vm1397_vm0, %v1681_v10  ;;  %v901_v18 = vadd.f32 %v1997_v42, %v830_v4  ;;  %v933_v19 = vadd.f32 %v1997_v42, %v862_v5  ;;  %v833_v20 = vmul.f32 %v2122_v0, %v1992_v40  ;;  %v865_v21 = vmul.f32 %v2124_v1, %v1992_v40  ;;  %v2224_v24 = vpop.f32.mrb[27].mxu1 }
 0x12f   : > { %1411 = vst.msk [vmem:[%s2016_s19 + $0x34] sm:$0xf] %vm1397_vm0, %v1647_v58  ;;  %1443 = vst.msk [vmem:[%s2016_s19 + $0xb4] sm:$0xf] %vm1397_vm0, %v1679_v14  ;;  %v1095_v25 = vsel %vm967_vm3, %v903_v63, %v1031_v15  ;;  %vm999_vm4 = vcmp.gt.f32.partialorder %v935_v59, 0.0  ;;  %v831_v30 = vmul.f32 %v1992_v40, %v2131_v6  ;;  %v863_v6 = vmul.f32 %v1992_v40, %v2133_v7 }
 0x130   : > { %v1063_v22 = vmul.f32 0.2, %v935_v59  ;;  %v1652_v31 = vpack.c.bf16 %v1095_v25, %v1095_v25  ;;  %vm965_vm5 = vcmp.gt.f32.partialorder %v901_v18, 0.0  ;;  %v1029_v0 = vmul.f32 0.2, %v901_v18 }
 0x131   : > { %vm997_vm6 = vcmp.gt.f32.partialorder %v933_v19, 0.0  ;;  %v1061_v1 = vmul.f32 0.2, %v933_v19  ;;  %v904_v34 = vadd.f32 %v1997_v42, %v833_v20  ;;  %v936_v35 = vadd.f32 %v1997_v42, %v865_v21 }
 0x132   : > { %v1127_v23 = vsel %vm999_vm4, %v935_v59, %v1063_v22  ;;  %1416 = vst.msk [vmem:[%s2016_s19 + $0x48] sm:$0xf] %vm1397_vm0, %v1652_v31  ;;  %v1093_v38 = vsel %vm965_vm5, %v901_v18, %v1029_v0  ;;  %v902_v43 = vadd.f32 %v1997_v42, %v831_v30  ;;  %v2240_v44 = vpop.f32.mrb[28].mxu0  ;;  %v2242_v46 = vpop.f32.mrb[28].mxu1  ;;  %v934_v57 = vadd.f32 %v1997_v42, %v863_v6 }
 0x133   : > { %v1684_v36 = vpack.c.bf16 %v1127_v23, %v1127_v23  ;;  %v1650_v32 = vpack.c.bf16 %v1093_v38, %v1093_v38  ;;  %v1125_v37 = vsel %vm997_vm6, %v933_v19, %v1061_v1  ;;  %vm968_vm7 = vcmp.gt.f32.partialorder %v904_v34, 0.0  ;;  %v2244_v48 = vpop.f32.mrb[29].mxu0  ;;  %v2246_v49 = vpop.f32.mrb[29].mxu1 }
 0x134   : > { %v1032_v47 = vmul.f32 0.2, %v904_v34  ;;  %v1682_v50 = vpack.c.bf16 %v1125_v37, %v1125_v37  ;;  %vm1000_vm8 = vcmp.gt.f32.partialorder %v936_v35, 0.0  ;;  %v1064_v51 = vmul.f32 0.2, %v936_v35  ;;  %v2250_v7 = vpop.f32.mrb[30].mxu0 }
 0x135   : > { %1448 = vst.msk [vmem:[%s2016_s19 + $0xc8] sm:$0xf] %vm1397_vm0, %v1684_v36  ;;  %vm966_vm9 = vcmp.gt.f32.partialorder %v902_v43, 0.0  ;;  %v2252_v52 = vpop.f32.mrb[30].mxu1  ;;  %1414 = vst.msk [vmem:[%s2016_s19 + $0x40] sm:$0xf] %vm1397_vm0, %v1650_v32  ;;  %v836_v60 = vmul.f32 %v2149_v26, %v1992_v40  ;;  %v868_v3 = vmul.f32 %v2151_v29, %v1992_v40  ;;  %v834_v4 = vmul.f32 %v1992_v40, %v2158_v33 }
 0x136   : > { %v1096_v53 = vsel %vm968_vm7, %v904_v34, %v1032_v47  ;;  %v1030_v56 = vmul.f32 0.2, %v902_v43  ;;  %v2259_v61 = vpop.f32.mrb[31].mxu0  ;;  %v2261_v62 = vpop.f32.mrb[31].mxu1  ;;  %1446 = vst.msk [vmem:[%s2016_s19 + $0xc0] sm:$0xf] %vm1397_vm0, %v1682_v50  ;;  %v1128_v54 = vsel %vm1000_vm8, %v936_v35, %v1064_v51  ;;  %v866_v33 = vmul.f32 %v1992_v40, %v2160_v27 }
 0x137   : > { %v1653_v63 = vpack.c.bf16 %v1096_v53, %v1096_v53  ;;  %v1685_v5 = vpack.c.bf16 %v1128_v54, %v1128_v54  ;;  %vm998_vm10 = vcmp.gt.f32.partialorder %v934_v57, 0.0  ;;  %v1062_v26 = vmul.f32 0.2, %v934_v57 }
 0x138   : > { %v1094_v10 = vsel %vm966_vm9, %v902_v43, %v1030_v56  ;;  %v907_v12 = vadd.f32 %v1997_v42, %v836_v60  ;;  %v939_v58 = vadd.f32 %v1997_v42, %v868_v3  ;;  %v905_v14 = vadd.f32 %v1997_v42, %v834_v4 }
 0x139   : > { %1417 = vst.msk [vmem:[%s2016_s19 + $0x4c] sm:$0xf] %vm1397_vm0, %v1653_v63  ;;  %v1651_v11 = vpack.c.bf16 %v1094_v10, %v1094_v10  ;;  %1449 = vst.msk [vmem:[%s2016_s19 + $0xcc] sm:$0xf] %vm1397_vm0, %v1685_v5  ;;  %v1126_v29 = vsel %vm998_vm10, %v934_v57, %v1062_v26  ;;  %v837_v15 = vmul.f32 %v2170_v39, %v1992_v40 }
 0x13a   : > { %v869_v59 = vmul.f32 %v2172_v41, %v1992_v40  ;;  %v1683_v18 = vpack.c.bf16 %v1126_v29, %v1126_v29  ;;  %vm971_vm11 = vcmp.gt.f32.partialorder %v907_v12, 0.0  ;;  %v1035_v19 = vmul.f32 0.2, %v907_v12 }
 0x13b   : > { %1415 = vst.msk [vmem:[%s2016_s19 + $0x44] sm:$0xf] %vm1397_vm0, %v1651_v11  ;;  %vm1003_vm12 = vcmp.gt.f32.partialorder %v939_v58, 0.0  ;;  %v1067_v20 = vmul.f32 0.2, %v939_v58  ;;  %vm969_vm13 = vcmp.gt.f32.partialorder %v905_v14, 0.0  ;;  %v937_v25 = vadd.f32 %v1997_v42, %v866_v33 }
 0x13c   : > { %v1033_v21 = vmul.f32 0.2, %v905_v14  ;;  %1447 = vst.msk [vmem:[%s2016_s19 + $0xc4] sm:$0xf] %vm1397_vm0, %v1683_v18  ;;  %v1099_v27 = vsel %vm971_vm11, %v907_v12, %v1035_v19  ;;  %v908_v39 = vadd.f32 %v1997_v42, %v837_v15  ;;  %v940_v41 = vadd.f32 %v1997_v42, %v869_v59 }
 0x13d   : > { %v835_v22 = vmul.f32 %v1992_v40, %v2176_v45  ;;  %v1656_v30 = vpack.c.bf16 %v1099_v27, %v1099_v27  ;;  %v1131_v31 = vsel %vm1003_vm12, %v939_v58, %v1067_v20  ;;  %vm1001_vm14 = vcmp.gt.f32.partialorder %v937_v25, 0.0 }
 0x13e   : > { %v1097_v0 = vsel %vm969_vm13, %v905_v14, %v1033_v21  ;;  %v1688_v23 = vpack.c.bf16 %v1131_v31, %v1131_v31  ;;  %v1065_v34 = vmul.f32 0.2, %v937_v25  ;;  %vm972_vm15 = vcmp.gt.f32.partialorder %v908_v39, 0.0 }
 0x13f   : > { %v1654_v1 = vpack.c.bf16 %v1097_v0, %v1097_v0  ;;  %1420 = vst.msk [vmem:[%s2016_s19 + $0x58] sm:$0xf] %vm1397_vm0, %v1656_v30  ;;  %v1036_v35 = vmul.f32 0.2, %v908_v39  ;;  %vm1004_vm1 = vcmp.gt.f32.partialorder %v940_v41, 0.0  ;;  %v906_v38 = vadd.f32 %v1997_v42, %v835_v22 }
 0x140   : > { %v1068_v36 = vmul.f32 0.2, %v940_v41  ;;  %1452 = vst.msk [vmem:[%s2016_s19 + $0xd8] sm:$0xf] %vm1397_vm0, %v1688_v23  ;;  %v1129_v45 = vsel %vm1001_vm14, %v937_v25, %v1065_v34  ;;  %v867_v43 = vmul.f32 %v1992_v40, %v2178_v28  ;;  %v840_v6 = vmul.f32 %v2190_v2, %v1992_v40 }
 0x141   : > { %1418 = vst.msk [vmem:[%s2016_s19 + $0x50] sm:$0xf] %vm1397_vm0, %v1654_v1  ;;  %v872_v32 = vmul.f32 %v2202_v8, %v1992_v40  ;;  %v1686_v37 = vpack.c.bf16 %v1129_v45, %v1129_v45  ;;  %v1100_v47 = vsel %vm972_vm15, %v908_v39, %v1036_v35  ;;  %vm970_vm2 = vcmp.gt.f32.partialorder %v906_v38, 0.0 }
 0x142   : > { %v1132_v50 = vsel %vm1004_vm1, %v940_v41, %v1068_v36  ;;  %v1657_v51 = vpack.c.bf16 %v1100_v47, %v1100_v47  ;;  %v1034_v56 = vmul.f32 0.2, %v906_v38  ;;  %v938_v57 = vadd.f32 %v1997_v42, %v867_v43 }
 0x143   : > { %v1689_v53 = vpack.c.bf16 %v1132_v50, %v1132_v50  ;;  %1450 = vst.msk [vmem:[%s2016_s19 + $0xd0] sm:$0xf] %vm1397_vm0, %v1686_v37  ;;  %v911_v28 = vadd.f32 %v1997_v42, %v840_v6  ;;  %v943_v60 = vadd.f32 %v1997_v42, %v872_v32  ;;  %v838_v2 = vmul.f32 %v1992_v40, %v2204_v9 }
 0x144   : > { %v870_v8 = vmul.f32 %v1992_v40, %v2207_v13  ;;  %1421 = vst.msk [vmem:[%s2016_s19 + $0x5c] sm:$0xf] %vm1397_vm0, %v1657_v51  ;;  %v1098_v63 = vsel %vm970_vm2, %v906_v38, %v1034_v56  ;;  %vm1002_vm3 = vcmp.gt.f32.partialorder %v938_v57, 0.0  ;;  %v1066_v54 = vmul.f32 0.2, %v938_v57 }
 0x145   : > { %1453 = vst.msk [vmem:[%s2016_s19 + $0xdc] sm:$0xf] %vm1397_vm0, %v1689_v53  ;;  %v841_v3 = vmul.f32 %v2209_v55, %v1992_v40  ;;  %v1655_v4 = vpack.c.bf16 %v1098_v63, %v1098_v63  ;;  %vm975_vm4 = vcmp.gt.f32.partialorder %v911_v28, 0.0  ;;  %v1039_v5 = vmul.f32 0.2, %v911_v28 }
 0x146   : > { %vm1007_vm5 = vcmp.gt.f32.partialorder %v943_v60, 0.0  ;;  %v1130_v9 = vsel %vm1002_vm3, %v938_v57, %v1066_v54  ;;  %v1071_v10 = vmul.f32 0.2, %v943_v60  ;;  %v909_v26 = vadd.f32 %v1997_v42, %v838_v2 }
 0x147   : > { %v941_v13 = vadd.f32 %v1997_v42, %v870_v8  ;;  %1419 = vst.msk [vmem:[%s2016_s19 + $0x54] sm:$0xf] %vm1397_vm0, %v1655_v4  ;;  %v1687_v11 = vpack.c.bf16 %v1130_v9, %v1130_v9  ;;  %v1103_v12 = vsel %vm975_vm4, %v911_v28, %v1039_v5  ;;  %v912_v58 = vadd.f32 %v1997_v42, %v841_v3 }
 0x148   : > { %v873_v55 = vmul.f32 %v2212_v16, %v1992_v40  ;;  %v1660_v14 = vpack.c.bf16 %v1103_v12, %v1103_v12  ;;  %v1135_v29 = vsel %vm1007_vm5, %v943_v60, %v1071_v10  ;;  %vm973_vm6 = vcmp.gt.f32.partialorder %v909_v26, 0.0 }
 0x149   : > { %v1037_v33 = vmul.f32 0.2, %v909_v26  ;;  %1451 = vst.msk [vmem:[%s2016_s19 + $0xd4] sm:$0xf] %vm1397_vm0, %v1687_v11  ;;  %v1692_v15 = vpack.c.bf16 %v1135_v29, %v1135_v29  ;;  %vm1005_vm7 = vcmp.gt.f32.partialorder %v941_v13, 0.0  ;;  %vm976_vm8 = vcmp.gt.f32.partialorder %v912_v58, 0.0 }
 0x14a   : > { %v1069_v59 = vmul.f32 0.2, %v941_v13  ;;  %1424 = vst.msk [vmem:[%s2016_s19 + $0x68] sm:$0xf] %vm1397_vm0, %v1660_v14  ;;  %v1040_v19 = vmul.f32 0.2, %v912_v58  ;;  %v944_v20 = vadd.f32 %v1997_v42, %v873_v55  ;;  %v839_v16 = vmul.f32 %v1992_v40, %v2214_v17 }
 0x14b   : > { %v1101_v18 = vsel %vm973_vm6, %v909_v26, %v1037_v33  ;;  %1456 = vst.msk [vmem:[%s2016_s19 + $0xe8] sm:$0xf] %vm1397_vm0, %v1692_v15  ;;  %v871_v27 = vmul.f32 %v1992_v40, %v2224_v24  ;;  %v844_v39 = vmul.f32 %v2240_v44, %v1992_v40  ;;  %v876_v44 = vmul.f32 %v2242_v46, %v1992_v40 }
 0x14c   : > { %v1658_v21 = vpack.c.bf16 %v1101_v18, %v1101_v18  ;;  %v1133_v25 = vsel %vm1005_vm7, %v941_v13, %v1069_v59  ;;  %v1104_v22 = vsel %vm976_vm8, %v912_v58, %v1040_v19  ;;  %vm1008_vm9 = vcmp.gt.f32.partialorder %v944_v20, 0.0 }
 0x14d   : > { %v1690_v41 = vpack.c.bf16 %v1133_v25, %v1133_v25  ;;  %v1072_v30 = vmul.f32 0.2, %v944_v20  ;;  %v1661_v31 = vpack.c.bf16 %v1104_v22, %v1104_v22  ;;  %v910_v17 = vadd.f32 %v1997_v42, %v839_v16 }
 0x14e   : > { %1422 = vst.msk [vmem:[%s2016_s19 + $0x60] sm:$0xf] %vm1397_vm0, %v1658_v21  ;;  %v942_v0 = vadd.f32 %v1997_v42, %v871_v27  ;;  %v915_v23 = vadd.f32 %v1997_v42, %v844_v39  ;;  %v842_v1 = vmul.f32 %v1992_v40, %v2244_v48  ;;  %v874_v34 = vmul.f32 %v1992_v40, %v2246_v49 }
 0x14f   : > { %1454 = vst.msk [vmem:[%s2016_s19 + $0xe0] sm:$0xf] %vm1397_vm0, %v1690_v41  ;;  %v1136_v24 = vsel %vm1008_vm9, %v944_v20, %v1072_v30  ;;  %1425 = vst.msk [vmem:[%s2016_s19 + $0x6c] sm:$0xf] %vm1397_vm0, %v1661_v31  ;;  %vm974_vm10 = vcmp.gt.f32.partialorder %v910_v17, 0.0  ;;  %v947_v43 = vadd.f32 %v1997_v42, %v876_v44  ;;  %v845_v6 = vmul.f32 %v2250_v7, %v1992_v40 }
 0x150   : > { %v1693_v35 = vpack.c.bf16 %v1136_v24, %v1136_v24  ;;  %v1038_v36 = vmul.f32 0.2, %v910_v17  ;;  %vm1006_vm11 = vcmp.gt.f32.partialorder %v942_v0, 0.0  ;;  %v1070_v38 = vmul.f32 0.2, %v942_v0 }
 0x151   : > { %vm979_vm12 = vcmp.gt.f32.partialorder %v915_v23, 0.0  ;;  %v1043_v45 = vmul.f32 0.2, %v915_v23  ;;  %v913_v48 = vadd.f32 %v1997_v42, %v842_v1  ;;  %v945_v49 = vadd.f32 %v1997_v42, %v874_v34 }
 0x152   : > { %1457 = vst.msk [vmem:[%s2016_s19 + $0xec] sm:$0xf] %vm1397_vm0, %v1693_v35  ;;  %v1102_v46 = vsel %vm974_vm10, %v910_v17, %v1038_v36  ;;  %v1134_v37 = vsel %vm1006_vm11, %v942_v0, %v1070_v38  ;;  %vm1011_vm13 = vcmp.gt.f32.partialorder %v947_v43, 0.0  ;;  %v1075_v53 = vmul.f32 0.2, %v947_v43 }
 0x153   : > { %v1659_v32 = vpack.c.bf16 %v1102_v46, %v1102_v46  ;;  %v1107_v47 = vsel %vm979_vm12, %v915_v23, %v1043_v45  ;;  %v1691_v50 = vpack.c.bf16 %v1134_v37, %v1134_v37  ;;  %vm977_vm14 = vcmp.gt.f32.partialorder %v913_v48, 0.0 }
 0x154   : > { %v1664_v51 = vpack.c.bf16 %v1107_v47, %v1107_v47  ;;  %v1041_v56 = vmul.f32 0.2, %v913_v48  ;;  %vm1009_vm15 = vcmp.gt.f32.partialorder %v945_v49, 0.0  ;;  %v1073_v57 = vmul.f32 0.2, %v945_v49 }
 0x155   : > { %1423 = vst.msk [vmem:[%s2016_s19 + $0x64] sm:$0xf] %vm1397_vm0, %v1659_v32  ;;  %v916_v28 = vadd.f32 %v1997_v42, %v845_v6  ;;  %1455 = vst.msk [vmem:[%s2016_s19 + $0xe4] sm:$0xf] %vm1397_vm0, %v1691_v50  ;;  %v1139_v7 = vsel %vm1011_vm13, %v947_v43, %v1075_v53  ;;  %v877_v60 = vmul.f32 %v2252_v52, %v1992_v40 }
 0x156   : > { %1428 = vst.msk [vmem:[%s2016_s19 + $0x78] sm:$0xf] %vm1397_vm0, %v1664_v51  ;;  %v843_v2 = vmul.f32 %v1992_v40, %v2259_v61  ;;  %v875_v8 = vmul.f32 %v1992_v40, %v2261_v62  ;;  %v1696_v63 = vpack.c.bf16 %v1139_v7, %v1139_v7  ;;  %v1105_v54 = vsel %vm977_vm14, %v913_v48, %v1041_v56 }
 0x157   : > { %v1137_v3 = vsel %vm1009_vm15, %v945_v49, %v1073_v57  ;;  %vm980_vm1 = vcmp.gt.f32.partialorder %v916_v28, 0.0  ;;  %v1662_v4 = vpack.c.bf16 %v1105_v54, %v1105_v54  ;;  %v1044_v9 = vmul.f32 0.2, %v916_v28 }
 0x158   : > { %v1694_v5 = vpack.c.bf16 %v1137_v3, %v1137_v3  ;;  %v948_v10 = vadd.f32 %v1997_v42, %v877_v60  ;;  %1460 = vst.msk [vmem:[%s2016_s19 + $0xf8] sm:$0xf] %vm1397_vm0, %v1696_v63  ;;  %v914_v52 = vadd.f32 %v1997_v42, %v843_v2  ;;  %v946_v26 = vadd.f32 %v1997_v42, %v875_v8 }
 0x159   : > { %1426 = vst.msk [vmem:[%s2016_s19 + $0x70] sm:$0xf] %vm1397_vm0, %v1662_v4  ;;  %v1108_v40 = vsel %vm980_vm1, %v916_v28, %v1044_v9 }
 0x15a   : > { %1458 = vst.msk [vmem:[%s2016_s19 + $0xf0] sm:$0xf] %vm1397_vm0, %v1694_v5  ;;  %vm1012_vm2 = vcmp.gt.f32.partialorder %v948_v10, 0.0  ;;  %v1076_v61 = vmul.f32 0.2, %v948_v10  ;;  %v1665_v62 = vpack.c.bf16 %v1108_v40, %v1108_v40  ;;  %vm978_vm3 = vcmp.gt.f32.partialorder %v914_v52, 0.0 }
 0x15b   : > { %v1042_v13 = vmul.f32 0.2, %v914_v52  ;;  %vm1010_vm4 = vcmp.gt.f32.partialorder %v946_v26, 0.0  ;;  %v1074_v12 = vmul.f32 0.2, %v946_v26 }
 0x15c   : > { %v1140_v11 = vsel %vm1012_vm2, %v948_v10, %v1076_v61  ;;  %1429 = vst.msk [vmem:[%s2016_s19 + $0x7c] sm:$0xf] %vm1397_vm0, %v1665_v62 }
 0x15d   : > { %v1697_v58 = vpack.c.bf16 %v1140_v11, %v1140_v11  ;;  %v1106_v42 = vsel %vm978_vm3, %v914_v52, %v1042_v13  ;;  %v1138_v14 = vsel %vm1010_vm4, %v946_v26, %v1074_v12 }
 0x15e   : > { %v1663_v55 = vpack.c.bf16 %v1106_v42, %v1106_v42  ;;  %v1695_v29 = vpack.c.bf16 %v1138_v14, %v1138_v14 }
 0x15f   : > { %1461 = vst.msk [vmem:[%s2016_s19 + $0xfc] sm:$0xf] %vm1397_vm0, %v1697_v58 }
 0x160   : > { %1427 = vst.msk [vmem:[%s2016_s19 + $0x74] sm:$0xf] %vm1397_vm0, %v1663_v55  ;;  %1459 = vst.msk [vmem:[%s2016_s19 + $0xf4] sm:$0xf] %vm1397_vm0, %v1695_v29 }
 0x161 PF: > { %s15_s17 = sadd.s32 1, %s1888_s17  }
 0x162   : > { %p12_p4 = scmp.ge.s32.totalorder %s15_s17, 6  }
 0x164   :  { %14 = sbr.rel (!%p12_p4) target bundleno = 2 (0x2), region = 66 }

// kernel: discriminator_forward.7
= control target key start
LH: loop header
LB: loop body
LE: loop exit
PB: predicated region body
PF: predicated region fallthrough
CT: control target
= control target key end

     0   :  { %v4902_v0 = vmov 0   ;;  %s6207_s2 = inlined_call_operand.vmem [shape: bf16[1024,128], index: 2, kind: input, shape index: {}]   ;;  %s6208_s1 = inlined_call_operand.vmem [shape: bf16[512,1024], index: 1, kind: input, shape index: {}]   ;;  %s6209_s0 = inlined_call_operand.<no memory space> [shape: f32[1], index: 0, kind: input, shape index: {}]   ;;  %s6210_s3 = inlined_call_operand.vmem [shape: f32[1,128], index: 3, kind: input, shape index: {}]   ;;  %s6211_s4 = inlined_call_operand.vmem [shape: bf16[512,128], index: 4, kind: output, shape index: {}]  }
   0x1   :  { %2067 = vmatprep.subr.bf16.mxu1 %v4902_v0  ;;  %2645 = vmatprep.subr.bf16.mxu0 %v4902_v0  ;;  %v4837_v1 = vld [vmem:[%s6207_s2] sm:$0xff]   ;;  %v4839_v3 = vld [vmem:[%s6207_s2 + $0x8] sm:$0xff]   ;;  %v4841_v5 = vld [vmem:[%s6207_s2 + $0x10] sm:$0xff]  }
   0x2   :  { %v4838_v2 = vld [vmem:[%s6207_s2 + $0x100] sm:$0xff]   ;;  %2068 = vmatpush1.bf16.msra.mxu1 %v4837_v1  ;;  %v4840_v4 = vld [vmem:[%s6207_s2 + $0x108] sm:$0xff]   ;;  %v4842_v6 = vld [vmem:[%s6207_s2 + $0x110] sm:$0xff]  }
   0x3   :  { %2646 = vmatpush1.bf16.msra.mxu0 %v4838_v2  ;;  %2069 = vmatprep.subr.bf16.mxu1 %v4902_v0  ;;  %v4843_v7 = vld [vmem:[%s6207_s2 + $0x18] sm:$0xff]   ;;  %v4845_v9 = vld [vmem:[%s6207_s2 + $0x20] sm:$0xff]   ;;  %v4847_v11 = vld [vmem:[%s6207_s2 + $0x28] sm:$0xff]  }
   0x4   :  { %2647 = vmatprep.subr.bf16.mxu0 %v4902_v0  ;;  %v4844_v8 = vld [vmem:[%s6207_s2 + $0x118] sm:$0xff]   ;;  %v4846_v10 = vld [vmem:[%s6207_s2 + $0x120] sm:$0xff]   ;;  %v4848_v12 = vld [vmem:[%s6207_s2 + $0x128] sm:$0xff]  }
   0x5   :  { %v4849_v13 = vld [vmem:[%s6207_s2 + $0x30] sm:$0xff]   ;;  %v4851_v15 = vld [vmem:[%s6207_s2 + $0x38] sm:$0xff]   ;;  %v4853_v17 = vld [vmem:[%s6207_s2 + $0x40] sm:$0xff]  }
   0x6   :  { %2070 = vmatpush1.bf16.msra.mxu1 %v4839_v3  ;;  %v4850_v14 = vld [vmem:[%s6207_s2 + $0x130] sm:$0xff]   ;;  %v4852_v16 = vld [vmem:[%s6207_s2 + $0x138] sm:$0xff]   ;;  %v4854_v18 = vld [vmem:[%s6207_s2 + $0x140] sm:$0xff]  }
   0x7   :  { %2648 = vmatpush1.bf16.msra.mxu0 %v4840_v4  ;;  %2071 = vmatprep.subr.bf16.mxu1 %v4902_v0  ;;  %v5003_v19 = vld [vmem:[%s6208_s1] sm:$0xff]  ;;  %v5013_v21 = vld [vmem:[%s6208_s1 + $0x10] sm:$0xff]  ;;  %v4855_v24 = vld [vmem:[%s6207_s2 + $0x48] sm:$0xff]  }
   0x8   :  { %2649 = vmatprep.subr.bf16.mxu0 %v4902_v0  ;;  %v5008_v20 = vld [vmem:[%s6208_s1 + $0x20] sm:$0xff]  ;;  %v5020_v23 = vld [vmem:[%s6208_s1 + $0x30] sm:$0xff]  ;;  %v4856_v26 = vld [vmem:[%s6207_s2 + $0x148] sm:$0xff]  }
   0x9   :  { %v3877_v22 = vcombine.high %v5003_v19, %v5008_v20  ;;  %v3881_v25 = vcombine.high %v5013_v21, %v5020_v23  ;;  %v4857_v27 = vld [vmem:[%s6207_s2 + $0x50] sm:$0xff]   ;;  %v4859_v29 = vld [vmem:[%s6207_s2 + $0x58] sm:$0xff]   ;;  %v4861_v31 = vld [vmem:[%s6207_s2 + $0x60] sm:$0xff]   ;;  %v3876_v42 = vcombine.low %v5003_v19, %v5008_v20  ;;  %v3880_v44 = vcombine.low %v5013_v21, %v5020_v23 }
   0xa   :  { %2072 = vmatpush1.bf16.msra.mxu1 %v4841_v5  ;;  %v4858_v28 = vld [vmem:[%s6207_s2 + $0x150] sm:$0xff]   ;;  %v4860_v30 = vld [vmem:[%s6207_s2 + $0x158] sm:$0xff]   ;;  %v4862_v32 = vld [vmem:[%s6207_s2 + $0x160] sm:$0xff]  }
   0xb   :  { %2650 = vmatpush1.bf16.msra.mxu0 %v4842_v6  ;;  %2073 = vmatprep.subr.bf16.mxu1 %v4902_v0  ;;  %v4863_v33 = vld [vmem:[%s6207_s2 + $0x68] sm:$0xff]   ;;  %v4865_v35 = vld [vmem:[%s6207_s2 + $0x70] sm:$0xff]   ;;  %v4867_v37 = vld [vmem:[%s6207_s2 + $0x78] sm:$0xff]  }
   0xc   :  { %2651 = vmatprep.subr.bf16.mxu0 %v4902_v0  ;;  %2099 = vmatprep.mubr.bf16.mxu1 %v3877_v22  ;;  %v4864_v34 = vld [vmem:[%s6207_s2 + $0x168] sm:$0xff]   ;;  %v4866_v36 = vld [vmem:[%s6207_s2 + $0x170] sm:$0xff]   ;;  %v4868_v38 = vld [vmem:[%s6207_s2 + $0x178] sm:$0xff]  }
   0xd   :  { %2677 = vmatprep.mubr.bf16.mxu0 %v3881_v25  ;;  %v27_v39 = vld [vmem:[%s6208_s1 + $0x40] sm:$0xff]  ;;  %v29_v41 = vld [vmem:[%s6208_s1 + $0x50] sm:$0xff]  ;;  %v4871_v51 = vld [vmem:[%s6207_s2 + $0x88] sm:$0xff]  }
   0xe   :  { %2074 = vmatpush1.bf16.msra.mxu1 %v4843_v7  ;;  %v31_v40 = vld [vmem:[%s6208_s1 + $0x60] sm:$0xff]  ;;  %v33_v43 = vld [vmem:[%s6208_s1 + $0x70] sm:$0xff]  ;;  %v4872_v52 = vld [vmem:[%s6207_s2 + $0x188] sm:$0xff]  }
   0xf   :  { %2652 = vmatpush1.bf16.msra.mxu0 %v4844_v8  ;;  %2075 = vmatprep.subr.bf16.mxu1 %v4902_v0  ;;  %v4869_v45 = vld [vmem:[%s6207_s2 + $0x80] sm:$0xff]   ;;  %v3885_v47 = vcombine.high %v27_v39, %v31_v40  ;;  %v3889_v48 = vcombine.high %v29_v41, %v33_v43  ;;  %v37_v53 = vld [vmem:[%s6208_s1 + $0x90] sm:$0xff]  ;;  %v3884_v55 = vcombine.low %v27_v39, %v31_v40  ;;  %v4875_v2 = vld [vmem:[%s6207_s2 + $0x98] sm:$0xff]  }
  0x10   :  { %2653 = vmatprep.subr.bf16.mxu0 %v4902_v0  ;;  %v4870_v46 = vld [vmem:[%s6207_s2 + $0x180] sm:$0xff]   ;;  %v41_v54 = vld [vmem:[%s6208_s1 + $0xb0] sm:$0xff]  ;;  %v3888_v56 = vcombine.low %v29_v41, %v33_v43  ;;  %v4876_v3 = vld [vmem:[%s6207_s2 + $0x198] sm:$0xff]  }
  0x11   :  { %v35_v49 = vld [vmem:[%s6208_s1 + $0x80] sm:$0xff]  ;;  %v3897_v58 = vcombine.high %v37_v53, %v41_v54  ;;  %v4873_v59 = vld [vmem:[%s6207_s2 + $0x90] sm:$0xff]   ;;  %v3896_v6 = vcombine.low %v37_v53, %v41_v54  ;;  %v4888_v39 = vld [vmem:[%s6207_s2 + $0x1c8] sm:$0xff]  }
  0x12   :  { %2076 = vmatpush1.bf16.msra.mxu1 %v4845_v9  ;;  %v39_v50 = vld [vmem:[%s6208_s1 + $0xa0] sm:$0xff]  ;;  %v4874_v60 = vld [vmem:[%s6207_s2 + $0x190] sm:$0xff]   ;;  %v4891_v54 = vld [vmem:[%s6207_s2 + $0xd8] sm:$0xff]  }
  0x13   :  { %2654 = vmatpush1.bf16.msra.mxu0 %v4846_v10  ;;  %2077 = vmatprep.subr.bf16.mxu1 %v4902_v0  ;;  %v3893_v57 = vcombine.high %v35_v49, %v39_v50  ;;  %v43_v61 = vld [vmem:[%s6208_s1 + $0xc0] sm:$0xff]  ;;  %v45_v63 = vld [vmem:[%s6208_s1 + $0xd0] sm:$0xff]  ;;  %v3892_v4 = vcombine.low %v35_v49, %v39_v50 }
  0x14   :  { %2655 = vmatprep.subr.bf16.mxu0 %v4902_v0  ;;  %v47_v62 = vld [vmem:[%s6208_s1 + $0xe0] sm:$0xff]  ;;  %v49_v1 = vld [vmem:[%s6208_s1 + $0xf0] sm:$0xff] }
  0x15   :  { %v4877_v5 = vld [vmem:[%s6207_s2 + $0xa0] sm:$0xff]   ;;  %v3901_v7 = vcombine.high %v43_v61, %v47_v62  ;;  %v3905_v9 = vcombine.high %v45_v63, %v49_v1  ;;  %v4881_v20 = vld [vmem:[%s6207_s2 + $0xb0] sm:$0xff]  }
  0x16   :  { %2078 = vmatpush1.bf16.msra.mxu1 %v4847_v11  ;;  %v4878_v8 = vld [vmem:[%s6207_s2 + $0x1a0] sm:$0xff]   ;;  %v4882_v21 = vld [vmem:[%s6207_s2 + $0x1b0] sm:$0xff]  }
  0x17   :  { %2656 = vmatpush1.bf16.msra.mxu0 %v4848_v12  ;;  %2079 = vmatprep.subr.bf16.mxu1 %v4902_v0  ;;  %v51_v10 = vld [vmem:[%s6208_s1 + $0x100] sm:$0xff]  ;;  %v53_v12 = vld [vmem:[%s6208_s1 + $0x110] sm:$0xff] }
  0x18   :  { %2657 = vmatprep.subr.bf16.mxu0 %v4902_v0  ;;  %v55_v11 = vld [vmem:[%s6208_s1 + $0x120] sm:$0xff]  ;;  %v61_v25 = vld [vmem:[%s6208_s1 + $0x150] sm:$0xff] }
  0x19   :  { %v59_v22 = vld [vmem:[%s6208_s1 + $0x140] sm:$0xff]  ;;  %v81_v49 = vld [vmem:[%s6208_s1 + $0x1f0] sm:$0xff] }
  0x1a   :  { %2080 = vmatpush1.bf16.msra.mxu1 %v4849_v13  ;;  %v57_v13 = vld [vmem:[%s6208_s1 + $0x130] sm:$0xff]  ;;  %v63_v23 = vld [vmem:[%s6208_s1 + $0x160] sm:$0xff] }
  0x1b   :  { %2658 = vmatpush1.bf16.msra.mxu0 %v4850_v14  ;;  %2081 = vmatprep.subr.bf16.mxu1 %v4902_v0  ;;  %v4879_v14 = vld [vmem:[%s6207_s2 + $0xa8] sm:$0xff]   ;;  %v3913_v19 = vcombine.high %v53_v12, %v57_v13  ;;  %v3916_v40 = vcombine.low %v59_v22, %v63_v23 }
  0x1c   :  { %2659 = vmatprep.subr.bf16.mxu0 %v4902_v0 }
  0x1e   :  { %2082 = vmatpush1.bf16.msra.mxu1 %v4851_v15  ;;  %v4880_v15 = vld [vmem:[%s6207_s2 + $0x1a8] sm:$0xff]  }
  0x1f   :  { %2660 = vmatpush1.bf16.msra.mxu0 %v4852_v16  ;;  %2083 = vmatprep.subr.bf16.mxu1 %v4902_v0  ;;  %v3900_v16 = vcombine.low %v43_v61, %v47_v62 }
  0x20   :  { %2661 = vmatprep.subr.bf16.mxu0 %v4902_v0 }
  0x22   :  { %2084 = vmatpush1.bf16.msra.mxu1 %v4853_v17  ;;  %v3904_v17 = vcombine.low %v45_v63, %v49_v1  ;;  %v91_v1 = vld [vmem:[%s6208_s1 + $0x240] sm:$0xff] }
  0x23   :  { %2662 = vmatpush1.bf16.msra.mxu0 %v4854_v18  ;;  %2085 = vmatprep.subr.bf16.mxu1 %v4902_v0  ;;  %v3909_v18 = vcombine.high %v51_v10, %v55_v11 }
  0x24   :  { %2663 = vmatprep.subr.bf16.mxu0 %v4902_v0 }
  0x26   :  { %2086 = vmatpush1.bf16.msra.mxu1 %v4855_v24  ;;  %v4883_v24 = vld [vmem:[%s6207_s2 + $0xb8] sm:$0xff]  }
  0x27   :  { %2664 = vmatpush1.bf16.msra.mxu0 %v4856_v26  ;;  %2087 = vmatprep.subr.bf16.mxu1 %v4902_v0  ;;  %v65_v26 = vld [vmem:[%s6208_s1 + $0x170] sm:$0xff] }
  0x28   :  { %2665 = vmatprep.subr.bf16.mxu0 %v4902_v0  ;;  %v3920_v41 = vcombine.low %v61_v25, %v65_v26 }
  0x2a   :  { %2088 = vmatpush1.bf16.msra.mxu1 %v4857_v27  ;;  %v4884_v27 = vld [vmem:[%s6207_s2 + $0x1b8] sm:$0xff]  }
  0x2b   :  { %2666 = vmatpush1.bf16.msra.mxu0 %v4858_v28  ;;  %2089 = vmatprep.subr.bf16.mxu1 %v4902_v0  ;;  %v3908_v28 = vcombine.low %v51_v10, %v55_v11  ;;  %v4894_v10 = vld [vmem:[%s6207_s2 + $0x1e0] sm:$0xff]  }
  0x2c   :  { %2667 = vmatprep.subr.bf16.mxu0 %v4902_v0  ;;  %v99_v11 = vld [vmem:[%s6208_s1 + $0x280] sm:$0xff] }
  0x2e   :  { %2090 = vmatpush1.bf16.msra.mxu1 %v4859_v29  ;;  %v3912_v29 = vcombine.low %v53_v12, %v57_v13  ;;  %v103_v12 = vld [vmem:[%s6208_s1 + $0x2a0] sm:$0xff]  ;;  %v101_v13 = vld [vmem:[%s6208_s1 + $0x290] sm:$0xff] }
  0x2f   :  { %2668 = vmatpush1.bf16.msra.mxu0 %v4860_v30  ;;  %2091 = vmatprep.subr.bf16.mxu1 %v4902_v0  ;;  %v3917_v30 = vcombine.high %v59_v22, %v63_v23  ;;  %v113_v22 = vld [vmem:[%s6208_s1 + $0x2f0] sm:$0xff]  ;;  %v3956_v23 = vcombine.low %v99_v11, %v103_v12 }
  0x30   :  { %2669 = vmatprep.subr.bf16.mxu0 %v4902_v0 }
  0x32   :  { %2092 = vmatpush1.bf16.msra.mxu1 %v4861_v31  ;;  %v3921_v31 = vcombine.high %v61_v25, %v65_v26 }
  0x33   :  { %2670 = vmatpush1.bf16.msra.mxu0 %v4862_v32  ;;  %2093 = vmatprep.subr.bf16.mxu1 %v4902_v0  ;;  %v4885_v32 = vld [vmem:[%s6207_s2 + $0xc0] sm:$0xff]  }
  0x34   :  { %2671 = vmatprep.subr.bf16.mxu0 %v4902_v0 }
  0x36   :  { %2094 = vmatpush1.bf16.msra.mxu1 %v4863_v33  ;;  %v4886_v33 = vld [vmem:[%s6207_s2 + $0x1c0] sm:$0xff]  }
  0x37   :  { %2672 = vmatpush1.bf16.msra.mxu0 %v4864_v34  ;;  %2095 = vmatprep.subr.bf16.mxu1 %v4902_v0  ;;  %v67_v34 = vld [vmem:[%s6208_s1 + $0x180] sm:$0xff] }
  0x38   :  { %2673 = vmatprep.subr.bf16.mxu0 %v4902_v0 }
  0x3a   :  { %2096 = vmatpush1.bf16.msra.mxu1 %v4865_v35  ;;  %v71_v35 = vld [vmem:[%s6208_s1 + $0x1a0] sm:$0xff] }
  0x3b   :  { %2674 = vmatpush1.bf16.msra.mxu0 %v4866_v36  ;;  %2097 = vmatprep.subr.bf16.mxu1 %v4902_v0  ;;  %v4887_v36 = vld [vmem:[%s6207_s2 + $0xc8] sm:$0xff]   ;;  %v3924_v50 = vcombine.low %v67_v34, %v71_v35 }
  0x3c   :  { %2675 = vmatprep.subr.bf16.mxu0 %v4902_v0 }
  0x3e   :  { %2098 = vmatpush1.bf16.msra.mxu1 %v4867_v37  ;;  %v69_v37 = vld [vmem:[%s6208_s1 + $0x190] sm:$0xff] }
  0x3f   :  { %2676 = vmatpush1.bf16.msra.mxu0 %v4868_v38  ;;  %2356 = vmatprep.subr.bf16.mxu1 %v4902_v0  ;;  %v73_v38 = vld [vmem:[%s6208_s1 + $0x1b0] sm:$0xff] }
  0x40   :  { %2934 = vmatprep.subr.bf16.mxu0 %v4902_v0  ;;  %v3929_v43 = vcombine.high %v69_v37, %v73_v38 }
  0x41   :  { %2100 = vmatmul.mubr.bf16.vlgmr.msra.gmra.mrb[0].mxu1 %v3876_v42  ;;  %v3925_v42 = vcombine.high %v67_v34, %v71_v35 }
  0x42   :  { %2678 = vmatmul.mubr.bf16.vlgmr.msra.gmra.mrb[0].mxu0 %v3880_v44  ;;  %2357 = vmatpush1.bf16.msra.mxu1 %v4869_v45  ;;  %v4889_v44 = vld [vmem:[%s6207_s2 + $0xd0] sm:$0xff]  }
  0x43   :  { %2935 = vmatpush1.bf16.msra.mxu0 %v4870_v46  ;;  %2107 = vmatprep.mubr.bf16.mxu1 %v3885_v47  ;;  %v4890_v45 = vld [vmem:[%s6207_s2 + $0x1d0] sm:$0xff]   ;;  %v75_v46 = vld [vmem:[%s6208_s1 + $0x1c0] sm:$0xff] }
  0x44   :  { %2685 = vmatprep.mubr.bf16.mxu0 %v3889_v48  ;;  %2358 = vmatprep.subr.bf16.mxu1 %v4902_v0  ;;  %v79_v47 = vld [vmem:[%s6208_s1 + $0x1e0] sm:$0xff]  ;;  %v77_v48 = vld [vmem:[%s6208_s1 + $0x1d0] sm:$0xff] }
  0x45   :  { %2936 = vmatprep.subr.bf16.mxu0 %v4902_v0  ;;  %v3937_v53 = vcombine.high %v77_v48, %v81_v49  ;;  %v3936_v61 = vcombine.low %v77_v48, %v81_v49  ;;  %v135_v48 = vld [vmem:[%s6208_s1 + $0x3a0] sm:$0xff]  ;;  %v133_v49 = vld [vmem:[%s6208_s1 + $0x390] sm:$0xff] }
  0x46   :  { %2359 = vmatpush1.bf16.msra.mxu1 %v4871_v51  ;;  %v3928_v51 = vcombine.low %v69_v37, %v73_v38  ;;  %v123_v37 = vld [vmem:[%s6208_s1 + $0x340] sm:$0xff] }
  0x47   :  { %2937 = vmatpush1.bf16.msra.mxu0 %v4872_v52  ;;  %2360 = vmatprep.subr.bf16.mxu1 %v4902_v0  ;;  %v3933_v52 = vcombine.high %v75_v46, %v79_v47  ;;  %v127_v38 = vld [vmem:[%s6208_s1 + $0x360] sm:$0xff] }
  0x48   :  { %2938 = vmatprep.subr.bf16.mxu0 %v4902_v0 }
  0x49   :  { %2108 = vmatmul.mubr.bf16.gmra.mrb[4].mxu1 %v3884_v55  ;;  %v4892_v55 = vld [vmem:[%s6207_s2 + $0x1d8] sm:$0xff]  }
  0x4a   :  { %2686 = vmatmul.mubr.bf16.gmra.mrb[4].mxu0 %v3888_v56  ;;  %2115 = vmatprep.mubr.bf16.mxu1 %v3893_v57  ;;  %v83_v56 = vld [vmem:[%s6208_s1 + $0x200] sm:$0xff] }
  0x4b   :  { %2693 = vmatprep.mubr.bf16.mxu0 %v3897_v58  ;;  %2361 = vmatpush1.bf16.msra.mxu1 %v4873_v59  ;;  %v87_v57 = vld [vmem:[%s6208_s1 + $0x220] sm:$0xff]  ;;  %v85_v58 = vld [vmem:[%s6208_s1 + $0x210] sm:$0xff] }
  0x4c   :  { %2939 = vmatpush1.bf16.msra.mxu0 %v4874_v60  ;;  %2362 = vmatprep.subr.bf16.mxu1 %v4902_v0  ;;  %v89_v59 = vld [vmem:[%s6208_s1 + $0x230] sm:$0xff]  ;;  %v3932_v60 = vcombine.low %v75_v46, %v79_v47  ;;  %v3941_v62 = vcombine.high %v83_v56, %v87_v57  ;;  %v131_v47 = vld [vmem:[%s6208_s1 + $0x380] sm:$0xff] }
  0x4d   :  { %2940 = vmatprep.subr.bf16.mxu0 %v4902_v0  ;;  %v3945_v63 = vcombine.high %v85_v58, %v89_v59  ;;  %v4898_v46 = vld [vmem:[%s6207_s2 + $0x1f0] sm:$0xff]  }
  0x4f   :  { %2363 = vmatpush1.bf16.msra.mxu1 %v4875_v2  ;;  %v95_v2 = vld [vmem:[%s6208_s1 + $0x260] sm:$0xff] }
  0x50   :  { %2941 = vmatpush1.bf16.msra.mxu0 %v4876_v3  ;;  %2364 = vmatprep.subr.bf16.mxu1 %v4902_v0  ;;  %v93_v3 = vld [vmem:[%s6208_s1 + $0x250] sm:$0xff] }
  0x51   :  { %2116 = vmatmul.mubr.bf16.gmra.mrb[8].mxu1 %v3892_v4  ;;  %2942 = vmatprep.subr.bf16.mxu0 %v4902_v0  ;;  %v97_v4 = vld [vmem:[%s6208_s1 + $0x270] sm:$0xff] }
  0x52   :  { %2694 = vmatmul.mubr.bf16.gmra.mrb[8].mxu0 %v3896_v6  ;;  %2123 = vmatprep.mubr.bf16.mxu1 %v3901_v7  ;;  %v3944_v6 = vcombine.low %v85_v58, %v89_v59  ;;  %v3949_v7 = vcombine.high %v91_v1, %v95_v2  ;;  %v3988_v58 = vcombine.low %v131_v47, %v135_v48 }
  0x53   :  { %2701 = vmatprep.mubr.bf16.mxu0 %v3905_v9  ;;  %2365 = vmatpush1.bf16.msra.mxu1 %v4877_v5  ;;  %v3940_v5 = vcombine.low %v83_v56, %v87_v57  ;;  %v4893_v9 = vld [vmem:[%s6207_s2 + $0xe0] sm:$0xff]   ;;  %v141_v57 = vld [vmem:[%s6208_s1 + $0x3d0] sm:$0xff] }
  0x54   :  { %2943 = vmatpush1.bf16.msra.mxu0 %v4878_v8  ;;  %2366 = vmatprep.subr.bf16.mxu1 %v4902_v0  ;;  %v3953_v8 = vcombine.high %v93_v3, %v97_v4  ;;  %v143_v56 = vld [vmem:[%s6208_s1 + $0x3e0] sm:$0xff] }
  0x55   :  { %2944 = vmatprep.subr.bf16.mxu0 %v4902_v0 }
  0x57   :  { %2367 = vmatpush1.bf16.msra.mxu1 %v4879_v14  ;;  %v105_v14 = vld [vmem:[%s6208_s1 + $0x2b0] sm:$0xff] }
  0x58   :  { %2945 = vmatpush1.bf16.msra.mxu0 %v4880_v15  ;;  %2368 = vmatprep.subr.bf16.mxu1 %v4902_v0  ;;  %v3948_v15 = vcombine.low %v91_v1, %v95_v2  ;;  %v147_v1 = vld [vmem:[%s6208_s1 + $0x400] sm:$0xff] }
  0x59   :  { %2124 = vmatmul.mubr.bf16.gmra.mrb[12].mxu1 %v3900_v16  ;;  %2946 = vmatprep.subr.bf16.mxu0 %v4902_v0  ;;  %v3952_v16 = vcombine.low %v93_v3, %v97_v4  ;;  %v151_v2 = vld [vmem:[%s6208_s1 + $0x420] sm:$0xff]  ;;  %v149_v3 = vld [vmem:[%s6208_s1 + $0x410] sm:$0xff] }
  0x5a   :  { %2702 = vmatmul.mubr.bf16.gmra.mrb[12].mxu0 %v3904_v17  ;;  %2131 = vmatprep.mubr.bf16.mxu1 %v3909_v18  ;;  %v3957_v17 = vcombine.high %v99_v11, %v103_v12  ;;  %v3961_v18 = vcombine.high %v101_v13, %v105_v14  ;;  %v153_v4 = vld [vmem:[%s6208_s1 + $0x430] sm:$0xff] }
  0x5b   :  { %2709 = vmatprep.mubr.bf16.mxu0 %v3913_v19  ;;  %2369 = vmatpush1.bf16.msra.mxu1 %v4881_v20  ;;  %v107_v19 = vld [vmem:[%s6208_s1 + $0x2c0] sm:$0xff]  ;;  %v157_v11 = vld [vmem:[%s6208_s1 + $0x450] sm:$0xff] }
  0x5c   :  { %2947 = vmatpush1.bf16.msra.mxu0 %v4882_v21  ;;  %2370 = vmatprep.subr.bf16.mxu1 %v4902_v0  ;;  %v111_v20 = vld [vmem:[%s6208_s1 + $0x2e0] sm:$0xff]  ;;  %v109_v21 = vld [vmem:[%s6208_s1 + $0x2d0] sm:$0xff] }
  0x5d   :  { %2948 = vmatprep.subr.bf16.mxu0 %v4902_v0  ;;  %v3965_v25 = vcombine.high %v107_v19, %v111_v20  ;;  %v3969_v26 = vcombine.high %v109_v21, %v113_v22  ;;  %v3968_v34 = vcombine.low %v109_v21, %v113_v22  ;;  %v161_v12 = vld [vmem:[%s6208_s1 + $0x470] sm:$0xff] }
  0x5e   :  { %v4016_v22 = vcombine.low %v157_v11, %v161_v12 }
  0x5f   :  { %2371 = vmatpush1.bf16.msra.mxu1 %v4883_v24  ;;  %v3960_v24 = vcombine.low %v101_v13, %v105_v14  ;;  %v4004_v13 = vcombine.low %v147_v1, %v151_v2  ;;  %v4008_v14 = vcombine.low %v149_v3, %v153_v4 }
  0x60   :  { %2949 = vmatpush1.bf16.msra.mxu0 %v4884_v27  ;;  %2372 = vmatprep.subr.bf16.mxu1 %v4902_v0  ;;  %v4895_v27 = vld [vmem:[%s6207_s2 + $0xe8] sm:$0xff]  }
  0x61   :  { %2132 = vmatmul.mubr.bf16.gmra.mrb[16].mxu1 %v3908_v28  ;;  %2950 = vmatprep.subr.bf16.mxu0 %v4902_v0  ;;  %v4896_v28 = vld [vmem:[%s6207_s2 + $0x1e8] sm:$0xff]  }
  0x62   :  { %2710 = vmatmul.mubr.bf16.gmra.mrb[16].mxu0 %v3912_v29  ;;  %2139 = vmatprep.mubr.bf16.mxu1 %v3917_v30  ;;  %v115_v29 = vld [vmem:[%s6208_s1 + $0x300] sm:$0xff] }
  0x63   :  { %2717 = vmatprep.mubr.bf16.mxu0 %v3921_v31  ;;  %2373 = vmatpush1.bf16.msra.mxu1 %v4885_v32  ;;  %v119_v30 = vld [vmem:[%s6208_s1 + $0x320] sm:$0xff]  ;;  %v117_v31 = vld [vmem:[%s6208_s1 + $0x310] sm:$0xff] }
  0x64   :  { %2951 = vmatpush1.bf16.msra.mxu0 %v4886_v33  ;;  %2374 = vmatprep.subr.bf16.mxu1 %v4902_v0  ;;  %v121_v32 = vld [vmem:[%s6208_s1 + $0x330] sm:$0xff]  ;;  %v3964_v33 = vcombine.low %v107_v19, %v111_v20  ;;  %v3973_v35 = vcombine.high %v115_v29, %v119_v30 }
  0x65   :  { %2952 = vmatprep.subr.bf16.mxu0 %v4902_v0  ;;  %v165_v19 = vld [vmem:[%s6208_s1 + $0x490] sm:$0xff] }
  0x66   :  { %v169_v20 = vld [vmem:[%s6208_s1 + $0x4b0] sm:$0xff] }
  0x67   :  { %2375 = vmatpush1.bf16.msra.mxu1 %v4887_v36  ;;  %v3977_v36 = vcombine.high %v117_v31, %v121_v32 }
  0x68   :  { %2953 = vmatpush1.bf16.msra.mxu0 %v4888_v39  ;;  %2376 = vmatprep.subr.bf16.mxu1 %v4902_v0  ;;  %v125_v39 = vld [vmem:[%s6208_s1 + $0x350] sm:$0xff] }
  0x69   :  { %2140 = vmatmul.mubr.bf16.gmra.mrb[20].mxu1 %v3916_v40  ;;  %2954 = vmatprep.subr.bf16.mxu0 %v4902_v0  ;;  %v129_v40 = vld [vmem:[%s6208_s1 + $0x370] sm:$0xff] }
  0x6a   :  { %2718 = vmatmul.mubr.bf16.gmra.mrb[20].mxu0 %v3920_v41  ;;  %2147 = vmatprep.mubr.bf16.mxu1 %v3925_v42  ;;  %v3972_v41 = vcombine.low %v115_v29, %v119_v30  ;;  %v3976_v42 = vcombine.low %v117_v31, %v121_v32  ;;  %v4024_v30 = vcombine.low %v165_v19, %v169_v20 }
  0x6b   :  { %2725 = vmatprep.mubr.bf16.mxu0 %v3929_v43  ;;  %2377 = vmatpush1.bf16.msra.mxu1 %v4889_v44  ;;  %v3981_v43 = vcombine.high %v123_v37, %v127_v38  ;;  %v3985_v44 = vcombine.high %v125_v39, %v129_v40 }
  0x6c   :  { %2955 = vmatpush1.bf16.msra.mxu0 %v4890_v45  ;;  %2378 = vmatprep.subr.bf16.mxu1 %v4902_v0  ;;  %v4897_v45 = vld [vmem:[%s6207_s2 + $0xf0] sm:$0xff]  }
  0x6d   :  { %2956 = vmatprep.subr.bf16.mxu0 %v4902_v0 }
  0x6f   :  { %2379 = vmatpush1.bf16.msra.mxu1 %v4891_v54 }
  0x70   :  { %2957 = vmatpush1.bf16.msra.mxu0 %v4892_v55  ;;  %2380 = vmatprep.subr.bf16.mxu1 %v4902_v0  ;;  %v139_v55 = vld [vmem:[%s6208_s1 + $0x3c0] sm:$0xff] }
  0x71   :  { %2148 = vmatmul.mubr.bf16.gmra.mrb[24].mxu1 %v3924_v50  ;;  %2958 = vmatprep.subr.bf16.mxu0 %v4902_v0  ;;  %v137_v50 = vld [vmem:[%s6208_s1 + $0x3b0] sm:$0xff] }
  0x72   :  { %2726 = vmatmul.mubr.bf16.gmra.mrb[24].mxu0 %v3928_v51  ;;  %2155 = vmatprep.mubr.bf16.mxu1 %v3933_v52  ;;  %v3980_v51 = vcombine.low %v123_v37, %v127_v38  ;;  %v3984_v52 = vcombine.low %v125_v39, %v129_v40  ;;  %v3993_v54 = vcombine.high %v133_v49, %v137_v50 }
  0x73   :  { %2733 = vmatprep.mubr.bf16.mxu0 %v3937_v53  ;;  %2381 = vmatpush1.bf16.msra.mxu1 %v4893_v9  ;;  %v3989_v53 = vcombine.high %v131_v47, %v135_v48  ;;  %v3992_v59 = vcombine.low %v133_v49, %v137_v50  ;;  %v155_v9 = vld [vmem:[%s6208_s1 + $0x440] sm:$0xff] }
  0x74   :  { %2959 = vmatpush1.bf16.msra.mxu0 %v4894_v10  ;;  %2382 = vmatprep.subr.bf16.mxu1 %v4902_v0  ;;  %v159_v10 = vld [vmem:[%s6208_s1 + $0x460] sm:$0xff] }
  0x75   :  { %2960 = vmatprep.subr.bf16.mxu0 %v4902_v0  ;;  %v4012_v21 = vcombine.low %v155_v9, %v159_v10  ;;  %v195_v49 = vld [vmem:[%s6208_s1 + $0x580] sm:$0xff] }
  0x76   :  { %v199_v50 = vld [vmem:[%s6208_s1 + $0x5a0] sm:$0xff] }
  0x77   :  { %2383 = vmatpush1.bf16.msra.mxu1 %v4895_v27  ;;  %v173_v27 = vld [vmem:[%s6208_s1 + $0x4d0] sm:$0xff] }
  0x78   :  { %2961 = vmatpush1.bf16.msra.mxu0 %v4896_v28  ;;  %2384 = vmatprep.subr.bf16.mxu1 %v4902_v0  ;;  %v177_v28 = vld [vmem:[%s6208_s1 + $0x4f0] sm:$0xff] }
  0x79   :  { %2156 = vmatmul.mubr.bf16.gmra.mrb[28].mxu1 %v3932_v60  ;;  %2962 = vmatprep.subr.bf16.mxu0 %v4902_v0  ;;  %v3997_v60 = vcombine.high %v139_v55, %v143_v56  ;;  %v4033_v32 = vcombine.high %v173_v27, %v177_v28  ;;  %v4032_v38 = vcombine.low %v173_v27, %v177_v28  ;;  %v237_v27 = vld [vmem:[%s6208_s1 + $0x6d0] sm:$0xff] }
  0x7a   :  { %2734 = vmatmul.mubr.bf16.gmra.mrb[28].mxu0 %v3936_v61  ;;  %2163 = vmatprep.mubr.bf16.mxu1 %v3941_v62  ;;  %v4899_v62 = vld [vmem:[%s6207_s2 + $0xf8] sm:$0xff]   ;;  %v241_v28 = vld [vmem:[%s6208_s1 + $0x6f0] sm:$0xff] }
  0x7b   :  { %2741 = vmatprep.mubr.bf16.mxu0 %v3945_v63  ;;  %2385 = vmatpush1.bf16.msra.mxu1 %v4897_v45  ;;  %v4900_v63 = vld [vmem:[%s6207_s2 + $0x1f8] sm:$0xff]  }
  0x7c   :  { %2963 = vmatpush1.bf16.msra.mxu0 %v4898_v46  ;;  %2386 = vmatprep.subr.bf16.mxu1 %v4902_v0 }
  0x7d   :  { %2964 = vmatprep.subr.bf16.mxu0 %v4902_v0  ;;  %v145_v0 = vld [vmem:[%s6208_s1 + $0x3f0] sm:$0xff] }
  0x7e   :  { %v4001_v61 = vcombine.high %v141_v57, %v145_v0 }
  0x7f   :  { %2387 = vmatpush1.bf16.msra.mxu1 %v4899_v62 }
  0x80   :  { %2965 = vmatpush1.bf16.msra.mxu0 %v4900_v63 }
  0x81   :  { %2164 = vmatmul.mubr.bf16.gmra.mrb[32].mxu1 %v3940_v5  ;;  %v3996_v5 = vcombine.low %v139_v55, %v143_v56  ;;  %v4053_v55 = vcombine.high %v195_v49, %v199_v50 }
  0x82   :  { %2742 = vmatmul.mubr.bf16.gmra.mrb[32].mxu0 %v3944_v6  ;;  %2171 = vmatprep.mubr.bf16.mxu1 %v3949_v7  ;;  %v4000_v6 = vcombine.low %v141_v57, %v145_v0  ;;  %v4005_v7 = vcombine.high %v147_v1, %v151_v2  ;;  %v203_v57 = vld [vmem:[%s6208_s1 + $0x5c0] sm:$0xff] }
  0x83   :  { %2749 = vmatprep.mubr.bf16.mxu0 %v3953_v8  ;;  %v4009_v8 = vcombine.high %v149_v3, %v153_v4  ;;  %v207_v0 = vld [vmem:[%s6208_s1 + $0x5e0] sm:$0xff]  ;;  %v213_v3 = vld [vmem:[%s6208_s1 + $0x610] sm:$0xff] }
  0x84   :  { %v4061_v62 = vcombine.high %v203_v57, %v207_v0  ;;  %v211_v1 = vld [vmem:[%s6208_s1 + $0x600] sm:$0xff]  ;;  %v217_v4 = vld [vmem:[%s6208_s1 + $0x630] sm:$0xff] }
  0x85   :  { %v215_v2 = vld [vmem:[%s6208_s1 + $0x620] sm:$0xff] }
  0x89   :  { %2172 = vmatmul.mubr.bf16.gmra.mrb[36].mxu1 %v3948_v15  ;;  %v4013_v15 = vcombine.high %v155_v9, %v159_v10  ;;  %v219_v9 = vld [vmem:[%s6208_s1 + $0x640] sm:$0xff] }
  0x8a   :  { %2750 = vmatmul.mubr.bf16.gmra.mrb[36].mxu0 %v3952_v16  ;;  %2179 = vmatprep.mubr.bf16.mxu1 %v3957_v17  ;;  %v4017_v16 = vcombine.high %v157_v11, %v161_v12  ;;  %v163_v17 = vld [vmem:[%s6208_s1 + $0x480] sm:$0xff]  ;;  %v221_v11 = vld [vmem:[%s6208_s1 + $0x650] sm:$0xff] }
  0x8b   :  { %2757 = vmatprep.mubr.bf16.mxu0 %v3961_v18  ;;  %v167_v18 = vld [vmem:[%s6208_s1 + $0x4a0] sm:$0xff]  ;;  %v225_v12 = vld [vmem:[%s6208_s1 + $0x670] sm:$0xff] }
  0x8c   :  { %v4020_v29 = vcombine.low %v163_v17, %v167_v18  ;;  %v223_v10 = vld [vmem:[%s6208_s1 + $0x660] sm:$0xff] }
  0x91   :  { %2180 = vmatmul.mubr.bf16.gmra.mrb[40].mxu1 %v3956_v23  ;;  %v4021_v23 = vcombine.high %v163_v17, %v167_v18  ;;  %v227_v17 = vld [vmem:[%s6208_s1 + $0x680] sm:$0xff] }
  0x92   :  { %2758 = vmatmul.mubr.bf16.gmra.mrb[40].mxu0 %v3960_v24  ;;  %2187 = vmatprep.mubr.bf16.mxu1 %v3965_v25  ;;  %v4025_v24 = vcombine.high %v165_v19, %v169_v20  ;;  %v171_v25 = vld [vmem:[%s6208_s1 + $0x4c0] sm:$0xff]  ;;  %v229_v19 = vld [vmem:[%s6208_s1 + $0x690] sm:$0xff] }
  0x93   :  { %2765 = vmatprep.mubr.bf16.mxu0 %v3969_v26  ;;  %v175_v26 = vld [vmem:[%s6208_s1 + $0x4e0] sm:$0xff]  ;;  %v233_v20 = vld [vmem:[%s6208_s1 + $0x6b0] sm:$0xff] }
  0x94   :  { %v4029_v31 = vcombine.high %v171_v25, %v175_v26  ;;  %v4028_v37 = vcombine.low %v171_v25, %v175_v26  ;;  %v231_v18 = vld [vmem:[%s6208_s1 + $0x6a0] sm:$0xff] }
  0x95   :  { %v235_v25 = vld [vmem:[%s6208_s1 + $0x6c0] sm:$0xff] }
  0x96   :  { %v239_v26 = vld [vmem:[%s6208_s1 + $0x6e0] sm:$0xff] }
  0x99   :  { %2188 = vmatmul.mubr.bf16.gmra.mrb[44].mxu1 %v3964_v33  ;;  %v179_v33 = vld [vmem:[%s6208_s1 + $0x500] sm:$0xff] }
  0x9a   :  { %2766 = vmatmul.mubr.bf16.gmra.mrb[44].mxu0 %v3968_v34  ;;  %2195 = vmatprep.mubr.bf16.mxu1 %v3973_v35  ;;  %v183_v34 = vld [vmem:[%s6208_s1 + $0x520] sm:$0xff]  ;;  %v181_v35 = vld [vmem:[%s6208_s1 + $0x510] sm:$0xff] }
  0x9b   :  { %2773 = vmatprep.mubr.bf16.mxu0 %v3977_v36  ;;  %v185_v36 = vld [vmem:[%s6208_s1 + $0x530] sm:$0xff]  ;;  %v4037_v39 = vcombine.high %v179_v33, %v183_v34  ;;  %v4036_v45 = vcombine.low %v179_v33, %v183_v34  ;;  %v243_v33 = vld [vmem:[%s6208_s1 + $0x700] sm:$0xff] }
  0x9c   :  { %v4041_v40 = vcombine.high %v181_v35, %v185_v36  ;;  %v4040_v46 = vcombine.low %v181_v35, %v185_v36  ;;  %v247_v34 = vld [vmem:[%s6208_s1 + $0x720] sm:$0xff]  ;;  %v245_v35 = vld [vmem:[%s6208_s1 + $0x710] sm:$0xff] }
  0x9d   :  { %v249_v36 = vld [vmem:[%s6208_s1 + $0x730] sm:$0xff] }
  0xa1   :  { %2196 = vmatmul.mubr.bf16.gmra.mrb[48].mxu1 %v3972_v41  ;;  %v187_v41 = vld [vmem:[%s6208_s1 + $0x540] sm:$0xff] }
  0xa2   :  { %2774 = vmatmul.mubr.bf16.gmra.mrb[48].mxu0 %v3976_v42  ;;  %2203 = vmatprep.mubr.bf16.mxu1 %v3981_v43  ;;  %v191_v42 = vld [vmem:[%s6208_s1 + $0x560] sm:$0xff]  ;;  %v189_v43 = vld [vmem:[%s6208_s1 + $0x550] sm:$0xff] }
  0xa3   :  { %2781 = vmatprep.mubr.bf16.mxu0 %v3985_v44  ;;  %v193_v44 = vld [vmem:[%s6208_s1 + $0x570] sm:$0xff]  ;;  %v4045_v47 = vcombine.high %v187_v41, %v191_v42 }
  0xa4   :  { %v4049_v48 = vcombine.high %v189_v43, %v193_v44 }
  0xa9   :  { %2204 = vmatmul.mubr.bf16.gmra.mrb[52].mxu1 %v3980_v51  ;;  %v197_v51 = vld [vmem:[%s6208_s1 + $0x590] sm:$0xff] }
  0xaa   :  { %2782 = vmatmul.mubr.bf16.gmra.mrb[52].mxu0 %v3984_v52  ;;  %2211 = vmatprep.mubr.bf16.mxu1 %v3989_v53  ;;  %v201_v52 = vld [vmem:[%s6208_s1 + $0x5b0] sm:$0xff]  ;;  %v4044_v53 = vcombine.low %v187_v41, %v191_v42  ;;  %v251_v41 = vld [vmem:[%s6208_s1 + $0x740] sm:$0xff] }
  0xab   :  { %2789 = vmatprep.mubr.bf16.mxu0 %v3993_v54  ;;  %v4048_v54 = vcombine.low %v189_v43, %v193_v44  ;;  %v4057_v56 = vcombine.high %v197_v51, %v201_v52  ;;  %v255_v42 = vld [vmem:[%s6208_s1 + $0x760] sm:$0xff]  ;;  %v253_v43 = vld [vmem:[%s6208_s1 + $0x750] sm:$0xff] }
  0xac   :  { %v257_v44 = vld [vmem:[%s6208_s1 + $0x770] sm:$0xff] }
  0xb1   :  { %2212 = vmatmul.mubr.bf16.gmra.mrb[56].mxu1 %v3988_v58  ;;  %v205_v58 = vld [vmem:[%s6208_s1 + $0x5d0] sm:$0xff] }
  0xb2   :  { %2790 = vmatmul.mubr.bf16.gmra.mrb[56].mxu0 %v3992_v59  ;;  %2219 = vmatprep.mubr.bf16.mxu1 %v3997_v60  ;;  %v209_v59 = vld [vmem:[%s6208_s1 + $0x5f0] sm:$0xff]  ;;  %v4052_v60 = vcombine.low %v195_v49, %v199_v50  ;;  %v259_v49 = vld [vmem:[%s6208_s1 + $0x780] sm:$0xff] }
  0xb3   :  { %2797 = vmatprep.mubr.bf16.mxu0 %v4001_v61  ;;  %v4056_v61 = vcombine.low %v197_v51, %v201_v52  ;;  %v4065_v63 = vcombine.high %v205_v58, %v209_v59  ;;  %v263_v50 = vld [vmem:[%s6208_s1 + $0x7a0] sm:$0xff]  ;;  %v261_v51 = vld [vmem:[%s6208_s1 + $0x790] sm:$0xff] }
  0xb4   :  { %v265_v52 = vld [vmem:[%s6208_s1 + $0x7b0] sm:$0xff] }
  0xb9   :  { %2220 = vmatmul.mubr.bf16.gmra.mrb[60].mxu1 %v3996_v5  ;;  %v4060_v5 = vcombine.low %v203_v57, %v207_v0  ;;  %v267_v57 = vld [vmem:[%s6208_s1 + $0x7c0] sm:$0xff] }
  0xba   :  { %2798 = vmatmul.mubr.bf16.gmra.mrb[60].mxu0 %v4000_v6  ;;  %2227 = vmatprep.mubr.bf16.mxu1 %v4005_v7  ;;  %v4064_v6 = vcombine.low %v205_v58, %v209_v59  ;;  %v4069_v7 = vcombine.high %v211_v1, %v215_v2  ;;  %v271_v0 = vld [vmem:[%s6208_s1 + $0x7e0] sm:$0xff]  ;;  %v269_v58 = vld [vmem:[%s6208_s1 + $0x7d0] sm:$0xff] }
  0xbb   :  { %2805 = vmatprep.mubr.bf16.mxu0 %v4009_v8  ;;  %v4073_v8 = vcombine.high %v213_v3, %v217_v4  ;;  %v273_v59 = vld [vmem:[%s6208_s1 + $0x7f0] sm:$0xff] }
  0xc1   :  { %2228 = vmatmul.mubr.bf16.gmra.mrb[64].mxu1 %v4004_v13  ;;  %v4068_v13 = vcombine.low %v211_v1, %v215_v2  ;;  %v20_v1 = vld [vmem:[%s6208_s1 + $0x8] sm:$0xff] }
  0xc2   :  { %2806 = vmatmul.mubr.bf16.gmra.mrb[64].mxu0 %v4008_v14  ;;  %2235 = vmatprep.mubr.bf16.mxu1 %v4013_v15  ;;  %v4072_v14 = vcombine.low %v213_v3, %v217_v4  ;;  %v4077_v15 = vcombine.high %v219_v9, %v223_v10  ;;  %v24_v2 = vld [vmem:[%s6208_s1 + $0x28] sm:$0xff]  ;;  %v22_v3 = vld [vmem:[%s6208_s1 + $0x18] sm:$0xff] }
  0xc3   :  { %2813 = vmatprep.mubr.bf16.mxu0 %v4017_v16  ;;  %v4081_v16 = vcombine.high %v221_v11, %v225_v12  ;;  %v26_v4 = vld [vmem:[%s6208_s1 + $0x38] sm:$0xff] }
  0xc9   :  { %2236 = vmatmul.mubr.bf16.gmra.mrb[68].mxu1 %v4012_v21  ;;  %v4076_v21 = vcombine.low %v219_v9, %v223_v10  ;;  %v28_v9 = vld [vmem:[%s6208_s1 + $0x48] sm:$0xff] }
  0xca   :  { %2814 = vmatmul.mubr.bf16.gmra.mrb[68].mxu0 %v4016_v22  ;;  %2243 = vmatprep.mubr.bf16.mxu1 %v4021_v23  ;;  %v4080_v22 = vcombine.low %v221_v11, %v225_v12  ;;  %v4085_v23 = vcombine.high %v227_v17, %v231_v18  ;;  %v32_v10 = vld [vmem:[%s6208_s1 + $0x68] sm:$0xff]  ;;  %v30_v11 = vld [vmem:[%s6208_s1 + $0x58] sm:$0xff] }
  0xcb   :  { %2821 = vmatprep.mubr.bf16.mxu0 %v4025_v24  ;;  %v4089_v24 = vcombine.high %v229_v19, %v233_v20  ;;  %v34_v12 = vld [vmem:[%s6208_s1 + $0x78] sm:$0xff] }
  0xd1   :  { %2244 = vmatmul.mubr.bf16.gmra.mrb[72].mxu1 %v4020_v29  ;;  %v4084_v29 = vcombine.low %v227_v17, %v231_v18  ;;  %v36_v17 = vld [vmem:[%s6208_s1 + $0x88] sm:$0xff] }
  0xd2   :  { %2822 = vmatmul.mubr.bf16.gmra.mrb[72].mxu0 %v4024_v30  ;;  %2251 = vmatprep.mubr.bf16.mxu1 %v4029_v31  ;;  %v4088_v30 = vcombine.low %v229_v19, %v233_v20  ;;  %v4093_v31 = vcombine.high %v235_v25, %v239_v26  ;;  %v40_v18 = vld [vmem:[%s6208_s1 + $0xa8] sm:$0xff]  ;;  %v38_v19 = vld [vmem:[%s6208_s1 + $0x98] sm:$0xff] }
  0xd3   :  { %2829 = vmatprep.mubr.bf16.mxu0 %v4033_v32  ;;  %v4097_v32 = vcombine.high %v237_v27, %v241_v28  ;;  %v42_v20 = vld [vmem:[%s6208_s1 + $0xb8] sm:$0xff] }
  0xd9   :  { %2252 = vmatmul.mubr.bf16.gmra.mrb[76].mxu1 %v4028_v37  ;;  %v4092_v37 = vcombine.low %v235_v25, %v239_v26  ;;  %v44_v25 = vld [vmem:[%s6208_s1 + $0xc8] sm:$0xff] }
  0xda   :  { %2830 = vmatmul.mubr.bf16.gmra.mrb[76].mxu0 %v4032_v38  ;;  %2259 = vmatprep.mubr.bf16.mxu1 %v4037_v39  ;;  %v4096_v38 = vcombine.low %v237_v27, %v241_v28  ;;  %v4101_v39 = vcombine.high %v243_v33, %v247_v34  ;;  %v48_v26 = vld [vmem:[%s6208_s1 + $0xe8] sm:$0xff]  ;;  %v46_v27 = vld [vmem:[%s6208_s1 + $0xd8] sm:$0xff] }
  0xdb   :  { %2837 = vmatprep.mubr.bf16.mxu0 %v4041_v40  ;;  %v4105_v40 = vcombine.high %v245_v35, %v249_v36  ;;  %v50_v28 = vld [vmem:[%s6208_s1 + $0xf8] sm:$0xff] }
  0xe1   :  { %2260 = vmatmul.mubr.bf16.gmra.mrb[80].mxu1 %v4036_v45  ;;  %v4100_v45 = vcombine.low %v243_v33, %v247_v34  ;;  %v52_v33 = vld [vmem:[%s6208_s1 + $0x108] sm:$0xff] }
  0xe2   :  { %2838 = vmatmul.mubr.bf16.gmra.mrb[80].mxu0 %v4040_v46  ;;  %2267 = vmatprep.mubr.bf16.mxu1 %v4045_v47  ;;  %v4104_v46 = vcombine.low %v245_v35, %v249_v36  ;;  %v4109_v47 = vcombine.high %v251_v41, %v255_v42  ;;  %v56_v34 = vld [vmem:[%s6208_s1 + $0x128] sm:$0xff]  ;;  %v54_v35 = vld [vmem:[%s6208_s1 + $0x118] sm:$0xff] }
  0xe3   :  { %2845 = vmatprep.mubr.bf16.mxu0 %v4049_v48  ;;  %v4113_v48 = vcombine.high %v253_v43, %v257_v44  ;;  %v58_v36 = vld [vmem:[%s6208_s1 + $0x138] sm:$0xff] }
  0xe9   :  { %2268 = vmatmul.mubr.bf16.gmra.mrb[84].mxu1 %v4044_v53  ;;  %v4108_v53 = vcombine.low %v251_v41, %v255_v42  ;;  %v60_v41 = vld [vmem:[%s6208_s1 + $0x148] sm:$0xff] }
  0xea   :  { %2846 = vmatmul.mubr.bf16.gmra.mrb[84].mxu0 %v4048_v54  ;;  %2275 = vmatprep.mubr.bf16.mxu1 %v4053_v55  ;;  %v4112_v54 = vcombine.low %v253_v43, %v257_v44  ;;  %v4117_v55 = vcombine.high %v259_v49, %v263_v50  ;;  %v64_v42 = vld [vmem:[%s6208_s1 + $0x168] sm:$0xff]  ;;  %v62_v43 = vld [vmem:[%s6208_s1 + $0x158] sm:$0xff] }
  0xeb   :  { %2853 = vmatprep.mubr.bf16.mxu0 %v4057_v56  ;;  %v4121_v56 = vcombine.high %v261_v51, %v265_v52  ;;  %v66_v44 = vld [vmem:[%s6208_s1 + $0x178] sm:$0xff] }
  0xf1   :  { %2276 = vmatmul.mubr.bf16.gmra.mrb[88].mxu1 %v4052_v60  ;;  %v4116_v60 = vcombine.low %v259_v49, %v263_v50  ;;  %v68_v49 = vld [vmem:[%s6208_s1 + $0x188] sm:$0xff] }
  0xf2   :  { %2854 = vmatmul.mubr.bf16.gmra.mrb[88].mxu0 %v4056_v61  ;;  %2283 = vmatprep.mubr.bf16.mxu1 %v4061_v62  ;;  %v4120_v61 = vcombine.low %v261_v51, %v265_v52  ;;  %v4125_v62 = vcombine.high %v267_v57, %v271_v0  ;;  %v72_v50 = vld [vmem:[%s6208_s1 + $0x1a8] sm:$0xff]  ;;  %v70_v51 = vld [vmem:[%s6208_s1 + $0x198] sm:$0xff] }
  0xf3   :  { %2861 = vmatprep.mubr.bf16.mxu0 %v4065_v63  ;;  %v4129_v63 = vcombine.high %v269_v58, %v273_v59  ;;  %v74_v52 = vld [vmem:[%s6208_s1 + $0x1b8] sm:$0xff] }
  0xf9   :  { %2284 = vmatmul.mubr.bf16.gmra.mrb[92].mxu1 %v4060_v5  ;;  %v4124_v5 = vcombine.low %v267_v57, %v271_v0  ;;  %v76_v57 = vld [vmem:[%s6208_s1 + $0x1c8] sm:$0xff] }
  0xfa   :  { %2862 = vmatmul.mubr.bf16.gmra.mrb[92].mxu0 %v4064_v6  ;;  %2291 = vmatprep.mubr.bf16.mxu1 %v4069_v7  ;;  %v4128_v6 = vcombine.low %v269_v58, %v273_v59  ;;  %v3879_v7 = vcombine.high %v20_v1, %v24_v2  ;;  %v80_v0 = vld [vmem:[%s6208_s1 + $0x1e8] sm:$0xff]  ;;  %v78_v58 = vld [vmem:[%s6208_s1 + $0x1d8] sm:$0xff] }
  0xfb   :  { %2869 = vmatprep.mubr.bf16.mxu0 %v4073_v8  ;;  %v3883_v8 = vcombine.high %v22_v3, %v26_v4  ;;  %v82_v59 = vld [vmem:[%s6208_s1 + $0x1f8] sm:$0xff] }
 0x101   :  { %2292 = vmatmul.mubr.bf16.gmra.mrb[96].mxu1 %v4068_v13  ;;  %v3878_v13 = vcombine.low %v20_v1, %v24_v2  ;;  %v84_v1 = vld [vmem:[%s6208_s1 + $0x208] sm:$0xff] }
 0x102   :  { %2870 = vmatmul.mubr.bf16.gmra.mrb[96].mxu0 %v4072_v14  ;;  %2299 = vmatprep.mubr.bf16.mxu1 %v4077_v15  ;;  %v3882_v14 = vcombine.low %v22_v3, %v26_v4  ;;  %v3887_v15 = vcombine.high %v28_v9, %v32_v10  ;;  %v88_v2 = vld [vmem:[%s6208_s1 + $0x228] sm:$0xff]  ;;  %v86_v3 = vld [vmem:[%s6208_s1 + $0x218] sm:$0xff] }
 0x103   :  { %2877 = vmatprep.mubr.bf16.mxu0 %v4081_v16  ;;  %v3891_v16 = vcombine.high %v30_v11, %v34_v12  ;;  %v90_v4 = vld [vmem:[%s6208_s1 + $0x238] sm:$0xff] }
 0x109   :  { %2300 = vmatmul.mubr.bf16.gmra.mrb[100].mxu1 %v4076_v21  ;;  %v3886_v21 = vcombine.low %v28_v9, %v32_v10  ;;  %v92_v9 = vld [vmem:[%s6208_s1 + $0x248] sm:$0xff] }
 0x10a   :  { %2878 = vmatmul.mubr.bf16.gmra.mrb[100].mxu0 %v4080_v22  ;;  %2307 = vmatprep.mubr.bf16.mxu1 %v4085_v23  ;;  %v3890_v22 = vcombine.low %v30_v11, %v34_v12  ;;  %v3895_v23 = vcombine.high %v36_v17, %v40_v18  ;;  %v96_v10 = vld [vmem:[%s6208_s1 + $0x268] sm:$0xff]  ;;  %v94_v11 = vld [vmem:[%s6208_s1 + $0x258] sm:$0xff] }
 0x10b   :  { %2885 = vmatprep.mubr.bf16.mxu0 %v4089_v24  ;;  %v3899_v24 = vcombine.high %v38_v19, %v42_v20  ;;  %v98_v12 = vld [vmem:[%s6208_s1 + $0x278] sm:$0xff] }
 0x111   :  { %2308 = vmatmul.mubr.bf16.gmra.mrb[104].mxu1 %v4084_v29  ;;  %v3894_v29 = vcombine.low %v36_v17, %v40_v18  ;;  %v100_v17 = vld [vmem:[%s6208_s1 + $0x288] sm:$0xff] }
 0x112   :  { %2886 = vmatmul.mubr.bf16.gmra.mrb[104].mxu0 %v4088_v30  ;;  %2315 = vmatprep.mubr.bf16.mxu1 %v4093_v31  ;;  %v3898_v30 = vcombine.low %v38_v19, %v42_v20  ;;  %v3903_v31 = vcombine.high %v44_v25, %v48_v26  ;;  %v104_v18 = vld [vmem:[%s6208_s1 + $0x2a8] sm:$0xff]  ;;  %v102_v19 = vld [vmem:[%s6208_s1 + $0x298] sm:$0xff] }
 0x113   :  { %2893 = vmatprep.mubr.bf16.mxu0 %v4097_v32  ;;  %v3907_v32 = vcombine.high %v46_v27, %v50_v28  ;;  %v106_v20 = vld [vmem:[%s6208_s1 + $0x2b8] sm:$0xff] }
 0x119   :  { %2316 = vmatmul.mubr.bf16.gmra.mrb[108].mxu1 %v4092_v37  ;;  %v3902_v37 = vcombine.low %v44_v25, %v48_v26  ;;  %v108_v25 = vld [vmem:[%s6208_s1 + $0x2c8] sm:$0xff] }
 0x11a   :  { %2894 = vmatmul.mubr.bf16.gmra.mrb[108].mxu0 %v4096_v38  ;;  %2323 = vmatprep.mubr.bf16.mxu1 %v4101_v39  ;;  %v3906_v38 = vcombine.low %v46_v27, %v50_v28  ;;  %v3911_v39 = vcombine.high %v52_v33, %v56_v34  ;;  %v112_v26 = vld [vmem:[%s6208_s1 + $0x2e8] sm:$0xff]  ;;  %v110_v27 = vld [vmem:[%s6208_s1 + $0x2d8] sm:$0xff] }
 0x11b   :  { %2901 = vmatprep.mubr.bf16.mxu0 %v4105_v40  ;;  %v3915_v40 = vcombine.high %v54_v35, %v58_v36  ;;  %v114_v28 = vld [vmem:[%s6208_s1 + $0x2f8] sm:$0xff] }
 0x121   :  { %2324 = vmatmul.mubr.bf16.gmra.mrb[112].mxu1 %v4100_v45  ;;  %v3910_v45 = vcombine.low %v52_v33, %v56_v34  ;;  %v116_v33 = vld [vmem:[%s6208_s1 + $0x308] sm:$0xff] }
 0x122   :  { %2902 = vmatmul.mubr.bf16.gmra.mrb[112].mxu0 %v4104_v46  ;;  %2331 = vmatprep.mubr.bf16.mxu1 %v4109_v47  ;;  %v3914_v46 = vcombine.low %v54_v35, %v58_v36  ;;  %v3919_v47 = vcombine.high %v60_v41, %v64_v42  ;;  %v120_v34 = vld [vmem:[%s6208_s1 + $0x328] sm:$0xff]  ;;  %v118_v35 = vld [vmem:[%s6208_s1 + $0x318] sm:$0xff] }
 0x123   :  { %2909 = vmatprep.mubr.bf16.mxu0 %v4113_v48  ;;  %v3923_v48 = vcombine.high %v62_v43, %v66_v44  ;;  %v122_v36 = vld [vmem:[%s6208_s1 + $0x338] sm:$0xff] }
 0x129   :  { %2332 = vmatmul.mubr.bf16.gmra.mrb[116].mxu1 %v4108_v53  ;;  %v3918_v53 = vcombine.low %v60_v41, %v64_v42  ;;  %v124_v41 = vld [vmem:[%s6208_s1 + $0x348] sm:$0xff] }
 0x12a   :  { %2910 = vmatmul.mubr.bf16.gmra.mrb[116].mxu0 %v4112_v54  ;;  %2339 = vmatprep.mubr.bf16.mxu1 %v4117_v55  ;;  %v3922_v54 = vcombine.low %v62_v43, %v66_v44  ;;  %v3927_v55 = vcombine.high %v68_v49, %v72_v50  ;;  %v128_v42 = vld [vmem:[%s6208_s1 + $0x368] sm:$0xff]  ;;  %v126_v43 = vld [vmem:[%s6208_s1 + $0x358] sm:$0xff] }
 0x12b   :  { %2917 = vmatprep.mubr.bf16.mxu0 %v4121_v56  ;;  %v3931_v56 = vcombine.high %v70_v51, %v74_v52  ;;  %v130_v44 = vld [vmem:[%s6208_s1 + $0x378] sm:$0xff] }
 0x131   :  { %2340 = vmatmul.mubr.bf16.gmra.mrb[120].mxu1 %v4116_v60  ;;  %v3926_v60 = vcombine.low %v68_v49, %v72_v50  ;;  %v132_v49 = vld [vmem:[%s6208_s1 + $0x388] sm:$0xff] }
 0x132   :  { %2918 = vmatmul.mubr.bf16.gmra.mrb[120].mxu0 %v4120_v61  ;;  %2347 = vmatprep.mubr.bf16.mxu1 %v4125_v62  ;;  %v3930_v61 = vcombine.low %v70_v51, %v74_v52  ;;  %v3935_v62 = vcombine.high %v76_v57, %v80_v0  ;;  %v136_v50 = vld [vmem:[%s6208_s1 + $0x3a8] sm:$0xff]  ;;  %v134_v51 = vld [vmem:[%s6208_s1 + $0x398] sm:$0xff] }
 0x133   :  { %2925 = vmatprep.mubr.bf16.mxu0 %v4129_v63  ;;  %v3939_v63 = vcombine.high %v78_v58, %v82_v59  ;;  %v138_v52 = vld [vmem:[%s6208_s1 + $0x3b8] sm:$0xff] }
 0x139   :  { %2348 = vmatmul.mubr.bf16.gmra.mrb[124].mxu1 %v4124_v5  ;;  %v3934_v5 = vcombine.low %v76_v57, %v80_v0  ;;  %v140_v57 = vld [vmem:[%s6208_s1 + $0x3c8] sm:$0xff] }
 0x13a   :  { %2926 = vmatmul.mubr.bf16.gmra.mrb[124].mxu0 %v4128_v6  ;;  %2388 = vmatprep.mubr.bf16.mxu1 %v3879_v7  ;;  %v3938_v6 = vcombine.low %v78_v58, %v82_v59  ;;  %v3943_v7 = vcombine.high %v84_v1, %v88_v2  ;;  %v144_v0 = vld [vmem:[%s6208_s1 + $0x3e8] sm:$0xff]  ;;  %v142_v58 = vld [vmem:[%s6208_s1 + $0x3d8] sm:$0xff] }
 0x13b   :  { %2966 = vmatprep.mubr.bf16.mxu0 %v3883_v8  ;;  %v3947_v8 = vcombine.high %v86_v3, %v90_v4  ;;  %v146_v59 = vld [vmem:[%s6208_s1 + $0x3f8] sm:$0xff] }
 0x141   :  { %2389 = vmatmul.mubr.bf16.vlgmr.msra.gmra.mrb[0].mxu1 %v3878_v13  ;;  %v3942_v13 = vcombine.low %v84_v1, %v88_v2  ;;  %v148_v1 = vld [vmem:[%s6208_s1 + $0x408] sm:$0xff] }
 0x142   :  { %2967 = vmatmul.mubr.bf16.vlgmr.msra.gmra.mrb[0].mxu0 %v3882_v14  ;;  %2396 = vmatprep.mubr.bf16.mxu1 %v3887_v15  ;;  %v3946_v14 = vcombine.low %v86_v3, %v90_v4  ;;  %v3951_v15 = vcombine.high %v92_v9, %v96_v10  ;;  %v152_v2 = vld [vmem:[%s6208_s1 + $0x428] sm:$0xff]  ;;  %v150_v3 = vld [vmem:[%s6208_s1 + $0x418] sm:$0xff] }
 0x143   :  { %2974 = vmatprep.mubr.bf16.mxu0 %v3891_v16  ;;  %v3955_v16 = vcombine.high %v94_v11, %v98_v12  ;;  %v154_v4 = vld [vmem:[%s6208_s1 + $0x438] sm:$0xff] }
 0x149   :  { %2397 = vmatmul.mubr.bf16.gmra.mrb[4].mxu1 %v3886_v21  ;;  %v3950_v21 = vcombine.low %v92_v9, %v96_v10  ;;  %v156_v9 = vld [vmem:[%s6208_s1 + $0x448] sm:$0xff] }
 0x14a   :  { %2975 = vmatmul.mubr.bf16.gmra.mrb[4].mxu0 %v3890_v22  ;;  %2404 = vmatprep.mubr.bf16.mxu1 %v3895_v23  ;;  %v3954_v22 = vcombine.low %v94_v11, %v98_v12  ;;  %v3959_v23 = vcombine.high %v100_v17, %v104_v18  ;;  %v160_v10 = vld [vmem:[%s6208_s1 + $0x468] sm:$0xff]  ;;  %v158_v11 = vld [vmem:[%s6208_s1 + $0x458] sm:$0xff] }
 0x14b   :  { %2982 = vmatprep.mubr.bf16.mxu0 %v3899_v24  ;;  %v3963_v24 = vcombine.high %v102_v19, %v106_v20  ;;  %v162_v12 = vld [vmem:[%s6208_s1 + $0x478] sm:$0xff] }
 0x151   :  { %2405 = vmatmul.mubr.bf16.gmra.mrb[8].mxu1 %v3894_v29  ;;  %v3958_v29 = vcombine.low %v100_v17, %v104_v18  ;;  %v164_v17 = vld [vmem:[%s6208_s1 + $0x488] sm:$0xff] }
 0x152   :  { %2983 = vmatmul.mubr.bf16.gmra.mrb[8].mxu0 %v3898_v30  ;;  %2412 = vmatprep.mubr.bf16.mxu1 %v3903_v31  ;;  %v3962_v30 = vcombine.low %v102_v19, %v106_v20  ;;  %v3967_v31 = vcombine.high %v108_v25, %v112_v26  ;;  %v168_v18 = vld [vmem:[%s6208_s1 + $0x4a8] sm:$0xff]  ;;  %v166_v19 = vld [vmem:[%s6208_s1 + $0x498] sm:$0xff] }
 0x153   :  { %2990 = vmatprep.mubr.bf16.mxu0 %v3907_v32  ;;  %v3971_v32 = vcombine.high %v110_v27, %v114_v28  ;;  %v170_v20 = vld [vmem:[%s6208_s1 + $0x4b8] sm:$0xff] }
 0x159   :  { %2413 = vmatmul.mubr.bf16.gmra.mrb[12].mxu1 %v3902_v37  ;;  %v3966_v37 = vcombine.low %v108_v25, %v112_v26  ;;  %v172_v25 = vld [vmem:[%s6208_s1 + $0x4c8] sm:$0xff] }
 0x15a   :  { %2991 = vmatmul.mubr.bf16.gmra.mrb[12].mxu0 %v3906_v38  ;;  %2420 = vmatprep.mubr.bf16.mxu1 %v3911_v39  ;;  %v3970_v38 = vcombine.low %v110_v27, %v114_v28  ;;  %v3975_v39 = vcombine.high %v116_v33, %v120_v34  ;;  %v176_v26 = vld [vmem:[%s6208_s1 + $0x4e8] sm:$0xff]  ;;  %v174_v27 = vld [vmem:[%s6208_s1 + $0x4d8] sm:$0xff] }
 0x15b   :  { %2998 = vmatprep.mubr.bf16.mxu0 %v3915_v40  ;;  %v3979_v40 = vcombine.high %v118_v35, %v122_v36  ;;  %v178_v28 = vld [vmem:[%s6208_s1 + $0x4f8] sm:$0xff] }
 0x161   :  { %2421 = vmatmul.mubr.bf16.gmra.mrb[16].mxu1 %v3910_v45  ;;  %v3974_v45 = vcombine.low %v116_v33, %v120_v34  ;;  %v180_v33 = vld [vmem:[%s6208_s1 + $0x508] sm:$0xff] }
 0x162   :  { %2999 = vmatmul.mubr.bf16.gmra.mrb[16].mxu0 %v3914_v46  ;;  %2428 = vmatprep.mubr.bf16.mxu1 %v3919_v47  ;;  %v3978_v46 = vcombine.low %v118_v35, %v122_v36  ;;  %v3983_v47 = vcombine.high %v124_v41, %v128_v42  ;;  %v184_v34 = vld [vmem:[%s6208_s1 + $0x528] sm:$0xff]  ;;  %v182_v35 = vld [vmem:[%s6208_s1 + $0x518] sm:$0xff] }
 0x163   :  { %3006 = vmatprep.mubr.bf16.mxu0 %v3923_v48  ;;  %v3987_v48 = vcombine.high %v126_v43, %v130_v44  ;;  %v186_v36 = vld [vmem:[%s6208_s1 + $0x538] sm:$0xff] }
 0x169   :  { %2429 = vmatmul.mubr.bf16.gmra.mrb[20].mxu1 %v3918_v53  ;;  %v3982_v53 = vcombine.low %v124_v41, %v128_v42  ;;  %v188_v41 = vld [vmem:[%s6208_s1 + $0x548] sm:$0xff] }
 0x16a   :  { %3007 = vmatmul.mubr.bf16.gmra.mrb[20].mxu0 %v3922_v54  ;;  %2436 = vmatprep.mubr.bf16.mxu1 %v3927_v55  ;;  %v3986_v54 = vcombine.low %v126_v43, %v130_v44  ;;  %v3991_v55 = vcombine.high %v132_v49, %v136_v50  ;;  %v192_v42 = vld [vmem:[%s6208_s1 + $0x568] sm:$0xff]  ;;  %v190_v43 = vld [vmem:[%s6208_s1 + $0x558] sm:$0xff] }
 0x16b   :  { %3014 = vmatprep.mubr.bf16.mxu0 %v3931_v56  ;;  %v3995_v56 = vcombine.high %v134_v51, %v138_v52  ;;  %v194_v44 = vld [vmem:[%s6208_s1 + $0x578] sm:$0xff] }
 0x171   :  { %2437 = vmatmul.mubr.bf16.gmra.mrb[24].mxu1 %v3926_v60  ;;  %v3990_v60 = vcombine.low %v132_v49, %v136_v50  ;;  %v196_v49 = vld [vmem:[%s6208_s1 + $0x588] sm:$0xff] }
 0x172   :  { %3015 = vmatmul.mubr.bf16.gmra.mrb[24].mxu0 %v3930_v61  ;;  %2444 = vmatprep.mubr.bf16.mxu1 %v3935_v62  ;;  %v3994_v61 = vcombine.low %v134_v51, %v138_v52  ;;  %v3999_v62 = vcombine.high %v140_v57, %v144_v0  ;;  %v200_v50 = vld [vmem:[%s6208_s1 + $0x5a8] sm:$0xff]  ;;  %v198_v51 = vld [vmem:[%s6208_s1 + $0x598] sm:$0xff] }
 0x173   :  { %3022 = vmatprep.mubr.bf16.mxu0 %v3939_v63  ;;  %v4003_v63 = vcombine.high %v142_v58, %v146_v59  ;;  %v202_v52 = vld [vmem:[%s6208_s1 + $0x5b8] sm:$0xff] }
 0x179   :  { %2445 = vmatmul.mubr.bf16.gmra.mrb[28].mxu1 %v3934_v5  ;;  %v3998_v5 = vcombine.low %v140_v57, %v144_v0  ;;  %v204_v57 = vld [vmem:[%s6208_s1 + $0x5c8] sm:$0xff] }
 0x17a   :  { %3023 = vmatmul.mubr.bf16.gmra.mrb[28].mxu0 %v3938_v6  ;;  %2452 = vmatprep.mubr.bf16.mxu1 %v3943_v7  ;;  %v4002_v6 = vcombine.low %v142_v58, %v146_v59  ;;  %v4007_v7 = vcombine.high %v148_v1, %v152_v2  ;;  %v208_v0 = vld [vmem:[%s6208_s1 + $0x5e8] sm:$0xff]  ;;  %v206_v58 = vld [vmem:[%s6208_s1 + $0x5d8] sm:$0xff] }
 0x17b   :  { %3030 = vmatprep.mubr.bf16.mxu0 %v3947_v8  ;;  %v4011_v8 = vcombine.high %v150_v3, %v154_v4  ;;  %v210_v59 = vld [vmem:[%s6208_s1 + $0x5f8] sm:$0xff] }
 0x181   :  { %2453 = vmatmul.mubr.bf16.gmra.mrb[32].mxu1 %v3942_v13  ;;  %v4006_v13 = vcombine.low %v148_v1, %v152_v2  ;;  %v212_v1 = vld [vmem:[%s6208_s1 + $0x608] sm:$0xff] }
 0x182   :  { %3031 = vmatmul.mubr.bf16.gmra.mrb[32].mxu0 %v3946_v14  ;;  %2460 = vmatprep.mubr.bf16.mxu1 %v3951_v15  ;;  %v4010_v14 = vcombine.low %v150_v3, %v154_v4  ;;  %v4015_v15 = vcombine.high %v156_v9, %v160_v10  ;;  %v216_v2 = vld [vmem:[%s6208_s1 + $0x628] sm:$0xff]  ;;  %v214_v3 = vld [vmem:[%s6208_s1 + $0x618] sm:$0xff] }
 0x183   :  { %3038 = vmatprep.mubr.bf16.mxu0 %v3955_v16  ;;  %v4019_v16 = vcombine.high %v158_v11, %v162_v12  ;;  %v218_v4 = vld [vmem:[%s6208_s1 + $0x638] sm:$0xff] }
 0x189   :  { %2461 = vmatmul.mubr.bf16.gmra.mrb[36].mxu1 %v3950_v21  ;;  %v4014_v21 = vcombine.low %v156_v9, %v160_v10  ;;  %v220_v9 = vld [vmem:[%s6208_s1 + $0x648] sm:$0xff] }
 0x18a   :  { %3039 = vmatmul.mubr.bf16.gmra.mrb[36].mxu0 %v3954_v22  ;;  %2468 = vmatprep.mubr.bf16.mxu1 %v3959_v23  ;;  %v4018_v22 = vcombine.low %v158_v11, %v162_v12  ;;  %v4023_v23 = vcombine.high %v164_v17, %v168_v18  ;;  %v224_v10 = vld [vmem:[%s6208_s1 + $0x668] sm:$0xff]  ;;  %v222_v11 = vld [vmem:[%s6208_s1 + $0x658] sm:$0xff] }
 0x18b   :  { %3046 = vmatprep.mubr.bf16.mxu0 %v3963_v24  ;;  %v4027_v24 = vcombine.high %v166_v19, %v170_v20  ;;  %v226_v12 = vld [vmem:[%s6208_s1 + $0x678] sm:$0xff] }
 0x191   :  { %2469 = vmatmul.mubr.bf16.gmra.mrb[40].mxu1 %v3958_v29  ;;  %v4022_v29 = vcombine.low %v164_v17, %v168_v18  ;;  %v228_v17 = vld [vmem:[%s6208_s1 + $0x688] sm:$0xff] }
 0x192   :  { %3047 = vmatmul.mubr.bf16.gmra.mrb[40].mxu0 %v3962_v30  ;;  %2476 = vmatprep.mubr.bf16.mxu1 %v3967_v31  ;;  %v4026_v30 = vcombine.low %v166_v19, %v170_v20  ;;  %v4031_v31 = vcombine.high %v172_v25, %v176_v26  ;;  %v232_v18 = vld [vmem:[%s6208_s1 + $0x6a8] sm:$0xff]  ;;  %v230_v19 = vld [vmem:[%s6208_s1 + $0x698] sm:$0xff] }
 0x193   :  { %3054 = vmatprep.mubr.bf16.mxu0 %v3971_v32  ;;  %v4035_v32 = vcombine.high %v174_v27, %v178_v28  ;;  %v234_v20 = vld [vmem:[%s6208_s1 + $0x6b8] sm:$0xff] }
 0x199   :  { %2477 = vmatmul.mubr.bf16.gmra.mrb[44].mxu1 %v3966_v37  ;;  %v4030_v37 = vcombine.low %v172_v25, %v176_v26  ;;  %v236_v25 = vld [vmem:[%s6208_s1 + $0x6c8] sm:$0xff] }
 0x19a   :  { %3055 = vmatmul.mubr.bf16.gmra.mrb[44].mxu0 %v3970_v38  ;;  %2484 = vmatprep.mubr.bf16.mxu1 %v3975_v39  ;;  %v4034_v38 = vcombine.low %v174_v27, %v178_v28  ;;  %v4039_v39 = vcombine.high %v180_v33, %v184_v34  ;;  %v240_v26 = vld [vmem:[%s6208_s1 + $0x6e8] sm:$0xff]  ;;  %v238_v27 = vld [vmem:[%s6208_s1 + $0x6d8] sm:$0xff] }
 0x19b   :  { %3062 = vmatprep.mubr.bf16.mxu0 %v3979_v40  ;;  %v4043_v40 = vcombine.high %v182_v35, %v186_v36  ;;  %v242_v28 = vld [vmem:[%s6208_s1 + $0x6f8] sm:$0xff] }
 0x1a1   :  { %2485 = vmatmul.mubr.bf16.gmra.mrb[48].mxu1 %v3974_v45  ;;  %v4038_v45 = vcombine.low %v180_v33, %v184_v34  ;;  %v244_v33 = vld [vmem:[%s6208_s1 + $0x708] sm:$0xff] }
 0x1a2   :  { %3063 = vmatmul.mubr.bf16.gmra.mrb[48].mxu0 %v3978_v46  ;;  %2492 = vmatprep.mubr.bf16.mxu1 %v3983_v47  ;;  %v4042_v46 = vcombine.low %v182_v35, %v186_v36  ;;  %v4047_v47 = vcombine.high %v188_v41, %v192_v42  ;;  %v248_v34 = vld [vmem:[%s6208_s1 + $0x728] sm:$0xff]  ;;  %v246_v36 = vld [vmem:[%s6208_s1 + $0x718] sm:$0xff] }
 0x1a3   :  { %3070 = vmatprep.mubr.bf16.mxu0 %v3987_v48  ;;  %v4051_v48 = vcombine.high %v190_v43, %v194_v44 }
 0x1a9   :  { %2493 = vmatmul.mubr.bf16.gmra.mrb[52].mxu1 %v3982_v53  ;;  %v4046_v53 = vcombine.low %v188_v41, %v192_v42  ;;  %v4094_v41 = vcombine.low %v236_v25, %v240_v26 }
 0x1aa   :  { %3071 = vmatmul.mubr.bf16.gmra.mrb[52].mxu0 %v3986_v54  ;;  %2500 = vmatprep.mubr.bf16.mxu1 %v3991_v55  ;;  %v4050_v54 = vcombine.low %v190_v43, %v194_v44  ;;  %v4055_v55 = vcombine.high %v196_v49, %v200_v50 }
 0x1ab   :  { %3078 = vmatprep.mubr.bf16.mxu0 %v3995_v56  ;;  %v4059_v56 = vcombine.high %v198_v51, %v202_v52 }
 0x1b1   :  { %2501 = vmatmul.mubr.bf16.gmra.mrb[56].mxu1 %v3990_v60  ;;  %v4054_v60 = vcombine.low %v196_v49, %v200_v50 }
 0x1b2   :  { %3079 = vmatmul.mubr.bf16.gmra.mrb[56].mxu0 %v3994_v61  ;;  %2508 = vmatprep.mubr.bf16.mxu1 %v3999_v62  ;;  %v4058_v61 = vcombine.low %v198_v51, %v202_v52  ;;  %v4063_v62 = vcombine.high %v204_v57, %v208_v0 }
 0x1b3   :  { %3086 = vmatprep.mubr.bf16.mxu0 %v4003_v63  ;;  %v4067_v63 = vcombine.high %v206_v58, %v210_v59 }
 0x1b9   :  { %2509 = vmatmul.mubr.bf16.gmra.mrb[60].mxu1 %v3998_v5  ;;  %v4062_v5 = vcombine.low %v204_v57, %v208_v0  ;;  %v256_v57 = vld [vmem:[%s6208_s1 + $0x768] sm:$0xff] }
 0x1ba   :  { %3087 = vmatmul.mubr.bf16.gmra.mrb[60].mxu0 %v4002_v6  ;;  %2516 = vmatprep.mubr.bf16.mxu1 %v4007_v7  ;;  %v4066_v6 = vcombine.low %v206_v58, %v210_v59  ;;  %v4071_v7 = vcombine.high %v212_v1, %v216_v2 }
 0x1bb   :  { %3094 = vmatprep.mubr.bf16.mxu0 %v4011_v8  ;;  %v4075_v8 = vcombine.high %v214_v3, %v218_v4 }
 0x1c1   :  { %2517 = vmatmul.mubr.bf16.gmra.mrb[64].mxu1 %v4006_v13  ;;  %v4070_v13 = vcombine.low %v212_v1, %v216_v2  ;;  %v4102_v1 = vcombine.low %v244_v33, %v248_v34 }
 0x1c2   :  { %3095 = vmatmul.mubr.bf16.gmra.mrb[64].mxu0 %v4010_v14  ;;  %2524 = vmatprep.mubr.bf16.mxu1 %v4015_v15  ;;  %v4074_v14 = vcombine.low %v214_v3, %v218_v4  ;;  %v4079_v15 = vcombine.high %v220_v9, %v224_v10 }
 0x1c3   :  { %3102 = vmatprep.mubr.bf16.mxu0 %v4019_v16  ;;  %v4083_v16 = vcombine.high %v222_v11, %v226_v12 }
 0x1c9   :  { %2525 = vmatmul.mubr.bf16.gmra.mrb[68].mxu1 %v4014_v21  ;;  %v4078_v21 = vcombine.low %v220_v9, %v224_v10 }
 0x1ca   :  { %3103 = vmatmul.mubr.bf16.gmra.mrb[68].mxu0 %v4018_v22  ;;  %2532 = vmatprep.mubr.bf16.mxu1 %v4023_v23  ;;  %v4082_v22 = vcombine.low %v222_v11, %v226_v12  ;;  %v4087_v23 = vcombine.high %v228_v17, %v232_v18 }
 0x1cb   :  { %3110 = vmatprep.mubr.bf16.mxu0 %v4027_v24  ;;  %v4091_v24 = vcombine.high %v230_v19, %v234_v20 }
 0x1d1   :  { %2533 = vmatmul.mubr.bf16.gmra.mrb[72].mxu1 %v4022_v29  ;;  %v4086_v29 = vcombine.low %v228_v17, %v232_v18 }
 0x1d2   :  { %3111 = vmatmul.mubr.bf16.gmra.mrb[72].mxu0 %v4026_v30  ;;  %2540 = vmatprep.mubr.bf16.mxu1 %v4031_v31  ;;  %v4090_v30 = vcombine.low %v230_v19, %v234_v20  ;;  %v4095_v31 = vcombine.high %v236_v25, %v240_v26  ;;  %v260_v19 = vld [vmem:[%s6208_s1 + $0x788] sm:$0xff]  ;;  %v266_v25 = vld [vmem:[%s6208_s1 + $0x7b8] sm:$0xff] }
 0x1d3   :  { %3118 = vmatprep.mubr.bf16.mxu0 %v4035_v32  ;;  %v4099_v32 = vcombine.high %v238_v27, %v242_v28  ;;  %v264_v20 = vld [vmem:[%s6208_s1 + $0x7a8] sm:$0xff] }
 0x1d9   :  { %2541 = vmatmul.mubr.bf16.gmra.mrb[76].mxu1 %v4030_v37  ;;  %v250_v37 = vld [vmem:[%s6208_s1 + $0x738] sm:$0xff] }
 0x1da   :  { %3119 = vmatmul.mubr.bf16.gmra.mrb[76].mxu0 %v4034_v38  ;;  %2548 = vmatprep.mubr.bf16.mxu1 %v4039_v39  ;;  %v5935_v39 = vstv %s6209_s0  ;;  %v4107_v50 = vcombine.high %v246_v36, %v250_v37  ;;  %v4106_v2 = vcombine.low %v246_v36, %v250_v37 }
 0x1db   :  { %3126 = vmatprep.mubr.bf16.mxu0 %v4043_v40 }
 0x1e1   :  { %2549 = vmatmul.mubr.bf16.gmra.mrb[80].mxu1 %v4038_v45  ;;  %v4098_v45 = vcombine.low %v238_v27, %v242_v28 }
 0x1e2   :  { %3127 = vmatmul.mubr.bf16.gmra.mrb[80].mxu0 %v4042_v46  ;;  %2556 = vmatprep.mubr.bf16.mxu1 %v4047_v47  ;;  %v4103_v46 = vcombine.high %v244_v33, %v248_v34  ;;  %v5940_v47 = vld [vmem:[%s6210_s3] ss:$0 sm:$0xff]  ;;  %v4119_v34 = vcombine.high %v260_v19, %v264_v20 }
 0x1e3   :  { %3134 = vmatprep.mubr.bf16.mxu0 %v4051_v48 }
 0x1e9   :  { %2557 = vmatmul.mubr.bf16.gmra.mrb[84].mxu1 %v4046_v53 }
 0x1ea   :  { %3135 = vmatmul.mubr.bf16.gmra.mrb[84].mxu0 %v4050_v54  ;;  %2564 = vmatprep.mubr.bf16.mxu1 %v4055_v55 }
 0x1eb   :  { %3142 = vmatprep.mubr.bf16.mxu0 %v4059_v56  ;;  %v252_v56 = vld [vmem:[%s6208_s1 + $0x748] sm:$0xff] }
 0x1ec   :  { %v4110_v28 = vcombine.low %v252_v56, %v256_v57 }
 0x1f1   :  { %2565 = vmatmul.mubr.bf16.gmra.mrb[88].mxu1 %v4054_v60  ;;  %v254_v60 = vld [vmem:[%s6208_s1 + $0x758] sm:$0xff] }
 0x1f2   :  { %3143 = vmatmul.mubr.bf16.gmra.mrb[88].mxu0 %v4058_v61  ;;  %2572 = vmatprep.mubr.bf16.mxu1 %v4063_v62  ;;  %v258_v61 = vld [vmem:[%s6208_s1 + $0x778] sm:$0xff] }
 0x1f3   :  { %3150 = vmatprep.mubr.bf16.mxu0 %v4067_v63  ;;  %v4115_v10 = vcombine.high %v254_v60, %v258_v61 }
 0x1f9   :  { %2573 = vmatmul.mubr.bf16.gmra.mrb[92].mxu1 %v4062_v5 }
 0x1fa   :  { %3151 = vmatmul.mubr.bf16.gmra.mrb[92].mxu0 %v4066_v6  ;;  %2580 = vmatprep.mubr.bf16.mxu1 %v4071_v7  ;;  %v4111_v7 = vcombine.high %v252_v56, %v256_v57  ;;  %v4118_v57 = vcombine.low %v260_v19, %v264_v20 }
 0x1fb   :  { %3158 = vmatprep.mubr.bf16.mxu0 %v4075_v8 }
 0x201   :  { %2581 = vmatmul.mubr.bf16.gmra.mrb[96].mxu1 %v4070_v13 }
 0x202   :  { %3159 = vmatmul.mubr.bf16.gmra.mrb[96].mxu0 %v4074_v14  ;;  %2588 = vmatprep.mubr.bf16.mxu1 %v4079_v15 }
 0x203   :  { %3166 = vmatprep.mubr.bf16.mxu0 %v4083_v16 }
 0x209   :  { %2589 = vmatmul.mubr.bf16.gmra.mrb[100].mxu1 %v4078_v21 }
 0x20a   :  { %3167 = vmatmul.mubr.bf16.gmra.mrb[100].mxu0 %v4082_v22  ;;  %2596 = vmatprep.mubr.bf16.mxu1 %v4087_v23 }
 0x20b   :  { %3174 = vmatprep.mubr.bf16.mxu0 %v4091_v24  ;;  %v262_v24 = vld [vmem:[%s6208_s1 + $0x798] sm:$0xff] }
 0x20c   :  { %v4123_v37 = vcombine.high %v262_v24, %v266_v25 }
 0x211   :  { %2597 = vmatmul.mubr.bf16.gmra.mrb[104].mxu1 %v4086_v29  ;;  %v4114_v29 = vcombine.low %v254_v60, %v258_v61 }
 0x212   :  { %3175 = vmatmul.mubr.bf16.gmra.mrb[104].mxu0 %v4090_v30  ;;  %2604 = vmatprep.mubr.bf16.mxu1 %v4095_v31 }
 0x213   :  { %3182 = vmatprep.mubr.bf16.mxu0 %v4099_v32 }
 0x214   :  { %v2390_v35 = vpop.f32.mrb[0].mxu1 }
 0x215   :  { %v2968_v38 = vpop.f32.mrb[0].mxu0  ;;  %v2392_v40 = vpop.f32.mrb[1].mxu1 }
 0x216   :  { %v4516_v42 = vadd.f32 %v2968_v38, %v2390_v35  ;;  %v2970_v43 = vpop.f32.mrb[1].mxu0  ;;  %v2393_v44 = vpop.f32.mrb[2].mxu1 }
 0x217   :  { %v2971_v48 = vpop.f32.mrb[2].mxu0  ;;  %v2395_v49 = vpop.f32.mrb[3].mxu1 }
 0x218   :  { %v3225_v51 = vmul.f32 %v4516_v42, %v5935_v39  ;;  %v4517_v52 = vadd.f32 %v2971_v48, %v2393_v44  ;;  %v2973_v53 = vpop.f32.mrb[3].mxu0  ;;  %v268_v48 = vld [vmem:[%s6208_s1 + $0x7c8] sm:$0xff] }
 0x219   :  { %2605 = vmatmul.mubr.bf16.gmra.mrb[108].mxu1 %v4094_v41  ;;  %v272_v49 = vld [vmem:[%s6208_s1 + $0x7e8] sm:$0xff]  ;;  %v270_v53 = vld [vmem:[%s6208_s1 + $0x7d8] sm:$0xff] }
 0x21a   :  { %v3296_v54 = vadd.f32 %v5940_v47, %v3225_v51  ;;  %v3226_v55 = vmul.f32 %v4517_v52, %v5935_v39  ;;  %3183 = vmatmul.mubr.bf16.gmra.mrb[108].mxu0 %v4098_v45  ;;  %2612 = vmatprep.mubr.bf16.mxu1 %v4103_v46 }
 0x21b   :  { %3190 = vmatprep.mubr.bf16.mxu0 %v4107_v50 }
 0x21c   :  { %v3424_v0 = vmul.f32 0.2, %v3296_v54  ;;  %v3297_v58 = vadd.f32 %v5940_v47, %v3226_v55  ;;  %v2398_v59 = vpop.f32.mrb[4].mxu1  ;;  %vm3360_vm0 = vcmp.gt.f32.partialorder %v3296_v54, 0.0 }
 0x21d   :  { %v2976_v62 = vpop.f32.mrb[4].mxu0  ;;  %v2400_v63 = vpop.f32.mrb[5].mxu1 }
 0x21e   :  { %vm3361_vm1 = vcmp.gt.f32.partialorder %v3297_v58, 0.0  ;;  %v3425_v3 = vmul.f32 0.2, %v3297_v58  ;;  %v4518_v4 = vadd.f32 %v2976_v62, %v2398_v59  ;;  %v2978_v5 = vpop.f32.mrb[5].mxu0  ;;  %v2401_v6 = vpop.f32.mrb[6].mxu1  ;;  %v3488_v11 = vsel %vm3360_vm0, %v3296_v54, %v3424_v0  ;;  %v274_v54 = vld [vmem:[%s6208_s1 + $0x7f8] sm:$0xff] }
 0x21f   :  { %v2979_v8 = vpop.f32.mrb[6].mxu0  ;;  %v2403_v9 = vpop.f32.mrb[7].mxu1  ;;  %v4122_v0 = vcombine.low %v262_v24, %v266_v25  ;;  %v4127_v62 = vcombine.high %v268_v48, %v272_v49 }
 0x220   :  { %v3489_v12 = vsel %vm3361_vm1, %v3297_v58, %v3425_v3  ;;  %v3227_v13 = vmul.f32 %v4518_v4, %v5935_v39  ;;  %v4519_v14 = vadd.f32 %v2979_v8, %v2401_v6  ;;  %v2981_v15 = vpop.f32.mrb[7].mxu0 }
 0x221   :  { %v4328_v16 = vpack.c.bf16 %v3489_v12, %v3488_v11  ;;  %2613 = vmatmul.mubr.bf16.gmra.mrb[112].mxu1 %v4102_v1 }
 0x222   :  { %v3298_v17 = vadd.f32 %v5940_v47, %v3227_v13  ;;  %v3228_v18 = vmul.f32 %v4519_v14, %v5935_v39  ;;  %3191 = vmatmul.mubr.bf16.gmra.mrb[112].mxu0 %v4106_v2  ;;  %2620 = vmatprep.mubr.bf16.mxu1 %v4111_v7  ;;  %v4131_v2 = vcombine.high %v270_v53, %v274_v54 }
 0x223   :  { %4329 = vst [vmem:[%s6211_s4] sm:$0xff] %v4328_v16   ;;  %3198 = vmatprep.mubr.bf16.mxu0 %v4115_v10  ;;  %v4126_v16 = vcombine.low %v268_v48, %v272_v49 }
 0x224   :  { %v3426_v21 = vmul.f32 0.2, %v3298_v17  ;;  %v3299_v22 = vadd.f32 %v5940_v47, %v3228_v18  ;;  %v2406_v23 = vpop.f32.mrb[8].mxu1  ;;  %vm3362_vm2 = vcmp.gt.f32.partialorder %v3298_v17, 0.0 }
 0x225   :  { %v2984_v26 = vpop.f32.mrb[8].mxu0  ;;  %v2408_v27 = vpop.f32.mrb[9].mxu1 }
 0x226   :  { %vm3363_vm3 = vcmp.gt.f32.partialorder %v3299_v22, 0.0  ;;  %v3427_v30 = vmul.f32 0.2, %v3299_v22  ;;  %v4520_v31 = vadd.f32 %v2984_v26, %v2406_v23  ;;  %v2986_v32 = vpop.f32.mrb[9].mxu0  ;;  %v2409_v33 = vpop.f32.mrb[10].mxu1  ;;  %v3490_v38 = vsel %vm3362_vm2, %v3298_v17, %v3426_v21 }
 0x227   :  { %v2987_v35 = vpop.f32.mrb[10].mxu0  ;;  %v2411_v36 = vpop.f32.mrb[11].mxu1  ;;  %v4130_v21 = vcombine.low %v270_v53, %v274_v54 }
 0x228   :  { %v3491_v40 = vsel %vm3363_vm3, %v3299_v22, %v3427_v30  ;;  %v3229_v41 = vmul.f32 %v4520_v31, %v5935_v39  ;;  %v4521_v42 = vadd.f32 %v2987_v35, %v2409_v33  ;;  %v2989_v43 = vpop.f32.mrb[11].mxu0 }
 0x229   :  { %v4333_v44 = vpack.c.bf16 %v3491_v40, %v3490_v38  ;;  %2621 = vmatmul.mubr.bf16.gmra.mrb[116].mxu1 %v4110_v28 }
 0x22a   :  { %v3300_v45 = vadd.f32 %v5940_v47, %v3229_v41  ;;  %v3230_v46 = vmul.f32 %v4521_v42, %v5935_v39  ;;  %3199 = vmatmul.mubr.bf16.gmra.mrb[116].mxu0 %v4114_v29  ;;  %2628 = vmatprep.mubr.bf16.mxu1 %v4119_v34 }
 0x22b   :  { %4485 = vst [vmem:[%s6211_s4 + $0x8] sm:$0xff] %v4333_v44   ;;  %3206 = vmatprep.mubr.bf16.mxu0 %v4123_v37 }
 0x22c   :  { %v3428_v50 = vmul.f32 0.2, %v3300_v45  ;;  %v3301_v51 = vadd.f32 %v5940_v47, %v3230_v46  ;;  %v2414_v52 = vpop.f32.mrb[12].mxu1  ;;  %vm3364_vm4 = vcmp.gt.f32.partialorder %v3300_v45, 0.0 }
 0x22d   :  { %v2992_v55 = vpop.f32.mrb[12].mxu0  ;;  %v2416_v56 = vpop.f32.mrb[13].mxu1 }
 0x22e   :  { %vm3365_vm5 = vcmp.gt.f32.partialorder %v3301_v51, 0.0  ;;  %v3429_v58 = vmul.f32 0.2, %v3301_v51  ;;  %v4522_v59 = vadd.f32 %v2992_v55, %v2414_v52  ;;  %v2994_v60 = vpop.f32.mrb[13].mxu0  ;;  %v2417_v61 = vpop.f32.mrb[14].mxu1  ;;  %v3492_v3 = vsel %vm3364_vm4, %v3300_v45, %v3428_v50 }
 0x22f   :  { %v2995_v63 = vpop.f32.mrb[14].mxu0  ;;  %v2419_v1 = vpop.f32.mrb[15].mxu1 }
 0x230   :  { %v3493_v4 = vsel %vm3365_vm5, %v3301_v51, %v3429_v58  ;;  %v3231_v5 = vmul.f32 %v4522_v59, %v5935_v39  ;;  %v4523_v6 = vadd.f32 %v2995_v63, %v2417_v61  ;;  %v2997_v7 = vpop.f32.mrb[15].mxu0 }
 0x231   :  { %v4338_v8 = vpack.c.bf16 %v3493_v4, %v3492_v3  ;;  %2629 = vmatmul.mubr.bf16.gmra.mrb[120].mxu1 %v4118_v57 }
 0x232   :  { %v3302_v9 = vadd.f32 %v5940_v47, %v3231_v5  ;;  %v3232_v10 = vmul.f32 %v4523_v6, %v5935_v39  ;;  %3207 = vmatmul.mubr.bf16.gmra.mrb[120].mxu0 %v4122_v0  ;;  %2636 = vmatprep.mubr.bf16.mxu1 %v4127_v62 }
 0x233   :  { %4486 = vst [vmem:[%s6211_s4 + $0x10] sm:$0xff] %v4338_v8   ;;  %3214 = vmatprep.mubr.bf16.mxu0 %v4131_v2 }
 0x234   :  { %v3430_v11 = vmul.f32 0.2, %v3302_v9  ;;  %v3303_v12 = vadd.f32 %v5940_v47, %v3232_v10  ;;  %v2422_v13 = vpop.f32.mrb[16].mxu1  ;;  %vm3366_vm6 = vcmp.gt.f32.partialorder %v3302_v9, 0.0 }
 0x235   :  { %v3000_v14 = vpop.f32.mrb[16].mxu0  ;;  %v2424_v15 = vpop.f32.mrb[17].mxu1 }
 0x236   :  { %vm3367_vm7 = vcmp.gt.f32.partialorder %v3303_v12, 0.0  ;;  %v3431_v17 = vmul.f32 0.2, %v3303_v12  ;;  %v4524_v18 = vadd.f32 %v3000_v14, %v2422_v13  ;;  %v3002_v19 = vpop.f32.mrb[17].mxu0  ;;  %v2425_v20 = vpop.f32.mrb[18].mxu1  ;;  %v3494_v24 = vsel %vm3366_vm6, %v3302_v9, %v3430_v11 }
 0x237   :  { %v3003_v22 = vpop.f32.mrb[18].mxu0  ;;  %v2427_v23 = vpop.f32.mrb[19].mxu1 }
 0x238   :  { %v3495_v25 = vsel %vm3367_vm7, %v3303_v12, %v3431_v17  ;;  %v3233_v26 = vmul.f32 %v4524_v18, %v5935_v39  ;;  %v4525_v27 = vadd.f32 %v3003_v22, %v2425_v20  ;;  %v3005_v28 = vpop.f32.mrb[19].mxu0 }
 0x239   :  { %v4343_v29 = vpack.c.bf16 %v3495_v25, %v3494_v24  ;;  %2637 = vmatmul.mubr.bf16.gmra.mrb[124].mxu1 %v4126_v16 }
 0x23a   :  { %v3304_v30 = vadd.f32 %v5940_v47, %v3233_v26  ;;  %v3234_v31 = vmul.f32 %v4525_v27, %v5935_v39  ;;  %3215 = vmatmul.mubr.bf16.gmra.mrb[124].mxu0 %v4130_v21 }
 0x23b   :  { %4487 = vst [vmem:[%s6211_s4 + $0x18] sm:$0xff] %v4343_v29  }
 0x23c   :  { %v3432_v32 = vmul.f32 0.2, %v3304_v30  ;;  %v3305_v33 = vadd.f32 %v5940_v47, %v3234_v31  ;;  %v2430_v34 = vpop.f32.mrb[20].mxu1  ;;  %vm3368_vm8 = vcmp.gt.f32.partialorder %v3304_v30, 0.0 }
 0x23d   :  { %v3008_v35 = vpop.f32.mrb[20].mxu0  ;;  %v2432_v36 = vpop.f32.mrb[21].mxu1 }
 0x23e   :  { %vm3369_vm9 = vcmp.gt.f32.partialorder %v3305_v33, 0.0  ;;  %v3433_v37 = vmul.f32 0.2, %v3305_v33  ;;  %v4526_v38 = vadd.f32 %v3008_v35, %v2430_v34  ;;  %v3010_v40 = vpop.f32.mrb[21].mxu0  ;;  %v2433_v41 = vpop.f32.mrb[22].mxu1  ;;  %v3496_v44 = vsel %vm3368_vm8, %v3304_v30, %v3432_v32 }
 0x23f   :  { %v3011_v42 = vpop.f32.mrb[22].mxu0  ;;  %v2435_v43 = vpop.f32.mrb[23].mxu1 }
 0x240   :  { %v3497_v45 = vsel %vm3369_vm9, %v3305_v33, %v3433_v37  ;;  %v3235_v46 = vmul.f32 %v4526_v38, %v5935_v39  ;;  %v4527_v48 = vadd.f32 %v3011_v42, %v2433_v41  ;;  %v3013_v49 = vpop.f32.mrb[23].mxu0 }
 0x241   :  { %v4348_v50 = vpack.c.bf16 %v3497_v45, %v3496_v44 }
 0x242   :  { %v3306_v51 = vadd.f32 %v5940_v47, %v3235_v46  ;;  %v3236_v52 = vmul.f32 %v4527_v48, %v5935_v39 }
 0x243   :  { %4488 = vst [vmem:[%s6211_s4 + $0x20] sm:$0xff] %v4348_v50  }
 0x244   :  { %v3434_v53 = vmul.f32 0.2, %v3306_v51  ;;  %v3307_v54 = vadd.f32 %v5940_v47, %v3236_v52  ;;  %v2438_v55 = vpop.f32.mrb[24].mxu1  ;;  %vm3370_vm10 = vcmp.gt.f32.partialorder %v3306_v51, 0.0 }
 0x245   :  { %v3016_v56 = vpop.f32.mrb[24].mxu0  ;;  %v2440_v57 = vpop.f32.mrb[25].mxu1 }
 0x246   :  { %vm3371_vm11 = vcmp.gt.f32.partialorder %v3307_v54, 0.0  ;;  %v3435_v0 = vmul.f32 0.2, %v3307_v54  ;;  %v4528_v58 = vadd.f32 %v3016_v56, %v2438_v55  ;;  %v3018_v59 = vpop.f32.mrb[25].mxu0  ;;  %v2441_v60 = vpop.f32.mrb[26].mxu1  ;;  %v3498_v63 = vsel %vm3370_vm10, %v3306_v51, %v3434_v53 }
 0x247   :  { %v3019_v61 = vpop.f32.mrb[26].mxu0  ;;  %v2443_v62 = vpop.f32.mrb[27].mxu1 }
 0x248   :  { %v3499_v1 = vsel %vm3371_vm11, %v3307_v54, %v3435_v0  ;;  %v3237_v2 = vmul.f32 %v4528_v58, %v5935_v39  ;;  %v4529_v3 = vadd.f32 %v3019_v61, %v2441_v60  ;;  %v3021_v4 = vpop.f32.mrb[27].mxu0 }
 0x249   :  { %v4353_v5 = vpack.c.bf16 %v3499_v1, %v3498_v63 }
 0x24a   :  { %v3308_v6 = vadd.f32 %v5940_v47, %v3237_v2  ;;  %v3238_v7 = vmul.f32 %v4529_v3, %v5935_v39 }
 0x24b   :  { %4489 = vst [vmem:[%s6211_s4 + $0x28] sm:$0xff] %v4353_v5  }
 0x24c   :  { %v3436_v8 = vmul.f32 0.2, %v3308_v6  ;;  %v3309_v9 = vadd.f32 %v5940_v47, %v3238_v7  ;;  %v2446_v10 = vpop.f32.mrb[28].mxu1  ;;  %vm3372_vm12 = vcmp.gt.f32.partialorder %v3308_v6, 0.0 }
 0x24d   :  { %v3024_v11 = vpop.f32.mrb[28].mxu0  ;;  %v2448_v12 = vpop.f32.mrb[29].mxu1 }
 0x24e   :  { %vm3373_vm13 = vcmp.gt.f32.partialorder %v3309_v9, 0.0  ;;  %v3437_v13 = vmul.f32 0.2, %v3309_v9  ;;  %v4530_v14 = vadd.f32 %v3024_v11, %v2446_v10  ;;  %v3026_v15 = vpop.f32.mrb[29].mxu0  ;;  %v2449_v16 = vpop.f32.mrb[30].mxu1  ;;  %v3500_v19 = vsel %vm3372_vm12, %v3308_v6, %v3436_v8 }
 0x24f   :  { %v3027_v17 = vpop.f32.mrb[30].mxu0  ;;  %v2451_v18 = vpop.f32.mrb[31].mxu1 }
 0x250   :  { %v3501_v20 = vsel %vm3373_vm13, %v3309_v9, %v3437_v13  ;;  %v3239_v21 = vmul.f32 %v4530_v14, %v5935_v39  ;;  %v4531_v22 = vadd.f32 %v3027_v17, %v2449_v16  ;;  %v3029_v23 = vpop.f32.mrb[31].mxu0 }
 0x251   :  { %v4358_v24 = vpack.c.bf16 %v3501_v20, %v3500_v19 }
 0x252   :  { %v3310_v25 = vadd.f32 %v5940_v47, %v3239_v21  ;;  %v3240_v26 = vmul.f32 %v4531_v22, %v5935_v39 }
 0x253   :  { %4490 = vst [vmem:[%s6211_s4 + $0x30] sm:$0xff] %v4358_v24  }
 0x254   :  { %v3438_v27 = vmul.f32 0.2, %v3310_v25  ;;  %v3311_v28 = vadd.f32 %v5940_v47, %v3240_v26  ;;  %v2454_v29 = vpop.f32.mrb[32].mxu1  ;;  %vm3374_vm14 = vcmp.gt.f32.partialorder %v3310_v25, 0.0 }
 0x255   :  { %v3032_v30 = vpop.f32.mrb[32].mxu0  ;;  %v2456_v31 = vpop.f32.mrb[33].mxu1 }
 0x256   :  { %vm3375_vm15 = vcmp.gt.f32.partialorder %v3311_v28, 0.0  ;;  %v3439_v32 = vmul.f32 0.2, %v3311_v28  ;;  %v4532_v33 = vadd.f32 %v3032_v30, %v2454_v29  ;;  %v3034_v34 = vpop.f32.mrb[33].mxu0  ;;  %v2457_v35 = vpop.f32.mrb[34].mxu1  ;;  %v3502_v38 = vsel %vm3374_vm14, %v3310_v25, %v3438_v27 }
 0x257   :  { %v3035_v36 = vpop.f32.mrb[34].mxu0  ;;  %v2459_v37 = vpop.f32.mrb[35].mxu1 }
 0x258   :  { %v3503_v40 = vsel %vm3375_vm15, %v3311_v28, %v3439_v32  ;;  %v3241_v41 = vmul.f32 %v4532_v33, %v5935_v39  ;;  %v4533_v42 = vadd.f32 %v3035_v36, %v2457_v35  ;;  %v3037_v43 = vpop.f32.mrb[35].mxu0 }
 0x259   :  { %v4363_v44 = vpack.c.bf16 %v3503_v40, %v3502_v38 }
 0x25a   :  { %v3312_v45 = vadd.f32 %v5940_v47, %v3241_v41  ;;  %v3242_v46 = vmul.f32 %v4533_v42, %v5935_v39 }
 0x25b   :  { %4491 = vst [vmem:[%s6211_s4 + $0x38] sm:$0xff] %v4363_v44  }
 0x25c   :  { %v3440_v48 = vmul.f32 0.2, %v3312_v45  ;;  %v3313_v49 = vadd.f32 %v5940_v47, %v3242_v46  ;;  %v2462_v50 = vpop.f32.mrb[36].mxu1  ;;  %vm3376_vm0 = vcmp.gt.f32.partialorder %v3312_v45, 0.0 }
 0x25d   :  { %v3040_v51 = vpop.f32.mrb[36].mxu0  ;;  %v2464_v52 = vpop.f32.mrb[37].mxu1 }
 0x25e   :  { %vm3377_vm1 = vcmp.gt.f32.partialorder %v3313_v49, 0.0  ;;  %v3441_v53 = vmul.f32 0.2, %v3313_v49  ;;  %v4534_v54 = vadd.f32 %v3040_v51, %v2462_v50  ;;  %v3042_v55 = vpop.f32.mrb[37].mxu0  ;;  %v2465_v56 = vpop.f32.mrb[38].mxu1  ;;  %v3504_v58 = vsel %vm3376_vm0, %v3312_v45, %v3440_v48 }
 0x25f   :  { %v3043_v57 = vpop.f32.mrb[38].mxu0  ;;  %v2467_v0 = vpop.f32.mrb[39].mxu1 }
 0x260   :  { %v3505_v59 = vsel %vm3377_vm1, %v3313_v49, %v3441_v53  ;;  %v3243_v60 = vmul.f32 %v4534_v54, %v5935_v39  ;;  %v4535_v61 = vadd.f32 %v3043_v57, %v2465_v56  ;;  %v3045_v62 = vpop.f32.mrb[39].mxu0 }
 0x261   :  { %v4368_v63 = vpack.c.bf16 %v3505_v59, %v3504_v58 }
 0x262   :  { %v3314_v1 = vadd.f32 %v5940_v47, %v3243_v60  ;;  %v3244_v2 = vmul.f32 %v4535_v61, %v5935_v39 }
 0x263   :  { %4492 = vst [vmem:[%s6211_s4 + $0x40] sm:$0xff] %v4368_v63  }
 0x264   :  { %v3442_v3 = vmul.f32 0.2, %v3314_v1  ;;  %v3315_v4 = vadd.f32 %v5940_v47, %v3244_v2  ;;  %v2470_v5 = vpop.f32.mrb[40].mxu1  ;;  %vm3378_vm2 = vcmp.gt.f32.partialorder %v3314_v1, 0.0 }
 0x265   :  { %v3048_v6 = vpop.f32.mrb[40].mxu0  ;;  %v2472_v7 = vpop.f32.mrb[41].mxu1 }
 0x266   :  { %vm3379_vm3 = vcmp.gt.f32.partialorder %v3315_v4, 0.0  ;;  %v3443_v8 = vmul.f32 0.2, %v3315_v4  ;;  %v4536_v9 = vadd.f32 %v3048_v6, %v2470_v5  ;;  %v3050_v10 = vpop.f32.mrb[41].mxu0  ;;  %v2473_v11 = vpop.f32.mrb[42].mxu1  ;;  %v3506_v14 = vsel %vm3378_vm2, %v3314_v1, %v3442_v3 }
 0x267   :  { %v3051_v12 = vpop.f32.mrb[42].mxu0  ;;  %v2475_v13 = vpop.f32.mrb[43].mxu1 }
 0x268   :  { %v3507_v15 = vsel %vm3379_vm3, %v3315_v4, %v3443_v8  ;;  %v3245_v16 = vmul.f32 %v4536_v9, %v5935_v39  ;;  %v4537_v17 = vadd.f32 %v3051_v12, %v2473_v11  ;;  %v3053_v18 = vpop.f32.mrb[43].mxu0 }
 0x269   :  { %v4373_v19 = vpack.c.bf16 %v3507_v15, %v3506_v14 }
 0x26a   :  { %v3316_v20 = vadd.f32 %v5940_v47, %v3245_v16  ;;  %v3246_v21 = vmul.f32 %v4537_v17, %v5935_v39 }
 0x26b   :  { %4493 = vst [vmem:[%s6211_s4 + $0x48] sm:$0xff] %v4373_v19  }
 0x26c   :  { %v3444_v22 = vmul.f32 0.2, %v3316_v20  ;;  %v3317_v23 = vadd.f32 %v5940_v47, %v3246_v21  ;;  %v2478_v24 = vpop.f32.mrb[44].mxu1  ;;  %vm3380_vm4 = vcmp.gt.f32.partialorder %v3316_v20, 0.0 }
 0x26d   :  { %v3056_v25 = vpop.f32.mrb[44].mxu0  ;;  %v2480_v26 = vpop.f32.mrb[45].mxu1 }
 0x26e   :  { %vm3381_vm5 = vcmp.gt.f32.partialorder %v3317_v23, 0.0  ;;  %v3445_v27 = vmul.f32 0.2, %v3317_v23  ;;  %v4538_v28 = vadd.f32 %v3056_v25, %v2478_v24  ;;  %v3058_v29 = vpop.f32.mrb[45].mxu0  ;;  %v2481_v30 = vpop.f32.mrb[46].mxu1  ;;  %v3508_v33 = vsel %vm3380_vm4, %v3316_v20, %v3444_v22 }
 0x26f   :  { %v3059_v31 = vpop.f32.mrb[46].mxu0  ;;  %v2483_v32 = vpop.f32.mrb[47].mxu1 }
 0x270   :  { %v3509_v34 = vsel %vm3381_vm5, %v3317_v23, %v3445_v27  ;;  %v3247_v35 = vmul.f32 %v4538_v28, %v5935_v39  ;;  %v4539_v36 = vadd.f32 %v3059_v31, %v2481_v30  ;;  %v3061_v37 = vpop.f32.mrb[47].mxu0 }
 0x271   :  { %v4378_v38 = vpack.c.bf16 %v3509_v34, %v3508_v33 }
 0x272   :  { %v3318_v40 = vadd.f32 %v5940_v47, %v3247_v35  ;;  %v3248_v41 = vmul.f32 %v4539_v36, %v5935_v39 }
 0x273   :  { %4494 = vst [vmem:[%s6211_s4 + $0x50] sm:$0xff] %v4378_v38  }
 0x274   :  { %v3446_v42 = vmul.f32 0.2, %v3318_v40  ;;  %v3319_v43 = vadd.f32 %v5940_v47, %v3248_v41  ;;  %v2486_v44 = vpop.f32.mrb[48].mxu1  ;;  %vm3382_vm6 = vcmp.gt.f32.partialorder %v3318_v40, 0.0 }
 0x275   :  { %v3064_v45 = vpop.f32.mrb[48].mxu0  ;;  %v2488_v46 = vpop.f32.mrb[49].mxu1 }
 0x276   :  { %vm3383_vm7 = vcmp.gt.f32.partialorder %v3319_v43, 0.0  ;;  %v3447_v48 = vmul.f32 0.2, %v3319_v43  ;;  %v4540_v49 = vadd.f32 %v3064_v45, %v2486_v44  ;;  %v3066_v50 = vpop.f32.mrb[49].mxu0  ;;  %v2489_v51 = vpop.f32.mrb[50].mxu1  ;;  %v3510_v54 = vsel %vm3382_vm6, %v3318_v40, %v3446_v42 }
 0x277   :  { %v3067_v52 = vpop.f32.mrb[50].mxu0  ;;  %v2491_v53 = vpop.f32.mrb[51].mxu1 }
 0x278   :  { %v3511_v55 = vsel %vm3383_vm7, %v3319_v43, %v3447_v48  ;;  %v3249_v56 = vmul.f32 %v4540_v49, %v5935_v39  ;;  %v4541_v57 = vadd.f32 %v3067_v52, %v2489_v51  ;;  %v3069_v0 = vpop.f32.mrb[51].mxu0 }
 0x279   :  { %v4383_v58 = vpack.c.bf16 %v3511_v55, %v3510_v54 }
 0x27a   :  { %v3320_v59 = vadd.f32 %v5940_v47, %v3249_v56  ;;  %v3250_v60 = vmul.f32 %v4541_v57, %v5935_v39 }
 0x27b   :  { %4495 = vst [vmem:[%s6211_s4 + $0x58] sm:$0xff] %v4383_v58  }
 0x27c   :  { %v3448_v61 = vmul.f32 0.2, %v3320_v59  ;;  %v3321_v62 = vadd.f32 %v5940_v47, %v3250_v60  ;;  %v2494_v63 = vpop.f32.mrb[52].mxu1  ;;  %vm3384_vm8 = vcmp.gt.f32.partialorder %v3320_v59, 0.0 }
 0x27d   :  { %v3072_v1 = vpop.f32.mrb[52].mxu0  ;;  %v2496_v2 = vpop.f32.mrb[53].mxu1 }
 0x27e   :  { %vm3385_vm9 = vcmp.gt.f32.partialorder %v3321_v62, 0.0  ;;  %v3449_v3 = vmul.f32 0.2, %v3321_v62  ;;  %v4542_v4 = vadd.f32 %v3072_v1, %v2494_v63  ;;  %v3074_v5 = vpop.f32.mrb[53].mxu0  ;;  %v2497_v6 = vpop.f32.mrb[54].mxu1  ;;  %v3512_v9 = vsel %vm3384_vm8, %v3320_v59, %v3448_v61 }
 0x27f   :  { %v3075_v7 = vpop.f32.mrb[54].mxu0  ;;  %v2499_v8 = vpop.f32.mrb[55].mxu1 }
 0x280   :  { %v3513_v10 = vsel %vm3385_vm9, %v3321_v62, %v3449_v3  ;;  %v3251_v11 = vmul.f32 %v4542_v4, %v5935_v39  ;;  %v4543_v12 = vadd.f32 %v3075_v7, %v2497_v6  ;;  %v3077_v13 = vpop.f32.mrb[55].mxu0 }
 0x281   :  { %v4388_v14 = vpack.c.bf16 %v3513_v10, %v3512_v9 }
 0x282   :  { %v3322_v15 = vadd.f32 %v5940_v47, %v3251_v11  ;;  %v3252_v16 = vmul.f32 %v4543_v12, %v5935_v39 }
 0x283   :  { %4496 = vst [vmem:[%s6211_s4 + $0x60] sm:$0xff] %v4388_v14  }
 0x284   :  { %v3450_v17 = vmul.f32 0.2, %v3322_v15  ;;  %v3323_v18 = vadd.f32 %v5940_v47, %v3252_v16  ;;  %v2502_v19 = vpop.f32.mrb[56].mxu1  ;;  %vm3386_vm10 = vcmp.gt.f32.partialorder %v3322_v15, 0.0 }
 0x285   :  { %v3080_v20 = vpop.f32.mrb[56].mxu0  ;;  %v2504_v21 = vpop.f32.mrb[57].mxu1 }
 0x286   :  { %vm3387_vm11 = vcmp.gt.f32.partialorder %v3323_v18, 0.0  ;;  %v3451_v22 = vmul.f32 0.2, %v3323_v18  ;;  %v4544_v23 = vadd.f32 %v3080_v20, %v2502_v19  ;;  %v3082_v24 = vpop.f32.mrb[57].mxu0  ;;  %v2505_v25 = vpop.f32.mrb[58].mxu1  ;;  %v3514_v28 = vsel %vm3386_vm10, %v3322_v15, %v3450_v17 }
 0x287   :  { %v3083_v26 = vpop.f32.mrb[58].mxu0  ;;  %v2507_v27 = vpop.f32.mrb[59].mxu1 }
 0x288   :  { %v3515_v29 = vsel %vm3387_vm11, %v3323_v18, %v3451_v22  ;;  %v3253_v30 = vmul.f32 %v4544_v23, %v5935_v39  ;;  %v4545_v31 = vadd.f32 %v3083_v26, %v2505_v25  ;;  %v3085_v32 = vpop.f32.mrb[59].mxu0 }
 0x289   :  { %v4393_v33 = vpack.c.bf16 %v3515_v29, %v3514_v28 }
 0x28a   :  { %v3324_v34 = vadd.f32 %v5940_v47, %v3253_v30  ;;  %v3254_v35 = vmul.f32 %v4545_v31, %v5935_v39 }
 0x28b   :  { %4497 = vst [vmem:[%s6211_s4 + $0x68] sm:$0xff] %v4393_v33  }
 0x28c   :  { %v3452_v36 = vmul.f32 0.2, %v3324_v34  ;;  %v3325_v37 = vadd.f32 %v5940_v47, %v3254_v35  ;;  %v2510_v38 = vpop.f32.mrb[60].mxu1  ;;  %vm3388_vm12 = vcmp.gt.f32.partialorder %v3324_v34, 0.0 }
 0x28d   :  { %v3088_v40 = vpop.f32.mrb[60].mxu0  ;;  %v2512_v41 = vpop.f32.mrb[61].mxu1 }
 0x28e   :  { %vm3389_vm13 = vcmp.gt.f32.partialorder %v3325_v37, 0.0  ;;  %v3453_v42 = vmul.f32 0.2, %v3325_v37  ;;  %v4546_v43 = vadd.f32 %v3088_v40, %v2510_v38  ;;  %v3090_v44 = vpop.f32.mrb[61].mxu0  ;;  %v2513_v45 = vpop.f32.mrb[62].mxu1  ;;  %v3516_v49 = vsel %vm3388_vm12, %v3324_v34, %v3452_v36 }
 0x28f   :  { %v3091_v46 = vpop.f32.mrb[62].mxu0  ;;  %v2515_v48 = vpop.f32.mrb[63].mxu1 }
 0x290   :  { %v3517_v50 = vsel %vm3389_vm13, %v3325_v37, %v3453_v42  ;;  %v3255_v51 = vmul.f32 %v4546_v43, %v5935_v39  ;;  %v4547_v52 = vadd.f32 %v3091_v46, %v2513_v45  ;;  %v3093_v53 = vpop.f32.mrb[63].mxu0 }
 0x291   :  { %v4398_v54 = vpack.c.bf16 %v3517_v50, %v3516_v49 }
 0x292   :  { %v3326_v55 = vadd.f32 %v5940_v47, %v3255_v51  ;;  %v3256_v56 = vmul.f32 %v4547_v52, %v5935_v39 }
 0x293   :  { %4498 = vst [vmem:[%s6211_s4 + $0x70] sm:$0xff] %v4398_v54  }
 0x294   :  { %v3454_v57 = vmul.f32 0.2, %v3326_v55  ;;  %v3327_v0 = vadd.f32 %v5940_v47, %v3256_v56  ;;  %v2518_v58 = vpop.f32.mrb[64].mxu1  ;;  %vm3390_vm14 = vcmp.gt.f32.partialorder %v3326_v55, 0.0 }
 0x295   :  { %v3096_v59 = vpop.f32.mrb[64].mxu0  ;;  %v2520_v60 = vpop.f32.mrb[65].mxu1 }
 0x296   :  { %vm3391_vm15 = vcmp.gt.f32.partialorder %v3327_v0, 0.0  ;;  %v3455_v61 = vmul.f32 0.2, %v3327_v0  ;;  %v4548_v62 = vadd.f32 %v3096_v59, %v2518_v58  ;;  %v3098_v63 = vpop.f32.mrb[65].mxu0  ;;  %v2521_v1 = vpop.f32.mrb[66].mxu1  ;;  %v3518_v4 = vsel %vm3390_vm14, %v3326_v55, %v3454_v57 }
 0x297   :  { %v3099_v2 = vpop.f32.mrb[66].mxu0  ;;  %v2523_v3 = vpop.f32.mrb[67].mxu1 }
 0x298   :  { %v3519_v5 = vsel %vm3391_vm15, %v3327_v0, %v3455_v61  ;;  %v3257_v6 = vmul.f32 %v4548_v62, %v5935_v39  ;;  %v4549_v7 = vadd.f32 %v3099_v2, %v2521_v1  ;;  %v3101_v8 = vpop.f32.mrb[67].mxu0 }
 0x299   :  { %v4403_v9 = vpack.c.bf16 %v3519_v5, %v3518_v4 }
 0x29a   :  { %v3328_v10 = vadd.f32 %v5940_v47, %v3257_v6  ;;  %v3258_v11 = vmul.f32 %v4549_v7, %v5935_v39 }
 0x29b   :  { %4499 = vst [vmem:[%s6211_s4 + $0x78] sm:$0xff] %v4403_v9  }
 0x29c   :  { %v3456_v12 = vmul.f32 0.2, %v3328_v10  ;;  %v3329_v13 = vadd.f32 %v5940_v47, %v3258_v11  ;;  %v2526_v14 = vpop.f32.mrb[68].mxu1  ;;  %vm3392_vm0 = vcmp.gt.f32.partialorder %v3328_v10, 0.0 }
 0x29d   :  { %v3104_v15 = vpop.f32.mrb[68].mxu0  ;;  %v2528_v16 = vpop.f32.mrb[69].mxu1 }
 0x29e   :  { %vm3393_vm1 = vcmp.gt.f32.partialorder %v3329_v13, 0.0  ;;  %v3457_v17 = vmul.f32 0.2, %v3329_v13  ;;  %v4550_v18 = vadd.f32 %v3104_v15, %v2526_v14  ;;  %v3106_v19 = vpop.f32.mrb[69].mxu0  ;;  %v2529_v20 = vpop.f32.mrb[70].mxu1  ;;  %v3520_v23 = vsel %vm3392_vm0, %v3328_v10, %v3456_v12 }
 0x29f   :  { %v3107_v21 = vpop.f32.mrb[70].mxu0  ;;  %v2531_v22 = vpop.f32.mrb[71].mxu1 }
 0x2a0   :  { %v3521_v24 = vsel %vm3393_vm1, %v3329_v13, %v3457_v17  ;;  %v3259_v25 = vmul.f32 %v4550_v18, %v5935_v39  ;;  %v4551_v26 = vadd.f32 %v3107_v21, %v2529_v20  ;;  %v3109_v27 = vpop.f32.mrb[71].mxu0 }
 0x2a1   :  { %v4408_v28 = vpack.c.bf16 %v3521_v24, %v3520_v23 }
 0x2a2   :  { %v3330_v29 = vadd.f32 %v5940_v47, %v3259_v25  ;;  %v3260_v30 = vmul.f32 %v4551_v26, %v5935_v39 }
 0x2a3   :  { %4500 = vst [vmem:[%s6211_s4 + $0x80] sm:$0xff] %v4408_v28  }
 0x2a4   :  { %v3458_v31 = vmul.f32 0.2, %v3330_v29  ;;  %v3331_v32 = vadd.f32 %v5940_v47, %v3260_v30  ;;  %v2534_v33 = vpop.f32.mrb[72].mxu1  ;;  %vm3394_vm2 = vcmp.gt.f32.partialorder %v3330_v29, 0.0 }
 0x2a5   :  { %v3112_v34 = vpop.f32.mrb[72].mxu0  ;;  %v2536_v35 = vpop.f32.mrb[73].mxu1 }
 0x2a6   :  { %vm3395_vm3 = vcmp.gt.f32.partialorder %v3331_v32, 0.0  ;;  %v3459_v36 = vmul.f32 0.2, %v3331_v32  ;;  %v4552_v37 = vadd.f32 %v3112_v34, %v2534_v33  ;;  %v3114_v38 = vpop.f32.mrb[73].mxu0  ;;  %v2537_v40 = vpop.f32.mrb[74].mxu1  ;;  %v3522_v43 = vsel %vm3394_vm2, %v3330_v29, %v3458_v31 }
 0x2a7   :  { %v3115_v41 = vpop.f32.mrb[74].mxu0  ;;  %v2539_v42 = vpop.f32.mrb[75].mxu1 }
 0x2a8   :  { %v3523_v44 = vsel %vm3395_vm3, %v3331_v32, %v3459_v36  ;;  %v3261_v45 = vmul.f32 %v4552_v37, %v5935_v39  ;;  %v4553_v46 = vadd.f32 %v3115_v41, %v2537_v40  ;;  %v3117_v48 = vpop.f32.mrb[75].mxu0 }
 0x2a9   :  { %v4413_v49 = vpack.c.bf16 %v3523_v44, %v3522_v43 }
 0x2aa   :  { %v3332_v50 = vadd.f32 %v5940_v47, %v3261_v45  ;;  %v3262_v51 = vmul.f32 %v4553_v46, %v5935_v39 }
 0x2ab   :  { %4501 = vst [vmem:[%s6211_s4 + $0x88] sm:$0xff] %v4413_v49  }
 0x2ac   :  { %v3460_v52 = vmul.f32 0.2, %v3332_v50  ;;  %v3333_v53 = vadd.f32 %v5940_v47, %v3262_v51  ;;  %v2542_v54 = vpop.f32.mrb[76].mxu1  ;;  %vm3396_vm4 = vcmp.gt.f32.partialorder %v3332_v50, 0.0 }
 0x2ad   :  { %v3120_v55 = vpop.f32.mrb[76].mxu0  ;;  %v2544_v56 = vpop.f32.mrb[77].mxu1 }
 0x2ae   :  { %vm3397_vm5 = vcmp.gt.f32.partialorder %v3333_v53, 0.0  ;;  %v3461_v57 = vmul.f32 0.2, %v3333_v53  ;;  %v4554_v0 = vadd.f32 %v3120_v55, %v2542_v54  ;;  %v3122_v58 = vpop.f32.mrb[77].mxu0  ;;  %v2545_v59 = vpop.f32.mrb[78].mxu1  ;;  %v3524_v62 = vsel %vm3396_vm4, %v3332_v50, %v3460_v52 }
 0x2af   :  { %v3123_v60 = vpop.f32.mrb[78].mxu0  ;;  %v2547_v61 = vpop.f32.mrb[79].mxu1 }
 0x2b0   :  { %v3525_v63 = vsel %vm3397_vm5, %v3333_v53, %v3461_v57  ;;  %v3263_v1 = vmul.f32 %v4554_v0, %v5935_v39  ;;  %v4555_v2 = vadd.f32 %v3123_v60, %v2545_v59  ;;  %v3125_v3 = vpop.f32.mrb[79].mxu0 }
 0x2b1   :  { %v4418_v4 = vpack.c.bf16 %v3525_v63, %v3524_v62 }
 0x2b2   :  { %v3334_v5 = vadd.f32 %v5940_v47, %v3263_v1  ;;  %v3264_v6 = vmul.f32 %v4555_v2, %v5935_v39 }
 0x2b3   :  { %4502 = vst [vmem:[%s6211_s4 + $0x90] sm:$0xff] %v4418_v4  }
 0x2b4   :  { %v3462_v7 = vmul.f32 0.2, %v3334_v5  ;;  %v3335_v8 = vadd.f32 %v5940_v47, %v3264_v6  ;;  %v2550_v9 = vpop.f32.mrb[80].mxu1  ;;  %vm3398_vm6 = vcmp.gt.f32.partialorder %v3334_v5, 0.0 }
 0x2b5   :  { %v3128_v10 = vpop.f32.mrb[80].mxu0  ;;  %v2552_v11 = vpop.f32.mrb[81].mxu1 }
 0x2b6   :  { %vm3399_vm7 = vcmp.gt.f32.partialorder %v3335_v8, 0.0  ;;  %v3463_v12 = vmul.f32 0.2, %v3335_v8  ;;  %v4556_v13 = vadd.f32 %v3128_v10, %v2550_v9  ;;  %v3130_v14 = vpop.f32.mrb[81].mxu0  ;;  %v2553_v15 = vpop.f32.mrb[82].mxu1  ;;  %v3526_v18 = vsel %vm3398_vm6, %v3334_v5, %v3462_v7 }
 0x2b7   :  { %v3131_v16 = vpop.f32.mrb[82].mxu0  ;;  %v2555_v17 = vpop.f32.mrb[83].mxu1 }
 0x2b8   :  { %v3527_v19 = vsel %vm3399_vm7, %v3335_v8, %v3463_v12  ;;  %v3265_v20 = vmul.f32 %v4556_v13, %v5935_v39  ;;  %v4557_v21 = vadd.f32 %v3131_v16, %v2553_v15  ;;  %v3133_v22 = vpop.f32.mrb[83].mxu0 }
 0x2b9   :  { %v4423_v23 = vpack.c.bf16 %v3527_v19, %v3526_v18 }
 0x2ba   :  { %v3336_v24 = vadd.f32 %v5940_v47, %v3265_v20  ;;  %v3266_v25 = vmul.f32 %v4557_v21, %v5935_v39 }
 0x2bb   :  { %4503 = vst [vmem:[%s6211_s4 + $0x98] sm:$0xff] %v4423_v23  }
 0x2bc   :  { %v3464_v26 = vmul.f32 0.2, %v3336_v24  ;;  %v3337_v27 = vadd.f32 %v5940_v47, %v3266_v25  ;;  %v2558_v28 = vpop.f32.mrb[84].mxu1  ;;  %vm3400_vm8 = vcmp.gt.f32.partialorder %v3336_v24, 0.0  ;;  %v6126_v47 = vld [vmem:[%s6210_s3] ss:$0 sm:$0xff] }
 0x2bd   :  { %v3136_v29 = vpop.f32.mrb[84].mxu0  ;;  %v2560_v30 = vpop.f32.mrb[85].mxu1 }
 0x2be   :  { %vm3401_vm9 = vcmp.gt.f32.partialorder %v3337_v27, 0.0  ;;  %v3465_v31 = vmul.f32 0.2, %v3337_v27  ;;  %v4558_v32 = vadd.f32 %v3136_v29, %v2558_v28  ;;  %v3138_v33 = vpop.f32.mrb[85].mxu0  ;;  %v2561_v34 = vpop.f32.mrb[86].mxu1  ;;  %v3528_v37 = vsel %vm3400_vm8, %v3336_v24, %v3464_v26 }
 0x2bf   :  { %v3139_v35 = vpop.f32.mrb[86].mxu0  ;;  %v2563_v36 = vpop.f32.mrb[87].mxu1 }
 0x2c0   :  { %v3529_v38 = vsel %vm3401_vm9, %v3337_v27, %v3465_v31  ;;  %v3267_v40 = vmul.f32 %v4558_v32, %v5935_v39  ;;  %v4559_v41 = vadd.f32 %v3139_v35, %v2561_v34  ;;  %v3141_v42 = vpop.f32.mrb[87].mxu0 }
 0x2c1   :  { %v4428_v43 = vpack.c.bf16 %v3529_v38, %v3528_v37 }
 0x2c2   :  { %v3338_v44 = vadd.f32 %v6126_v47, %v3267_v40  ;;  %v3268_v45 = vmul.f32 %v4559_v41, %v5935_v39 }
 0x2c3   :  { %4504 = vst [vmem:[%s6211_s4 + $0xa0] sm:$0xff] %v4428_v43  }
 0x2c4   :  { %v3466_v46 = vmul.f32 0.2, %v3338_v44  ;;  %v3339_v48 = vadd.f32 %v6126_v47, %v3268_v45  ;;  %v2566_v49 = vpop.f32.mrb[88].mxu1  ;;  %vm3402_vm10 = vcmp.gt.f32.partialorder %v3338_v44, 0.0 }
 0x2c5   :  { %v3144_v50 = vpop.f32.mrb[88].mxu0  ;;  %v2568_v51 = vpop.f32.mrb[89].mxu1 }
 0x2c6   :  { %vm3403_vm11 = vcmp.gt.f32.partialorder %v3339_v48, 0.0  ;;  %v3467_v52 = vmul.f32 0.2, %v3339_v48  ;;  %v4560_v53 = vadd.f32 %v3144_v50, %v2566_v49  ;;  %v3146_v54 = vpop.f32.mrb[89].mxu0  ;;  %v2569_v55 = vpop.f32.mrb[90].mxu1  ;;  %v3530_v0 = vsel %vm3402_vm10, %v3338_v44, %v3466_v46 }
 0x2c7   :  { %v3147_v56 = vpop.f32.mrb[90].mxu0  ;;  %v2571_v57 = vpop.f32.mrb[91].mxu1 }
 0x2c8   :  { %v3531_v58 = vsel %vm3403_vm11, %v3339_v48, %v3467_v52  ;;  %v3269_v59 = vmul.f32 %v4560_v53, %v5935_v39  ;;  %v4561_v60 = vadd.f32 %v3147_v56, %v2569_v55  ;;  %v3149_v61 = vpop.f32.mrb[91].mxu0 }
 0x2c9   :  { %v4433_v62 = vpack.c.bf16 %v3531_v58, %v3530_v0 }
 0x2ca   :  { %v3340_v63 = vadd.f32 %v6126_v47, %v3269_v59  ;;  %v3270_v1 = vmul.f32 %v4561_v60, %v5935_v39 }
 0x2cb   :  { %4505 = vst [vmem:[%s6211_s4 + $0xa8] sm:$0xff] %v4433_v62  }
 0x2cc   :  { %v3468_v2 = vmul.f32 0.2, %v3340_v63  ;;  %v3341_v3 = vadd.f32 %v6126_v47, %v3270_v1  ;;  %v2574_v4 = vpop.f32.mrb[92].mxu1  ;;  %vm3404_vm12 = vcmp.gt.f32.partialorder %v3340_v63, 0.0 }
 0x2cd   :  { %v3152_v5 = vpop.f32.mrb[92].mxu0  ;;  %v2576_v6 = vpop.f32.mrb[93].mxu1 }
 0x2ce   :  { %vm3405_vm13 = vcmp.gt.f32.partialorder %v3341_v3, 0.0  ;;  %v3469_v7 = vmul.f32 0.2, %v3341_v3  ;;  %v4562_v8 = vadd.f32 %v3152_v5, %v2574_v4  ;;  %v3154_v9 = vpop.f32.mrb[93].mxu0  ;;  %v2577_v10 = vpop.f32.mrb[94].mxu1  ;;  %v3532_v13 = vsel %vm3404_vm12, %v3340_v63, %v3468_v2 }
 0x2cf   :  { %v3155_v11 = vpop.f32.mrb[94].mxu0  ;;  %v2579_v12 = vpop.f32.mrb[95].mxu1 }
 0x2d0   :  { %v3533_v14 = vsel %vm3405_vm13, %v3341_v3, %v3469_v7  ;;  %v3271_v15 = vmul.f32 %v4562_v8, %v5935_v39  ;;  %v4563_v16 = vadd.f32 %v3155_v11, %v2577_v10  ;;  %v3157_v17 = vpop.f32.mrb[95].mxu0 }
 0x2d1   :  { %v4438_v18 = vpack.c.bf16 %v3533_v14, %v3532_v13 }
 0x2d2   :  { %v3342_v19 = vadd.f32 %v6126_v47, %v3271_v15  ;;  %v3272_v20 = vmul.f32 %v4563_v16, %v5935_v39 }
 0x2d3   :  { %4506 = vst [vmem:[%s6211_s4 + $0xb0] sm:$0xff] %v4438_v18  }
 0x2d4   :  { %v3470_v21 = vmul.f32 0.2, %v3342_v19  ;;  %v3343_v22 = vadd.f32 %v6126_v47, %v3272_v20  ;;  %v2582_v23 = vpop.f32.mrb[96].mxu1  ;;  %vm3406_vm14 = vcmp.gt.f32.partialorder %v3342_v19, 0.0 }
 0x2d5   :  { %v3160_v24 = vpop.f32.mrb[96].mxu0  ;;  %v2584_v25 = vpop.f32.mrb[97].mxu1 }
 0x2d6   :  { %vm3407_vm15 = vcmp.gt.f32.partialorder %v3343_v22, 0.0  ;;  %v3471_v26 = vmul.f32 0.2, %v3343_v22  ;;  %v4564_v27 = vadd.f32 %v3160_v24, %v2582_v23  ;;  %v3162_v28 = vpop.f32.mrb[97].mxu0  ;;  %v2585_v29 = vpop.f32.mrb[98].mxu1  ;;  %v3534_v32 = vsel %vm3406_vm14, %v3342_v19, %v3470_v21 }
 0x2d7   :  { %v3163_v30 = vpop.f32.mrb[98].mxu0  ;;  %v2587_v31 = vpop.f32.mrb[99].mxu1 }
 0x2d8   :  { %v3535_v33 = vsel %vm3407_vm15, %v3343_v22, %v3471_v26  ;;  %v3273_v34 = vmul.f32 %v4564_v27, %v5935_v39  ;;  %v4565_v35 = vadd.f32 %v3163_v30, %v2585_v29  ;;  %v3165_v36 = vpop.f32.mrb[99].mxu0 }
 0x2d9   :  { %v4443_v37 = vpack.c.bf16 %v3535_v33, %v3534_v32 }
 0x2da   :  { %v3344_v38 = vadd.f32 %v6126_v47, %v3273_v34  ;;  %v3274_v40 = vmul.f32 %v4565_v35, %v5935_v39 }
 0x2db   :  { %4507 = vst [vmem:[%s6211_s4 + $0xb8] sm:$0xff] %v4443_v37  }
 0x2dc   :  { %v3472_v41 = vmul.f32 0.2, %v3344_v38  ;;  %v3345_v42 = vadd.f32 %v6126_v47, %v3274_v40  ;;  %v2590_v43 = vpop.f32.mrb[100].mxu1  ;;  %vm3408_vm0 = vcmp.gt.f32.partialorder %v3344_v38, 0.0 }
 0x2dd   :  { %v3168_v44 = vpop.f32.mrb[100].mxu0  ;;  %v2592_v45 = vpop.f32.mrb[101].mxu1 }
 0x2de   :  { %vm3409_vm1 = vcmp.gt.f32.partialorder %v3345_v42, 0.0  ;;  %v3473_v46 = vmul.f32 0.2, %v3345_v42  ;;  %v4566_v48 = vadd.f32 %v3168_v44, %v2590_v43  ;;  %v3170_v49 = vpop.f32.mrb[101].mxu0  ;;  %v2593_v50 = vpop.f32.mrb[102].mxu1  ;;  %v3536_v53 = vsel %vm3408_vm0, %v3344_v38, %v3472_v41 }
 0x2df   :  { %v3171_v51 = vpop.f32.mrb[102].mxu0  ;;  %v2595_v52 = vpop.f32.mrb[103].mxu1 }
 0x2e0   :  { %v3537_v54 = vsel %vm3409_vm1, %v3345_v42, %v3473_v46  ;;  %v3275_v55 = vmul.f32 %v4566_v48, %v5935_v39  ;;  %v4567_v56 = vadd.f32 %v3171_v51, %v2593_v50  ;;  %v3173_v57 = vpop.f32.mrb[103].mxu0 }
 0x2e1   :  { %v4448_v0 = vpack.c.bf16 %v3537_v54, %v3536_v53 }
 0x2e2   :  { %v3346_v58 = vadd.f32 %v6126_v47, %v3275_v55  ;;  %v3276_v59 = vmul.f32 %v4567_v56, %v5935_v39 }
 0x2e3   :  { %4508 = vst [vmem:[%s6211_s4 + $0xc0] sm:$0xff] %v4448_v0  }
 0x2e4   :  { %v3474_v60 = vmul.f32 0.2, %v3346_v58  ;;  %v3347_v61 = vadd.f32 %v6126_v47, %v3276_v59  ;;  %v2598_v62 = vpop.f32.mrb[104].mxu1  ;;  %vm3410_vm2 = vcmp.gt.f32.partialorder %v3346_v58, 0.0 }
 0x2e5   :  { %v3176_v63 = vpop.f32.mrb[104].mxu0  ;;  %v2600_v1 = vpop.f32.mrb[105].mxu1 }
 0x2e6   :  { %vm3411_vm3 = vcmp.gt.f32.partialorder %v3347_v61, 0.0  ;;  %v3475_v2 = vmul.f32 0.2, %v3347_v61  ;;  %v4568_v3 = vadd.f32 %v3176_v63, %v2598_v62  ;;  %v3178_v4 = vpop.f32.mrb[105].mxu0  ;;  %v2601_v5 = vpop.f32.mrb[106].mxu1  ;;  %v3538_v8 = vsel %vm3410_vm2, %v3346_v58, %v3474_v60 }
 0x2e7   :  { %v3179_v6 = vpop.f32.mrb[106].mxu0  ;;  %v2603_v7 = vpop.f32.mrb[107].mxu1 }
 0x2e8   :  { %v3539_v9 = vsel %vm3411_vm3, %v3347_v61, %v3475_v2  ;;  %v3277_v10 = vmul.f32 %v4568_v3, %v5935_v39  ;;  %v4569_v11 = vadd.f32 %v3179_v6, %v2601_v5  ;;  %v3181_v12 = vpop.f32.mrb[107].mxu0 }
 0x2e9   :  { %v4453_v13 = vpack.c.bf16 %v3539_v9, %v3538_v8 }
 0x2ea   :  { %v3348_v14 = vadd.f32 %v6126_v47, %v3277_v10  ;;  %v3278_v15 = vmul.f32 %v4569_v11, %v5935_v39 }
 0x2eb   :  { %4509 = vst [vmem:[%s6211_s4 + $0xc8] sm:$0xff] %v4453_v13  }
 0x2ec   :  { %v3476_v16 = vmul.f32 0.2, %v3348_v14  ;;  %v3349_v17 = vadd.f32 %v6126_v47, %v3278_v15  ;;  %v2606_v18 = vpop.f32.mrb[108].mxu1  ;;  %vm3412_vm4 = vcmp.gt.f32.partialorder %v3348_v14, 0.0 }
 0x2ed   :  { %v3184_v19 = vpop.f32.mrb[108].mxu0  ;;  %v2608_v20 = vpop.f32.mrb[109].mxu1 }
 0x2ee   :  { %vm3413_vm5 = vcmp.gt.f32.partialorder %v3349_v17, 0.0  ;;  %v3477_v21 = vmul.f32 0.2, %v3349_v17  ;;  %v4570_v22 = vadd.f32 %v3184_v19, %v2606_v18  ;;  %v3186_v23 = vpop.f32.mrb[109].mxu0  ;;  %v2609_v24 = vpop.f32.mrb[110].mxu1  ;;  %v3540_v27 = vsel %vm3412_vm4, %v3348_v14, %v3476_v16 }
 0x2ef   :  { %v3187_v25 = vpop.f32.mrb[110].mxu0  ;;  %v2611_v26 = vpop.f32.mrb[111].mxu1 }
 0x2f0   :  { %v3541_v28 = vsel %vm3413_vm5, %v3349_v17, %v3477_v21  ;;  %v3279_v29 = vmul.f32 %v4570_v22, %v5935_v39  ;;  %v4571_v30 = vadd.f32 %v3187_v25, %v2609_v24  ;;  %v3189_v31 = vpop.f32.mrb[111].mxu0 }
 0x2f1   :  { %v4458_v32 = vpack.c.bf16 %v3541_v28, %v3540_v27 }
 0x2f2   :  { %v3350_v33 = vadd.f32 %v6126_v47, %v3279_v29  ;;  %v3280_v34 = vmul.f32 %v4571_v30, %v5935_v39 }
 0x2f3   :  { %4510 = vst [vmem:[%s6211_s4 + $0xd0] sm:$0xff] %v4458_v32  }
 0x2f4   :  { %v3478_v35 = vmul.f32 0.2, %v3350_v33  ;;  %v3351_v36 = vadd.f32 %v6126_v47, %v3280_v34  ;;  %v2614_v37 = vpop.f32.mrb[112].mxu1  ;;  %vm3414_vm6 = vcmp.gt.f32.partialorder %v3350_v33, 0.0 }
 0x2f5   :  { %v3192_v38 = vpop.f32.mrb[112].mxu0  ;;  %v2616_v40 = vpop.f32.mrb[113].mxu1 }
 0x2f6   :  { %vm3415_vm7 = vcmp.gt.f32.partialorder %v3351_v36, 0.0  ;;  %v3479_v41 = vmul.f32 0.2, %v3351_v36  ;;  %v4572_v42 = vadd.f32 %v3192_v38, %v2614_v37  ;;  %v3194_v43 = vpop.f32.mrb[113].mxu0  ;;  %v2617_v44 = vpop.f32.mrb[114].mxu1  ;;  %v3542_v48 = vsel %vm3414_vm6, %v3350_v33, %v3478_v35 }
 0x2f7   :  { %v3195_v45 = vpop.f32.mrb[114].mxu0  ;;  %v2619_v46 = vpop.f32.mrb[115].mxu1 }
 0x2f8   :  { %v3543_v49 = vsel %vm3415_vm7, %v3351_v36, %v3479_v41  ;;  %v3281_v50 = vmul.f32 %v4572_v42, %v5935_v39  ;;  %v4573_v51 = vadd.f32 %v3195_v45, %v2617_v44  ;;  %v3197_v52 = vpop.f32.mrb[115].mxu0 }
 0x2f9   :  { %v4463_v53 = vpack.c.bf16 %v3543_v49, %v3542_v48 }
 0x2fa   :  { %v3352_v54 = vadd.f32 %v6126_v47, %v3281_v50  ;;  %v3282_v55 = vmul.f32 %v4573_v51, %v5935_v39 }
 0x2fb   :  { %4511 = vst [vmem:[%s6211_s4 + $0xd8] sm:$0xff] %v4463_v53  }
 0x2fc   :  { %v3480_v56 = vmul.f32 0.2, %v3352_v54  ;;  %v3353_v57 = vadd.f32 %v6126_v47, %v3282_v55  ;;  %v2622_v0 = vpop.f32.mrb[116].mxu1  ;;  %vm3416_vm8 = vcmp.gt.f32.partialorder %v3352_v54, 0.0 }
 0x2fd   :  { %v3200_v58 = vpop.f32.mrb[116].mxu0  ;;  %v2624_v59 = vpop.f32.mrb[117].mxu1 }
 0x2fe   :  { %vm3417_vm9 = vcmp.gt.f32.partialorder %v3353_v57, 0.0  ;;  %v3481_v60 = vmul.f32 0.2, %v3353_v57  ;;  %v4574_v61 = vadd.f32 %v3200_v58, %v2622_v0  ;;  %v3202_v62 = vpop.f32.mrb[117].mxu0  ;;  %v2625_v63 = vpop.f32.mrb[118].mxu1  ;;  %v3544_v3 = vsel %vm3416_vm8, %v3352_v54, %v3480_v56 }
 0x2ff   :  { %v3203_v1 = vpop.f32.mrb[118].mxu0  ;;  %v2627_v2 = vpop.f32.mrb[119].mxu1 }
 0x300   :  { %v3545_v4 = vsel %vm3417_vm9, %v3353_v57, %v3481_v60  ;;  %v3283_v5 = vmul.f32 %v4574_v61, %v5935_v39  ;;  %v4575_v6 = vadd.f32 %v3203_v1, %v2625_v63  ;;  %v3205_v7 = vpop.f32.mrb[119].mxu0 }
 0x301   :  { %v4468_v8 = vpack.c.bf16 %v3545_v4, %v3544_v3 }
 0x302   :  { %v3354_v9 = vadd.f32 %v6126_v47, %v3283_v5  ;;  %v3284_v10 = vmul.f32 %v4575_v6, %v5935_v39 }
 0x303   :  { %4512 = vst [vmem:[%s6211_s4 + $0xe0] sm:$0xff] %v4468_v8  }
 0x304   :  { %v3482_v11 = vmul.f32 0.2, %v3354_v9  ;;  %v3355_v12 = vadd.f32 %v6126_v47, %v3284_v10  ;;  %v2630_v13 = vpop.f32.mrb[120].mxu1  ;;  %vm3418_vm10 = vcmp.gt.f32.partialorder %v3354_v9, 0.0 }
 0x305   :  { %v3208_v14 = vpop.f32.mrb[120].mxu0  ;;  %v2632_v15 = vpop.f32.mrb[121].mxu1 }
 0x306   :  { %vm3419_vm11 = vcmp.gt.f32.partialorder %v3355_v12, 0.0  ;;  %v3483_v16 = vmul.f32 0.2, %v3355_v12  ;;  %v4576_v17 = vadd.f32 %v3208_v14, %v2630_v13  ;;  %v3210_v18 = vpop.f32.mrb[121].mxu0  ;;  %v2633_v19 = vpop.f32.mrb[122].mxu1  ;;  %v3546_v22 = vsel %vm3418_vm10, %v3354_v9, %v3482_v11 }
 0x307   :  { %v3211_v20 = vpop.f32.mrb[122].mxu0  ;;  %v2635_v21 = vpop.f32.mrb[123].mxu1 }
 0x308   :  { %v3547_v23 = vsel %vm3419_vm11, %v3355_v12, %v3483_v16  ;;  %v3285_v24 = vmul.f32 %v4576_v17, %v5935_v39  ;;  %v4577_v25 = vadd.f32 %v3211_v20, %v2633_v19  ;;  %v3213_v26 = vpop.f32.mrb[123].mxu0 }
 0x309   :  { %v4473_v27 = vpack.c.bf16 %v3547_v23, %v3546_v22 }
 0x30a   :  { %v3356_v28 = vadd.f32 %v6126_v47, %v3285_v24  ;;  %v3286_v29 = vmul.f32 %v4577_v25, %v5935_v39 }
 0x30b   :  { %4513 = vst [vmem:[%s6211_s4 + $0xe8] sm:$0xff] %v4473_v27  }
 0x30c   :  { %v3484_v30 = vmul.f32 0.2, %v3356_v28  ;;  %v3357_v31 = vadd.f32 %v6126_v47, %v3286_v29  ;;  %v2638_v32 = vpop.f32.mrb[124].mxu1  ;;  %vm3420_vm12 = vcmp.gt.f32.partialorder %v3356_v28, 0.0 }
 0x30d   :  { %v3216_v33 = vpop.f32.mrb[124].mxu0  ;;  %v2640_v34 = vpop.f32.mrb[125].mxu1 }
 0x30e   :  { %vm3421_vm13 = vcmp.gt.f32.partialorder %v3357_v31, 0.0  ;;  %v3485_v35 = vmul.f32 0.2, %v3357_v31  ;;  %v4578_v36 = vadd.f32 %v3216_v33, %v2638_v32  ;;  %v3218_v37 = vpop.f32.mrb[125].mxu0  ;;  %v2641_v38 = vpop.f32.mrb[126].mxu1  ;;  %v3548_v42 = vsel %vm3420_vm12, %v3356_v28, %v3484_v30 }
 0x30f   :  { %v3219_v40 = vpop.f32.mrb[126].mxu0  ;;  %v2643_v41 = vpop.f32.mrb[127].mxu1 }
 0x310   :  { %v3549_v43 = vsel %vm3421_vm13, %v3357_v31, %v3485_v35  ;;  %v3287_v44 = vmul.f32 %v4578_v36, %v5935_v39  ;;  %v4579_v45 = vadd.f32 %v3219_v40, %v2641_v38  ;;  %v3221_v46 = vpop.f32.mrb[127].mxu0 }
 0x311   :  { %v4478_v48 = vpack.c.bf16 %v3549_v43, %v3548_v42 }
 0x312   :  { %v3358_v49 = vadd.f32 %v6126_v47, %v3287_v44  ;;  %v3288_v50 = vmul.f32 %v4579_v45, %v5935_v39 }
 0x313   :  { %4514 = vst [vmem:[%s6211_s4 + $0xf0] sm:$0xff] %v4478_v48  }
 0x314   :  { %v3486_v51 = vmul.f32 0.2, %v3358_v49  ;;  %v3359_v52 = vadd.f32 %v6126_v47, %v3288_v50  ;;  %vm3422_vm14 = vcmp.gt.f32.partialorder %v3358_v49, 0.0 }
 0x316   :  { %vm3423_vm15 = vcmp.gt.f32.partialorder %v3359_v52, 0.0  ;;  %v3487_v53 = vmul.f32 0.2, %v3359_v52  ;;  %v3550_v54 = vsel %vm3422_vm14, %v3358_v49, %v3486_v51 }
 0x318   :  { %v3551_v55 = vsel %vm3423_vm15, %v3359_v52, %v3487_v53 }
 0x319   :  { %v4483_v56 = vpack.c.bf16 %v3551_v55, %v3550_v54 }
 0x31b   :  { %4515 = vst [vmem:[%s6211_s4 + $0xf8] sm:$0xff] %v4483_v56  }

// kernel: discriminator_forward.8
= control target key start
LH: loop header
LB: loop body
LE: loop exit
PB: predicated region body
PF: predicated region fallthrough
CT: control target
= control target key end

     0   :  { %vm3496_vm0 = vcmask 1043456   ;;  %vm3497_vm2 = vcmask 523268   ;;  %s5882_s2 = inlined_call_operand.vmem [shape: bf16[2048,192], index: 2, kind: input, shape index: {}]   ;;  %s5883_s1 = inlined_call_operand.vmem [shape: bf16[128,2048], index: 1, kind: input, shape index: {}]   ;;  %s5884_s3 = inlined_call_operand.vmem [shape: f32[1,192], index: 3, kind: input, shape index: {}]   ;;  %s5885_s0 = inlined_call_operand.<no memory space> [shape: f32[1], index: 0, kind: input, shape index: {}]   ;;  %s5886_s4 = inlined_call_operand.vmem [shape: bf16[128,192], index: 4, kind: output, shape index: {}]  }
   0x1   :  { %v4159_v0 = vld [vmem:[%s5882_s2 + $0x4] ss:$8 sps:$4 sm:$0xff]   ;;  %v4163_v2 = vld [vmem:[%s5882_s2] ss:$8 sps:$4 sm:$0xff]   ;;  %v4165_v4 = vld [vmem:[%s5882_s2 + $0x14] ss:$8 sps:$4 sm:$0xff]  }
   0x2   :  { %v4161_v1 = vld [vmem:[%s5882_s2 + $0x404] ss:$8 sps:$4 sm:$0xff]   ;;  %2322 = vmatprep.subr.bf16.mxu1 %v4159_v0  ;;  %v4164_v3 = vld [vmem:[%s5882_s2 + $0x400] ss:$8 sps:$4 sm:$0xff]   ;;  %v4167_v5 = vld [vmem:[%s5882_s2 + $0x414] ss:$8 sps:$4 sm:$0xff]  }
   0x3   :  { %2774 = vmatprep.subr.bf16.mxu0 %v4161_v1  ;;  %2323 = vmatpush1.bf16.msra.mxu1 %v4163_v2  ;;  %v4169_v6 = vld [vmem:[%s5882_s2 + $0x10] ss:$8 sps:$4 sm:$0xff]   ;;  %v4171_v8 = vld [vmem:[%s5882_s2 + $0x24] ss:$8 sps:$4 sm:$0xff]   ;;  %v4175_v10 = vld [vmem:[%s5882_s2 + $0x20] ss:$8 sps:$4 sm:$0xff]  }
   0x4   :  { %2775 = vmatpush1.bf16.msra.mxu0 %v4164_v3  ;;  %2324 = vmatprep.subr.bf16.mxu1 %v4165_v4  ;;  %v4170_v7 = vld [vmem:[%s5882_s2 + $0x410] ss:$8 sps:$4 sm:$0xff]   ;;  %v4173_v9 = vld [vmem:[%s5882_s2 + $0x424] ss:$8 sps:$4 sm:$0xff]   ;;  %v4176_v11 = vld [vmem:[%s5882_s2 + $0x420] ss:$8 sps:$4 sm:$0xff]  }
   0x5   :  { %2776 = vmatprep.subr.bf16.mxu0 %v4167_v5  ;;  %v4177_v12 = vld [vmem:[%s5882_s2 + $0x34] ss:$8 sps:$4 sm:$0xff]   ;;  %v4181_v14 = vld [vmem:[%s5882_s2 + $0x30] ss:$8 sps:$4 sm:$0xff]   ;;  %v4183_v16 = vld [vmem:[%s5882_s2 + $0x44] ss:$8 sps:$4 sm:$0xff]  }
   0x6   :  { %v4179_v13 = vld [vmem:[%s5882_s2 + $0x434] ss:$8 sps:$4 sm:$0xff]   ;;  %v4182_v15 = vld [vmem:[%s5882_s2 + $0x430] ss:$8 sps:$4 sm:$0xff]   ;;  %v4185_v17 = vld [vmem:[%s5882_s2 + $0x444] ss:$8 sps:$4 sm:$0xff]  }
   0x7   :  { %2325 = vmatpush1.bf16.msra.mxu1 %v4169_v6  ;;  %v4187_v18 = vld [vmem:[%s5882_s2 + $0x40] ss:$8 sps:$4 sm:$0xff]   ;;  %v4189_v20 = vld [vmem:[%s5882_s2 + $0x54] ss:$8 sps:$4 sm:$0xff]   ;;  %v4193_v22 = vld [vmem:[%s5882_s2 + $0x50] ss:$8 sps:$4 sm:$0xff]  }
   0x8   :  { %2777 = vmatpush1.bf16.msra.mxu0 %v4170_v7  ;;  %2326 = vmatprep.subr.bf16.mxu1 %v4171_v8  ;;  %v4188_v19 = vld [vmem:[%s5882_s2 + $0x440] ss:$8 sps:$4 sm:$0xff]   ;;  %v4191_v21 = vld [vmem:[%s5882_s2 + $0x454] ss:$8 sps:$4 sm:$0xff]   ;;  %v4194_v23 = vld [vmem:[%s5882_s2 + $0x450] ss:$8 sps:$4 sm:$0xff]  }
   0x9   :  { %2778 = vmatprep.subr.bf16.mxu0 %v4173_v9  ;;  %v4195_v24 = vld [vmem:[%s5882_s2 + $0x64] ss:$8 sps:$4 sm:$0xff]   ;;  %v4199_v26 = vld [vmem:[%s5882_s2 + $0x60] ss:$8 sps:$4 sm:$0xff]   ;;  %v4201_v28 = vld [vmem:[%s5882_s2 + $0x74] ss:$8 sps:$4 sm:$0xff]  }
   0xa   :  { %v4197_v25 = vld [vmem:[%s5882_s2 + $0x464] ss:$8 sps:$4 sm:$0xff]   ;;  %v4200_v27 = vld [vmem:[%s5882_s2 + $0x460] ss:$8 sps:$4 sm:$0xff]   ;;  %v4203_v29 = vld [vmem:[%s5882_s2 + $0x474] ss:$8 sps:$4 sm:$0xff]  }
   0xb   :  { %2327 = vmatpush1.bf16.msra.mxu1 %v4175_v10  ;;  %v4205_v30 = vld [vmem:[%s5882_s2 + $0x70] ss:$8 sps:$4 sm:$0xff]   ;;  %v4207_v32 = vld [vmem:[%s5882_s2 + $0x84] ss:$8 sps:$4 sm:$0xff]   ;;  %v4211_v34 = vld [vmem:[%s5882_s2 + $0x80] ss:$8 sps:$4 sm:$0xff]  }
   0xc   :  { %2779 = vmatpush1.bf16.msra.mxu0 %v4176_v11  ;;  %2328 = vmatprep.subr.bf16.mxu1 %v4177_v12  ;;  %v4206_v31 = vld [vmem:[%s5882_s2 + $0x470] ss:$8 sps:$4 sm:$0xff]   ;;  %v4209_v33 = vld [vmem:[%s5882_s2 + $0x484] ss:$8 sps:$4 sm:$0xff]   ;;  %v4212_v35 = vld [vmem:[%s5882_s2 + $0x480] ss:$8 sps:$4 sm:$0xff]  }
   0xd   :  { %2780 = vmatprep.subr.bf16.mxu0 %v4179_v13  ;;  %v4213_v36 = vld [vmem:[%s5882_s2 + $0x94] ss:$8 sps:$4 sm:$0xff]   ;;  %v4217_v38 = vld [vmem:[%s5882_s2 + $0x90] ss:$8 sps:$4 sm:$0xff]   ;;  %v4219_v40 = vld [vmem:[%s5882_s2 + $0xa4] ss:$8 sps:$4 sm:$0xff]  }
   0xe   :  { %v4215_v37 = vld [vmem:[%s5882_s2 + $0x494] ss:$8 sps:$4 sm:$0xff]   ;;  %v4218_v39 = vld [vmem:[%s5882_s2 + $0x490] ss:$8 sps:$4 sm:$0xff]   ;;  %v4221_v41 = vld [vmem:[%s5882_s2 + $0x4a4] ss:$8 sps:$4 sm:$0xff]  }
   0xf   :  { %2329 = vmatpush1.bf16.msra.mxu1 %v4181_v14  ;;  %v4223_v42 = vld [vmem:[%s5882_s2 + $0xa0] ss:$8 sps:$4 sm:$0xff]   ;;  %v4225_v44 = vld [vmem:[%s5882_s2 + $0xb4] ss:$8 sps:$4 sm:$0xff]   ;;  %v4229_v46 = vld [vmem:[%s5882_s2 + $0xb0] ss:$8 sps:$4 sm:$0xff]  }
  0x10   :  { %2781 = vmatpush1.bf16.msra.mxu0 %v4182_v15  ;;  %2330 = vmatprep.subr.bf16.mxu1 %v4183_v16  ;;  %v4224_v43 = vld [vmem:[%s5882_s2 + $0x4a0] ss:$8 sps:$4 sm:$0xff]   ;;  %v4227_v45 = vld [vmem:[%s5882_s2 + $0x4b4] ss:$8 sps:$4 sm:$0xff]   ;;  %v4230_v47 = vld [vmem:[%s5882_s2 + $0x4b0] ss:$8 sps:$4 sm:$0xff]  }
  0x11   :  { %2782 = vmatprep.subr.bf16.mxu0 %v4185_v17  ;;  %v18_v48 = vld [vmem:[%s5883_s1] sm:$0xff]  ;;  %v4237_v58 = vld [vmem:[%s5882_s2 + $0xd4] ss:$8 sps:$4 sm:$0xff]   ;;  %v4241_v60 = vld [vmem:[%s5882_s2 + $0xd0] ss:$8 sps:$4 sm:$0xff]  }
  0x12   :  { %v26_v49 = vld [vmem:[%s5883_s1 + $0x40] sm:$0xff]  ;;  %v4239_v59 = vld [vmem:[%s5882_s2 + $0x4d4] ss:$8 sps:$4 sm:$0xff]   ;;  %v4242_v61 = vld [vmem:[%s5882_s2 + $0x4d0] ss:$8 sps:$4 sm:$0xff]  }
  0x13   :  { %2331 = vmatpush1.bf16.msra.mxu1 %v4187_v18  ;;  %v22_v50 = vld [vmem:[%s5883_s1 + $0x20] sm:$0xff]  ;;  %v3520_v53 = vcombine.high %v18_v48, %v26_v49  ;;  %v4249_v2 = vld [vmem:[%s5882_s2 + $0xf4] ss:$8 sps:$4 sm:$0xff]   ;;  %v4253_v4 = vld [vmem:[%s5882_s2 + $0xf0] ss:$8 sps:$4 sm:$0xff]   ;;  %v3519_v11 = vcombine.low %v18_v48, %v26_v49 }
  0x14   :  { %2783 = vmatpush1.bf16.msra.mxu0 %v4188_v19  ;;  %2332 = vmatprep.subr.bf16.mxu1 %v4189_v20  ;;  %v30_v51 = vld [vmem:[%s5883_s1 + $0x60] sm:$0xff]  ;;  %v4251_v3 = vld [vmem:[%s5882_s2 + $0x4f4] ss:$8 sps:$4 sm:$0xff]   ;;  %v4254_v5 = vld [vmem:[%s5882_s2 + $0x4f0] ss:$8 sps:$4 sm:$0xff]  }
  0x15   :  { %2784 = vmatprep.subr.bf16.mxu0 %v4191_v21  ;;  %v4231_v52 = vld [vmem:[%s5882_s2 + $0xc4] ss:$8 sps:$4 sm:$0xff]   ;;  %v3528_v55 = vcombine.high %v22_v50, %v30_v51  ;;  %2354 = vmatprep.mubr.bf16.mxu1 %v3520_v53  ;;  %v4235_v56 = vld [vmem:[%s5882_s2 + $0xc0] ss:$8 sps:$4 sm:$0xff]   ;;  %v3527_v12 = vcombine.low %v22_v50, %v30_v51  ;;  %v4263_v16 = vld [vmem:[%s5882_s2 + $0x114] ss:$8 sps:$4 sm:$0xff]  }
  0x16   :  { %v4233_v54 = vld [vmem:[%s5882_s2 + $0x4c4] ss:$8 sps:$4 sm:$0xff]   ;;  %v4236_v57 = vld [vmem:[%s5882_s2 + $0x4c0] ss:$8 sps:$4 sm:$0xff]   ;;  %v4266_v17 = vld [vmem:[%s5882_s2 + $0x514] ss:$8 sps:$4 sm:$0xff]  }
  0x17   :  { %2333 = vmatpush1.bf16.msra.mxu1 %v4193_v22  ;;  %2806 = vmatprep.mubr.bf16.mxu0 %v3528_v55  ;;  %v4243_v62 = vld [vmem:[%s5882_s2 + $0xe4] ss:$8 sps:$4 sm:$0xff]   ;;  %v4247_v0 = vld [vmem:[%s5882_s2 + $0xe0] ss:$8 sps:$4 sm:$0xff]   ;;  %v4261_v20 = vld [vmem:[%s5882_s2 + $0x110] ss:$8 sps:$4 sm:$0xff]  }
  0x18   :  { %2785 = vmatpush1.bf16.msra.mxu0 %v4194_v23  ;;  %2334 = vmatprep.subr.bf16.mxu1 %v4195_v24  ;;  %v4245_v63 = vld [vmem:[%s5882_s2 + $0x4e4] ss:$8 sps:$4 sm:$0xff]   ;;  %v4248_v1 = vld [vmem:[%s5882_s2 + $0x4e0] ss:$8 sps:$4 sm:$0xff]   ;;  %v4264_v21 = vld [vmem:[%s5882_s2 + $0x510] ss:$8 sps:$4 sm:$0xff]  }
  0x19   :  { %2786 = vmatprep.subr.bf16.mxu0 %v4197_v25  ;;  %v4257_v6 = vld [vmem:[%s5882_s2 + $0x104] ss:$8 sps:$4 sm:$0xff]   ;;  %v4255_v8 = vld [vmem:[%s5882_s2 + $0x100] ss:$8 sps:$4 sm:$0xff]   ;;  %v4287_v48 = vld [vmem:[%s5882_s2 + $0x154] ss:$8 sps:$4 sm:$0xff]  }
  0x1a   :  { %v4260_v7 = vld [vmem:[%s5882_s2 + $0x504] ss:$8 sps:$4 sm:$0xff]   ;;  %v4258_v9 = vld [vmem:[%s5882_s2 + $0x500] ss:$8 sps:$4 sm:$0xff]   ;;  %v4290_v49 = vld [vmem:[%s5882_s2 + $0x554] ss:$8 sps:$4 sm:$0xff]  }
  0x1b   :  { %2335 = vmatpush1.bf16.msra.mxu1 %v4199_v26  ;;  %v34_v10 = vld [vmem:[%s5883_s1 + $0x80] sm:$0xff]  ;;  %v4288_v53 = vld [vmem:[%s5882_s2 + $0x550] ss:$8 sps:$4 sm:$0xff]   ;;  %vm5742_vm5 = vmor %vm3497_vm2, %vm3496_vm0 }
  0x1c   :  { %2787 = vmatpush1.bf16.msra.mxu0 %v4200_v27  ;;  %2336 = vmatprep.subr.bf16.mxu1 %v4201_v28  ;;  %v42_v13 = vld [vmem:[%s5883_s1 + $0xc0] sm:$0xff] }
  0x1d   :  { %2788 = vmatprep.subr.bf16.mxu0 %v4203_v29  ;;  %v38_v14 = vld [vmem:[%s5883_s1 + $0xa0] sm:$0xff]  ;;  %v3536_v18 = vcombine.high %v34_v10, %v42_v13  ;;  %v3535_v28 = vcombine.low %v34_v10, %v42_v13 }
  0x1e   :  { %v46_v15 = vld [vmem:[%s5883_s1 + $0xe0] sm:$0xff] }
  0x1f   :  { %2337 = vmatpush1.bf16.msra.mxu1 %v4205_v30  ;;  %v3544_v19 = vcombine.high %v38_v14, %v46_v15  ;;  %v4269_v22 = vld [vmem:[%s5882_s2 + $0x124] ss:$8 sps:$4 sm:$0xff]   ;;  %v4267_v24 = vld [vmem:[%s5882_s2 + $0x120] ss:$8 sps:$4 sm:$0xff]   ;;  %v3543_v29 = vcombine.low %v38_v14, %v46_v15 }
  0x20   :  { %2789 = vmatpush1.bf16.msra.mxu0 %v4206_v31  ;;  %2338 = vmatprep.subr.bf16.mxu1 %v4207_v32  ;;  %v4272_v23 = vld [vmem:[%s5882_s2 + $0x524] ss:$8 sps:$4 sm:$0xff]   ;;  %v4270_v25 = vld [vmem:[%s5882_s2 + $0x520] ss:$8 sps:$4 sm:$0xff]   ;;  %v4275_v32 = vld [vmem:[%s5882_s2 + $0x134] ss:$8 sps:$4 sm:$0xff]  }
  0x21   :  { %2790 = vmatprep.subr.bf16.mxu0 %v4209_v33  ;;  %v50_v26 = vld [vmem:[%s5883_s1 + $0x100] sm:$0xff]  ;;  %v4278_v33 = vld [vmem:[%s5882_s2 + $0x534] ss:$8 sps:$4 sm:$0xff]  }
  0x22   :  { %v58_v27 = vld [vmem:[%s5883_s1 + $0x140] sm:$0xff] }
  0x23   :  { %2339 = vmatpush1.bf16.msra.mxu1 %v4211_v34  ;;  %v54_v30 = vld [vmem:[%s5883_s1 + $0x120] sm:$0xff]  ;;  %v3552_v34 = vcombine.high %v50_v26, %v58_v27 }
  0x24   :  { %2791 = vmatpush1.bf16.msra.mxu0 %v4212_v35  ;;  %2340 = vmatprep.subr.bf16.mxu1 %v4213_v36  ;;  %v62_v31 = vld [vmem:[%s5883_s1 + $0x160] sm:$0xff]  ;;  %v4273_v36 = vld [vmem:[%s5882_s2 + $0x130] ss:$8 sps:$4 sm:$0xff]  }
  0x25   :  { %2792 = vmatprep.subr.bf16.mxu0 %v4215_v37  ;;  %v3560_v35 = vcombine.high %v54_v30, %v62_v31  ;;  %v4276_v37 = vld [vmem:[%s5882_s2 + $0x530] ss:$8 sps:$4 sm:$0xff]   ;;  %v4296_v55 = vld [vmem:[%s5882_s2 + $0x564] ss:$8 sps:$4 sm:$0xff]   ;;  %v4303_v14 = vld [vmem:[%s5882_s2 + $0x180] ss:$8 sps:$4 sm:$0xff]  }
  0x26   :  { %v110_v13 = vld [vmem:[%s5883_s1 + $0x2e0] sm:$0xff] }
  0x27   :  { %2341 = vmatpush1.bf16.msra.mxu1 %v4217_v38  ;;  %v4281_v38 = vld [vmem:[%s5882_s2 + $0x144] ss:$8 sps:$4 sm:$0xff]   ;;  %v4306_v15 = vld [vmem:[%s5882_s2 + $0x580] ss:$8 sps:$4 sm:$0xff]  }
  0x28   :  { %2793 = vmatpush1.bf16.msra.mxu0 %v4218_v39  ;;  %2342 = vmatprep.subr.bf16.mxu1 %v4219_v40  ;;  %v4284_v39 = vld [vmem:[%s5882_s2 + $0x544] ss:$8 sps:$4 sm:$0xff]   ;;  %v4279_v40 = vld [vmem:[%s5882_s2 + $0x140] ss:$8 sps:$4 sm:$0xff]  }
  0x29   :  { %2794 = vmatprep.subr.bf16.mxu0 %v4221_v41  ;;  %v4282_v41 = vld [vmem:[%s5882_s2 + $0x540] ss:$8 sps:$4 sm:$0xff]  }
  0x2b   :  { %2343 = vmatpush1.bf16.msra.mxu1 %v4223_v42  ;;  %v66_v42 = vld [vmem:[%s5883_s1 + $0x180] sm:$0xff] }
  0x2c   :  { %2795 = vmatpush1.bf16.msra.mxu0 %v4224_v43  ;;  %2344 = vmatprep.subr.bf16.mxu1 %v4225_v44  ;;  %v74_v43 = vld [vmem:[%s5883_s1 + $0x1c0] sm:$0xff]  ;;  %v3551_v44 = vcombine.low %v50_v26, %v58_v27 }
  0x2d   :  { %2796 = vmatprep.subr.bf16.mxu0 %v4227_v45  ;;  %v3559_v45 = vcombine.low %v54_v30, %v62_v31  ;;  %v3568_v50 = vcombine.high %v66_v42, %v74_v43  ;;  %v114_v26 = vld [vmem:[%s5883_s1 + $0x300] sm:$0xff] }
  0x2e   :  { %v118_v30 = vld [vmem:[%s5883_s1 + $0x320] sm:$0xff] }
  0x2f   :  { %2345 = vmatpush1.bf16.msra.mxu1 %v4229_v46  ;;  %v70_v46 = vld [vmem:[%s5883_s1 + $0x1a0] sm:$0xff] }
  0x30   :  { %2797 = vmatpush1.bf16.msra.mxu0 %v4230_v47  ;;  %2346 = vmatprep.subr.bf16.mxu1 %v4231_v52  ;;  %v78_v47 = vld [vmem:[%s5883_s1 + $0x1e0] sm:$0xff]  ;;  %v4285_v52 = vld [vmem:[%s5882_s2 + $0x150] ss:$8 sps:$4 sm:$0xff]  }
  0x31   :  { %2798 = vmatprep.subr.bf16.mxu0 %v4233_v54  ;;  %v3576_v51 = vcombine.high %v70_v46, %v78_v47  ;;  %v4293_v54 = vld [vmem:[%s5882_s2 + $0x164] ss:$8 sps:$4 sm:$0xff]  }
  0x32   :  { %v126_v31 = vld [vmem:[%s5883_s1 + $0x360] sm:$0xff] }
  0x33   :  { %2347 = vmatpush1.bf16.msra.mxu1 %v4235_v56  ;;  %v4291_v56 = vld [vmem:[%s5882_s2 + $0x160] ss:$8 sps:$4 sm:$0xff]  }
  0x34   :  { %2799 = vmatpush1.bf16.msra.mxu0 %v4236_v57  ;;  %2348 = vmatprep.subr.bf16.mxu1 %v4237_v58  ;;  %v82_v57 = vld [vmem:[%s5883_s1 + $0x200] sm:$0xff] }
  0x35   :  { %2800 = vmatprep.subr.bf16.mxu0 %v4239_v59  ;;  %v90_v58 = vld [vmem:[%s5883_s1 + $0x240] sm:$0xff]  ;;  %v3567_v59 = vcombine.low %v66_v42, %v74_v43 }
  0x36   :  { %v3583_v10 = vcombine.low %v82_v57, %v90_v58  ;;  %v130_v42 = vld [vmem:[%s5883_s1 + $0x380] sm:$0xff] }
  0x37   :  { %2349 = vmatpush1.bf16.msra.mxu1 %v4241_v60  ;;  %v3575_v60 = vcombine.low %v70_v46, %v78_v47  ;;  %v138_v43 = vld [vmem:[%s5883_s1 + $0x3c0] sm:$0xff] }
  0x38   :  { %2801 = vmatpush1.bf16.msra.mxu0 %v4242_v61  ;;  %2350 = vmatprep.subr.bf16.mxu1 %v4243_v62  ;;  %v86_v61 = vld [vmem:[%s5883_s1 + $0x220] sm:$0xff] }
  0x39   :  { %2802 = vmatprep.subr.bf16.mxu0 %v4245_v63  ;;  %v94_v62 = vld [vmem:[%s5883_s1 + $0x260] sm:$0xff] }
  0x3a   :  { %v4294_v63 = vld [vmem:[%s5882_s2 + $0x560] ss:$8 sps:$4 sm:$0xff]  }
  0x3b   :  { %2351 = vmatpush1.bf16.msra.mxu1 %v4247_v0  ;;  %v4299_v0 = vld [vmem:[%s5882_s2 + $0x174] ss:$8 sps:$4 sm:$0xff]   ;;  %v134_v46 = vld [vmem:[%s5883_s1 + $0x3a0] sm:$0xff] }
  0x3c   :  { %2803 = vmatpush1.bf16.msra.mxu0 %v4248_v1  ;;  %2352 = vmatprep.subr.bf16.mxu1 %v4249_v2  ;;  %v4302_v1 = vld [vmem:[%s5882_s2 + $0x574] ss:$8 sps:$4 sm:$0xff]   ;;  %v3584_v2 = vcombine.high %v82_v57, %v90_v58  ;;  %v142_v47 = vld [vmem:[%s5883_s1 + $0x3e0] sm:$0xff]  ;;  %v19_v58 = vld [vmem:[%s5883_s1 + $0x8] sm:$0xff] }
  0x3d   :  { %2804 = vmatprep.subr.bf16.mxu0 %v4251_v3  ;;  %v3592_v3 = vcombine.high %v86_v61, %v94_v62  ;;  %v4342_v57 = vld [vmem:[%s5882_s2 + $0x5e0] ss:$8 sps:$4 sm:$0xff]  }
  0x3f   :  { %2353 = vmatpush1.bf16.msra.mxu1 %v4253_v4  ;;  %v4297_v4 = vld [vmem:[%s5882_s2 + $0x170] ss:$8 sps:$4 sm:$0xff]  }
  0x40   :  { %2805 = vmatpush1.bf16.msra.mxu0 %v4254_v5  ;;  %2435 = vmatprep.subr.bf16.mxu1 %v4257_v6  ;;  %v4300_v5 = vld [vmem:[%s5882_s2 + $0x570] ss:$8 sps:$4 sm:$0xff]   ;;  %v4305_v6 = vld [vmem:[%s5882_s2 + $0x184] ss:$8 sps:$4 sm:$0xff]  }
  0x41   :  { %2887 = vmatprep.subr.bf16.mxu0 %v4260_v7  ;;  %v4308_v7 = vld [vmem:[%s5882_s2 + $0x584] ss:$8 sps:$4 sm:$0xff]  }
  0x42   :  { %2355 = vmatmul.mubr.bf16.vlgmr.msra.gmra.mrb[0].mxu1 %v3519_v11  ;;  %v3591_v11 = vcombine.low %v86_v61, %v94_v62  ;;  %v3639_v61 = vcombine.low %v134_v46, %v142_v47  ;;  %v23_v62 = vld [vmem:[%s5883_s1 + $0x28] sm:$0xff] }
  0x43   :  { %2807 = vmatmul.mubr.bf16.vlgmr.msra.gmra.mrb[0].mxu0 %v3527_v12  ;;  %2436 = vmatpush1.bf16.msra.mxu1 %v4255_v8  ;;  %v98_v8 = vld [vmem:[%s5883_s1 + $0x280] sm:$0xff] }
  0x44   :  { %2888 = vmatpush1.bf16.msra.mxu0 %v4258_v9  ;;  %2437 = vmatprep.subr.bf16.mxu1 %v4263_v16  ;;  %v106_v9 = vld [vmem:[%s5883_s1 + $0x2c0] sm:$0xff]  ;;  %v4311_v16 = vld [vmem:[%s5882_s2 + $0x194] ss:$8 sps:$4 sm:$0xff]  }
  0x45   :  { %2889 = vmatprep.subr.bf16.mxu0 %v4266_v17  ;;  %2364 = vmatprep.mubr.bf16.mxu1 %v3536_v18  ;;  %v102_v12 = vld [vmem:[%s5883_s1 + $0x2a0] sm:$0xff]  ;;  %v4314_v17 = vld [vmem:[%s5882_s2 + $0x594] ss:$8 sps:$4 sm:$0xff]   ;;  %v3600_v18 = vcombine.high %v98_v8, %v106_v9  ;;  %v3599_v27 = vcombine.low %v98_v8, %v106_v9  ;;  %v35_v9 = vld [vmem:[%s5883_s1 + $0x88] sm:$0xff] }
  0x46   :  { %2816 = vmatprep.mubr.bf16.mxu0 %v3544_v19  ;;  %v3608_v19 = vcombine.high %v102_v12, %v110_v13  ;;  %v4351_v8 = vld [vmem:[%s5882_s2 + $0x200] ss:$8 sps:$4 sm:$0xff]  }
  0x47   :  { %2438 = vmatpush1.bf16.msra.mxu1 %v4261_v20  ;;  %v4309_v20 = vld [vmem:[%s5882_s2 + $0x190] ss:$8 sps:$4 sm:$0xff]  }
  0x48   :  { %2890 = vmatpush1.bf16.msra.mxu0 %v4264_v21  ;;  %2439 = vmatprep.subr.bf16.mxu1 %v4269_v22  ;;  %v4312_v21 = vld [vmem:[%s5882_s2 + $0x590] ss:$8 sps:$4 sm:$0xff]   ;;  %v4317_v22 = vld [vmem:[%s5882_s2 + $0x1a4] ss:$8 sps:$4 sm:$0xff]  }
  0x49   :  { %2891 = vmatprep.subr.bf16.mxu0 %v4272_v23  ;;  %v4320_v23 = vld [vmem:[%s5882_s2 + $0x5a4] ss:$8 sps:$4 sm:$0xff]  }
  0x4a   :  { %2365 = vmatmul.mubr.bf16.gmra.mrb[4].mxu1 %v3535_v28  ;;  %v3607_v28 = vcombine.low %v102_v12, %v110_v13  ;;  %v39_v13 = vld [vmem:[%s5883_s1 + $0xa8] sm:$0xff] }
  0x4b   :  { %2817 = vmatmul.mubr.bf16.gmra.mrb[4].mxu0 %v3543_v29  ;;  %2440 = vmatpush1.bf16.msra.mxu1 %v4267_v24  ;;  %v4315_v24 = vld [vmem:[%s5882_s2 + $0x1a0] ss:$8 sps:$4 sm:$0xff]  }
  0x4c   :  { %2892 = vmatpush1.bf16.msra.mxu0 %v4270_v25  ;;  %2441 = vmatprep.subr.bf16.mxu1 %v4275_v32  ;;  %v4318_v25 = vld [vmem:[%s5882_s2 + $0x5a0] ss:$8 sps:$4 sm:$0xff]   ;;  %v4323_v32 = vld [vmem:[%s5882_s2 + $0x1b4] ss:$8 sps:$4 sm:$0xff]  }
  0x4d   :  { %2893 = vmatprep.subr.bf16.mxu0 %v4278_v33  ;;  %2374 = vmatprep.mubr.bf16.mxu1 %v3552_v34  ;;  %v122_v29 = vld [vmem:[%s5883_s1 + $0x340] sm:$0xff]  ;;  %v4326_v33 = vld [vmem:[%s5882_s2 + $0x5b4] ss:$8 sps:$4 sm:$0xff]  }
  0x4e   :  { %2826 = vmatprep.mubr.bf16.mxu0 %v3560_v35  ;;  %v3616_v34 = vcombine.high %v114_v26, %v122_v29  ;;  %v3624_v35 = vcombine.high %v118_v30, %v126_v31 }
  0x4f   :  { %2442 = vmatpush1.bf16.msra.mxu1 %v4273_v36  ;;  %v4321_v36 = vld [vmem:[%s5882_s2 + $0x1b0] ss:$8 sps:$4 sm:$0xff]  }
  0x50   :  { %2894 = vmatpush1.bf16.msra.mxu0 %v4276_v37  ;;  %2443 = vmatprep.subr.bf16.mxu1 %v4281_v38  ;;  %v4324_v37 = vld [vmem:[%s5882_s2 + $0x5b0] ss:$8 sps:$4 sm:$0xff]   ;;  %v4329_v38 = vld [vmem:[%s5882_s2 + $0x1c4] ss:$8 sps:$4 sm:$0xff]  }
  0x51   :  { %2895 = vmatprep.subr.bf16.mxu0 %v4284_v39  ;;  %v4332_v39 = vld [vmem:[%s5882_s2 + $0x5c4] ss:$8 sps:$4 sm:$0xff]  }
  0x52   :  { %2375 = vmatmul.mubr.bf16.gmra.mrb[8].mxu1 %v3551_v44  ;;  %v3615_v44 = vcombine.low %v114_v26, %v122_v29  ;;  %v63_v29 = vld [vmem:[%s5883_s1 + $0x168] sm:$0xff] }
  0x53   :  { %2827 = vmatmul.mubr.bf16.gmra.mrb[8].mxu0 %v3559_v45  ;;  %2444 = vmatpush1.bf16.msra.mxu1 %v4279_v40  ;;  %v4327_v40 = vld [vmem:[%s5882_s2 + $0x1c0] ss:$8 sps:$4 sm:$0xff]   ;;  %v3623_v45 = vcombine.low %v118_v30, %v126_v31 }
  0x54   :  { %2896 = vmatpush1.bf16.msra.mxu0 %v4282_v41  ;;  %2445 = vmatprep.subr.bf16.mxu1 %v4287_v48  ;;  %v4330_v41 = vld [vmem:[%s5882_s2 + $0x5c0] ss:$8 sps:$4 sm:$0xff]   ;;  %v4335_v48 = vld [vmem:[%s5882_s2 + $0x1d4] ss:$8 sps:$4 sm:$0xff]  }
  0x55   :  { %2897 = vmatprep.subr.bf16.mxu0 %v4290_v49  ;;  %2384 = vmatprep.mubr.bf16.mxu1 %v3568_v50  ;;  %v4338_v49 = vld [vmem:[%s5882_s2 + $0x5d4] ss:$8 sps:$4 sm:$0xff]   ;;  %v3632_v50 = vcombine.high %v130_v42, %v138_v43  ;;  %v4363_v30 = vld [vmem:[%s5882_s2 + $0x220] ss:$8 sps:$4 sm:$0xff]  }
  0x56   :  { %2836 = vmatprep.mubr.bf16.mxu0 %v3576_v51  ;;  %v3640_v51 = vcombine.high %v134_v46, %v142_v47  ;;  %v4366_v31 = vld [vmem:[%s5882_s2 + $0x620] ss:$8 sps:$4 sm:$0xff]  }
  0x57   :  { %2446 = vmatpush1.bf16.msra.mxu1 %v4285_v52  ;;  %v4333_v52 = vld [vmem:[%s5882_s2 + $0x1d0] ss:$8 sps:$4 sm:$0xff]   ;;  %v71_v46 = vld [vmem:[%s5883_s1 + $0x1a8] sm:$0xff] }
  0x58   :  { %2898 = vmatpush1.bf16.msra.mxu0 %v4288_v53  ;;  %2447 = vmatprep.subr.bf16.mxu1 %v4293_v54  ;;  %v4336_v53 = vld [vmem:[%s5882_s2 + $0x5d0] ss:$8 sps:$4 sm:$0xff]   ;;  %v4341_v54 = vld [vmem:[%s5882_s2 + $0x1e4] ss:$8 sps:$4 sm:$0xff]  }
  0x59   :  { %2899 = vmatprep.subr.bf16.mxu0 %v4296_v55  ;;  %v4344_v55 = vld [vmem:[%s5882_s2 + $0x5e4] ss:$8 sps:$4 sm:$0xff]  }
  0x5a   :  { %2385 = vmatmul.mubr.bf16.gmra.mrb[12].mxu1 %v3567_v59  ;;  %v27_v59 = vld [vmem:[%s5883_s1 + $0x48] sm:$0xff] }
  0x5b   :  { %2837 = vmatmul.mubr.bf16.gmra.mrb[12].mxu0 %v3575_v60  ;;  %2448 = vmatpush1.bf16.msra.mxu1 %v4291_v56  ;;  %v4339_v56 = vld [vmem:[%s5882_s2 + $0x1e0] ss:$8 sps:$4 sm:$0xff]   ;;  %v3631_v60 = vcombine.low %v130_v42, %v138_v43 }
  0x5c   :  { %2900 = vmatpush1.bf16.msra.mxu0 %v4294_v63  ;;  %2449 = vmatprep.subr.bf16.mxu1 %v4299_v0  ;;  %v31_v63 = vld [vmem:[%s5883_s1 + $0x68] sm:$0xff]  ;;  %v4347_v0 = vld [vmem:[%s5882_s2 + $0x1f4] ss:$8 sps:$4 sm:$0xff]  }
  0x5d   :  { %2901 = vmatprep.subr.bf16.mxu0 %v4302_v1  ;;  %2394 = vmatprep.mubr.bf16.mxu1 %v3584_v2  ;;  %v4350_v1 = vld [vmem:[%s5882_s2 + $0x5f4] ss:$8 sps:$4 sm:$0xff]   ;;  %v3522_v2 = vcombine.high %v19_v58, %v27_v59  ;;  %v3529_v12 = vcombine.low %v23_v62, %v31_v63  ;;  %v67_v42 = vld [vmem:[%s5883_s1 + $0x188] sm:$0xff] }
  0x5e   :  { %2846 = vmatprep.mubr.bf16.mxu0 %v3592_v3  ;;  %v3530_v3 = vcombine.high %v23_v62, %v31_v63  ;;  %v79_v47 = vld [vmem:[%s5883_s1 + $0x1e8] sm:$0xff] }
  0x5f   :  { %2450 = vmatpush1.bf16.msra.mxu1 %v4297_v4  ;;  %v4345_v4 = vld [vmem:[%s5882_s2 + $0x1f0] ss:$8 sps:$4 sm:$0xff]   ;;  %v87_v62 = vld [vmem:[%s5883_s1 + $0x228] sm:$0xff] }
  0x60   :  { %2902 = vmatpush1.bf16.msra.mxu0 %v4300_v5  ;;  %2451 = vmatprep.subr.bf16.mxu1 %v4305_v6  ;;  %v4348_v5 = vld [vmem:[%s5882_s2 + $0x5f0] ss:$8 sps:$4 sm:$0xff]   ;;  %v4353_v6 = vld [vmem:[%s5882_s2 + $0x204] ss:$8 sps:$4 sm:$0xff]  }
  0x61   :  { %2903 = vmatprep.subr.bf16.mxu0 %v4308_v7  ;;  %v4356_v7 = vld [vmem:[%s5882_s2 + $0x604] ss:$8 sps:$4 sm:$0xff]  }
  0x62   :  { %2395 = vmatmul.mubr.bf16.gmra.mrb[16].mxu1 %v3583_v10  ;;  %v43_v10 = vld [vmem:[%s5883_s1 + $0xc8] sm:$0xff] }
  0x63   :  { %2847 = vmatmul.mubr.bf16.gmra.mrb[16].mxu0 %v3591_v11  ;;  %2452 = vmatpush1.bf16.msra.mxu1 %v4303_v14  ;;  %v3521_v11 = vcombine.low %v19_v58, %v27_v59  ;;  %v47_v14 = vld [vmem:[%s5883_s1 + $0xe8] sm:$0xff]  ;;  %v3537_v26 = vcombine.low %v35_v9, %v43_v10 }
  0x64   :  { %2904 = vmatpush1.bf16.msra.mxu0 %v4306_v15  ;;  %2453 = vmatprep.subr.bf16.mxu1 %v4311_v16  ;;  %v4354_v15 = vld [vmem:[%s5882_s2 + $0x600] ss:$8 sps:$4 sm:$0xff]   ;;  %v4359_v16 = vld [vmem:[%s5882_s2 + $0x214] ss:$8 sps:$4 sm:$0xff]  }
  0x65   :  { %2905 = vmatprep.subr.bf16.mxu0 %v4314_v17  ;;  %2404 = vmatprep.mubr.bf16.mxu1 %v3600_v18  ;;  %v4362_v17 = vld [vmem:[%s5882_s2 + $0x614] ss:$8 sps:$4 sm:$0xff]   ;;  %v3538_v18 = vcombine.high %v35_v9, %v43_v10  ;;  %v83_v58 = vld [vmem:[%s5883_s1 + $0x208] sm:$0xff] }
  0x66   :  { %2856 = vmatprep.mubr.bf16.mxu0 %v3608_v19  ;;  %v3546_v19 = vcombine.high %v39_v13, %v47_v14  ;;  %v91_v59 = vld [vmem:[%s5883_s1 + $0x248] sm:$0xff] }
  0x67   :  { %2454 = vmatpush1.bf16.msra.mxu1 %v4309_v20  ;;  %v4357_v20 = vld [vmem:[%s5882_s2 + $0x210] ss:$8 sps:$4 sm:$0xff]   ;;  %v95_v63 = vld [vmem:[%s5883_s1 + $0x268] sm:$0xff] }
  0x68   :  { %2906 = vmatpush1.bf16.msra.mxu0 %v4312_v21  ;;  %2455 = vmatprep.subr.bf16.mxu1 %v4317_v22  ;;  %v4360_v21 = vld [vmem:[%s5882_s2 + $0x610] ss:$8 sps:$4 sm:$0xff]   ;;  %v4365_v22 = vld [vmem:[%s5882_s2 + $0x224] ss:$8 sps:$4 sm:$0xff]   ;;  %v4402_v9 = vld [vmem:[%s5882_s2 + $0x680] ss:$8 sps:$4 sm:$0xff]  }
  0x69   :  { %2907 = vmatprep.subr.bf16.mxu0 %v4320_v23  ;;  %v4368_v23 = vld [vmem:[%s5882_s2 + $0x624] ss:$8 sps:$4 sm:$0xff]  }
  0x6a   :  { %2405 = vmatmul.mubr.bf16.gmra.mrb[20].mxu1 %v3599_v27  ;;  %v3545_v27 = vcombine.low %v39_v13, %v47_v14  ;;  %v99_v10 = vld [vmem:[%s5883_s1 + $0x288] sm:$0xff]  ;;  %v3593_v13 = vcombine.low %v87_v62, %v95_v63 }
  0x6b   :  { %2857 = vmatmul.mubr.bf16.gmra.mrb[20].mxu0 %v3607_v28  ;;  %2456 = vmatpush1.bf16.msra.mxu1 %v4315_v24  ;;  %v51_v24 = vld [vmem:[%s5883_s1 + $0x108] sm:$0xff] }
  0x6c   :  { %2908 = vmatpush1.bf16.msra.mxu0 %v4318_v25  ;;  %2457 = vmatprep.subr.bf16.mxu1 %v4323_v32  ;;  %v59_v25 = vld [vmem:[%s5883_s1 + $0x148] sm:$0xff]  ;;  %v4371_v32 = vld [vmem:[%s5882_s2 + $0x234] ss:$8 sps:$4 sm:$0xff]  }
  0x6d   :  { %2909 = vmatprep.subr.bf16.mxu0 %v4326_v33  ;;  %2414 = vmatprep.mubr.bf16.mxu1 %v3616_v34  ;;  %v55_v28 = vld [vmem:[%s5883_s1 + $0x128] sm:$0xff]  ;;  %v4374_v33 = vld [vmem:[%s5882_s2 + $0x634] ss:$8 sps:$4 sm:$0xff]   ;;  %v3554_v34 = vcombine.high %v51_v24, %v59_v25  ;;  %v3553_v43 = vcombine.low %v51_v24, %v59_v25 }
  0x6e   :  { %2866 = vmatprep.mubr.bf16.mxu0 %v3624_v35  ;;  %v3562_v35 = vcombine.high %v55_v28, %v63_v29  ;;  %v103_v14 = vld [vmem:[%s5883_s1 + $0x2a8] sm:$0xff] }
  0x6f   :  { %2458 = vmatpush1.bf16.msra.mxu1 %v4321_v36  ;;  %v4369_v36 = vld [vmem:[%s5882_s2 + $0x230] ss:$8 sps:$4 sm:$0xff]   ;;  %v4411_v24 = vld [vmem:[%s5882_s2 + $0x2a0] ss:$8 sps:$4 sm:$0xff]  }
  0x70   :  { %2910 = vmatpush1.bf16.msra.mxu0 %v4324_v37  ;;  %2459 = vmatprep.subr.bf16.mxu1 %v4329_v38  ;;  %v4372_v37 = vld [vmem:[%s5882_s2 + $0x630] ss:$8 sps:$4 sm:$0xff]   ;;  %v4377_v38 = vld [vmem:[%s5882_s2 + $0x244] ss:$8 sps:$4 sm:$0xff]  }
  0x71   :  { %2911 = vmatprep.subr.bf16.mxu0 %v4332_v39  ;;  %v4380_v39 = vld [vmem:[%s5882_s2 + $0x644] ss:$8 sps:$4 sm:$0xff]  }
  0x72   :  { %2415 = vmatmul.mubr.bf16.gmra.mrb[24].mxu1 %v3615_v44  ;;  %v3561_v44 = vcombine.low %v55_v28, %v63_v29  ;;  %v115_v25 = vld [vmem:[%s5883_s1 + $0x308] sm:$0xff] }
  0x73   :  { %2867 = vmatmul.mubr.bf16.gmra.mrb[24].mxu0 %v3623_v45  ;;  %2460 = vmatpush1.bf16.msra.mxu1 %v4327_v40  ;;  %v4375_v40 = vld [vmem:[%s5882_s2 + $0x240] ss:$8 sps:$4 sm:$0xff]  }
  0x74   :  { %2912 = vmatpush1.bf16.msra.mxu0 %v4330_v41  ;;  %2461 = vmatprep.subr.bf16.mxu1 %v4335_v48  ;;  %v4378_v41 = vld [vmem:[%s5882_s2 + $0x640] ss:$8 sps:$4 sm:$0xff]   ;;  %v4383_v48 = vld [vmem:[%s5882_s2 + $0x254] ss:$8 sps:$4 sm:$0xff]  }
  0x75   :  { %2913 = vmatprep.subr.bf16.mxu0 %v4338_v49  ;;  %2424 = vmatprep.mubr.bf16.mxu1 %v3632_v50  ;;  %v75_v45 = vld [vmem:[%s5883_s1 + $0x1c8] sm:$0xff]  ;;  %v4386_v49 = vld [vmem:[%s5882_s2 + $0x654] ss:$8 sps:$4 sm:$0xff]  }
  0x76   :  { %2876 = vmatprep.mubr.bf16.mxu0 %v3640_v51  ;;  %v3570_v50 = vcombine.high %v67_v42, %v75_v45  ;;  %v3578_v51 = vcombine.high %v71_v46, %v79_v47  ;;  %v119_v29 = vld [vmem:[%s5883_s1 + $0x328] sm:$0xff] }
  0x77   :  { %2462 = vmatpush1.bf16.msra.mxu1 %v4333_v52  ;;  %v4381_v52 = vld [vmem:[%s5882_s2 + $0x250] ss:$8 sps:$4 sm:$0xff]  }
  0x78   :  { %2914 = vmatpush1.bf16.msra.mxu0 %v4336_v53  ;;  %2463 = vmatprep.subr.bf16.mxu1 %v4341_v54  ;;  %v4384_v53 = vld [vmem:[%s5882_s2 + $0x650] ss:$8 sps:$4 sm:$0xff]   ;;  %v4389_v54 = vld [vmem:[%s5882_s2 + $0x264] ss:$8 sps:$4 sm:$0xff]  }
  0x79   :  { %2915 = vmatprep.subr.bf16.mxu0 %v4344_v55  ;;  %v4392_v55 = vld [vmem:[%s5882_s2 + $0x664] ss:$8 sps:$4 sm:$0xff]  }
  0x7a   :  { %2425 = vmatmul.mubr.bf16.gmra.mrb[28].mxu1 %v3631_v60  ;;  %v3569_v60 = vcombine.low %v67_v42, %v75_v45  ;;  %v143_v45 = vld [vmem:[%s5883_s1 + $0x3e8] sm:$0xff] }
  0x7b   :  { %2877 = vmatmul.mubr.bf16.gmra.mrb[28].mxu0 %v3639_v61  ;;  %2464 = vmatpush1.bf16.msra.mxu1 %v4339_v56  ;;  %v4387_v56 = vld [vmem:[%s5882_s2 + $0x260] ss:$8 sps:$4 sm:$0xff]   ;;  %v3577_v61 = vcombine.low %v71_v46, %v79_v47 }
  0x7c   :  { %2916 = vmatpush1.bf16.msra.mxu0 %v4342_v57  ;;  %2465 = vmatprep.subr.bf16.mxu1 %v4347_v0  ;;  %v4390_v57 = vld [vmem:[%s5882_s2 + $0x660] ss:$8 sps:$4 sm:$0xff]   ;;  %v4395_v0 = vld [vmem:[%s5882_s2 + $0x274] ss:$8 sps:$4 sm:$0xff]  }
  0x7d   :  { %2917 = vmatprep.subr.bf16.mxu0 %v4350_v1  ;;  %2467 = vmatprep.mubr.bf16.mxu1 %v3522_v2  ;;  %v4398_v1 = vld [vmem:[%s5882_s2 + $0x674] ss:$8 sps:$4 sm:$0xff]   ;;  %v3586_v2 = vcombine.high %v83_v58, %v91_v59  ;;  %v4423_v46 = vld [vmem:[%s5882_s2 + $0x2c0] ss:$8 sps:$4 sm:$0xff]  }
  0x7e   :  { %2919 = vmatprep.mubr.bf16.mxu0 %v3530_v3  ;;  %v3594_v3 = vcombine.high %v87_v62, %v95_v63  ;;  %v4426_v47 = vld [vmem:[%s5882_s2 + $0x6c0] ss:$8 sps:$4 sm:$0xff]   ;;  %v24_v62 = vld [vmem:[%s5883_s1 + $0x30] sm:$0xff] }
  0x7f   :  { %2466 = vmatpush1.bf16.msra.mxu1 %v4345_v4  ;;  %v4393_v4 = vld [vmem:[%s5882_s2 + $0x270] ss:$8 sps:$4 sm:$0xff]  }
  0x80   :  { %2918 = vmatpush1.bf16.msra.mxu0 %v4348_v5  ;;  %2548 = vmatprep.subr.bf16.mxu1 %v4353_v6  ;;  %v4396_v5 = vld [vmem:[%s5882_s2 + $0x670] ss:$8 sps:$4 sm:$0xff]   ;;  %v4401_v6 = vld [vmem:[%s5882_s2 + $0x284] ss:$8 sps:$4 sm:$0xff]  }
  0x81   :  { %3000 = vmatprep.subr.bf16.mxu0 %v4356_v7  ;;  %v4404_v7 = vld [vmem:[%s5882_s2 + $0x684] ss:$8 sps:$4 sm:$0xff]   ;;  %v32_v63 = vld [vmem:[%s5883_s1 + $0x70] sm:$0xff] }
  0x82   :  { %2468 = vmatmul.mubr.bf16.vlgmr.msra.gmra.mrb[0].mxu1 %v3521_v11  ;;  %v107_v11 = vld [vmem:[%s5883_s1 + $0x2c8] sm:$0xff] }
  0x83   :  { %2920 = vmatmul.mubr.bf16.vlgmr.msra.gmra.mrb[0].mxu0 %v3529_v12  ;;  %2549 = vmatpush1.bf16.msra.mxu1 %v4351_v8  ;;  %v4399_v8 = vld [vmem:[%s5882_s2 + $0x280] ss:$8 sps:$4 sm:$0xff]   ;;  %v3585_v12 = vcombine.low %v83_v58, %v91_v59  ;;  %v20_v58 = vld [vmem:[%s5883_s1 + $0x10] sm:$0xff] }
  0x84   :  { %3001 = vmatpush1.bf16.msra.mxu0 %v4354_v15  ;;  %2550 = vmatprep.subr.bf16.mxu1 %v4359_v16  ;;  %v111_v15 = vld [vmem:[%s5883_s1 + $0x2e8] sm:$0xff]  ;;  %v4407_v16 = vld [vmem:[%s5882_s2 + $0x294] ss:$8 sps:$4 sm:$0xff]  }
  0x85   :  { %3002 = vmatprep.subr.bf16.mxu0 %v4362_v17  ;;  %2477 = vmatprep.mubr.bf16.mxu1 %v3538_v18  ;;  %v4410_v17 = vld [vmem:[%s5882_s2 + $0x694] ss:$8 sps:$4 sm:$0xff]   ;;  %v3602_v18 = vcombine.high %v99_v10, %v107_v11  ;;  %v3609_v28 = vcombine.low %v103_v14, %v111_v15 }
  0x86   :  { %2929 = vmatprep.mubr.bf16.mxu0 %v3546_v19  ;;  %v3610_v19 = vcombine.high %v103_v14, %v111_v15  ;;  %v40_v14 = vld [vmem:[%s5883_s1 + $0xb0] sm:$0xff] }
  0x87   :  { %2551 = vmatpush1.bf16.msra.mxu1 %v4357_v20  ;;  %v4405_v20 = vld [vmem:[%s5882_s2 + $0x290] ss:$8 sps:$4 sm:$0xff]  }
  0x88   :  { %3003 = vmatpush1.bf16.msra.mxu0 %v4360_v21  ;;  %2552 = vmatprep.subr.bf16.mxu1 %v4365_v22  ;;  %v4408_v21 = vld [vmem:[%s5882_s2 + $0x690] ss:$8 sps:$4 sm:$0xff]   ;;  %v4413_v22 = vld [vmem:[%s5882_s2 + $0x2a4] ss:$8 sps:$4 sm:$0xff]  }
  0x89   :  { %3004 = vmatprep.subr.bf16.mxu0 %v4368_v23  ;;  %v4416_v23 = vld [vmem:[%s5882_s2 + $0x6a4] ss:$8 sps:$4 sm:$0xff]   ;;  %v48_v15 = vld [vmem:[%s5883_s1 + $0xf0] sm:$0xff] }
  0x8a   :  { %2478 = vmatmul.mubr.bf16.gmra.mrb[4].mxu1 %v3537_v26  ;;  %v123_v26 = vld [vmem:[%s5883_s1 + $0x348] sm:$0xff] }
  0x8b   :  { %2930 = vmatmul.mubr.bf16.gmra.mrb[4].mxu0 %v3545_v27  ;;  %2553 = vmatpush1.bf16.msra.mxu1 %v4363_v30  ;;  %v3601_v27 = vcombine.low %v99_v10, %v107_v11  ;;  %v127_v30 = vld [vmem:[%s5883_s1 + $0x368] sm:$0xff]  ;;  %v3617_v42 = vcombine.low %v115_v25, %v123_v26  ;;  %v36_v10 = vld [vmem:[%s5883_s1 + $0x90] sm:$0xff] }
  0x8c   :  { %3005 = vmatpush1.bf16.msra.mxu0 %v4366_v31  ;;  %2554 = vmatprep.subr.bf16.mxu1 %v4371_v32  ;;  %v4414_v31 = vld [vmem:[%s5882_s2 + $0x6a0] ss:$8 sps:$4 sm:$0xff]   ;;  %v4419_v32 = vld [vmem:[%s5882_s2 + $0x2b4] ss:$8 sps:$4 sm:$0xff]  }
  0x8d   :  { %3006 = vmatprep.subr.bf16.mxu0 %v4374_v33  ;;  %2487 = vmatprep.mubr.bf16.mxu1 %v3554_v34  ;;  %v4422_v33 = vld [vmem:[%s5882_s2 + $0x6b4] ss:$8 sps:$4 sm:$0xff]   ;;  %v3618_v34 = vcombine.high %v115_v25, %v123_v26  ;;  %v4462_v25 = vld [vmem:[%s5882_s2 + $0x720] ss:$8 sps:$4 sm:$0xff]  }
  0x8e   :  { %2939 = vmatprep.mubr.bf16.mxu0 %v3562_v35  ;;  %v3626_v35 = vcombine.high %v119_v29, %v127_v30  ;;  %v44_v11 = vld [vmem:[%s5883_s1 + $0xd0] sm:$0xff] }
  0x8f   :  { %2555 = vmatpush1.bf16.msra.mxu1 %v4369_v36  ;;  %v4417_v36 = vld [vmem:[%s5882_s2 + $0x2b0] ss:$8 sps:$4 sm:$0xff]  }
  0x90   :  { %3007 = vmatpush1.bf16.msra.mxu0 %v4372_v37  ;;  %2556 = vmatprep.subr.bf16.mxu1 %v4377_v38  ;;  %v4420_v37 = vld [vmem:[%s5882_s2 + $0x6b0] ss:$8 sps:$4 sm:$0xff]   ;;  %v4425_v38 = vld [vmem:[%s5882_s2 + $0x2c4] ss:$8 sps:$4 sm:$0xff]  }
  0x91   :  { %3008 = vmatprep.subr.bf16.mxu0 %v4380_v39  ;;  %v4428_v39 = vld [vmem:[%s5882_s2 + $0x6c4] ss:$8 sps:$4 sm:$0xff]   ;;  %v52_v26 = vld [vmem:[%s5883_s1 + $0x110] sm:$0xff] }
  0x92   :  { %2488 = vmatmul.mubr.bf16.gmra.mrb[8].mxu1 %v3553_v43  ;;  %v3625_v43 = vcombine.low %v119_v29, %v127_v30  ;;  %v3547_v29 = vcombine.low %v40_v14, %v48_v15  ;;  %v56_v30 = vld [vmem:[%s5883_s1 + $0x130] sm:$0xff] }
  0x93   :  { %2940 = vmatmul.mubr.bf16.gmra.mrb[8].mxu0 %v3561_v44  ;;  %2557 = vmatpush1.bf16.msra.mxu1 %v4375_v40  ;;  %v131_v40 = vld [vmem:[%s5883_s1 + $0x388] sm:$0xff] }
  0x94   :  { %3009 = vmatpush1.bf16.msra.mxu0 %v4378_v41  ;;  %2558 = vmatprep.subr.bf16.mxu1 %v4383_v48  ;;  %v139_v41 = vld [vmem:[%s5883_s1 + $0x3c8] sm:$0xff]  ;;  %v4431_v48 = vld [vmem:[%s5882_s2 + $0x2d4] ss:$8 sps:$4 sm:$0xff]  }
  0x95   :  { %3010 = vmatprep.subr.bf16.mxu0 %v4386_v49  ;;  %2497 = vmatprep.mubr.bf16.mxu1 %v3570_v50  ;;  %v135_v44 = vld [vmem:[%s5883_s1 + $0x3a8] sm:$0xff]  ;;  %v4434_v49 = vld [vmem:[%s5882_s2 + $0x6d4] ss:$8 sps:$4 sm:$0xff]   ;;  %v3634_v50 = vcombine.high %v131_v40, %v139_v41  ;;  %v3633_v59 = vcombine.low %v131_v40, %v139_v41 }
  0x96   :  { %2949 = vmatprep.mubr.bf16.mxu0 %v3578_v51  ;;  %v3642_v51 = vcombine.high %v135_v44, %v143_v45  ;;  %v68_v40 = vld [vmem:[%s5883_s1 + $0x190] sm:$0xff] }
  0x97   :  { %2559 = vmatpush1.bf16.msra.mxu1 %v4381_v52  ;;  %v4429_v52 = vld [vmem:[%s5882_s2 + $0x2d0] ss:$8 sps:$4 sm:$0xff]  }
  0x98   :  { %3011 = vmatpush1.bf16.msra.mxu0 %v4384_v53  ;;  %2560 = vmatprep.subr.bf16.mxu1 %v4389_v54  ;;  %v4432_v53 = vld [vmem:[%s5882_s2 + $0x6d0] ss:$8 sps:$4 sm:$0xff]   ;;  %v4437_v54 = vld [vmem:[%s5882_s2 + $0x2e4] ss:$8 sps:$4 sm:$0xff]  }
  0x99   :  { %3012 = vmatprep.subr.bf16.mxu0 %v4392_v55  ;;  %v4440_v55 = vld [vmem:[%s5882_s2 + $0x6e4] ss:$8 sps:$4 sm:$0xff]  }
  0x9a   :  { %2498 = vmatmul.mubr.bf16.gmra.mrb[12].mxu1 %v3569_v60  ;;  %v3641_v60 = vcombine.low %v135_v44, %v143_v45  ;;  %v72_v44 = vld [vmem:[%s5883_s1 + $0x1b0] sm:$0xff] }
  0x9b   :  { %2950 = vmatmul.mubr.bf16.gmra.mrb[12].mxu0 %v3577_v61  ;;  %2561 = vmatpush1.bf16.msra.mxu1 %v4387_v56  ;;  %v4435_v56 = vld [vmem:[%s5882_s2 + $0x2e0] ss:$8 sps:$4 sm:$0xff]   ;;  %v28_v61 = vld [vmem:[%s5883_s1 + $0x50] sm:$0xff] }
  0x9c   :  { %3013 = vmatpush1.bf16.msra.mxu0 %v4390_v57  ;;  %2562 = vmatprep.subr.bf16.mxu1 %v4395_v0  ;;  %v4438_v57 = vld [vmem:[%s5882_s2 + $0x6e0] ss:$8 sps:$4 sm:$0xff]   ;;  %v4443_v0 = vld [vmem:[%s5882_s2 + $0x2f4] ss:$8 sps:$4 sm:$0xff]  }
  0x9d   :  { %3014 = vmatprep.subr.bf16.mxu0 %v4398_v1  ;;  %2507 = vmatprep.mubr.bf16.mxu1 %v3586_v2  ;;  %v4446_v1 = vld [vmem:[%s5882_s2 + $0x6f4] ss:$8 sps:$4 sm:$0xff]   ;;  %v3524_v2 = vcombine.high %v20_v58, %v28_v61 }
  0x9e   :  { %2959 = vmatprep.mubr.bf16.mxu0 %v3594_v3  ;;  %v3532_v3 = vcombine.high %v24_v62, %v32_v63  ;;  %v80_v45 = vld [vmem:[%s5883_s1 + $0x1f0] sm:$0xff] }
  0x9f   :  { %2563 = vmatpush1.bf16.msra.mxu1 %v4393_v4  ;;  %v4441_v4 = vld [vmem:[%s5882_s2 + $0x2f0] ss:$8 sps:$4 sm:$0xff]  }
  0xa0   :  { %3015 = vmatpush1.bf16.msra.mxu0 %v4396_v5  ;;  %2564 = vmatprep.subr.bf16.mxu1 %v4401_v6  ;;  %v4444_v5 = vld [vmem:[%s5882_s2 + $0x6f0] ss:$8 sps:$4 sm:$0xff]   ;;  %v4449_v6 = vld [vmem:[%s5882_s2 + $0x304] ss:$8 sps:$4 sm:$0xff]  }
  0xa1   :  { %3016 = vmatprep.subr.bf16.mxu0 %v4404_v7  ;;  %v4452_v7 = vld [vmem:[%s5882_s2 + $0x704] ss:$8 sps:$4 sm:$0xff]  }
  0xa2   :  { %2508 = vmatmul.mubr.bf16.gmra.mrb[16].mxu1 %v3585_v12  ;;  %v3523_v12 = vcombine.low %v20_v58, %v28_v61  ;;  %v3579_v58 = vcombine.low %v72_v44, %v80_v45  ;;  %v96_v61 = vld [vmem:[%s5883_s1 + $0x270] sm:$0xff] }
  0xa3   :  { %2960 = vmatmul.mubr.bf16.gmra.mrb[16].mxu0 %v3593_v13  ;;  %2565 = vmatpush1.bf16.msra.mxu1 %v4399_v8  ;;  %v4447_v8 = vld [vmem:[%s5882_s2 + $0x300] ss:$8 sps:$4 sm:$0xff]   ;;  %v3531_v13 = vcombine.low %v24_v62, %v32_v63 }
  0xa4   :  { %3017 = vmatpush1.bf16.msra.mxu0 %v4402_v9  ;;  %2566 = vmatprep.subr.bf16.mxu1 %v4407_v16  ;;  %v4450_v9 = vld [vmem:[%s5882_s2 + $0x700] ss:$8 sps:$4 sm:$0xff]   ;;  %v4455_v16 = vld [vmem:[%s5882_s2 + $0x314] ss:$8 sps:$4 sm:$0xff]  }
  0xa5   :  { %3018 = vmatprep.subr.bf16.mxu0 %v4410_v17  ;;  %2517 = vmatprep.mubr.bf16.mxu1 %v3602_v18  ;;  %v4458_v17 = vld [vmem:[%s5882_s2 + $0x714] ss:$8 sps:$4 sm:$0xff]   ;;  %v3540_v18 = vcombine.high %v36_v10, %v44_v11  ;;  %v4483_v62 = vld [vmem:[%s5882_s2 + $0x360] ss:$8 sps:$4 sm:$0xff]  }
  0xa6   :  { %2969 = vmatprep.mubr.bf16.mxu0 %v3610_v19  ;;  %v3548_v19 = vcombine.high %v40_v14, %v48_v15  ;;  %v4486_v63 = vld [vmem:[%s5882_s2 + $0x760] ss:$8 sps:$4 sm:$0xff]  }
  0xa7   :  { %2567 = vmatpush1.bf16.msra.mxu1 %v4405_v20  ;;  %v4453_v20 = vld [vmem:[%s5882_s2 + $0x310] ss:$8 sps:$4 sm:$0xff]   ;;  %v4495_v14 = vld [vmem:[%s5882_s2 + $0x380] ss:$8 sps:$4 sm:$0xff]  }
  0xa8   :  { %3019 = vmatpush1.bf16.msra.mxu0 %v4408_v21  ;;  %2568 = vmatprep.subr.bf16.mxu1 %v4413_v22  ;;  %v4456_v21 = vld [vmem:[%s5882_s2 + $0x710] ss:$8 sps:$4 sm:$0xff]   ;;  %v4461_v22 = vld [vmem:[%s5882_s2 + $0x324] ss:$8 sps:$4 sm:$0xff]   ;;  %v4498_v15 = vld [vmem:[%s5882_s2 + $0x780] ss:$8 sps:$4 sm:$0xff]  }
  0xa9   :  { %3020 = vmatprep.subr.bf16.mxu0 %v4416_v23  ;;  %v4464_v23 = vld [vmem:[%s5882_s2 + $0x724] ss:$8 sps:$4 sm:$0xff]  }
  0xaa   :  { %2518 = vmatmul.mubr.bf16.gmra.mrb[20].mxu1 %v3601_v27  ;;  %v60_v27 = vld [vmem:[%s5883_s1 + $0x150] sm:$0xff] }
  0xab   :  { %2970 = vmatmul.mubr.bf16.gmra.mrb[20].mxu0 %v3609_v28  ;;  %2569 = vmatpush1.bf16.msra.mxu1 %v4411_v24  ;;  %v4459_v24 = vld [vmem:[%s5882_s2 + $0x320] ss:$8 sps:$4 sm:$0xff]   ;;  %v3539_v28 = vcombine.low %v36_v10, %v44_v11  ;;  %v3555_v41 = vcombine.low %v52_v26, %v60_v27  ;;  %v108_v11 = vld [vmem:[%s5883_s1 + $0x2d0] sm:$0xff] }
  0xac   :  { %3021 = vmatpush1.bf16.msra.mxu0 %v4414_v31  ;;  %2570 = vmatprep.subr.bf16.mxu1 %v4419_v32  ;;  %v64_v31 = vld [vmem:[%s5883_s1 + $0x170] sm:$0xff] }
  0xad   :  { %3022 = vmatprep.subr.bf16.mxu0 %v4422_v33  ;;  %2527 = vmatprep.mubr.bf16.mxu1 %v3618_v34  ;;  %v4467_v32 = vld [vmem:[%s5882_s2 + $0x334] ss:$8 sps:$4 sm:$0xff]   ;;  %v3556_v34 = vcombine.high %v52_v26, %v60_v27 }
  0xae   :  { %2979 = vmatprep.mubr.bf16.mxu0 %v3626_v35  ;;  %v4470_v33 = vld [vmem:[%s5882_s2 + $0x734] ss:$8 sps:$4 sm:$0xff]   ;;  %v3564_v35 = vcombine.high %v56_v30, %v64_v31 }
  0xaf   :  { %2571 = vmatpush1.bf16.msra.mxu1 %v4417_v36  ;;  %v4465_v36 = vld [vmem:[%s5882_s2 + $0x330] ss:$8 sps:$4 sm:$0xff]  }
  0xb0   :  { %3023 = vmatpush1.bf16.msra.mxu0 %v4420_v37  ;;  %2572 = vmatprep.subr.bf16.mxu1 %v4425_v38  ;;  %v4468_v37 = vld [vmem:[%s5882_s2 + $0x730] ss:$8 sps:$4 sm:$0xff]   ;;  %v4473_v38 = vld [vmem:[%s5882_s2 + $0x344] ss:$8 sps:$4 sm:$0xff]  }
  0xb1   :  { %3024 = vmatprep.subr.bf16.mxu0 %v4428_v39  ;;  %v4476_v39 = vld [vmem:[%s5882_s2 + $0x744] ss:$8 sps:$4 sm:$0xff]   ;;  %v124_v27 = vld [vmem:[%s5883_s1 + $0x350] sm:$0xff] }
  0xb2   :  { %2528 = vmatmul.mubr.bf16.gmra.mrb[24].mxu1 %v3617_v42  ;;  %v3563_v42 = vcombine.low %v56_v30, %v64_v31  ;;  %v4507_v30 = vld [vmem:[%s5882_s2 + $0x3a0] ss:$8 sps:$4 sm:$0xff]  }
  0xb3   :  { %2980 = vmatmul.mubr.bf16.gmra.mrb[24].mxu0 %v3625_v43  ;;  %2573 = vmatpush1.bf16.msra.mxu1 %v4423_v46  ;;  %v76_v43 = vld [vmem:[%s5883_s1 + $0x1d0] sm:$0xff]  ;;  %v4471_v46 = vld [vmem:[%s5882_s2 + $0x340] ss:$8 sps:$4 sm:$0xff]  }
  0xb4   :  { %3025 = vmatpush1.bf16.msra.mxu0 %v4426_v47  ;;  %2574 = vmatprep.subr.bf16.mxu1 %v4431_v48  ;;  %v4474_v47 = vld [vmem:[%s5882_s2 + $0x740] ss:$8 sps:$4 sm:$0xff]   ;;  %v4479_v48 = vld [vmem:[%s5882_s2 + $0x354] ss:$8 sps:$4 sm:$0xff]  }
  0xb5   :  { %3026 = vmatprep.subr.bf16.mxu0 %v4434_v49  ;;  %2537 = vmatprep.mubr.bf16.mxu1 %v3634_v50  ;;  %v4482_v49 = vld [vmem:[%s5882_s2 + $0x754] ss:$8 sps:$4 sm:$0xff]   ;;  %v3572_v50 = vcombine.high %v68_v40, %v76_v43  ;;  %v4510_v31 = vld [vmem:[%s5882_s2 + $0x7a0] ss:$8 sps:$4 sm:$0xff]  }
  0xb6   :  { %2989 = vmatprep.mubr.bf16.mxu0 %v3642_v51  ;;  %v3580_v51 = vcombine.high %v72_v44, %v80_v45  ;;  %v136_v44 = vld [vmem:[%s5883_s1 + $0x3b0] sm:$0xff] }
  0xb7   :  { %2575 = vmatpush1.bf16.msra.mxu1 %v4429_v52  ;;  %v4477_v52 = vld [vmem:[%s5882_s2 + $0x350] ss:$8 sps:$4 sm:$0xff]  }
  0xb8   :  { %3027 = vmatpush1.bf16.msra.mxu0 %v4432_v53  ;;  %2576 = vmatprep.subr.bf16.mxu1 %v4437_v54  ;;  %v4480_v53 = vld [vmem:[%s5882_s2 + $0x750] ss:$8 sps:$4 sm:$0xff]   ;;  %v4485_v54 = vld [vmem:[%s5882_s2 + $0x364] ss:$8 sps:$4 sm:$0xff]  }
  0xb9   :  { %3028 = vmatprep.subr.bf16.mxu0 %v4440_v55  ;;  %v4488_v55 = vld [vmem:[%s5882_s2 + $0x764] ss:$8 sps:$4 sm:$0xff]   ;;  %v144_v45 = vld [vmem:[%s5883_s1 + $0x3f0] sm:$0xff] }
  0xba   :  { %2538 = vmatmul.mubr.bf16.gmra.mrb[28].mxu1 %v3633_v59  ;;  %v92_v59 = vld [vmem:[%s5883_s1 + $0x250] sm:$0xff] }
  0xbb   :  { %2990 = vmatmul.mubr.bf16.gmra.mrb[28].mxu0 %v3641_v60  ;;  %2577 = vmatpush1.bf16.msra.mxu1 %v4435_v56  ;;  %v84_v56 = vld [vmem:[%s5883_s1 + $0x210] sm:$0xff] }
  0xbc   :  { %3029 = vmatpush1.bf16.msra.mxu0 %v4438_v57  ;;  %2578 = vmatprep.subr.bf16.mxu1 %v4443_v0  ;;  %v3571_v57 = vcombine.low %v68_v40, %v76_v43  ;;  %v88_v60 = vld [vmem:[%s5883_s1 + $0x230] sm:$0xff] }
  0xbd   :  { %3030 = vmatprep.subr.bf16.mxu0 %v4446_v1  ;;  %2580 = vmatprep.mubr.bf16.mxu1 %v3524_v2  ;;  %v4491_v0 = vld [vmem:[%s5882_s2 + $0x374] ss:$8 sps:$4 sm:$0xff]   ;;  %v3588_v2 = vcombine.high %v84_v56, %v92_v59  ;;  %v3595_v10 = vcombine.low %v88_v60, %v96_v61 }
  0xbe   :  { %3032 = vmatprep.mubr.bf16.mxu0 %v3532_v3  ;;  %v4494_v1 = vld [vmem:[%s5882_s2 + $0x774] ss:$8 sps:$4 sm:$0xff]   ;;  %v3596_v3 = vcombine.high %v88_v60, %v96_v61 }
  0xbf   :  { %2579 = vmatpush1.bf16.msra.mxu1 %v4441_v4  ;;  %v4489_v4 = vld [vmem:[%s5882_s2 + $0x370] ss:$8 sps:$4 sm:$0xff]  }
  0xc0   :  { %3031 = vmatpush1.bf16.msra.mxu0 %v4444_v5  ;;  %2661 = vmatprep.subr.bf16.mxu1 %v4449_v6  ;;  %v4492_v5 = vld [vmem:[%s5882_s2 + $0x770] ss:$8 sps:$4 sm:$0xff]   ;;  %v4497_v6 = vld [vmem:[%s5882_s2 + $0x384] ss:$8 sps:$4 sm:$0xff]  }
  0xc1   :  { %3113 = vmatprep.subr.bf16.mxu0 %v4452_v7  ;;  %v4500_v7 = vld [vmem:[%s5882_s2 + $0x784] ss:$8 sps:$4 sm:$0xff]   ;;  %v132_v40 = vld [vmem:[%s5883_s1 + $0x390] sm:$0xff]  ;;  %v25_v60 = vld [vmem:[%s5883_s1 + $0x38] sm:$0xff] }
  0xc2   :  { %2581 = vmatmul.mubr.bf16.vlgmr.msra.gmra.mrb[0].mxu1 %v3523_v12  ;;  %v104_v12 = vld [vmem:[%s5883_s1 + $0x2b0] sm:$0xff]  ;;  %v33_v61 = vld [vmem:[%s5883_s1 + $0x78] sm:$0xff] }
  0xc3   :  { %3033 = vmatmul.mubr.bf16.vlgmr.msra.gmra.mrb[0].mxu0 %v3531_v13  ;;  %2662 = vmatpush1.bf16.msra.mxu1 %v4447_v8  ;;  %v100_v8 = vld [vmem:[%s5883_s1 + $0x290] sm:$0xff] }
  0xc4   :  { %3114 = vmatpush1.bf16.msra.mxu0 %v4450_v9  ;;  %2663 = vmatprep.subr.bf16.mxu1 %v4455_v16  ;;  %v3587_v9 = vcombine.low %v84_v56, %v92_v59  ;;  %v112_v13 = vld [vmem:[%s5883_s1 + $0x2f0] sm:$0xff]  ;;  %v21_v56 = vld [vmem:[%s5883_s1 + $0x18] sm:$0xff] }
  0xc5   :  { %3115 = vmatprep.subr.bf16.mxu0 %v4458_v17  ;;  %2590 = vmatprep.mubr.bf16.mxu1 %v3540_v18  ;;  %v4503_v16 = vld [vmem:[%s5882_s2 + $0x394] ss:$8 sps:$4 sm:$0xff]   ;;  %v3604_v18 = vcombine.high %v100_v8, %v108_v11  ;;  %v3611_v26 = vcombine.low %v104_v12, %v112_v13 }
  0xc6   :  { %3042 = vmatprep.mubr.bf16.mxu0 %v3548_v19  ;;  %v4506_v17 = vld [vmem:[%s5882_s2 + $0x794] ss:$8 sps:$4 sm:$0xff]   ;;  %v3612_v19 = vcombine.high %v104_v12, %v112_v13 }
  0xc7   :  { %2664 = vmatpush1.bf16.msra.mxu1 %v4453_v20  ;;  %v4501_v20 = vld [vmem:[%s5882_s2 + $0x390] ss:$8 sps:$4 sm:$0xff]  }
  0xc8   :  { %3116 = vmatpush1.bf16.msra.mxu0 %v4456_v21  ;;  %2665 = vmatprep.subr.bf16.mxu1 %v4461_v22  ;;  %v4504_v21 = vld [vmem:[%s5882_s2 + $0x790] ss:$8 sps:$4 sm:$0xff]   ;;  %v4509_v22 = vld [vmem:[%s5882_s2 + $0x3a4] ss:$8 sps:$4 sm:$0xff]  }
  0xc9   :  { %3117 = vmatprep.subr.bf16.mxu0 %v4464_v23  ;;  %v4512_v23 = vld [vmem:[%s5882_s2 + $0x7a4] ss:$8 sps:$4 sm:$0xff]   ;;  %v140_v43 = vld [vmem:[%s5883_s1 + $0x3d0] sm:$0xff]  ;;  %v29_v59 = vld [vmem:[%s5883_s1 + $0x58] sm:$0xff] }
  0xca   :  { %2591 = vmatmul.mubr.bf16.gmra.mrb[4].mxu1 %v3539_v28  ;;  %v120_v28 = vld [vmem:[%s5883_s1 + $0x330] sm:$0xff] }
  0xcb   :  { %3043 = vmatmul.mubr.bf16.gmra.mrb[4].mxu0 %v3547_v29  ;;  %2666 = vmatpush1.bf16.msra.mxu1 %v4459_v24  ;;  %v116_v24 = vld [vmem:[%s5883_s1 + $0x310] sm:$0xff] }
  0xcc   :  { %3118 = vmatpush1.bf16.msra.mxu0 %v4462_v25  ;;  %2667 = vmatprep.subr.bf16.mxu1 %v4467_v32  ;;  %v3603_v25 = vcombine.low %v100_v8, %v108_v11  ;;  %v128_v29 = vld [vmem:[%s5883_s1 + $0x370] sm:$0xff]  ;;  %v41_v8 = vld [vmem:[%s5883_s1 + $0xb8] sm:$0xff]  ;;  %v3533_v11 = vcombine.low %v25_v60, %v33_v61 }
  0xcd   :  { %3119 = vmatprep.subr.bf16.mxu0 %v4470_v33  ;;  %2600 = vmatprep.mubr.bf16.mxu1 %v3556_v34  ;;  %v4515_v32 = vld [vmem:[%s5882_s2 + $0x3b4] ss:$8 sps:$4 sm:$0xff]   ;;  %v3620_v34 = vcombine.high %v116_v24, %v124_v27 }
  0xce   :  { %3052 = vmatprep.mubr.bf16.mxu0 %v3564_v35  ;;  %v4518_v33 = vld [vmem:[%s5882_s2 + $0x7b4] ss:$8 sps:$4 sm:$0xff]   ;;  %v3628_v35 = vcombine.high %v120_v28, %v128_v29 }
  0xcf   :  { %2668 = vmatpush1.bf16.msra.mxu1 %v4465_v36  ;;  %v4513_v36 = vld [vmem:[%s5882_s2 + $0x3b0] ss:$8 sps:$4 sm:$0xff]  }
  0xd0   :  { %3120 = vmatpush1.bf16.msra.mxu0 %v4468_v37  ;;  %2669 = vmatprep.subr.bf16.mxu1 %v4473_v38  ;;  %v4516_v37 = vld [vmem:[%s5882_s2 + $0x7b0] ss:$8 sps:$4 sm:$0xff]   ;;  %v4521_v38 = vld [vmem:[%s5882_s2 + $0x3c4] ss:$8 sps:$4 sm:$0xff]  }
  0xd1   :  { %3121 = vmatprep.subr.bf16.mxu0 %v4476_v39  ;;  %v4524_v39 = vld [vmem:[%s5882_s2 + $0x7c4] ss:$8 sps:$4 sm:$0xff]  }
  0xd2   :  { %2601 = vmatmul.mubr.bf16.gmra.mrb[8].mxu1 %v3555_v41  ;;  %v3619_v41 = vcombine.low %v116_v24, %v124_v27  ;;  %v73_v24 = vld [vmem:[%s5883_s1 + $0x1b8] sm:$0xff] }
  0xd3   :  { %3053 = vmatmul.mubr.bf16.gmra.mrb[8].mxu0 %v3563_v42  ;;  %2670 = vmatpush1.bf16.msra.mxu1 %v4471_v46  ;;  %v3627_v42 = vcombine.low %v120_v28, %v128_v29  ;;  %v4519_v46 = vld [vmem:[%s5882_s2 + $0x3c0] ss:$8 sps:$4 sm:$0xff]  }
  0xd4   :  { %3122 = vmatpush1.bf16.msra.mxu0 %v4474_v47  ;;  %2671 = vmatprep.subr.bf16.mxu1 %v4479_v48  ;;  %v4522_v47 = vld [vmem:[%s5882_s2 + $0x7c0] ss:$8 sps:$4 sm:$0xff]   ;;  %v4527_v48 = vld [vmem:[%s5882_s2 + $0x3d4] ss:$8 sps:$4 sm:$0xff]  }
  0xd5   :  { %3123 = vmatprep.subr.bf16.mxu0 %v4482_v49  ;;  %2610 = vmatprep.mubr.bf16.mxu1 %v3572_v50  ;;  %v4530_v49 = vld [vmem:[%s5882_s2 + $0x7d4] ss:$8 sps:$4 sm:$0xff]   ;;  %v3636_v50 = vcombine.high %v132_v40, %v140_v43 }
  0xd6   :  { %3062 = vmatprep.mubr.bf16.mxu0 %v3580_v51  ;;  %v3644_v51 = vcombine.high %v136_v44, %v144_v45 }
  0xd7   :  { %2672 = vmatpush1.bf16.msra.mxu1 %v4477_v52  ;;  %v4525_v52 = vld [vmem:[%s5882_s2 + $0x3d0] ss:$8 sps:$4 sm:$0xff]  }
  0xd8   :  { %3124 = vmatpush1.bf16.msra.mxu0 %v4480_v53  ;;  %2673 = vmatprep.subr.bf16.mxu1 %v4485_v54  ;;  %v4528_v53 = vld [vmem:[%s5882_s2 + $0x7d0] ss:$8 sps:$4 sm:$0xff]   ;;  %v4533_v54 = vld [vmem:[%s5882_s2 + $0x3e4] ss:$8 sps:$4 sm:$0xff]  }
  0xd9   :  { %3125 = vmatprep.subr.bf16.mxu0 %v4488_v55  ;;  %v4536_v55 = vld [vmem:[%s5882_s2 + $0x7e4] ss:$8 sps:$4 sm:$0xff]  }
  0xda   :  { %2611 = vmatmul.mubr.bf16.gmra.mrb[12].mxu1 %v3571_v57  ;;  %v3635_v57 = vcombine.low %v132_v40, %v140_v43  ;;  %v105_v40 = vld [vmem:[%s5883_s1 + $0x2b8] sm:$0xff] }
  0xdb   :  { %3063 = vmatmul.mubr.bf16.gmra.mrb[12].mxu0 %v3579_v58  ;;  %2674 = vmatpush1.bf16.msra.mxu1 %v4483_v62  ;;  %v3643_v58 = vcombine.low %v136_v44, %v144_v45  ;;  %v4531_v62 = vld [vmem:[%s5882_s2 + $0x3e0] ss:$8 sps:$4 sm:$0xff]  }
  0xdc   :  { %3126 = vmatpush1.bf16.msra.mxu0 %v4486_v63  ;;  %2675 = vmatprep.subr.bf16.mxu1 %v4491_v0  ;;  %v4534_v63 = vld [vmem:[%s5882_s2 + $0x7e0] ss:$8 sps:$4 sm:$0xff]   ;;  %v4539_v0 = vld [vmem:[%s5882_s2 + $0x3f4] ss:$8 sps:$4 sm:$0xff]  }
  0xdd   :  { %3127 = vmatprep.subr.bf16.mxu0 %v4494_v1  ;;  %2620 = vmatprep.mubr.bf16.mxu1 %v3588_v2  ;;  %v4542_v1 = vld [vmem:[%s5882_s2 + $0x7f4] ss:$8 sps:$4 sm:$0xff]   ;;  %v3526_v2 = vcombine.high %v21_v56, %v29_v59 }
  0xde   :  { %3072 = vmatprep.mubr.bf16.mxu0 %v3596_v3  ;;  %v3534_v3 = vcombine.high %v25_v60, %v33_v61 }
  0xdf   :  { %2676 = vmatpush1.bf16.msra.mxu1 %v4489_v4  ;;  %v4537_v4 = vld [vmem:[%s5882_s2 + $0x3f0] ss:$8 sps:$4 sm:$0xff]  }
  0xe0   :  { %3128 = vmatpush1.bf16.msra.mxu0 %v4492_v5  ;;  %2677 = vmatprep.subr.bf16.mxu1 %v4497_v6  ;;  %v4540_v5 = vld [vmem:[%s5882_s2 + $0x7f0] ss:$8 sps:$4 sm:$0xff]  }
  0xe1   :  { %3129 = vmatprep.subr.bf16.mxu0 %v4500_v7  ;;  %v37_v6 = vld [vmem:[%s5883_s1 + $0x98] sm:$0xff] }
  0xe2   :  { %2621 = vmatmul.mubr.bf16.gmra.mrb[16].mxu1 %v3587_v9  ;;  %v45_v7 = vld [vmem:[%s5883_s1 + $0xd8] sm:$0xff] }
  0xe3   :  { %3073 = vmatmul.mubr.bf16.gmra.mrb[16].mxu0 %v3595_v10  ;;  %2678 = vmatpush1.bf16.msra.mxu1 %v4495_v14  ;;  %v49_v9 = vld [vmem:[%s5883_s1 + $0xf8] sm:$0xff]  ;;  %v3525_v10 = vcombine.low %v21_v56, %v29_v59  ;;  %v3542_v12 = vcombine.high %v37_v6, %v45_v7 }
  0xe4   :  { %3130 = vmatpush1.bf16.msra.mxu0 %v4498_v15  ;;  %2679 = vmatprep.subr.bf16.mxu1 %v4503_v16  ;;  %v3550_v13 = vcombine.high %v41_v8, %v49_v9  ;;  %v53_v14 = vld [vmem:[%s5883_s1 + $0x118] sm:$0xff] }
  0xe5   :  { %3131 = vmatprep.subr.bf16.mxu0 %v4506_v17  ;;  %2630 = vmatprep.mubr.bf16.mxu1 %v3604_v18  ;;  %v61_v15 = vld [vmem:[%s5883_s1 + $0x158] sm:$0xff]  ;;  %v3541_v18 = vcombine.low %v37_v6, %v45_v7  ;;  %v5726_v7 = vstv %s5885_s0 }
  0xe6   :  { %3082 = vmatprep.mubr.bf16.mxu0 %v3612_v19  ;;  %v57_v16 = vld [vmem:[%s5883_s1 + $0x138] sm:$0xff]  ;;  %v3549_v19 = vcombine.low %v41_v8, %v49_v9 }
  0xe7   :  { %2680 = vmatpush1.bf16.msra.mxu1 %v4501_v20  ;;  %v65_v17 = vld [vmem:[%s5883_s1 + $0x178] sm:$0xff]  ;;  %v3558_v20 = vcombine.high %v53_v14, %v61_v15 }
  0xe8   :  { %3132 = vmatpush1.bf16.msra.mxu0 %v4504_v21  ;;  %2681 = vmatprep.subr.bf16.mxu1 %v4509_v22  ;;  %v3566_v21 = vcombine.high %v57_v16, %v65_v17  ;;  %v69_v22 = vld [vmem:[%s5883_s1 + $0x198] sm:$0xff]  ;;  %v3565_v27 = vcombine.low %v57_v16, %v65_v17 }
  0xe9   :  { %3133 = vmatprep.subr.bf16.mxu0 %v4512_v23  ;;  %v77_v23 = vld [vmem:[%s5883_s1 + $0x1d8] sm:$0xff] }
  0xea   :  { %2631 = vmatmul.mubr.bf16.gmra.mrb[20].mxu1 %v3603_v25  ;;  %v81_v25 = vld [vmem:[%s5883_s1 + $0x1f8] sm:$0xff]  ;;  %v3574_v28 = vcombine.high %v69_v22, %v77_v23 }
  0xeb   :  { %3083 = vmatmul.mubr.bf16.gmra.mrb[20].mxu0 %v3611_v26  ;;  %2682 = vmatpush1.bf16.msra.mxu1 %v4507_v30  ;;  %v3557_v26 = vcombine.low %v53_v14, %v61_v15  ;;  %v3582_v29 = vcombine.high %v73_v24, %v81_v25  ;;  %v85_v30 = vld [vmem:[%s5883_s1 + $0x218] sm:$0xff] }
  0xec   :  { %3134 = vmatpush1.bf16.msra.mxu0 %v4510_v31  ;;  %2683 = vmatprep.subr.bf16.mxu1 %v4515_v32  ;;  %v93_v31 = vld [vmem:[%s5883_s1 + $0x258] sm:$0xff] }
  0xed   :  { %3135 = vmatprep.subr.bf16.mxu0 %v4518_v33  ;;  %2640 = vmatprep.mubr.bf16.mxu1 %v3620_v34  ;;  %v89_v32 = vld [vmem:[%s5883_s1 + $0x238] sm:$0xff]  ;;  %v3573_v34 = vcombine.low %v69_v22, %v77_v23 }
  0xee   :  { %3092 = vmatprep.mubr.bf16.mxu0 %v3628_v35  ;;  %v97_v33 = vld [vmem:[%s5883_s1 + $0x278] sm:$0xff]  ;;  %v3581_v35 = vcombine.low %v73_v24, %v81_v25 }
  0xef   :  { %2684 = vmatpush1.bf16.msra.mxu1 %v4513_v36  ;;  %v3590_v36 = vcombine.high %v85_v30, %v93_v31  ;;  %v3597_v43 = vcombine.low %v89_v32, %v97_v33  ;;  %v137_v56 = vld [vmem:[%s5883_s1 + $0x3b8] sm:$0xff] }
  0xf0   :  { %3136 = vmatpush1.bf16.msra.mxu0 %v4516_v37  ;;  %2685 = vmatprep.subr.bf16.mxu1 %v4521_v38  ;;  %v3598_v37 = vcombine.high %v89_v32, %v97_v33  ;;  %v101_v38 = vld [vmem:[%s5883_s1 + $0x298] sm:$0xff] }
  0xf1   :  { %3137 = vmatprep.subr.bf16.mxu0 %v4524_v39  ;;  %v109_v39 = vld [vmem:[%s5883_s1 + $0x2d8] sm:$0xff] }
  0xf2   :  { %2641 = vmatmul.mubr.bf16.gmra.mrb[24].mxu1 %v3619_v41  ;;  %v113_v41 = vld [vmem:[%s5883_s1 + $0x2f8] sm:$0xff]  ;;  %v3606_v44 = vcombine.high %v101_v38, %v109_v39 }
  0xf3   :  { %3093 = vmatmul.mubr.bf16.gmra.mrb[24].mxu0 %v3627_v42  ;;  %2686 = vmatpush1.bf16.msra.mxu1 %v4519_v46  ;;  %v3589_v42 = vcombine.low %v85_v30, %v93_v31  ;;  %v3614_v45 = vcombine.high %v105_v40, %v113_v41  ;;  %v117_v46 = vld [vmem:[%s5883_s1 + $0x318] sm:$0xff] }
  0xf4   :  { %3138 = vmatpush1.bf16.msra.mxu0 %v4522_v47  ;;  %2687 = vmatprep.subr.bf16.mxu1 %v4527_v48  ;;  %v125_v47 = vld [vmem:[%s5883_s1 + $0x358] sm:$0xff] }
  0xf5   :  { %3139 = vmatprep.subr.bf16.mxu0 %v4530_v49  ;;  %2650 = vmatprep.mubr.bf16.mxu1 %v3636_v50  ;;  %v121_v48 = vld [vmem:[%s5883_s1 + $0x338] sm:$0xff]  ;;  %v3605_v50 = vcombine.low %v101_v38, %v109_v39 }
  0xf6   :  { %3102 = vmatprep.mubr.bf16.mxu0 %v3644_v51  ;;  %v129_v49 = vld [vmem:[%s5883_s1 + $0x378] sm:$0xff]  ;;  %v3613_v51 = vcombine.low %v105_v40, %v113_v41 }
  0xf7   :  { %2688 = vmatpush1.bf16.msra.mxu1 %v4525_v52  ;;  %v3622_v52 = vcombine.high %v117_v46, %v125_v47  ;;  %v3629_v59 = vcombine.low %v121_v48, %v129_v49 }
  0xf8   :  { %3140 = vmatpush1.bf16.msra.mxu0 %v4528_v53  ;;  %2689 = vmatprep.subr.bf16.mxu1 %v4533_v54  ;;  %v3630_v53 = vcombine.high %v121_v48, %v129_v49  ;;  %v133_v54 = vld [vmem:[%s5883_s1 + $0x398] sm:$0xff] }
  0xf9   :  { %3141 = vmatprep.subr.bf16.mxu0 %v4536_v55  ;;  %v141_v55 = vld [vmem:[%s5883_s1 + $0x3d8] sm:$0xff] }
  0xfa   :  { %2651 = vmatmul.mubr.bf16.gmra.mrb[28].mxu1 %v3635_v57  ;;  %v145_v57 = vld [vmem:[%s5883_s1 + $0x3f8] sm:$0xff]  ;;  %v3638_v60 = vcombine.high %v133_v54, %v141_v55 }
  0xfb   :  { %3103 = vmatmul.mubr.bf16.gmra.mrb[28].mxu0 %v3643_v58  ;;  %2690 = vmatpush1.bf16.msra.mxu1 %v4531_v62  ;;  %v3621_v58 = vcombine.low %v117_v46, %v125_v47  ;;  %v3646_v61 = vcombine.high %v137_v56, %v145_v57  ;;  %v3637_v62 = vcombine.low %v133_v54, %v141_v55 }
  0xfc   :  { %3142 = vmatpush1.bf16.msra.mxu0 %v4534_v63  ;;  %2691 = vmatprep.subr.bf16.mxu1 %v4539_v0  ;;  %v3645_v63 = vcombine.low %v137_v56, %v145_v57  ;;  %v3262_v0 = vlaneseq }
  0xfd   :  { %3143 = vmatprep.subr.bf16.mxu0 %v4542_v1  ;;  %2693 = vmatprep.mubr.bf16.mxu1 %v3526_v2 }
  0xfe   :  { %3145 = vmatprep.mubr.bf16.mxu0 %v3534_v3  ;;  %v3263_v1 = vshrl.u32 %v3262_v0, 7  ;;  %v3260_v3 = vld [vmem:[%s5884_s3] sm:$0x3] }
  0xff   :  { %2692 = vmatpush1.bf16.msra.mxu1 %v4537_v4 }
 0x100   :  { %3144 = vmatpush1.bf16.msra.mxu0 %v4540_v5  ;;  %v3264_v2 = vsub.s32 0, %v3263_v1  ;;  %v3268_v4 = vsub.s32 1, %v3263_v1 }
 0x102   :  { %2694 = vmatmul.mubr.bf16.vlgmr.msra.gmra.mrb[0].mxu1 %v3525_v10  ;;  %v5728_v9 = vrot.slane %v3260_v3, %v3264_v2 }
 0x103   :  { %3146 = vmatmul.mubr.bf16.vlgmr.msra.gmra.mrb[0].mxu0 %v3533_v11  ;;  %2703 = vmatprep.mubr.bf16.mxu1 %v3542_v12 }
 0x104   :  { %3155 = vmatprep.mubr.bf16.mxu0 %v3550_v13  ;;  %v5730_v13 = vrot.slane %v3260_v3, %v3268_v4 }
 0x10a   :  { %2704 = vmatmul.mubr.bf16.gmra.mrb[4].mxu1 %v3541_v18 }
 0x10b   :  { %3156 = vmatmul.mubr.bf16.gmra.mrb[4].mxu0 %v3549_v19  ;;  %2713 = vmatprep.mubr.bf16.mxu1 %v3558_v20 }
 0x10c   :  { %3165 = vmatprep.mubr.bf16.mxu0 %v3566_v21 }
 0x112   :  { %2714 = vmatmul.mubr.bf16.gmra.mrb[8].mxu1 %v3557_v26 }
 0x113   :  { %3166 = vmatmul.mubr.bf16.gmra.mrb[8].mxu0 %v3565_v27  ;;  %2723 = vmatprep.mubr.bf16.mxu1 %v3574_v28 }
 0x114   :  { %3175 = vmatprep.mubr.bf16.mxu0 %v3582_v29 }
 0x11a   :  { %2724 = vmatmul.mubr.bf16.gmra.mrb[12].mxu1 %v3573_v34 }
 0x11b   :  { %3176 = vmatmul.mubr.bf16.gmra.mrb[12].mxu0 %v3581_v35  ;;  %2733 = vmatprep.mubr.bf16.mxu1 %v3590_v36 }
 0x11c   :  { %3185 = vmatprep.mubr.bf16.mxu0 %v3598_v37 }
 0x122   :  { %2734 = vmatmul.mubr.bf16.gmra.mrb[16].mxu1 %v3589_v42 }
 0x123   :  { %3186 = vmatmul.mubr.bf16.gmra.mrb[16].mxu0 %v3597_v43  ;;  %2743 = vmatprep.mubr.bf16.mxu1 %v3606_v44 }
 0x124   :  { %3195 = vmatprep.mubr.bf16.mxu0 %v3614_v45 }
 0x12a   :  { %2744 = vmatmul.mubr.bf16.gmra.mrb[20].mxu1 %v3605_v50 }
 0x12b   :  { %3196 = vmatmul.mubr.bf16.gmra.mrb[20].mxu0 %v3613_v51  ;;  %2753 = vmatprep.mubr.bf16.mxu1 %v3622_v52 }
 0x12c   :  { %3205 = vmatprep.mubr.bf16.mxu0 %v3630_v53 }
 0x132   :  { %2754 = vmatmul.mubr.bf16.gmra.mrb[24].mxu1 %v3621_v58 }
 0x133   :  { %3206 = vmatmul.mubr.bf16.gmra.mrb[24].mxu0 %v3629_v59  ;;  %2763 = vmatprep.mubr.bf16.mxu1 %v3638_v60 }
 0x134   :  { %3215 = vmatprep.mubr.bf16.mxu0 %v3646_v61 }
 0x13a   :  { %2764 = vmatmul.mubr.bf16.gmra.mrb[28].mxu1 %v3637_v62 }
 0x13b   :  { %3216 = vmatmul.mubr.bf16.gmra.mrb[28].mxu0 %v3645_v63 }
 0x1d5   :  { %v2695_v5 = vpop.f32.mrb[0].mxu1 }
 0x1d6   :  { %v3147_v6 = vpop.f32.mrb[0].mxu0  ;;  %v2697_v10 = vpop.f32.mrb[1].mxu1 }
 0x1d7   :  { %v3935_v8 = vadd.f32 %v3147_v6, %v2695_v5  ;;  %v3149_v11 = vpop.f32.mrb[1].mxu0  ;;  %v2699_v14 = vpop.f32.mrb[2].mxu1 }
 0x1d8   :  { %v3936_v12 = vadd.f32 %v3149_v11, %v2697_v10  ;;  %v3151_v15 = vpop.f32.mrb[2].mxu0  ;;  %v2701_v18 = vpop.f32.mrb[3].mxu1 }
 0x1d9   :  { %v3228_v16 = vmul.f32 %v3935_v8, %v5726_v7  ;;  %v3937_v17 = vadd.f32 %v3151_v15, %v2699_v14  ;;  %v3153_v19 = vpop.f32.mrb[3].mxu0 }
 0x1da   :  { %v3229_v20 = vmul.f32 %v3936_v12, %v5726_v7  ;;  %v3938_v21 = vadd.f32 %v3153_v19, %v2701_v18 }
 0x1db   :  { %v3272_v22 = vadd.f32 %v5728_v9, %v3228_v16  ;;  %v3230_v23 = vmul.f32 %v3937_v17, %v5726_v7 }
 0x1dc   :  { %v3273_v24 = vadd.f32 %v5730_v13, %v3229_v20  ;;  %v3231_v25 = vmul.f32 %v3938_v21, %v5726_v7 }
 0x1dd   :  { %vm3304_vm1 = vcmp.gt.f32.partialorder %v3272_v22, 0.0  ;;  %v3336_v26 = vmul.f32 0.2, %v3272_v22  ;;  %v3274_v27 = vadd.f32 %v5728_v9, %v3230_v23  ;;  %v2705_v30 = vpop.f32.mrb[4].mxu1 }
 0x1de   :  { %vm3305_vm3 = vcmp.gt.f32.partialorder %v3273_v24, 0.0  ;;  %v3337_v28 = vmul.f32 0.2, %v3273_v24  ;;  %v3275_v29 = vadd.f32 %v5730_v13, %v3231_v25  ;;  %v3157_v31 = vpop.f32.mrb[4].mxu0  ;;  %v2707_v35 = vpop.f32.mrb[5].mxu1 }
 0x1df   :  { %v3368_v32 = vsel %vm3304_vm1, %v3272_v22, %v3336_v26  ;;  %vm3306_vm4 = vcmp.gt.f32.partialorder %v3274_v27, 0.0  ;;  %v3338_v33 = vmul.f32 0.2, %v3274_v27  ;;  %v3939_v34 = vadd.f32 %v3157_v31, %v2705_v30  ;;  %v3159_v36 = vpop.f32.mrb[5].mxu0  ;;  %v2709_v41 = vpop.f32.mrb[6].mxu1 }
 0x1e0   :  { %v3369_v37 = vsel %vm3305_vm3, %v3273_v24, %v3337_v28  ;;  %vm3307_vm6 = vcmp.gt.f32.partialorder %v3275_v29, 0.0  ;;  %v3339_v39 = vmul.f32 0.2, %v3275_v29  ;;  %v3940_v40 = vadd.f32 %v3159_v36, %v2707_v35  ;;  %v3161_v42 = vpop.f32.mrb[6].mxu0  ;;  %v2711_v47 = vpop.f32.mrb[7].mxu1 }
 0x1e1   :  { %v3919_v43 = vpack.c.bf16 %v3369_v37, %v3368_v32  ;;  %v3370_v44 = vsel %vm3306_vm4, %v3274_v27, %v3338_v33  ;;  %v3232_v45 = vmul.f32 %v3939_v34, %v5726_v7  ;;  %v3941_v46 = vadd.f32 %v3161_v42, %v2709_v41  ;;  %v3163_v48 = vpop.f32.mrb[7].mxu0 }
 0x1e2   :  { %v3371_v49 = vsel %vm3307_vm6, %v3275_v29, %v3339_v39  ;;  %v3233_v50 = vmul.f32 %v3940_v40, %v5726_v7  ;;  %v3942_v51 = vadd.f32 %v3163_v48, %v2711_v47 }
 0x1e3   :  { %3499 = vst.msk [vmem:[%s5886_s4] sm:$0xff] %vm5742_vm5, %v3919_v43  ;;  %v3920_v52 = vpack.c.bf16 %v3371_v49, %v3370_v44  ;;  %v3276_v53 = vadd.f32 %v5728_v9, %v3232_v45  ;;  %v3234_v54 = vmul.f32 %v3941_v46, %v5726_v7 }
 0x1e4   :  { %v3277_v55 = vadd.f32 %v5730_v13, %v3233_v50  ;;  %v3235_v56 = vmul.f32 %v3942_v51, %v5726_v7 }
 0x1e5   :  { %3500 = vst.msk [vmem:[%s5886_s4 + $0x8] sm:$0xff] %vm5742_vm5, %v3920_v52  ;;  %vm3308_vm7 = vcmp.gt.f32.partialorder %v3276_v53, 0.0  ;;  %v3340_v57 = vmul.f32 0.2, %v3276_v53  ;;  %v3278_v58 = vadd.f32 %v5728_v9, %v3234_v54  ;;  %v2715_v61 = vpop.f32.mrb[8].mxu1 }
 0x1e6   :  { %vm3309_vm8 = vcmp.gt.f32.partialorder %v3277_v55, 0.0  ;;  %v3341_v59 = vmul.f32 0.2, %v3277_v55  ;;  %v3279_v60 = vadd.f32 %v5730_v13, %v3235_v56  ;;  %v3167_v62 = vpop.f32.mrb[8].mxu0  ;;  %v2717_v2 = vpop.f32.mrb[9].mxu1 }
 0x1e7   :  { %v3372_v63 = vsel %vm3308_vm7, %v3276_v53, %v3340_v57  ;;  %vm3310_vm9 = vcmp.gt.f32.partialorder %v3278_v58, 0.0  ;;  %v3342_v0 = vmul.f32 0.2, %v3278_v58  ;;  %v3943_v1 = vadd.f32 %v3167_v62, %v2715_v61  ;;  %v3169_v3 = vpop.f32.mrb[9].mxu0  ;;  %v2719_v8 = vpop.f32.mrb[10].mxu1 }
 0x1e8   :  { %v3373_v4 = vsel %vm3309_vm8, %v3277_v55, %v3341_v59  ;;  %vm3311_vm10 = vcmp.gt.f32.partialorder %v3279_v60, 0.0  ;;  %v3343_v5 = vmul.f32 0.2, %v3279_v60  ;;  %v3944_v6 = vadd.f32 %v3169_v3, %v2717_v2  ;;  %v3171_v10 = vpop.f32.mrb[10].mxu0  ;;  %v2721_v16 = vpop.f32.mrb[11].mxu1 }
 0x1e9   :  { %v3921_v11 = vpack.c.bf16 %v3373_v4, %v3372_v63  ;;  %v3374_v12 = vsel %vm3310_vm9, %v3278_v58, %v3342_v0  ;;  %v3236_v14 = vmul.f32 %v3943_v1, %v5726_v7  ;;  %v3945_v15 = vadd.f32 %v3171_v10, %v2719_v8  ;;  %v3173_v17 = vpop.f32.mrb[11].mxu0 }
 0x1ea   :  { %v3375_v18 = vsel %vm3311_vm10, %v3279_v60, %v3343_v5  ;;  %v3237_v19 = vmul.f32 %v3944_v6, %v5726_v7  ;;  %v3946_v20 = vadd.f32 %v3173_v17, %v2721_v16 }
 0x1eb   :  { %3501 = vst.msk [vmem:[%s5886_s4 + $0x10] sm:$0xff] %vm5742_vm5, %v3921_v11  ;;  %v3922_v21 = vpack.c.bf16 %v3375_v18, %v3374_v12  ;;  %v3280_v22 = vadd.f32 %v5728_v9, %v3236_v14  ;;  %v3238_v23 = vmul.f32 %v3945_v15, %v5726_v7 }
 0x1ec   :  { %v3281_v24 = vadd.f32 %v5730_v13, %v3237_v19  ;;  %v3239_v25 = vmul.f32 %v3946_v20, %v5726_v7 }
 0x1ed   :  { %3502 = vst.msk [vmem:[%s5886_s4 + $0x18] sm:$0xff] %vm5742_vm5, %v3922_v21  ;;  %vm3312_vm11 = vcmp.gt.f32.partialorder %v3280_v22, 0.0  ;;  %v3344_v26 = vmul.f32 0.2, %v3280_v22  ;;  %v3282_v27 = vadd.f32 %v5728_v9, %v3238_v23  ;;  %v2725_v30 = vpop.f32.mrb[12].mxu1 }
 0x1ee   :  { %vm3313_vm12 = vcmp.gt.f32.partialorder %v3281_v24, 0.0  ;;  %v3345_v28 = vmul.f32 0.2, %v3281_v24  ;;  %v3283_v29 = vadd.f32 %v5730_v13, %v3239_v25  ;;  %v3177_v31 = vpop.f32.mrb[12].mxu0  ;;  %v2727_v35 = vpop.f32.mrb[13].mxu1 }
 0x1ef   :  { %v3376_v32 = vsel %vm3312_vm11, %v3280_v22, %v3344_v26  ;;  %vm3314_vm13 = vcmp.gt.f32.partialorder %v3282_v27, 0.0  ;;  %v3346_v33 = vmul.f32 0.2, %v3282_v27  ;;  %v3947_v34 = vadd.f32 %v3177_v31, %v2725_v30  ;;  %v3179_v36 = vpop.f32.mrb[13].mxu0  ;;  %v2729_v41 = vpop.f32.mrb[14].mxu1 }
 0x1f0   :  { %v3377_v37 = vsel %vm3313_vm12, %v3281_v24, %v3345_v28  ;;  %vm3315_vm14 = vcmp.gt.f32.partialorder %v3283_v29, 0.0  ;;  %v3347_v39 = vmul.f32 0.2, %v3283_v29  ;;  %v3948_v40 = vadd.f32 %v3179_v36, %v2727_v35  ;;  %v3181_v42 = vpop.f32.mrb[14].mxu0  ;;  %v2731_v47 = vpop.f32.mrb[15].mxu1 }
 0x1f1   :  { %v3923_v43 = vpack.c.bf16 %v3377_v37, %v3376_v32  ;;  %v3378_v44 = vsel %vm3314_vm13, %v3282_v27, %v3346_v33  ;;  %v3240_v45 = vmul.f32 %v3947_v34, %v5726_v7  ;;  %v3949_v46 = vadd.f32 %v3181_v42, %v2729_v41  ;;  %v3183_v48 = vpop.f32.mrb[15].mxu0 }
 0x1f2   :  { %v3379_v49 = vsel %vm3315_vm14, %v3283_v29, %v3347_v39  ;;  %v3241_v50 = vmul.f32 %v3948_v40, %v5726_v7  ;;  %v3950_v51 = vadd.f32 %v3183_v48, %v2731_v47 }
 0x1f3   :  { %3503 = vst.msk [vmem:[%s5886_s4 + $0x20] sm:$0xff] %vm5742_vm5, %v3923_v43  ;;  %v3924_v52 = vpack.c.bf16 %v3379_v49, %v3378_v44  ;;  %v3284_v53 = vadd.f32 %v5728_v9, %v3240_v45  ;;  %v3242_v54 = vmul.f32 %v3949_v46, %v5726_v7 }
 0x1f4   :  { %v3285_v55 = vadd.f32 %v5730_v13, %v3241_v50  ;;  %v3243_v56 = vmul.f32 %v3950_v51, %v5726_v7 }
 0x1f5   :  { %3504 = vst.msk [vmem:[%s5886_s4 + $0x28] sm:$0xff] %vm5742_vm5, %v3924_v52  ;;  %vm3316_vm15 = vcmp.gt.f32.partialorder %v3284_v53, 0.0  ;;  %v3348_v57 = vmul.f32 0.2, %v3284_v53  ;;  %v3286_v58 = vadd.f32 %v5728_v9, %v3242_v54  ;;  %v2735_v61 = vpop.f32.mrb[16].mxu1 }
 0x1f6   :  { %vm3317_vm0 = vcmp.gt.f32.partialorder %v3285_v55, 0.0  ;;  %v3349_v59 = vmul.f32 0.2, %v3285_v55  ;;  %v3287_v60 = vadd.f32 %v5730_v13, %v3243_v56  ;;  %v3187_v62 = vpop.f32.mrb[16].mxu0  ;;  %v2737_v2 = vpop.f32.mrb[17].mxu1 }
 0x1f7   :  { %v3380_v63 = vsel %vm3316_vm15, %v3284_v53, %v3348_v57  ;;  %vm3318_vm1 = vcmp.gt.f32.partialorder %v3286_v58, 0.0  ;;  %v3350_v0 = vmul.f32 0.2, %v3286_v58  ;;  %v3951_v1 = vadd.f32 %v3187_v62, %v2735_v61  ;;  %v3189_v3 = vpop.f32.mrb[17].mxu0  ;;  %v2739_v8 = vpop.f32.mrb[18].mxu1 }
 0x1f8   :  { %v3381_v4 = vsel %vm3317_vm0, %v3285_v55, %v3349_v59  ;;  %vm3319_vm2 = vcmp.gt.f32.partialorder %v3287_v60, 0.0  ;;  %v3351_v5 = vmul.f32 0.2, %v3287_v60  ;;  %v3952_v6 = vadd.f32 %v3189_v3, %v2737_v2  ;;  %v3191_v10 = vpop.f32.mrb[18].mxu0  ;;  %v2741_v16 = vpop.f32.mrb[19].mxu1 }
 0x1f9   :  { %v3925_v11 = vpack.c.bf16 %v3381_v4, %v3380_v63  ;;  %v3382_v12 = vsel %vm3318_vm1, %v3286_v58, %v3350_v0  ;;  %v3244_v14 = vmul.f32 %v3951_v1, %v5726_v7  ;;  %v3953_v15 = vadd.f32 %v3191_v10, %v2739_v8  ;;  %v3193_v17 = vpop.f32.mrb[19].mxu0 }
 0x1fa   :  { %v3383_v18 = vsel %vm3319_vm2, %v3287_v60, %v3351_v5  ;;  %v3245_v19 = vmul.f32 %v3952_v6, %v5726_v7  ;;  %v3954_v20 = vadd.f32 %v3193_v17, %v2741_v16 }
 0x1fb   :  { %3505 = vst.msk [vmem:[%s5886_s4 + $0x30] sm:$0xff] %vm5742_vm5, %v3925_v11  ;;  %v3926_v21 = vpack.c.bf16 %v3383_v18, %v3382_v12  ;;  %v3288_v22 = vadd.f32 %v5728_v9, %v3244_v14  ;;  %v3246_v23 = vmul.f32 %v3953_v15, %v5726_v7 }
 0x1fc   :  { %v3289_v24 = vadd.f32 %v5730_v13, %v3245_v19  ;;  %v3247_v25 = vmul.f32 %v3954_v20, %v5726_v7 }
 0x1fd   :  { %3506 = vst.msk [vmem:[%s5886_s4 + $0x38] sm:$0xff] %vm5742_vm5, %v3926_v21  ;;  %vm3320_vm3 = vcmp.gt.f32.partialorder %v3288_v22, 0.0  ;;  %v3352_v26 = vmul.f32 0.2, %v3288_v22  ;;  %v3290_v27 = vadd.f32 %v5728_v9, %v3246_v23  ;;  %v2745_v30 = vpop.f32.mrb[20].mxu1 }
 0x1fe   :  { %vm3321_vm4 = vcmp.gt.f32.partialorder %v3289_v24, 0.0  ;;  %v3353_v28 = vmul.f32 0.2, %v3289_v24  ;;  %v3291_v29 = vadd.f32 %v5730_v13, %v3247_v25  ;;  %v3197_v31 = vpop.f32.mrb[20].mxu0  ;;  %v2747_v35 = vpop.f32.mrb[21].mxu1 }
 0x1ff   :  { %v3384_v32 = vsel %vm3320_vm3, %v3288_v22, %v3352_v26  ;;  %vm3322_vm6 = vcmp.gt.f32.partialorder %v3290_v27, 0.0  ;;  %v3354_v33 = vmul.f32 0.2, %v3290_v27  ;;  %v3955_v34 = vadd.f32 %v3197_v31, %v2745_v30  ;;  %v3199_v36 = vpop.f32.mrb[21].mxu0  ;;  %v2749_v41 = vpop.f32.mrb[22].mxu1 }
 0x200   :  { %v3385_v37 = vsel %vm3321_vm4, %v3289_v24, %v3353_v28  ;;  %vm3323_vm7 = vcmp.gt.f32.partialorder %v3291_v29, 0.0  ;;  %v3355_v39 = vmul.f32 0.2, %v3291_v29  ;;  %v3956_v40 = vadd.f32 %v3199_v36, %v2747_v35  ;;  %v3201_v42 = vpop.f32.mrb[22].mxu0  ;;  %v2751_v47 = vpop.f32.mrb[23].mxu1 }
 0x201   :  { %v3927_v43 = vpack.c.bf16 %v3385_v37, %v3384_v32  ;;  %v3386_v44 = vsel %vm3322_vm6, %v3290_v27, %v3354_v33  ;;  %v3248_v45 = vmul.f32 %v3955_v34, %v5726_v7  ;;  %v3957_v46 = vadd.f32 %v3201_v42, %v2749_v41  ;;  %v3203_v48 = vpop.f32.mrb[23].mxu0 }
 0x202   :  { %v3387_v49 = vsel %vm3323_vm7, %v3291_v29, %v3355_v39  ;;  %v3249_v50 = vmul.f32 %v3956_v40, %v5726_v7  ;;  %v3958_v51 = vadd.f32 %v3203_v48, %v2751_v47 }
 0x203   :  { %3507 = vst.msk [vmem:[%s5886_s4 + $0x40] sm:$0xff] %vm5742_vm5, %v3927_v43  ;;  %v3928_v52 = vpack.c.bf16 %v3387_v49, %v3386_v44  ;;  %v3292_v53 = vadd.f32 %v5728_v9, %v3248_v45  ;;  %v3250_v54 = vmul.f32 %v3957_v46, %v5726_v7 }
 0x204   :  { %v3293_v55 = vadd.f32 %v5730_v13, %v3249_v50  ;;  %v3251_v56 = vmul.f32 %v3958_v51, %v5726_v7 }
 0x205   :  { %3508 = vst.msk [vmem:[%s5886_s4 + $0x48] sm:$0xff] %vm5742_vm5, %v3928_v52  ;;  %vm3324_vm8 = vcmp.gt.f32.partialorder %v3292_v53, 0.0  ;;  %v3356_v57 = vmul.f32 0.2, %v3292_v53  ;;  %v3294_v58 = vadd.f32 %v5728_v9, %v3250_v54  ;;  %v2755_v61 = vpop.f32.mrb[24].mxu1 }
 0x206   :  { %vm3325_vm9 = vcmp.gt.f32.partialorder %v3293_v55, 0.0  ;;  %v3357_v59 = vmul.f32 0.2, %v3293_v55  ;;  %v3295_v60 = vadd.f32 %v5730_v13, %v3251_v56  ;;  %v3207_v62 = vpop.f32.mrb[24].mxu0  ;;  %v2757_v2 = vpop.f32.mrb[25].mxu1 }
 0x207   :  { %v3388_v63 = vsel %vm3324_vm8, %v3292_v53, %v3356_v57  ;;  %vm3326_vm10 = vcmp.gt.f32.partialorder %v3294_v58, 0.0  ;;  %v3358_v0 = vmul.f32 0.2, %v3294_v58  ;;  %v3959_v1 = vadd.f32 %v3207_v62, %v2755_v61  ;;  %v3209_v3 = vpop.f32.mrb[25].mxu0  ;;  %v2759_v8 = vpop.f32.mrb[26].mxu1 }
 0x208   :  { %v3389_v4 = vsel %vm3325_vm9, %v3293_v55, %v3357_v59  ;;  %vm3327_vm11 = vcmp.gt.f32.partialorder %v3295_v60, 0.0  ;;  %v3359_v5 = vmul.f32 0.2, %v3295_v60  ;;  %v3960_v6 = vadd.f32 %v3209_v3, %v2757_v2  ;;  %v3211_v10 = vpop.f32.mrb[26].mxu0  ;;  %v2761_v16 = vpop.f32.mrb[27].mxu1 }
 0x209   :  { %v3929_v11 = vpack.c.bf16 %v3389_v4, %v3388_v63  ;;  %v3390_v12 = vsel %vm3326_vm10, %v3294_v58, %v3358_v0  ;;  %v3252_v14 = vmul.f32 %v3959_v1, %v5726_v7  ;;  %v3961_v15 = vadd.f32 %v3211_v10, %v2759_v8  ;;  %v3213_v17 = vpop.f32.mrb[27].mxu0 }
 0x20a   :  { %v3391_v18 = vsel %vm3327_vm11, %v3295_v60, %v3359_v5  ;;  %v3253_v19 = vmul.f32 %v3960_v6, %v5726_v7  ;;  %v3962_v20 = vadd.f32 %v3213_v17, %v2761_v16 }
 0x20b   :  { %3509 = vst.msk [vmem:[%s5886_s4 + $0x50] sm:$0xff] %vm5742_vm5, %v3929_v11  ;;  %v3930_v21 = vpack.c.bf16 %v3391_v18, %v3390_v12  ;;  %v3296_v22 = vadd.f32 %v5728_v9, %v3252_v14  ;;  %v3254_v23 = vmul.f32 %v3961_v15, %v5726_v7 }
 0x20c   :  { %v3297_v24 = vadd.f32 %v5730_v13, %v3253_v19  ;;  %v3255_v25 = vmul.f32 %v3962_v20, %v5726_v7 }
 0x20d   :  { %3510 = vst.msk [vmem:[%s5886_s4 + $0x58] sm:$0xff] %vm5742_vm5, %v3930_v21  ;;  %vm3328_vm12 = vcmp.gt.f32.partialorder %v3296_v22, 0.0  ;;  %v3360_v26 = vmul.f32 0.2, %v3296_v22  ;;  %v3298_v27 = vadd.f32 %v5728_v9, %v3254_v23  ;;  %v2765_v30 = vpop.f32.mrb[28].mxu1 }
 0x20e   :  { %vm3329_vm13 = vcmp.gt.f32.partialorder %v3297_v24, 0.0  ;;  %v3361_v28 = vmul.f32 0.2, %v3297_v24  ;;  %v3299_v29 = vadd.f32 %v5730_v13, %v3255_v25  ;;  %v3217_v31 = vpop.f32.mrb[28].mxu0  ;;  %v2767_v35 = vpop.f32.mrb[29].mxu1 }
 0x20f   :  { %v3392_v32 = vsel %vm3328_vm12, %v3296_v22, %v3360_v26  ;;  %vm3330_vm14 = vcmp.gt.f32.partialorder %v3298_v27, 0.0  ;;  %v3362_v33 = vmul.f32 0.2, %v3298_v27  ;;  %v3963_v34 = vadd.f32 %v3217_v31, %v2765_v30  ;;  %v3219_v36 = vpop.f32.mrb[29].mxu0  ;;  %v2769_v41 = vpop.f32.mrb[30].mxu1 }
 0x210   :  { %v3393_v37 = vsel %vm3329_vm13, %v3297_v24, %v3361_v28  ;;  %vm3331_vm15 = vcmp.gt.f32.partialorder %v3299_v29, 0.0  ;;  %v3363_v39 = vmul.f32 0.2, %v3299_v29  ;;  %v3964_v40 = vadd.f32 %v3219_v36, %v2767_v35  ;;  %v3221_v42 = vpop.f32.mrb[30].mxu0  ;;  %v2771_v47 = vpop.f32.mrb[31].mxu1 }
 0x211   :  { %v3931_v43 = vpack.c.bf16 %v3393_v37, %v3392_v32  ;;  %v3394_v44 = vsel %vm3330_vm14, %v3298_v27, %v3362_v33  ;;  %v3256_v45 = vmul.f32 %v3963_v34, %v5726_v7  ;;  %v3965_v46 = vadd.f32 %v3221_v42, %v2769_v41  ;;  %v3223_v48 = vpop.f32.mrb[31].mxu0 }
 0x212   :  { %v3395_v49 = vsel %vm3331_vm15, %v3299_v29, %v3363_v39  ;;  %v3257_v50 = vmul.f32 %v3964_v40, %v5726_v7  ;;  %v3966_v51 = vadd.f32 %v3223_v48, %v2771_v47 }
 0x213   :  { %3511 = vst.msk [vmem:[%s5886_s4 + $0x60] sm:$0xff] %vm5742_vm5, %v3931_v43  ;;  %v3932_v52 = vpack.c.bf16 %v3395_v49, %v3394_v44  ;;  %v3300_v53 = vadd.f32 %v5728_v9, %v3256_v45  ;;  %v3258_v54 = vmul.f32 %v3965_v46, %v5726_v7 }
 0x214   :  { %v3301_v55 = vadd.f32 %v5730_v13, %v3257_v50  ;;  %v3259_v56 = vmul.f32 %v3966_v51, %v5726_v7 }
 0x215   :  { %3512 = vst.msk [vmem:[%s5886_s4 + $0x68] sm:$0xff] %vm5742_vm5, %v3932_v52  ;;  %vm3332_vm0 = vcmp.gt.f32.partialorder %v3300_v53, 0.0  ;;  %v3364_v57 = vmul.f32 0.2, %v3300_v53  ;;  %v3302_v58 = vadd.f32 %v5728_v9, %v3258_v54 }
 0x216   :  { %vm3333_vm1 = vcmp.gt.f32.partialorder %v3301_v55, 0.0  ;;  %v3365_v59 = vmul.f32 0.2, %v3301_v55  ;;  %v3303_v60 = vadd.f32 %v5730_v13, %v3259_v56 }
 0x217   :  { %v3396_v61 = vsel %vm3332_vm0, %v3300_v53, %v3364_v57  ;;  %vm3334_vm2 = vcmp.gt.f32.partialorder %v3302_v58, 0.0  ;;  %v3366_v62 = vmul.f32 0.2, %v3302_v58 }
 0x218   :  { %v3397_v63 = vsel %vm3333_vm1, %v3301_v55, %v3365_v59  ;;  %vm3335_vm3 = vcmp.gt.f32.partialorder %v3303_v60, 0.0  ;;  %v3367_v7 = vmul.f32 0.2, %v3303_v60 }
 0x219   :  { %v3933_v0 = vpack.c.bf16 %v3397_v63, %v3396_v61  ;;  %v3398_v1 = vsel %vm3334_vm2, %v3302_v58, %v3366_v62 }
 0x21a   :  { %v3399_v2 = vsel %vm3335_vm3, %v3303_v60, %v3367_v7 }
 0x21b   :  { %3513 = vst.msk [vmem:[%s5886_s4 + $0x70] sm:$0xff] %vm5742_vm5, %v3933_v0  ;;  %v3934_v9 = vpack.c.bf16 %v3399_v2, %v3398_v1 }
 0x21d   :  { %3514 = vst.msk [vmem:[%s5886_s4 + $0x78] sm:$0xff] %vm5742_vm5, %v3934_v9 }

// kernel: discriminator_forward.9
= control target key start
LH: loop header
LB: loop body
LE: loop exit
PB: predicated region body
PF: predicated region fallthrough
CT: control target
= control target key end

     0   :  { %vm3324_vm0 = vcmask 1043456   ;;  %vm3325_vm2 = vcmask 523268   ;;  %s5872_s2 = inlined_call_operand.vmem [shape: bf16[3072,192], index: 2, kind: input, shape index: {}]   ;;  %s5873_s1 = inlined_call_operand.vmem [shape: bf16[32,3072], index: 1, kind: input, shape index: {}]   ;;  %s5874_s3 = inlined_call_operand.vmem [shape: f32[1,192], index: 3, kind: input, shape index: {}]   ;;  %s5875_s0 = inlined_call_operand.<no memory space> [shape: f32[1], index: 0, kind: input, shape index: {}]   ;;  %s5876_s4 = inlined_call_operand.vmem [shape: bf16[32,192], index: 4, kind: output, shape index: {}]  }
   0x1   :  { %v3863_v0 = vld [vmem:[%s5872_s2 + $0x4] ss:$8 sps:$4 sm:$0xff]   ;;  %v3867_v2 = vld [vmem:[%s5872_s2] ss:$8 sps:$4 sm:$0xff]   ;;  %v3869_v4 = vld [vmem:[%s5872_s2 + $0x14] ss:$8 sps:$4 sm:$0xff]  }
   0x2   :  { %v3865_v1 = vld [vmem:[%s5872_s2 + $0x604] ss:$8 sps:$4 sm:$0xff]   ;;  %2610 = vmatprep.subr.bf16.mxu1 %v3863_v0  ;;  %v3868_v3 = vld [vmem:[%s5872_s2 + $0x600] ss:$8 sps:$4 sm:$0xff]   ;;  %v3871_v5 = vld [vmem:[%s5872_s2 + $0x614] ss:$8 sps:$4 sm:$0xff]  }
   0x3   :  { %2928 = vmatprep.subr.bf16.mxu0 %v3865_v1  ;;  %2611 = vmatpush1.bf16.msra.mxu1 %v3867_v2  ;;  %v3873_v6 = vld [vmem:[%s5872_s2 + $0x10] ss:$8 sps:$4 sm:$0xff]   ;;  %v3875_v8 = vld [vmem:[%s5872_s2 + $0x24] ss:$8 sps:$4 sm:$0xff]   ;;  %v3879_v10 = vld [vmem:[%s5872_s2 + $0x20] ss:$8 sps:$4 sm:$0xff]  }
   0x4   :  { %2929 = vmatpush1.bf16.msra.mxu0 %v3868_v3  ;;  %2612 = vmatprep.subr.bf16.mxu1 %v3869_v4  ;;  %v3874_v7 = vld [vmem:[%s5872_s2 + $0x610] ss:$8 sps:$4 sm:$0xff]   ;;  %v3877_v9 = vld [vmem:[%s5872_s2 + $0x624] ss:$8 sps:$4 sm:$0xff]   ;;  %v3880_v11 = vld [vmem:[%s5872_s2 + $0x620] ss:$8 sps:$4 sm:$0xff]  }
   0x5   :  { %2930 = vmatprep.subr.bf16.mxu0 %v3871_v5  ;;  %v3881_v12 = vld [vmem:[%s5872_s2 + $0x34] ss:$8 sps:$4 sm:$0xff]   ;;  %v3885_v14 = vld [vmem:[%s5872_s2 + $0x30] ss:$8 sps:$4 sm:$0xff]   ;;  %v3887_v16 = vld [vmem:[%s5872_s2 + $0x44] ss:$8 sps:$4 sm:$0xff]  }
   0x6   :  { %v3883_v13 = vld [vmem:[%s5872_s2 + $0x634] ss:$8 sps:$4 sm:$0xff]   ;;  %v3886_v15 = vld [vmem:[%s5872_s2 + $0x630] ss:$8 sps:$4 sm:$0xff]   ;;  %v3889_v17 = vld [vmem:[%s5872_s2 + $0x644] ss:$8 sps:$4 sm:$0xff]  }
   0x7   :  { %2613 = vmatpush1.bf16.msra.mxu1 %v3873_v6  ;;  %v3891_v18 = vld [vmem:[%s5872_s2 + $0x40] ss:$8 sps:$4 sm:$0xff]   ;;  %v3893_v20 = vld [vmem:[%s5872_s2 + $0x54] ss:$8 sps:$4 sm:$0xff]   ;;  %v3897_v22 = vld [vmem:[%s5872_s2 + $0x50] ss:$8 sps:$4 sm:$0xff]  }
   0x8   :  { %2931 = vmatpush1.bf16.msra.mxu0 %v3874_v7  ;;  %2614 = vmatprep.subr.bf16.mxu1 %v3875_v8  ;;  %v3892_v19 = vld [vmem:[%s5872_s2 + $0x640] ss:$8 sps:$4 sm:$0xff]   ;;  %v3895_v21 = vld [vmem:[%s5872_s2 + $0x654] ss:$8 sps:$4 sm:$0xff]   ;;  %v3898_v23 = vld [vmem:[%s5872_s2 + $0x650] ss:$8 sps:$4 sm:$0xff]  }
   0x9   :  { %2932 = vmatprep.subr.bf16.mxu0 %v3877_v9  ;;  %v3899_v24 = vld [vmem:[%s5872_s2 + $0x64] ss:$8 sps:$4 sm:$0xff]   ;;  %v3903_v26 = vld [vmem:[%s5872_s2 + $0x60] ss:$8 sps:$4 sm:$0xff]   ;;  %v3905_v28 = vld [vmem:[%s5872_s2 + $0x74] ss:$8 sps:$4 sm:$0xff]  }
   0xa   :  { %v3901_v25 = vld [vmem:[%s5872_s2 + $0x664] ss:$8 sps:$4 sm:$0xff]   ;;  %v3904_v27 = vld [vmem:[%s5872_s2 + $0x660] ss:$8 sps:$4 sm:$0xff]   ;;  %v3907_v29 = vld [vmem:[%s5872_s2 + $0x674] ss:$8 sps:$4 sm:$0xff]  }
   0xb   :  { %2615 = vmatpush1.bf16.msra.mxu1 %v3879_v10  ;;  %v3909_v30 = vld [vmem:[%s5872_s2 + $0x70] ss:$8 sps:$4 sm:$0xff]   ;;  %v3911_v32 = vld [vmem:[%s5872_s2 + $0x84] ss:$8 sps:$4 sm:$0xff]   ;;  %v3915_v34 = vld [vmem:[%s5872_s2 + $0x80] ss:$8 sps:$4 sm:$0xff]  }
   0xc   :  { %2933 = vmatpush1.bf16.msra.mxu0 %v3880_v11  ;;  %2616 = vmatprep.subr.bf16.mxu1 %v3881_v12  ;;  %v3910_v31 = vld [vmem:[%s5872_s2 + $0x670] ss:$8 sps:$4 sm:$0xff]   ;;  %v3913_v33 = vld [vmem:[%s5872_s2 + $0x684] ss:$8 sps:$4 sm:$0xff]   ;;  %v3916_v35 = vld [vmem:[%s5872_s2 + $0x680] ss:$8 sps:$4 sm:$0xff]  }
   0xd   :  { %2934 = vmatprep.subr.bf16.mxu0 %v3883_v13  ;;  %v3917_v36 = vld [vmem:[%s5872_s2 + $0x94] ss:$8 sps:$4 sm:$0xff]   ;;  %v3921_v38 = vld [vmem:[%s5872_s2 + $0x90] ss:$8 sps:$4 sm:$0xff]   ;;  %v3923_v40 = vld [vmem:[%s5872_s2 + $0xa4] ss:$8 sps:$4 sm:$0xff]  }
   0xe   :  { %v3919_v37 = vld [vmem:[%s5872_s2 + $0x694] ss:$8 sps:$4 sm:$0xff]   ;;  %v3922_v39 = vld [vmem:[%s5872_s2 + $0x690] ss:$8 sps:$4 sm:$0xff]   ;;  %v3925_v41 = vld [vmem:[%s5872_s2 + $0x6a4] ss:$8 sps:$4 sm:$0xff]  }
   0xf   :  { %2617 = vmatpush1.bf16.msra.mxu1 %v3885_v14  ;;  %v3927_v42 = vld [vmem:[%s5872_s2 + $0xa0] ss:$8 sps:$4 sm:$0xff]   ;;  %v3929_v44 = vld [vmem:[%s5872_s2 + $0xb4] ss:$8 sps:$4 sm:$0xff]   ;;  %v3933_v46 = vld [vmem:[%s5872_s2 + $0xb0] ss:$8 sps:$4 sm:$0xff]  }
  0x10   :  { %2935 = vmatpush1.bf16.msra.mxu0 %v3886_v15  ;;  %2618 = vmatprep.subr.bf16.mxu1 %v3887_v16  ;;  %v3928_v43 = vld [vmem:[%s5872_s2 + $0x6a0] ss:$8 sps:$4 sm:$0xff]   ;;  %v3931_v45 = vld [vmem:[%s5872_s2 + $0x6b4] ss:$8 sps:$4 sm:$0xff]   ;;  %v3934_v47 = vld [vmem:[%s5872_s2 + $0x6b0] ss:$8 sps:$4 sm:$0xff]  }
  0x11   :  { %2936 = vmatprep.subr.bf16.mxu0 %v3889_v17  ;;  %v18_v48 = vld [vmem:[%s5873_s1] sm:$0xff]  ;;  %v24_v53 = vld [vmem:[%s5873_s1 + $0x30] sm:$0xff]  ;;  %vm5848_vm5 = vmor %vm3325_vm2, %vm3324_vm0 }
  0x12   :  { %v30_v49 = vld [vmem:[%s5873_s1 + $0x60] sm:$0xff]  ;;  %v36_v54 = vld [vmem:[%s5873_s1 + $0x90] sm:$0xff] }
  0x13   :  { %2619 = vmatpush1.bf16.msra.mxu1 %v3891_v18  ;;  %v3935_v50 = vld [vmem:[%s5872_s2 + $0xc4] ss:$8 sps:$4 sm:$0xff]   ;;  %v3336_v52 = vcombine.high %v18_v48, %v30_v49  ;;  %v3348_v55 = vcombine.high %v24_v53, %v36_v54  ;;  %v3939_v56 = vld [vmem:[%s5872_s2 + $0xc0] ss:$8 sps:$4 sm:$0xff]   ;;  %v3941_v58 = vld [vmem:[%s5872_s2 + $0xd4] ss:$8 sps:$4 sm:$0xff]   ;;  %v3335_v8 = vcombine.low %v18_v48, %v30_v49  ;;  %v3347_v10 = vcombine.low %v24_v53, %v36_v54 }
  0x14   :  { %2937 = vmatpush1.bf16.msra.mxu0 %v3892_v19  ;;  %2620 = vmatprep.subr.bf16.mxu1 %v3893_v20  ;;  %v3937_v51 = vld [vmem:[%s5872_s2 + $0x6c4] ss:$8 sps:$4 sm:$0xff]   ;;  %v3940_v57 = vld [vmem:[%s5872_s2 + $0x6c0] ss:$8 sps:$4 sm:$0xff]   ;;  %v3943_v59 = vld [vmem:[%s5872_s2 + $0x6d4] ss:$8 sps:$4 sm:$0xff]  }
  0x15   :  { %2938 = vmatprep.subr.bf16.mxu0 %v3895_v21  ;;  %2642 = vmatprep.mubr.bf16.mxu1 %v3336_v52  ;;  %v3945_v60 = vld [vmem:[%s5872_s2 + $0xd0] ss:$8 sps:$4 sm:$0xff]   ;;  %v3947_v62 = vld [vmem:[%s5872_s2 + $0xe4] ss:$8 sps:$4 sm:$0xff]   ;;  %v3951_v0 = vld [vmem:[%s5872_s2 + $0xe0] ss:$8 sps:$4 sm:$0xff]  }
  0x16   :  { %2960 = vmatprep.mubr.bf16.mxu0 %v3348_v55  ;;  %v3946_v61 = vld [vmem:[%s5872_s2 + $0x6d0] ss:$8 sps:$4 sm:$0xff]   ;;  %v3949_v63 = vld [vmem:[%s5872_s2 + $0x6e4] ss:$8 sps:$4 sm:$0xff]   ;;  %v3952_v1 = vld [vmem:[%s5872_s2 + $0x6e0] ss:$8 sps:$4 sm:$0xff]  }
  0x17   :  { %2621 = vmatpush1.bf16.msra.mxu1 %v3897_v22  ;;  %v3953_v2 = vld [vmem:[%s5872_s2 + $0xf4] ss:$8 sps:$4 sm:$0xff]   ;;  %v3957_v4 = vld [vmem:[%s5872_s2 + $0xf0] ss:$8 sps:$4 sm:$0xff]   ;;  %v3961_v6 = vld [vmem:[%s5872_s2 + $0x104] ss:$8 sps:$4 sm:$0xff]  }
  0x18   :  { %2939 = vmatpush1.bf16.msra.mxu0 %v3898_v23  ;;  %2622 = vmatprep.subr.bf16.mxu1 %v3899_v24  ;;  %v3955_v3 = vld [vmem:[%s5872_s2 + $0x6f4] ss:$8 sps:$4 sm:$0xff]   ;;  %v3958_v5 = vld [vmem:[%s5872_s2 + $0x6f0] ss:$8 sps:$4 sm:$0xff]   ;;  %v3964_v7 = vld [vmem:[%s5872_s2 + $0x704] ss:$8 sps:$4 sm:$0xff]  }
  0x19   :  { %2940 = vmatprep.subr.bf16.mxu0 %v3901_v25  ;;  %v3959_v9 = vld [vmem:[%s5872_s2 + $0x100] ss:$8 sps:$4 sm:$0xff]   ;;  %v3967_v12 = vld [vmem:[%s5872_s2 + $0x114] ss:$8 sps:$4 sm:$0xff]   ;;  %v3965_v14 = vld [vmem:[%s5872_s2 + $0x110] ss:$8 sps:$4 sm:$0xff]  }
  0x1a   :  { %v3962_v11 = vld [vmem:[%s5872_s2 + $0x700] ss:$8 sps:$4 sm:$0xff]   ;;  %v3970_v13 = vld [vmem:[%s5872_s2 + $0x714] ss:$8 sps:$4 sm:$0xff]   ;;  %v3968_v15 = vld [vmem:[%s5872_s2 + $0x710] ss:$8 sps:$4 sm:$0xff]  }
  0x1b   :  { %2623 = vmatpush1.bf16.msra.mxu1 %v3903_v26  ;;  %v3973_v16 = vld [vmem:[%s5872_s2 + $0x124] ss:$8 sps:$4 sm:$0xff]   ;;  %v3971_v18 = vld [vmem:[%s5872_s2 + $0x120] ss:$8 sps:$4 sm:$0xff]   ;;  %v3979_v20 = vld [vmem:[%s5872_s2 + $0x134] ss:$8 sps:$4 sm:$0xff]  }
  0x1c   :  { %2941 = vmatpush1.bf16.msra.mxu0 %v3904_v27  ;;  %2624 = vmatprep.subr.bf16.mxu1 %v3905_v28  ;;  %v3976_v17 = vld [vmem:[%s5872_s2 + $0x724] ss:$8 sps:$4 sm:$0xff]   ;;  %v3974_v19 = vld [vmem:[%s5872_s2 + $0x720] ss:$8 sps:$4 sm:$0xff]   ;;  %v3982_v21 = vld [vmem:[%s5872_s2 + $0x734] ss:$8 sps:$4 sm:$0xff]  }
  0x1d   :  { %2942 = vmatprep.subr.bf16.mxu0 %v3907_v29  ;;  %v3977_v22 = vld [vmem:[%s5872_s2 + $0x130] ss:$8 sps:$4 sm:$0xff]   ;;  %v3985_v24 = vld [vmem:[%s5872_s2 + $0x144] ss:$8 sps:$4 sm:$0xff]   ;;  %v3983_v26 = vld [vmem:[%s5872_s2 + $0x140] ss:$8 sps:$4 sm:$0xff]  }
  0x1e   :  { %v3980_v23 = vld [vmem:[%s5872_s2 + $0x730] ss:$8 sps:$4 sm:$0xff]   ;;  %v3988_v25 = vld [vmem:[%s5872_s2 + $0x744] ss:$8 sps:$4 sm:$0xff]   ;;  %v3986_v27 = vld [vmem:[%s5872_s2 + $0x740] ss:$8 sps:$4 sm:$0xff]  }
  0x1f   :  { %2625 = vmatpush1.bf16.msra.mxu1 %v3909_v30  ;;  %v3991_v28 = vld [vmem:[%s5872_s2 + $0x154] ss:$8 sps:$4 sm:$0xff]   ;;  %v42_v30 = vld [vmem:[%s5873_s1 + $0xc0] sm:$0xff]  ;;  %v4004_v52 = vld [vmem:[%s5872_s2 + $0x770] ss:$8 sps:$4 sm:$0xff]  }
  0x20   :  { %2943 = vmatpush1.bf16.msra.mxu0 %v3910_v31  ;;  %2626 = vmatprep.subr.bf16.mxu1 %v3911_v32  ;;  %v3994_v29 = vld [vmem:[%s5872_s2 + $0x754] ss:$8 sps:$4 sm:$0xff]   ;;  %v54_v31 = vld [vmem:[%s5873_s1 + $0x120] sm:$0xff]  ;;  %v3989_v32 = vld [vmem:[%s5872_s2 + $0x150] ss:$8 sps:$4 sm:$0xff]  }
  0x21   :  { %2944 = vmatprep.subr.bf16.mxu0 %v3913_v33  ;;  %v3360_v33 = vcombine.high %v42_v30, %v54_v31  ;;  %v4785_v49 = vld [vmem:[%s5873_s1 + $0x38] sm:$0xff]  ;;  %v4009_v54 = vld [vmem:[%s5872_s2 + $0x184] ss:$8 sps:$4 sm:$0xff]  }
  0x22   :  { %v4012_v55 = vld [vmem:[%s5872_s2 + $0x784] ss:$8 sps:$4 sm:$0xff]  }
  0x23   :  { %2627 = vmatpush1.bf16.msra.mxu1 %v3915_v34  ;;  %v3992_v34 = vld [vmem:[%s5872_s2 + $0x750] ss:$8 sps:$4 sm:$0xff]  }
  0x24   :  { %2945 = vmatpush1.bf16.msra.mxu0 %v3916_v35  ;;  %2628 = vmatprep.subr.bf16.mxu1 %v3917_v36  ;;  %v48_v35 = vld [vmem:[%s5873_s1 + $0xf0] sm:$0xff] }
  0x25   :  { %2946 = vmatprep.subr.bf16.mxu0 %v3919_v37  ;;  %v60_v36 = vld [vmem:[%s5873_s1 + $0x150] sm:$0xff]  ;;  %v3359_v37 = vcombine.low %v42_v30, %v54_v31 }
  0x26   :  { %v4063_v30 = vld [vmem:[%s5872_s2 + $0x214] ss:$8 sps:$4 sm:$0xff]  }
  0x27   :  { %2629 = vmatpush1.bf16.msra.mxu1 %v3921_v38  ;;  %v3997_v38 = vld [vmem:[%s5872_s2 + $0x164] ss:$8 sps:$4 sm:$0xff]   ;;  %v4066_v31 = vld [vmem:[%s5872_s2 + $0x814] ss:$8 sps:$4 sm:$0xff]  }
  0x28   :  { %2947 = vmatpush1.bf16.msra.mxu0 %v3922_v39  ;;  %2630 = vmatprep.subr.bf16.mxu1 %v3923_v40  ;;  %v3372_v39 = vcombine.high %v48_v35, %v60_v36  ;;  %v3371_v40 = vcombine.low %v48_v35, %v60_v36  ;;  %v4061_v36 = vld [vmem:[%s5872_s2 + $0x210] ss:$8 sps:$4 sm:$0xff]  }
  0x29   :  { %2948 = vmatprep.subr.bf16.mxu0 %v3925_v41  ;;  %v4000_v41 = vld [vmem:[%s5872_s2 + $0x764] ss:$8 sps:$4 sm:$0xff]  }
  0x2b   :  { %2631 = vmatpush1.bf16.msra.mxu1 %v3927_v42  ;;  %v3995_v42 = vld [vmem:[%s5872_s2 + $0x160] ss:$8 sps:$4 sm:$0xff]  }
  0x2c   :  { %2949 = vmatpush1.bf16.msra.mxu0 %v3928_v43  ;;  %2632 = vmatprep.subr.bf16.mxu1 %v3929_v44  ;;  %v3998_v43 = vld [vmem:[%s5872_s2 + $0x760] ss:$8 sps:$4 sm:$0xff]  }
  0x2d   :  { %2950 = vmatprep.subr.bf16.mxu0 %v3931_v45  ;;  %v4767_v44 = vld [vmem:[%s5873_s1 + $0x8] sm:$0xff] }
  0x2e   :  { %v4772_v45 = vld [vmem:[%s5873_s1 + $0x68] sm:$0xff] }
  0x2f   :  { %2633 = vmatpush1.bf16.msra.mxu1 %v3933_v46  ;;  %v4003_v46 = vld [vmem:[%s5872_s2 + $0x174] ss:$8 sps:$4 sm:$0xff]   ;;  %v3338_v48 = vcombine.high %v4767_v44, %v4772_v45 }
  0x30   :  { %2951 = vmatpush1.bf16.msra.mxu0 %v3934_v47  ;;  %2634 = vmatprep.subr.bf16.mxu1 %v3935_v50  ;;  %v4006_v47 = vld [vmem:[%s5872_s2 + $0x774] ss:$8 sps:$4 sm:$0xff]  }
  0x31   :  { %2952 = vmatprep.subr.bf16.mxu0 %v3937_v51  ;;  %v4790_v50 = vld [vmem:[%s5873_s1 + $0x98] sm:$0xff] }
  0x32   :  { %v4001_v51 = vld [vmem:[%s5872_s2 + $0x170] ss:$8 sps:$4 sm:$0xff]   ;;  %v3350_v53 = vcombine.high %v4785_v49, %v4790_v50 }
  0x33   :  { %2635 = vmatpush1.bf16.msra.mxu1 %v3939_v56  ;;  %v4007_v56 = vld [vmem:[%s5872_s2 + $0x180] ss:$8 sps:$4 sm:$0xff]  }
  0x34   :  { %2953 = vmatpush1.bf16.msra.mxu0 %v3940_v57  ;;  %2636 = vmatprep.subr.bf16.mxu1 %v3941_v58  ;;  %v4010_v57 = vld [vmem:[%s5872_s2 + $0x780] ss:$8 sps:$4 sm:$0xff]   ;;  %v4015_v58 = vld [vmem:[%s5872_s2 + $0x194] ss:$8 sps:$4 sm:$0xff]  }
  0x35   :  { %2954 = vmatprep.subr.bf16.mxu0 %v3943_v59  ;;  %v4018_v59 = vld [vmem:[%s5872_s2 + $0x794] ss:$8 sps:$4 sm:$0xff]  }
  0x37   :  { %2637 = vmatpush1.bf16.msra.mxu1 %v3945_v60  ;;  %v4013_v60 = vld [vmem:[%s5872_s2 + $0x190] ss:$8 sps:$4 sm:$0xff]  }
  0x38   :  { %2955 = vmatpush1.bf16.msra.mxu0 %v3946_v61  ;;  %2638 = vmatprep.subr.bf16.mxu1 %v3947_v62  ;;  %v4016_v61 = vld [vmem:[%s5872_s2 + $0x790] ss:$8 sps:$4 sm:$0xff]   ;;  %v4021_v62 = vld [vmem:[%s5872_s2 + $0x1a4] ss:$8 sps:$4 sm:$0xff]  }
  0x39   :  { %2956 = vmatprep.subr.bf16.mxu0 %v3949_v63  ;;  %v4024_v63 = vld [vmem:[%s5872_s2 + $0x7a4] ss:$8 sps:$4 sm:$0xff]  }
  0x3b   :  { %2639 = vmatpush1.bf16.msra.mxu1 %v3951_v0  ;;  %v4019_v0 = vld [vmem:[%s5872_s2 + $0x1a0] ss:$8 sps:$4 sm:$0xff]  }
  0x3c   :  { %2957 = vmatpush1.bf16.msra.mxu0 %v3952_v1  ;;  %2640 = vmatprep.subr.bf16.mxu1 %v3953_v2  ;;  %v4022_v1 = vld [vmem:[%s5872_s2 + $0x7a0] ss:$8 sps:$4 sm:$0xff]   ;;  %v4027_v2 = vld [vmem:[%s5872_s2 + $0x1b4] ss:$8 sps:$4 sm:$0xff]  }
  0x3d   :  { %2958 = vmatprep.subr.bf16.mxu0 %v3955_v3  ;;  %v4030_v3 = vld [vmem:[%s5872_s2 + $0x7b4] ss:$8 sps:$4 sm:$0xff]  }
  0x3f   :  { %2641 = vmatpush1.bf16.msra.mxu1 %v3957_v4  ;;  %v4025_v4 = vld [vmem:[%s5872_s2 + $0x1b0] ss:$8 sps:$4 sm:$0xff]  }
  0x40   :  { %2959 = vmatpush1.bf16.msra.mxu0 %v3958_v5  ;;  %2663 = vmatprep.subr.bf16.mxu1 %v3961_v6  ;;  %v4028_v5 = vld [vmem:[%s5872_s2 + $0x7b0] ss:$8 sps:$4 sm:$0xff]   ;;  %v4033_v6 = vld [vmem:[%s5872_s2 + $0x1c4] ss:$8 sps:$4 sm:$0xff]  }
  0x41   :  { %2981 = vmatprep.subr.bf16.mxu0 %v3964_v7  ;;  %v4036_v7 = vld [vmem:[%s5872_s2 + $0x7c4] ss:$8 sps:$4 sm:$0xff]  }
  0x42   :  { %2643 = vmatmul.mubr.bf16.vlgmr.msra.gmra.mrb[0].mxu1 %v3335_v8  ;;  %v4031_v8 = vld [vmem:[%s5872_s2 + $0x1c0] ss:$8 sps:$4 sm:$0xff]  }
  0x43   :  { %2961 = vmatmul.mubr.bf16.vlgmr.msra.gmra.mrb[0].mxu0 %v3347_v10  ;;  %2664 = vmatpush1.bf16.msra.mxu1 %v3959_v9  ;;  %v4034_v9 = vld [vmem:[%s5872_s2 + $0x7c0] ss:$8 sps:$4 sm:$0xff]   ;;  %v4039_v10 = vld [vmem:[%s5872_s2 + $0x1d4] ss:$8 sps:$4 sm:$0xff]  }
  0x44   :  { %2982 = vmatpush1.bf16.msra.mxu0 %v3962_v11  ;;  %2665 = vmatprep.subr.bf16.mxu1 %v3967_v12  ;;  %v4042_v11 = vld [vmem:[%s5872_s2 + $0x7d4] ss:$8 sps:$4 sm:$0xff]   ;;  %v4037_v12 = vld [vmem:[%s5872_s2 + $0x1d0] ss:$8 sps:$4 sm:$0xff]  }
  0x45   :  { %2983 = vmatprep.subr.bf16.mxu0 %v3970_v13  ;;  %2652 = vmatprep.mubr.bf16.mxu1 %v3360_v33  ;;  %v4040_v13 = vld [vmem:[%s5872_s2 + $0x7d0] ss:$8 sps:$4 sm:$0xff]  }
  0x46   :  { %2970 = vmatprep.mubr.bf16.mxu0 %v3372_v39  ;;  %v61_v33 = vld [vmem:[%s5873_s1 + $0x158] sm:$0xff]  ;;  %v4072_v39 = vld [vmem:[%s5872_s2 + $0x824] ss:$8 sps:$4 sm:$0xff]  }
  0x47   :  { %2666 = vmatpush1.bf16.msra.mxu1 %v3965_v14  ;;  %v4045_v14 = vld [vmem:[%s5872_s2 + $0x1e4] ss:$8 sps:$4 sm:$0xff]  }
  0x48   :  { %2984 = vmatpush1.bf16.msra.mxu0 %v3968_v15  ;;  %2667 = vmatprep.subr.bf16.mxu1 %v3973_v16  ;;  %v4048_v15 = vld [vmem:[%s5872_s2 + $0x7e4] ss:$8 sps:$4 sm:$0xff]   ;;  %v4043_v16 = vld [vmem:[%s5872_s2 + $0x1e0] ss:$8 sps:$4 sm:$0xff]  }
  0x49   :  { %2985 = vmatprep.subr.bf16.mxu0 %v3976_v17  ;;  %v4046_v17 = vld [vmem:[%s5872_s2 + $0x7e0] ss:$8 sps:$4 sm:$0xff]  }
  0x4a   :  { %2653 = vmatmul.mubr.bf16.gmra.mrb[4].mxu1 %v3359_v37  ;;  %v4064_v37 = vld [vmem:[%s5872_s2 + $0x810] ss:$8 sps:$4 sm:$0xff]  }
  0x4b   :  { %2668 = vmatpush1.bf16.msra.mxu1 %v3971_v18  ;;  %2971 = vmatmul.mubr.bf16.gmra.mrb[4].mxu0 %v3371_v40  ;;  %v4051_v18 = vld [vmem:[%s5872_s2 + $0x1f4] ss:$8 sps:$4 sm:$0xff]   ;;  %v4067_v40 = vld [vmem:[%s5872_s2 + $0x220] ss:$8 sps:$4 sm:$0xff]  }
  0x4c   :  { %2986 = vmatpush1.bf16.msra.mxu0 %v3974_v19  ;;  %2669 = vmatprep.subr.bf16.mxu1 %v3979_v20  ;;  %v4054_v19 = vld [vmem:[%s5872_s2 + $0x7f4] ss:$8 sps:$4 sm:$0xff]   ;;  %v4049_v20 = vld [vmem:[%s5872_s2 + $0x1f0] ss:$8 sps:$4 sm:$0xff]  }
  0x4d   :  { %2987 = vmatprep.subr.bf16.mxu0 %v3982_v21  ;;  %2695 = vmatprep.mubr.bf16.mxu1 %v3338_v48  ;;  %v4052_v21 = vld [vmem:[%s5872_s2 + $0x7f0] ss:$8 sps:$4 sm:$0xff]   ;;  %v4075_v48 = vld [vmem:[%s5872_s2 + $0x234] ss:$8 sps:$4 sm:$0xff]  }
  0x4e   :  { %3013 = vmatprep.mubr.bf16.mxu0 %v3350_v53  ;;  %v4076_v53 = vld [vmem:[%s5872_s2 + $0x830] ss:$8 sps:$4 sm:$0xff]  }
  0x4f   :  { %2670 = vmatpush1.bf16.msra.mxu1 %v3977_v22  ;;  %v4057_v22 = vld [vmem:[%s5872_s2 + $0x204] ss:$8 sps:$4 sm:$0xff]  }
  0x50   :  { %2988 = vmatpush1.bf16.msra.mxu0 %v3980_v23  ;;  %2671 = vmatprep.subr.bf16.mxu1 %v3985_v24  ;;  %v4060_v23 = vld [vmem:[%s5872_s2 + $0x804] ss:$8 sps:$4 sm:$0xff]   ;;  %v4055_v24 = vld [vmem:[%s5872_s2 + $0x200] ss:$8 sps:$4 sm:$0xff]  }
  0x51   :  { %2989 = vmatprep.subr.bf16.mxu0 %v3988_v25  ;;  %v4058_v25 = vld [vmem:[%s5872_s2 + $0x800] ss:$8 sps:$4 sm:$0xff]  }
  0x53   :  { %2672 = vmatpush1.bf16.msra.mxu1 %v3983_v26  ;;  %v43_v26 = vld [vmem:[%s5873_s1 + $0xc8] sm:$0xff] }
  0x54   :  { %2990 = vmatpush1.bf16.msra.mxu0 %v3986_v27  ;;  %2673 = vmatprep.subr.bf16.mxu1 %v3991_v28  ;;  %v3337_v27 = vcombine.low %v4767_v44, %v4772_v45  ;;  %v3349_v28 = vcombine.low %v4785_v49, %v4790_v50  ;;  %v4956_v45 = vld [vmem:[%s5873_s1 + $0x70] sm:$0xff] }
  0x55   :  { %2991 = vmatprep.subr.bf16.mxu0 %v3994_v29  ;;  %v55_v29 = vld [vmem:[%s5873_s1 + $0x128] sm:$0xff]  ;;  %v4078_v49 = vld [vmem:[%s5872_s2 + $0x834] ss:$8 sps:$4 sm:$0xff]  }
  0x57   :  { %2674 = vmatpush1.bf16.msra.mxu1 %v3989_v32  ;;  %v49_v32 = vld [vmem:[%s5873_s1 + $0xf8] sm:$0xff] }
  0x58   :  { %2992 = vmatpush1.bf16.msra.mxu0 %v3992_v34  ;;  %2675 = vmatprep.subr.bf16.mxu1 %v3997_v38  ;;  %v3362_v34 = vcombine.high %v43_v26, %v55_v29  ;;  %v3374_v35 = vcombine.high %v49_v32, %v61_v33  ;;  %v4069_v38 = vld [vmem:[%s5872_s2 + $0x224] ss:$8 sps:$4 sm:$0xff]   ;;  %v3373_v44 = vcombine.low %v49_v32, %v61_v33  ;;  %v4139_v32 = vld [vmem:[%s5872_s2 + $0x2e0] ss:$8 sps:$4 sm:$0xff]  }
  0x59   :  { %2993 = vmatprep.subr.bf16.mxu0 %v4000_v41  ;;  %v4070_v41 = vld [vmem:[%s5872_s2 + $0x820] ss:$8 sps:$4 sm:$0xff]  }
  0x5a   :  { %v4142_v33 = vld [vmem:[%s5872_s2 + $0x8e0] ss:$8 sps:$4 sm:$0xff]  }
  0x5b   :  { %2676 = vmatpush1.bf16.msra.mxu1 %v3995_v42  ;;  %v4951_v42 = vld [vmem:[%s5873_s1 + $0x10] sm:$0xff] }
  0x5c   :  { %2994 = vmatpush1.bf16.msra.mxu0 %v3998_v43  ;;  %2677 = vmatprep.subr.bf16.mxu1 %v4003_v46  ;;  %v3361_v43 = vcombine.low %v43_v26, %v55_v29  ;;  %v4961_v46 = vld [vmem:[%s5873_s1 + $0x40] sm:$0xff]  ;;  %v3340_v50 = vcombine.high %v4951_v42, %v4956_v45  ;;  %v4135_v26 = vld [vmem:[%s5872_s2 + $0x2d4] ss:$8 sps:$4 sm:$0xff]   ;;  %v4136_v29 = vld [vmem:[%s5872_s2 + $0x8d0] ss:$8 sps:$4 sm:$0xff]  }
  0x5d   :  { %2995 = vmatprep.subr.bf16.mxu0 %v4006_v47  ;;  %v4966_v47 = vld [vmem:[%s5873_s1 + $0xa0] sm:$0xff] }
  0x5f   :  { %2678 = vmatpush1.bf16.msra.mxu1 %v4001_v51  ;;  %v3352_v51 = vcombine.high %v4961_v46, %v4966_v47 }
  0x60   :  { %2996 = vmatpush1.bf16.msra.mxu0 %v4004_v52  ;;  %2679 = vmatprep.subr.bf16.mxu1 %v4009_v54  ;;  %v4073_v52 = vld [vmem:[%s5872_s2 + $0x230] ss:$8 sps:$4 sm:$0xff]   ;;  %v4081_v54 = vld [vmem:[%s5872_s2 + $0x244] ss:$8 sps:$4 sm:$0xff]  }
  0x61   :  { %2997 = vmatprep.subr.bf16.mxu0 %v4012_v55  ;;  %v4084_v55 = vld [vmem:[%s5872_s2 + $0x844] ss:$8 sps:$4 sm:$0xff]  }
  0x63   :  { %2680 = vmatpush1.bf16.msra.mxu1 %v4007_v56  ;;  %v4079_v56 = vld [vmem:[%s5872_s2 + $0x240] ss:$8 sps:$4 sm:$0xff]  }
  0x64   :  { %2998 = vmatpush1.bf16.msra.mxu0 %v4010_v57  ;;  %2681 = vmatprep.subr.bf16.mxu1 %v4015_v58  ;;  %v4082_v57 = vld [vmem:[%s5872_s2 + $0x840] ss:$8 sps:$4 sm:$0xff]   ;;  %v4087_v58 = vld [vmem:[%s5872_s2 + $0x254] ss:$8 sps:$4 sm:$0xff]  }
  0x65   :  { %2999 = vmatprep.subr.bf16.mxu0 %v4018_v59  ;;  %v4090_v59 = vld [vmem:[%s5872_s2 + $0x854] ss:$8 sps:$4 sm:$0xff]  }
  0x67   :  { %2682 = vmatpush1.bf16.msra.mxu1 %v4013_v60  ;;  %v4085_v60 = vld [vmem:[%s5872_s2 + $0x250] ss:$8 sps:$4 sm:$0xff]  }
  0x68   :  { %3000 = vmatpush1.bf16.msra.mxu0 %v4016_v61  ;;  %2683 = vmatprep.subr.bf16.mxu1 %v4021_v62  ;;  %v4088_v61 = vld [vmem:[%s5872_s2 + $0x850] ss:$8 sps:$4 sm:$0xff]   ;;  %v4093_v62 = vld [vmem:[%s5872_s2 + $0x264] ss:$8 sps:$4 sm:$0xff]  }
  0x69   :  { %3001 = vmatprep.subr.bf16.mxu0 %v4024_v63  ;;  %v4096_v63 = vld [vmem:[%s5872_s2 + $0x864] ss:$8 sps:$4 sm:$0xff]  }
  0x6b   :  { %2684 = vmatpush1.bf16.msra.mxu1 %v4019_v0  ;;  %v4091_v0 = vld [vmem:[%s5872_s2 + $0x260] ss:$8 sps:$4 sm:$0xff]  }
  0x6c   :  { %3002 = vmatpush1.bf16.msra.mxu0 %v4022_v1  ;;  %2685 = vmatprep.subr.bf16.mxu1 %v4027_v2  ;;  %v4094_v1 = vld [vmem:[%s5872_s2 + $0x860] ss:$8 sps:$4 sm:$0xff]   ;;  %v4099_v2 = vld [vmem:[%s5872_s2 + $0x274] ss:$8 sps:$4 sm:$0xff]  }
  0x6d   :  { %3003 = vmatprep.subr.bf16.mxu0 %v4030_v3  ;;  %v4102_v3 = vld [vmem:[%s5872_s2 + $0x874] ss:$8 sps:$4 sm:$0xff]  }
  0x6f   :  { %2686 = vmatpush1.bf16.msra.mxu1 %v4025_v4  ;;  %v4097_v4 = vld [vmem:[%s5872_s2 + $0x270] ss:$8 sps:$4 sm:$0xff]  }
  0x70   :  { %3004 = vmatpush1.bf16.msra.mxu0 %v4028_v5  ;;  %2687 = vmatprep.subr.bf16.mxu1 %v4033_v6  ;;  %v4100_v5 = vld [vmem:[%s5872_s2 + $0x870] ss:$8 sps:$4 sm:$0xff]   ;;  %v4105_v6 = vld [vmem:[%s5872_s2 + $0x284] ss:$8 sps:$4 sm:$0xff]  }
  0x71   :  { %3005 = vmatprep.subr.bf16.mxu0 %v4036_v7  ;;  %v4108_v7 = vld [vmem:[%s5872_s2 + $0x884] ss:$8 sps:$4 sm:$0xff]  }
  0x73   :  { %2688 = vmatpush1.bf16.msra.mxu1 %v4031_v8  ;;  %v4103_v8 = vld [vmem:[%s5872_s2 + $0x280] ss:$8 sps:$4 sm:$0xff]  }
  0x74   :  { %3006 = vmatpush1.bf16.msra.mxu0 %v4034_v9  ;;  %2689 = vmatprep.subr.bf16.mxu1 %v4039_v10  ;;  %v4106_v9 = vld [vmem:[%s5872_s2 + $0x880] ss:$8 sps:$4 sm:$0xff]   ;;  %v4111_v10 = vld [vmem:[%s5872_s2 + $0x294] ss:$8 sps:$4 sm:$0xff]  }
  0x75   :  { %3007 = vmatprep.subr.bf16.mxu0 %v4042_v11  ;;  %v4114_v11 = vld [vmem:[%s5872_s2 + $0x894] ss:$8 sps:$4 sm:$0xff]  }
  0x77   :  { %2690 = vmatpush1.bf16.msra.mxu1 %v4037_v12  ;;  %v4109_v12 = vld [vmem:[%s5872_s2 + $0x290] ss:$8 sps:$4 sm:$0xff]  }
  0x78   :  { %3008 = vmatpush1.bf16.msra.mxu0 %v4040_v13  ;;  %2691 = vmatprep.subr.bf16.mxu1 %v4045_v14  ;;  %v4112_v13 = vld [vmem:[%s5872_s2 + $0x890] ss:$8 sps:$4 sm:$0xff]   ;;  %v4117_v14 = vld [vmem:[%s5872_s2 + $0x2a4] ss:$8 sps:$4 sm:$0xff]  }
  0x79   :  { %3009 = vmatprep.subr.bf16.mxu0 %v4048_v15  ;;  %v4120_v15 = vld [vmem:[%s5872_s2 + $0x8a4] ss:$8 sps:$4 sm:$0xff]  }
  0x7b   :  { %2692 = vmatpush1.bf16.msra.mxu1 %v4043_v16  ;;  %v4115_v16 = vld [vmem:[%s5872_s2 + $0x2a0] ss:$8 sps:$4 sm:$0xff]  }
  0x7c   :  { %3010 = vmatpush1.bf16.msra.mxu0 %v4046_v17  ;;  %2693 = vmatprep.subr.bf16.mxu1 %v4051_v18  ;;  %v4118_v17 = vld [vmem:[%s5872_s2 + $0x8a0] ss:$8 sps:$4 sm:$0xff]   ;;  %v4123_v18 = vld [vmem:[%s5872_s2 + $0x2b4] ss:$8 sps:$4 sm:$0xff]  }
  0x7d   :  { %3011 = vmatprep.subr.bf16.mxu0 %v4054_v19  ;;  %v4126_v19 = vld [vmem:[%s5872_s2 + $0x8b4] ss:$8 sps:$4 sm:$0xff]  }
  0x7f   :  { %2694 = vmatpush1.bf16.msra.mxu1 %v4049_v20  ;;  %v4121_v20 = vld [vmem:[%s5872_s2 + $0x2b0] ss:$8 sps:$4 sm:$0xff]  }
  0x80   :  { %3012 = vmatpush1.bf16.msra.mxu0 %v4052_v21  ;;  %2716 = vmatprep.subr.bf16.mxu1 %v4057_v22  ;;  %v4124_v21 = vld [vmem:[%s5872_s2 + $0x8b0] ss:$8 sps:$4 sm:$0xff]   ;;  %v4129_v22 = vld [vmem:[%s5872_s2 + $0x2c4] ss:$8 sps:$4 sm:$0xff]  }
  0x81   :  { %3034 = vmatprep.subr.bf16.mxu0 %v4060_v23  ;;  %v4132_v23 = vld [vmem:[%s5872_s2 + $0x8c4] ss:$8 sps:$4 sm:$0xff]  }
  0x82   :  { %2696 = vmatmul.mubr.bf16.vlgmr.msra.gmra.mrb[0].mxu1 %v3337_v27  ;;  %v4138_v27 = vld [vmem:[%s5872_s2 + $0x8d4] ss:$8 sps:$4 sm:$0xff]  }
  0x83   :  { %3014 = vmatmul.mubr.bf16.vlgmr.msra.gmra.mrb[0].mxu0 %v3349_v28  ;;  %2717 = vmatpush1.bf16.msra.mxu1 %v4055_v24  ;;  %v4127_v24 = vld [vmem:[%s5872_s2 + $0x2c0] ss:$8 sps:$4 sm:$0xff]   ;;  %v4133_v28 = vld [vmem:[%s5872_s2 + $0x2d0] ss:$8 sps:$4 sm:$0xff]  }
  0x84   :  { %3035 = vmatpush1.bf16.msra.mxu0 %v4058_v25  ;;  %2718 = vmatprep.subr.bf16.mxu1 %v4063_v30  ;;  %v4130_v25 = vld [vmem:[%s5872_s2 + $0x8c0] ss:$8 sps:$4 sm:$0xff]   ;;  %v4141_v30 = vld [vmem:[%s5872_s2 + $0x2e4] ss:$8 sps:$4 sm:$0xff]  }
  0x85   :  { %3036 = vmatprep.subr.bf16.mxu0 %v4066_v31  ;;  %2705 = vmatprep.mubr.bf16.mxu1 %v3362_v34  ;;  %v4144_v31 = vld [vmem:[%s5872_s2 + $0x8e4] ss:$8 sps:$4 sm:$0xff]   ;;  %v4147_v34 = vld [vmem:[%s5872_s2 + $0x2f4] ss:$8 sps:$4 sm:$0xff]  }
  0x86   :  { %3023 = vmatprep.mubr.bf16.mxu0 %v3374_v35  ;;  %v4150_v35 = vld [vmem:[%s5872_s2 + $0x8f4] ss:$8 sps:$4 sm:$0xff]  }
  0x87   :  { %2719 = vmatpush1.bf16.msra.mxu1 %v4061_v36  ;;  %v4145_v36 = vld [vmem:[%s5872_s2 + $0x2f0] ss:$8 sps:$4 sm:$0xff]  }
  0x88   :  { %3037 = vmatpush1.bf16.msra.mxu0 %v4064_v37  ;;  %2720 = vmatprep.subr.bf16.mxu1 %v4069_v38  ;;  %v4148_v37 = vld [vmem:[%s5872_s2 + $0x8f0] ss:$8 sps:$4 sm:$0xff]   ;;  %v4153_v38 = vld [vmem:[%s5872_s2 + $0x304] ss:$8 sps:$4 sm:$0xff]  }
  0x89   :  { %3038 = vmatprep.subr.bf16.mxu0 %v4072_v39  ;;  %v4156_v39 = vld [vmem:[%s5872_s2 + $0x904] ss:$8 sps:$4 sm:$0xff]  }
  0x8a   :  { %2706 = vmatmul.mubr.bf16.gmra.mrb[4].mxu1 %v3361_v43  ;;  %v44_v43 = vld [vmem:[%s5873_s1 + $0xd0] sm:$0xff] }
  0x8b   :  { %3024 = vmatmul.mubr.bf16.gmra.mrb[4].mxu0 %v3373_v44  ;;  %2721 = vmatpush1.bf16.msra.mxu1 %v4067_v40  ;;  %v4151_v40 = vld [vmem:[%s5872_s2 + $0x300] ss:$8 sps:$4 sm:$0xff]   ;;  %v56_v44 = vld [vmem:[%s5873_s1 + $0x130] sm:$0xff] }
  0x8c   :  { %3039 = vmatpush1.bf16.msra.mxu0 %v4070_v41  ;;  %2722 = vmatprep.subr.bf16.mxu1 %v4075_v48  ;;  %v4154_v41 = vld [vmem:[%s5872_s2 + $0x900] ss:$8 sps:$4 sm:$0xff]   ;;  %v3339_v48 = vcombine.low %v4951_v42, %v4956_v45  ;;  %v4162_v42 = vld [vmem:[%s5872_s2 + $0x914] ss:$8 sps:$4 sm:$0xff]   ;;  %v3364_v45 = vcombine.high %v44_v43, %v56_v44 }
  0x8d   :  { %3040 = vmatprep.subr.bf16.mxu0 %v4078_v49  ;;  %2748 = vmatprep.mubr.bf16.mxu1 %v3340_v50  ;;  %v3351_v49 = vcombine.low %v4961_v46, %v4966_v47  ;;  %v50_v50 = vld [vmem:[%s5873_s1 + $0x100] sm:$0xff]  ;;  %v4157_v47 = vld [vmem:[%s5872_s2 + $0x310] ss:$8 sps:$4 sm:$0xff]  }
  0x8e   :  { %3066 = vmatprep.mubr.bf16.mxu0 %v3352_v51  ;;  %v62_v51 = vld [vmem:[%s5873_s1 + $0x160] sm:$0xff] }
  0x8f   :  { %2723 = vmatpush1.bf16.msra.mxu1 %v4073_v52  ;;  %v4159_v52 = vld [vmem:[%s5872_s2 + $0x314] ss:$8 sps:$4 sm:$0xff]   ;;  %v3376_v46 = vcombine.high %v50_v50, %v62_v51 }
  0x90   :  { %3041 = vmatpush1.bf16.msra.mxu0 %v4076_v53  ;;  %2724 = vmatprep.subr.bf16.mxu1 %v4081_v54  ;;  %v4160_v53 = vld [vmem:[%s5872_s2 + $0x910] ss:$8 sps:$4 sm:$0xff]   ;;  %v4165_v54 = vld [vmem:[%s5872_s2 + $0x324] ss:$8 sps:$4 sm:$0xff]  }
  0x91   :  { %3042 = vmatprep.subr.bf16.mxu0 %v4084_v55  ;;  %v4168_v55 = vld [vmem:[%s5872_s2 + $0x924] ss:$8 sps:$4 sm:$0xff]  }
  0x93   :  { %2725 = vmatpush1.bf16.msra.mxu1 %v4079_v56  ;;  %v4163_v56 = vld [vmem:[%s5872_s2 + $0x320] ss:$8 sps:$4 sm:$0xff]  }
  0x94   :  { %3043 = vmatpush1.bf16.msra.mxu0 %v4082_v57  ;;  %2726 = vmatprep.subr.bf16.mxu1 %v4087_v58  ;;  %v4166_v57 = vld [vmem:[%s5872_s2 + $0x920] ss:$8 sps:$4 sm:$0xff]   ;;  %v5183_v58 = vld [vmem:[%s5873_s1 + $0x18] sm:$0xff] }
  0x95   :  { %3044 = vmatprep.subr.bf16.mxu0 %v4090_v59  ;;  %v5188_v59 = vld [vmem:[%s5873_s1 + $0x78] sm:$0xff] }
  0x97   :  { %2727 = vmatpush1.bf16.msra.mxu1 %v4085_v60  ;;  %v3363_v60 = vcombine.low %v44_v43, %v56_v44  ;;  %v4231_v43 = vld [vmem:[%s5872_s2 + $0x3d4] ss:$8 sps:$4 sm:$0xff]  }
  0x98   :  { %3045 = vmatpush1.bf16.msra.mxu0 %v4088_v61  ;;  %2728 = vmatprep.subr.bf16.mxu1 %v4093_v62  ;;  %v3375_v61 = vcombine.low %v50_v50, %v62_v51  ;;  %v5193_v62 = vld [vmem:[%s5873_s1 + $0x48] sm:$0xff]  ;;  %v4234_v44 = vld [vmem:[%s5872_s2 + $0x9d4] ss:$8 sps:$4 sm:$0xff]  }
  0x99   :  { %3046 = vmatprep.subr.bf16.mxu0 %v4096_v63  ;;  %v5198_v63 = vld [vmem:[%s5873_s1 + $0xa8] sm:$0xff] }
  0x9a   :  { %v4237_v50 = vld [vmem:[%s5872_s2 + $0x3e4] ss:$8 sps:$4 sm:$0xff]  }
  0x9b   :  { %2729 = vmatpush1.bf16.msra.mxu1 %v4091_v0  ;;  %v4171_v0 = vld [vmem:[%s5872_s2 + $0x334] ss:$8 sps:$4 sm:$0xff]   ;;  %v4240_v51 = vld [vmem:[%s5872_s2 + $0x9e4] ss:$8 sps:$4 sm:$0xff]  }
  0x9c   :  { %3047 = vmatpush1.bf16.msra.mxu0 %v4094_v1  ;;  %2730 = vmatprep.subr.bf16.mxu1 %v4099_v2  ;;  %v4174_v1 = vld [vmem:[%s5872_s2 + $0x934] ss:$8 sps:$4 sm:$0xff]   ;;  %v3342_v2 = vcombine.high %v5183_v58, %v5188_v59 }
  0x9d   :  { %3048 = vmatprep.subr.bf16.mxu0 %v4102_v3  ;;  %v3354_v3 = vcombine.high %v5193_v62, %v5198_v63 }
  0x9f   :  { %2731 = vmatpush1.bf16.msra.mxu1 %v4097_v4  ;;  %v4169_v4 = vld [vmem:[%s5872_s2 + $0x330] ss:$8 sps:$4 sm:$0xff]  }
  0xa0   :  { %3049 = vmatpush1.bf16.msra.mxu0 %v4100_v5  ;;  %2732 = vmatprep.subr.bf16.mxu1 %v4105_v6  ;;  %v4172_v5 = vld [vmem:[%s5872_s2 + $0x930] ss:$8 sps:$4 sm:$0xff]   ;;  %v4177_v6 = vld [vmem:[%s5872_s2 + $0x344] ss:$8 sps:$4 sm:$0xff]  }
  0xa1   :  { %3050 = vmatprep.subr.bf16.mxu0 %v4108_v7  ;;  %v4180_v7 = vld [vmem:[%s5872_s2 + $0x944] ss:$8 sps:$4 sm:$0xff]  }
  0xa3   :  { %2733 = vmatpush1.bf16.msra.mxu1 %v4103_v8  ;;  %v4175_v8 = vld [vmem:[%s5872_s2 + $0x340] ss:$8 sps:$4 sm:$0xff]  }
  0xa4   :  { %3051 = vmatpush1.bf16.msra.mxu0 %v4106_v9  ;;  %2734 = vmatprep.subr.bf16.mxu1 %v4111_v10  ;;  %v4178_v9 = vld [vmem:[%s5872_s2 + $0x940] ss:$8 sps:$4 sm:$0xff]   ;;  %v4183_v10 = vld [vmem:[%s5872_s2 + $0x354] ss:$8 sps:$4 sm:$0xff]  }
  0xa5   :  { %3052 = vmatprep.subr.bf16.mxu0 %v4114_v11  ;;  %v4186_v11 = vld [vmem:[%s5872_s2 + $0x954] ss:$8 sps:$4 sm:$0xff]  }
  0xa7   :  { %2735 = vmatpush1.bf16.msra.mxu1 %v4109_v12  ;;  %v4181_v12 = vld [vmem:[%s5872_s2 + $0x350] ss:$8 sps:$4 sm:$0xff]  }
  0xa8   :  { %3053 = vmatpush1.bf16.msra.mxu0 %v4112_v13  ;;  %2736 = vmatprep.subr.bf16.mxu1 %v4117_v14  ;;  %v4184_v13 = vld [vmem:[%s5872_s2 + $0x950] ss:$8 sps:$4 sm:$0xff]   ;;  %v4189_v14 = vld [vmem:[%s5872_s2 + $0x364] ss:$8 sps:$4 sm:$0xff]  }
  0xa9   :  { %3054 = vmatprep.subr.bf16.mxu0 %v4120_v15  ;;  %v4192_v15 = vld [vmem:[%s5872_s2 + $0x964] ss:$8 sps:$4 sm:$0xff]  }
  0xab   :  { %2737 = vmatpush1.bf16.msra.mxu1 %v4115_v16  ;;  %v4187_v16 = vld [vmem:[%s5872_s2 + $0x360] ss:$8 sps:$4 sm:$0xff]  }
  0xac   :  { %3055 = vmatpush1.bf16.msra.mxu0 %v4118_v17  ;;  %2738 = vmatprep.subr.bf16.mxu1 %v4123_v18  ;;  %v4190_v17 = vld [vmem:[%s5872_s2 + $0x960] ss:$8 sps:$4 sm:$0xff]   ;;  %v4195_v18 = vld [vmem:[%s5872_s2 + $0x374] ss:$8 sps:$4 sm:$0xff]  }
  0xad   :  { %3056 = vmatprep.subr.bf16.mxu0 %v4126_v19  ;;  %v4198_v19 = vld [vmem:[%s5872_s2 + $0x974] ss:$8 sps:$4 sm:$0xff]  }
  0xaf   :  { %2739 = vmatpush1.bf16.msra.mxu1 %v4121_v20  ;;  %v4193_v20 = vld [vmem:[%s5872_s2 + $0x370] ss:$8 sps:$4 sm:$0xff]  }
  0xb0   :  { %3057 = vmatpush1.bf16.msra.mxu0 %v4124_v21  ;;  %2740 = vmatprep.subr.bf16.mxu1 %v4129_v22  ;;  %v4196_v21 = vld [vmem:[%s5872_s2 + $0x970] ss:$8 sps:$4 sm:$0xff]   ;;  %v4201_v22 = vld [vmem:[%s5872_s2 + $0x384] ss:$8 sps:$4 sm:$0xff]  }
  0xb1   :  { %3058 = vmatprep.subr.bf16.mxu0 %v4132_v23  ;;  %v4204_v23 = vld [vmem:[%s5872_s2 + $0x984] ss:$8 sps:$4 sm:$0xff]  }
  0xb3   :  { %2741 = vmatpush1.bf16.msra.mxu1 %v4127_v24  ;;  %v4199_v24 = vld [vmem:[%s5872_s2 + $0x380] ss:$8 sps:$4 sm:$0xff]  }
  0xb4   :  { %3059 = vmatpush1.bf16.msra.mxu0 %v4130_v25  ;;  %2742 = vmatprep.subr.bf16.mxu1 %v4135_v26  ;;  %v4202_v25 = vld [vmem:[%s5872_s2 + $0x980] ss:$8 sps:$4 sm:$0xff]   ;;  %v4207_v26 = vld [vmem:[%s5872_s2 + $0x394] ss:$8 sps:$4 sm:$0xff]  }
  0xb5   :  { %3060 = vmatprep.subr.bf16.mxu0 %v4138_v27  ;;  %v4210_v27 = vld [vmem:[%s5872_s2 + $0x994] ss:$8 sps:$4 sm:$0xff]  }
  0xb7   :  { %2743 = vmatpush1.bf16.msra.mxu1 %v4133_v28  ;;  %v4205_v28 = vld [vmem:[%s5872_s2 + $0x390] ss:$8 sps:$4 sm:$0xff]  }
  0xb8   :  { %3061 = vmatpush1.bf16.msra.mxu0 %v4136_v29  ;;  %2744 = vmatprep.subr.bf16.mxu1 %v4141_v30  ;;  %v4208_v29 = vld [vmem:[%s5872_s2 + $0x990] ss:$8 sps:$4 sm:$0xff]   ;;  %v4213_v30 = vld [vmem:[%s5872_s2 + $0x3a4] ss:$8 sps:$4 sm:$0xff]  }
  0xb9   :  { %3062 = vmatprep.subr.bf16.mxu0 %v4144_v31  ;;  %v4216_v31 = vld [vmem:[%s5872_s2 + $0x9a4] ss:$8 sps:$4 sm:$0xff]  }
  0xbb   :  { %2745 = vmatpush1.bf16.msra.mxu1 %v4139_v32  ;;  %v4211_v32 = vld [vmem:[%s5872_s2 + $0x3a0] ss:$8 sps:$4 sm:$0xff]  }
  0xbc   :  { %3063 = vmatpush1.bf16.msra.mxu0 %v4142_v33  ;;  %2746 = vmatprep.subr.bf16.mxu1 %v4147_v34  ;;  %v4214_v33 = vld [vmem:[%s5872_s2 + $0x9a0] ss:$8 sps:$4 sm:$0xff]   ;;  %v4219_v34 = vld [vmem:[%s5872_s2 + $0x3b4] ss:$8 sps:$4 sm:$0xff]  }
  0xbd   :  { %3064 = vmatprep.subr.bf16.mxu0 %v4150_v35  ;;  %v4222_v35 = vld [vmem:[%s5872_s2 + $0x9b4] ss:$8 sps:$4 sm:$0xff]  }
  0xbf   :  { %2747 = vmatpush1.bf16.msra.mxu1 %v4145_v36  ;;  %v4217_v36 = vld [vmem:[%s5872_s2 + $0x3b0] ss:$8 sps:$4 sm:$0xff]  }
  0xc0   :  { %3065 = vmatpush1.bf16.msra.mxu0 %v4148_v37  ;;  %2769 = vmatprep.subr.bf16.mxu1 %v4153_v38  ;;  %v4220_v37 = vld [vmem:[%s5872_s2 + $0x9b0] ss:$8 sps:$4 sm:$0xff]   ;;  %v4225_v38 = vld [vmem:[%s5872_s2 + $0x3c4] ss:$8 sps:$4 sm:$0xff]  }
  0xc1   :  { %3087 = vmatprep.subr.bf16.mxu0 %v4156_v39  ;;  %v4228_v39 = vld [vmem:[%s5872_s2 + $0x9c4] ss:$8 sps:$4 sm:$0xff]  }
  0xc2   :  { %2749 = vmatmul.mubr.bf16.vlgmr.msra.gmra.mrb[0].mxu1 %v3339_v48  ;;  %v4229_v48 = vld [vmem:[%s5872_s2 + $0x3d0] ss:$8 sps:$4 sm:$0xff]  }
  0xc3   :  { %3067 = vmatmul.mubr.bf16.vlgmr.msra.gmra.mrb[0].mxu0 %v3351_v49  ;;  %2770 = vmatpush1.bf16.msra.mxu1 %v4151_v40  ;;  %v4223_v40 = vld [vmem:[%s5872_s2 + $0x3c0] ss:$8 sps:$4 sm:$0xff]   ;;  %v4232_v49 = vld [vmem:[%s5872_s2 + $0x9d0] ss:$8 sps:$4 sm:$0xff]  }
  0xc4   :  { %3088 = vmatpush1.bf16.msra.mxu0 %v4154_v41  ;;  %2771 = vmatprep.subr.bf16.mxu1 %v4159_v52  ;;  %v4226_v41 = vld [vmem:[%s5872_s2 + $0x9c0] ss:$8 sps:$4 sm:$0xff]  }
  0xc5   :  { %3089 = vmatprep.subr.bf16.mxu0 %v4162_v42  ;;  %2758 = vmatprep.mubr.bf16.mxu1 %v3364_v45  ;;  %v4235_v52 = vld [vmem:[%s5872_s2 + $0x3e0] ss:$8 sps:$4 sm:$0xff]   ;;  %v4243_v45 = vld [vmem:[%s5872_s2 + $0x3f4] ss:$8 sps:$4 sm:$0xff]  }
  0xc6   :  { %3076 = vmatprep.mubr.bf16.mxu0 %v3376_v46  ;;  %v4238_v42 = vld [vmem:[%s5872_s2 + $0x9e0] ss:$8 sps:$4 sm:$0xff]   ;;  %v4246_v46 = vld [vmem:[%s5872_s2 + $0x9f4] ss:$8 sps:$4 sm:$0xff]  }
  0xc7   :  { %2772 = vmatpush1.bf16.msra.mxu1 %v4157_v47  ;;  %v4241_v47 = vld [vmem:[%s5872_s2 + $0x3f0] ss:$8 sps:$4 sm:$0xff]  }
  0xc8   :  { %3090 = vmatpush1.bf16.msra.mxu0 %v4160_v53  ;;  %2773 = vmatprep.subr.bf16.mxu1 %v4165_v54  ;;  %v4244_v53 = vld [vmem:[%s5872_s2 + $0x9f0] ss:$8 sps:$4 sm:$0xff]   ;;  %v4249_v54 = vld [vmem:[%s5872_s2 + $0x404] ss:$8 sps:$4 sm:$0xff]  }
  0xc9   :  { %3091 = vmatprep.subr.bf16.mxu0 %v4168_v55  ;;  %v4252_v55 = vld [vmem:[%s5872_s2 + $0xa04] ss:$8 sps:$4 sm:$0xff]  }
  0xca   :  { %2759 = vmatmul.mubr.bf16.gmra.mrb[4].mxu1 %v3363_v60  ;;  %v45_v60 = vld [vmem:[%s5873_s1 + $0xd8] sm:$0xff] }
  0xcb   :  { %3077 = vmatmul.mubr.bf16.gmra.mrb[4].mxu0 %v3375_v61  ;;  %2774 = vmatpush1.bf16.msra.mxu1 %v4163_v56  ;;  %v4247_v56 = vld [vmem:[%s5872_s2 + $0x400] ss:$8 sps:$4 sm:$0xff]   ;;  %v57_v61 = vld [vmem:[%s5873_s1 + $0x138] sm:$0xff] }
  0xcc   :  { %3092 = vmatpush1.bf16.msra.mxu0 %v4166_v57  ;;  %2775 = vmatprep.subr.bf16.mxu1 %v4171_v0  ;;  %v4250_v57 = vld [vmem:[%s5872_s2 + $0xa00] ss:$8 sps:$4 sm:$0xff]   ;;  %v3341_v0 = vcombine.low %v5183_v58, %v5188_v59  ;;  %v4258_v58 = vld [vmem:[%s5872_s2 + $0xa14] ss:$8 sps:$4 sm:$0xff]   ;;  %v3366_v59 = vcombine.high %v45_v60, %v57_v61 }
  0xcd   :  { %3093 = vmatprep.subr.bf16.mxu0 %v4174_v1  ;;  %2801 = vmatprep.mubr.bf16.mxu1 %v3342_v2  ;;  %v3353_v1 = vcombine.low %v5193_v62, %v5198_v63  ;;  %v51_v2 = vld [vmem:[%s5873_s1 + $0x108] sm:$0xff]  ;;  %v4253_v63 = vld [vmem:[%s5872_s2 + $0x410] ss:$8 sps:$4 sm:$0xff]  }
  0xce   :  { %3119 = vmatprep.mubr.bf16.mxu0 %v3354_v3  ;;  %v63_v3 = vld [vmem:[%s5873_s1 + $0x168] sm:$0xff] }
  0xcf   :  { %2776 = vmatpush1.bf16.msra.mxu1 %v4169_v4  ;;  %v4255_v4 = vld [vmem:[%s5872_s2 + $0x414] ss:$8 sps:$4 sm:$0xff]   ;;  %v3378_v62 = vcombine.high %v51_v2, %v63_v3 }
  0xd0   :  { %3094 = vmatpush1.bf16.msra.mxu0 %v4172_v5  ;;  %2777 = vmatprep.subr.bf16.mxu1 %v4177_v6  ;;  %v4256_v5 = vld [vmem:[%s5872_s2 + $0xa10] ss:$8 sps:$4 sm:$0xff]   ;;  %v4261_v6 = vld [vmem:[%s5872_s2 + $0x424] ss:$8 sps:$4 sm:$0xff]  }
  0xd1   :  { %3095 = vmatprep.subr.bf16.mxu0 %v4180_v7  ;;  %v4264_v7 = vld [vmem:[%s5872_s2 + $0xa24] ss:$8 sps:$4 sm:$0xff]  }
  0xd3   :  { %2778 = vmatpush1.bf16.msra.mxu1 %v4175_v8  ;;  %v4259_v8 = vld [vmem:[%s5872_s2 + $0x420] ss:$8 sps:$4 sm:$0xff]  }
  0xd4   :  { %3096 = vmatpush1.bf16.msra.mxu0 %v4178_v9  ;;  %2779 = vmatprep.subr.bf16.mxu1 %v4183_v10  ;;  %v4262_v9 = vld [vmem:[%s5872_s2 + $0xa20] ss:$8 sps:$4 sm:$0xff]  }
  0xd5   :  { %3097 = vmatprep.subr.bf16.mxu0 %v4186_v11  ;;  %v5415_v10 = vld [vmem:[%s5873_s1 + $0x20] sm:$0xff]  ;;  %v3365_v11 = vcombine.low %v45_v60, %v57_v61  ;;  %v4327_v60 = vld [vmem:[%s5872_s2 + $0x4d4] ss:$8 sps:$4 sm:$0xff]  }
  0xd6   :  { %v4330_v61 = vld [vmem:[%s5872_s2 + $0xad4] ss:$8 sps:$4 sm:$0xff]  }
  0xd7   :  { %2780 = vmatpush1.bf16.msra.mxu1 %v4181_v12  ;;  %v3377_v12 = vcombine.low %v51_v2, %v63_v3  ;;  %v4333_v2 = vld [vmem:[%s5872_s2 + $0x4e4] ss:$8 sps:$4 sm:$0xff]  }
  0xd8   :  { %3098 = vmatpush1.bf16.msra.mxu0 %v4184_v13  ;;  %2781 = vmatprep.subr.bf16.mxu1 %v4189_v14  ;;  %v5420_v13 = vld [vmem:[%s5873_s1 + $0x80] sm:$0xff]  ;;  %v5425_v14 = vld [vmem:[%s5873_s1 + $0x50] sm:$0xff] }
  0xd9   :  { %3099 = vmatprep.subr.bf16.mxu0 %v4192_v15  ;;  %v5430_v15 = vld [vmem:[%s5873_s1 + $0xb0] sm:$0xff]  ;;  %v4336_v3 = vld [vmem:[%s5872_s2 + $0xae4] ss:$8 sps:$4 sm:$0xff]  }
  0xdb   :  { %2782 = vmatpush1.bf16.msra.mxu1 %v4187_v16  ;;  %v4267_v16 = vld [vmem:[%s5872_s2 + $0x434] ss:$8 sps:$4 sm:$0xff]  }
  0xdc   :  { %3100 = vmatpush1.bf16.msra.mxu0 %v4190_v17  ;;  %2783 = vmatprep.subr.bf16.mxu1 %v4195_v18  ;;  %v4270_v17 = vld [vmem:[%s5872_s2 + $0xa34] ss:$8 sps:$4 sm:$0xff]   ;;  %v3344_v18 = vcombine.high %v5415_v10, %v5420_v13 }
  0xdd   :  { %3101 = vmatprep.subr.bf16.mxu0 %v4198_v19  ;;  %v3356_v19 = vcombine.high %v5425_v14, %v5430_v15 }
  0xdf   :  { %2784 = vmatpush1.bf16.msra.mxu1 %v4193_v20  ;;  %v4265_v20 = vld [vmem:[%s5872_s2 + $0x430] ss:$8 sps:$4 sm:$0xff]  }
  0xe0   :  { %3102 = vmatpush1.bf16.msra.mxu0 %v4196_v21  ;;  %2785 = vmatprep.subr.bf16.mxu1 %v4201_v22  ;;  %v4268_v21 = vld [vmem:[%s5872_s2 + $0xa30] ss:$8 sps:$4 sm:$0xff]   ;;  %v4273_v22 = vld [vmem:[%s5872_s2 + $0x444] ss:$8 sps:$4 sm:$0xff]  }
  0xe1   :  { %3103 = vmatprep.subr.bf16.mxu0 %v4204_v23  ;;  %v4276_v23 = vld [vmem:[%s5872_s2 + $0xa44] ss:$8 sps:$4 sm:$0xff]  }
  0xe3   :  { %2786 = vmatpush1.bf16.msra.mxu1 %v4199_v24  ;;  %v4271_v24 = vld [vmem:[%s5872_s2 + $0x440] ss:$8 sps:$4 sm:$0xff]  }
  0xe4   :  { %3104 = vmatpush1.bf16.msra.mxu0 %v4202_v25  ;;  %2787 = vmatprep.subr.bf16.mxu1 %v4207_v26  ;;  %v4274_v25 = vld [vmem:[%s5872_s2 + $0xa40] ss:$8 sps:$4 sm:$0xff]   ;;  %v4279_v26 = vld [vmem:[%s5872_s2 + $0x454] ss:$8 sps:$4 sm:$0xff]  }
  0xe5   :  { %3105 = vmatprep.subr.bf16.mxu0 %v4210_v27  ;;  %v4282_v27 = vld [vmem:[%s5872_s2 + $0xa54] ss:$8 sps:$4 sm:$0xff]  }
  0xe7   :  { %2788 = vmatpush1.bf16.msra.mxu1 %v4205_v28  ;;  %v4277_v28 = vld [vmem:[%s5872_s2 + $0x450] ss:$8 sps:$4 sm:$0xff]  }
  0xe8   :  { %3106 = vmatpush1.bf16.msra.mxu0 %v4208_v29  ;;  %2789 = vmatprep.subr.bf16.mxu1 %v4213_v30  ;;  %v4280_v29 = vld [vmem:[%s5872_s2 + $0xa50] ss:$8 sps:$4 sm:$0xff]   ;;  %v4285_v30 = vld [vmem:[%s5872_s2 + $0x464] ss:$8 sps:$4 sm:$0xff]  }
  0xe9   :  { %3107 = vmatprep.subr.bf16.mxu0 %v4216_v31  ;;  %v4288_v31 = vld [vmem:[%s5872_s2 + $0xa64] ss:$8 sps:$4 sm:$0xff]  }
  0xeb   :  { %2790 = vmatpush1.bf16.msra.mxu1 %v4211_v32  ;;  %v4283_v32 = vld [vmem:[%s5872_s2 + $0x460] ss:$8 sps:$4 sm:$0xff]  }
  0xec   :  { %3108 = vmatpush1.bf16.msra.mxu0 %v4214_v33  ;;  %2791 = vmatprep.subr.bf16.mxu1 %v4219_v34  ;;  %v4286_v33 = vld [vmem:[%s5872_s2 + $0xa60] ss:$8 sps:$4 sm:$0xff]   ;;  %v4291_v34 = vld [vmem:[%s5872_s2 + $0x474] ss:$8 sps:$4 sm:$0xff]  }
  0xed   :  { %3109 = vmatprep.subr.bf16.mxu0 %v4222_v35  ;;  %v4294_v35 = vld [vmem:[%s5872_s2 + $0xa74] ss:$8 sps:$4 sm:$0xff]  }
  0xef   :  { %2792 = vmatpush1.bf16.msra.mxu1 %v4217_v36  ;;  %v4289_v36 = vld [vmem:[%s5872_s2 + $0x470] ss:$8 sps:$4 sm:$0xff]  }
  0xf0   :  { %3110 = vmatpush1.bf16.msra.mxu0 %v4220_v37  ;;  %2793 = vmatprep.subr.bf16.mxu1 %v4225_v38  ;;  %v4292_v37 = vld [vmem:[%s5872_s2 + $0xa70] ss:$8 sps:$4 sm:$0xff]   ;;  %v4297_v38 = vld [vmem:[%s5872_s2 + $0x484] ss:$8 sps:$4 sm:$0xff]  }
  0xf1   :  { %3111 = vmatprep.subr.bf16.mxu0 %v4228_v39  ;;  %v4300_v39 = vld [vmem:[%s5872_s2 + $0xa84] ss:$8 sps:$4 sm:$0xff]  }
  0xf3   :  { %2794 = vmatpush1.bf16.msra.mxu1 %v4223_v40  ;;  %v4295_v40 = vld [vmem:[%s5872_s2 + $0x480] ss:$8 sps:$4 sm:$0xff]  }
  0xf4   :  { %3112 = vmatpush1.bf16.msra.mxu0 %v4226_v41  ;;  %2795 = vmatprep.subr.bf16.mxu1 %v4231_v43  ;;  %v4298_v41 = vld [vmem:[%s5872_s2 + $0xa80] ss:$8 sps:$4 sm:$0xff]   ;;  %v4303_v43 = vld [vmem:[%s5872_s2 + $0x494] ss:$8 sps:$4 sm:$0xff]  }
  0xf5   :  { %3113 = vmatprep.subr.bf16.mxu0 %v4234_v44  ;;  %v4306_v44 = vld [vmem:[%s5872_s2 + $0xa94] ss:$8 sps:$4 sm:$0xff]  }
  0xf7   :  { %2796 = vmatpush1.bf16.msra.mxu1 %v4229_v48  ;;  %v4301_v48 = vld [vmem:[%s5872_s2 + $0x490] ss:$8 sps:$4 sm:$0xff]  }
  0xf8   :  { %3114 = vmatpush1.bf16.msra.mxu0 %v4232_v49  ;;  %2797 = vmatprep.subr.bf16.mxu1 %v4237_v50  ;;  %v4304_v49 = vld [vmem:[%s5872_s2 + $0xa90] ss:$8 sps:$4 sm:$0xff]   ;;  %v4309_v50 = vld [vmem:[%s5872_s2 + $0x4a4] ss:$8 sps:$4 sm:$0xff]  }
  0xf9   :  { %3115 = vmatprep.subr.bf16.mxu0 %v4240_v51  ;;  %v4312_v51 = vld [vmem:[%s5872_s2 + $0xaa4] ss:$8 sps:$4 sm:$0xff]  }
  0xfb   :  { %2798 = vmatpush1.bf16.msra.mxu1 %v4235_v52  ;;  %v4307_v52 = vld [vmem:[%s5872_s2 + $0x4a0] ss:$8 sps:$4 sm:$0xff]  }
  0xfc   :  { %3116 = vmatpush1.bf16.msra.mxu0 %v4238_v42  ;;  %2799 = vmatprep.subr.bf16.mxu1 %v4243_v45  ;;  %v4310_v42 = vld [vmem:[%s5872_s2 + $0xaa0] ss:$8 sps:$4 sm:$0xff]   ;;  %v4315_v45 = vld [vmem:[%s5872_s2 + $0x4b4] ss:$8 sps:$4 sm:$0xff]  }
  0xfd   :  { %3117 = vmatprep.subr.bf16.mxu0 %v4246_v46  ;;  %v4318_v46 = vld [vmem:[%s5872_s2 + $0xab4] ss:$8 sps:$4 sm:$0xff]  }
  0xff   :  { %2800 = vmatpush1.bf16.msra.mxu1 %v4241_v47  ;;  %v4313_v47 = vld [vmem:[%s5872_s2 + $0x4b0] ss:$8 sps:$4 sm:$0xff]  }
 0x100   :  { %3118 = vmatpush1.bf16.msra.mxu0 %v4244_v53  ;;  %2822 = vmatprep.subr.bf16.mxu1 %v4249_v54  ;;  %v4316_v53 = vld [vmem:[%s5872_s2 + $0xab0] ss:$8 sps:$4 sm:$0xff]   ;;  %v4321_v54 = vld [vmem:[%s5872_s2 + $0x4c4] ss:$8 sps:$4 sm:$0xff]  }
 0x101   :  { %3140 = vmatprep.subr.bf16.mxu0 %v4252_v55  ;;  %v4324_v55 = vld [vmem:[%s5872_s2 + $0xac4] ss:$8 sps:$4 sm:$0xff]  }
 0x102   :  { %2802 = vmatmul.mubr.bf16.vlgmr.msra.gmra.mrb[0].mxu1 %v3341_v0  ;;  %v4325_v0 = vld [vmem:[%s5872_s2 + $0x4d0] ss:$8 sps:$4 sm:$0xff]  }
 0x103   :  { %3120 = vmatmul.mubr.bf16.vlgmr.msra.gmra.mrb[0].mxu0 %v3353_v1  ;;  %2823 = vmatpush1.bf16.msra.mxu1 %v4247_v56  ;;  %v4319_v56 = vld [vmem:[%s5872_s2 + $0x4c0] ss:$8 sps:$4 sm:$0xff]   ;;  %v4328_v1 = vld [vmem:[%s5872_s2 + $0xad0] ss:$8 sps:$4 sm:$0xff]  }
 0x104   :  { %3141 = vmatpush1.bf16.msra.mxu0 %v4250_v57  ;;  %2824 = vmatprep.subr.bf16.mxu1 %v4255_v4  ;;  %v4322_v57 = vld [vmem:[%s5872_s2 + $0xac0] ss:$8 sps:$4 sm:$0xff]  }
 0x105   :  { %3142 = vmatprep.subr.bf16.mxu0 %v4258_v58  ;;  %2811 = vmatprep.mubr.bf16.mxu1 %v3366_v59  ;;  %v4331_v4 = vld [vmem:[%s5872_s2 + $0x4e0] ss:$8 sps:$4 sm:$0xff]   ;;  %v4339_v59 = vld [vmem:[%s5872_s2 + $0x4f4] ss:$8 sps:$4 sm:$0xff]  }
 0x106   :  { %3129 = vmatprep.mubr.bf16.mxu0 %v3378_v62  ;;  %v4334_v58 = vld [vmem:[%s5872_s2 + $0xae0] ss:$8 sps:$4 sm:$0xff]   ;;  %v4342_v62 = vld [vmem:[%s5872_s2 + $0xaf4] ss:$8 sps:$4 sm:$0xff]  }
 0x107   :  { %2825 = vmatpush1.bf16.msra.mxu1 %v4253_v63  ;;  %v4337_v63 = vld [vmem:[%s5872_s2 + $0x4f0] ss:$8 sps:$4 sm:$0xff]  }
 0x108   :  { %3143 = vmatpush1.bf16.msra.mxu0 %v4256_v5  ;;  %2826 = vmatprep.subr.bf16.mxu1 %v4261_v6  ;;  %v4340_v5 = vld [vmem:[%s5872_s2 + $0xaf0] ss:$8 sps:$4 sm:$0xff]   ;;  %v4345_v6 = vld [vmem:[%s5872_s2 + $0x504] ss:$8 sps:$4 sm:$0xff]  }
 0x109   :  { %3144 = vmatprep.subr.bf16.mxu0 %v4264_v7  ;;  %v4348_v7 = vld [vmem:[%s5872_s2 + $0xb04] ss:$8 sps:$4 sm:$0xff]  }
 0x10a   :  { %2812 = vmatmul.mubr.bf16.gmra.mrb[4].mxu1 %v3365_v11  ;;  %v3355_v11 = vcombine.low %v5425_v14, %v5430_v15  ;;  %v4351_v14 = vld [vmem:[%s5872_s2 + $0x514] ss:$8 sps:$4 sm:$0xff]  }
 0x10b   :  { %3130 = vmatmul.mubr.bf16.gmra.mrb[4].mxu0 %v3377_v12  ;;  %2827 = vmatpush1.bf16.msra.mxu1 %v4259_v8  ;;  %v46_v8 = vld [vmem:[%s5873_s1 + $0xe0] sm:$0xff]  ;;  %v4354_v15 = vld [vmem:[%s5872_s2 + $0xb14] ss:$8 sps:$4 sm:$0xff]  }
 0x10c   :  { %3145 = vmatpush1.bf16.msra.mxu0 %v4262_v9  ;;  %2828 = vmatprep.subr.bf16.mxu1 %v4267_v16  ;;  %v3343_v9 = vcombine.low %v5415_v10, %v5420_v13  ;;  %v58_v12 = vld [vmem:[%s5873_s1 + $0x140] sm:$0xff]  ;;  %v52_v16 = vld [vmem:[%s5873_s1 + $0x110] sm:$0xff] }
 0x10d   :  { %3146 = vmatprep.subr.bf16.mxu0 %v4270_v17  ;;  %2854 = vmatprep.mubr.bf16.mxu1 %v3344_v18  ;;  %v64_v17 = vld [vmem:[%s5873_s1 + $0x170] sm:$0xff]  ;;  %v4343_v10 = vld [vmem:[%s5872_s2 + $0x500] ss:$8 sps:$4 sm:$0xff]   ;;  %v3368_v18 = vcombine.high %v46_v8, %v58_v12 }
 0x10e   :  { %3172 = vmatprep.mubr.bf16.mxu0 %v3356_v19  ;;  %v4346_v13 = vld [vmem:[%s5872_s2 + $0xb00] ss:$8 sps:$4 sm:$0xff]   ;;  %v3380_v19 = vcombine.high %v52_v16, %v64_v17 }
 0x10f   :  { %2829 = vmatpush1.bf16.msra.mxu1 %v4265_v20  ;;  %v4349_v20 = vld [vmem:[%s5872_s2 + $0x510] ss:$8 sps:$4 sm:$0xff]  }
 0x110   :  { %3147 = vmatpush1.bf16.msra.mxu0 %v4268_v21  ;;  %2830 = vmatprep.subr.bf16.mxu1 %v4273_v22  ;;  %v4352_v21 = vld [vmem:[%s5872_s2 + $0xb10] ss:$8 sps:$4 sm:$0xff]   ;;  %v4357_v22 = vld [vmem:[%s5872_s2 + $0x524] ss:$8 sps:$4 sm:$0xff]  }
 0x111   :  { %3148 = vmatprep.subr.bf16.mxu0 %v4276_v23  ;;  %v4360_v23 = vld [vmem:[%s5872_s2 + $0xb24] ss:$8 sps:$4 sm:$0xff]  }
 0x113   :  { %2831 = vmatpush1.bf16.msra.mxu1 %v4271_v24  ;;  %v5641_v24 = vld [vmem:[%s5873_s1 + $0x28] sm:$0xff] }
 0x114   :  { %3149 = vmatpush1.bf16.msra.mxu0 %v4274_v25  ;;  %2832 = vmatprep.subr.bf16.mxu1 %v4279_v26  ;;  %v3367_v25 = vcombine.low %v46_v8, %v58_v12  ;;  %v3379_v26 = vcombine.low %v52_v16, %v64_v17  ;;  %v4415_v8 = vld [vmem:[%s5872_s2 + $0x5c0] ss:$8 sps:$4 sm:$0xff]   ;;  %v4426_v12 = vld [vmem:[%s5872_s2 + $0xbd4] ss:$8 sps:$4 sm:$0xff]   ;;  %v4421_v16 = vld [vmem:[%s5872_s2 + $0x5d0] ss:$8 sps:$4 sm:$0xff]  }
 0x115   :  { %3150 = vmatprep.subr.bf16.mxu0 %v4282_v27  ;;  %v5646_v27 = vld [vmem:[%s5873_s1 + $0x88] sm:$0xff]  ;;  %v4424_v17 = vld [vmem:[%s5872_s2 + $0xbd0] ss:$8 sps:$4 sm:$0xff]  }
 0x117   :  { %2833 = vmatpush1.bf16.msra.mxu1 %v4277_v28  ;;  %v5651_v28 = vld [vmem:[%s5873_s1 + $0x58] sm:$0xff] }
 0x118   :  { %3151 = vmatpush1.bf16.msra.mxu0 %v4280_v29  ;;  %2834 = vmatprep.subr.bf16.mxu1 %v4285_v30  ;;  %v5656_v29 = vld [vmem:[%s5873_s1 + $0xb8] sm:$0xff]  ;;  %v4355_v30 = vld [vmem:[%s5872_s2 + $0x520] ss:$8 sps:$4 sm:$0xff]  }
 0x119   :  { %3152 = vmatprep.subr.bf16.mxu0 %v4288_v31  ;;  %v4358_v31 = vld [vmem:[%s5872_s2 + $0xb20] ss:$8 sps:$4 sm:$0xff]  }
 0x11b   :  { %2835 = vmatpush1.bf16.msra.mxu1 %v4283_v32  ;;  %v4363_v32 = vld [vmem:[%s5872_s2 + $0x534] ss:$8 sps:$4 sm:$0xff]  }
 0x11c   :  { %3153 = vmatpush1.bf16.msra.mxu0 %v4286_v33  ;;  %2836 = vmatprep.subr.bf16.mxu1 %v4291_v34  ;;  %v4366_v33 = vld [vmem:[%s5872_s2 + $0xb34] ss:$8 sps:$4 sm:$0xff]   ;;  %v3346_v34 = vcombine.high %v5641_v24, %v5646_v27 }
 0x11d   :  { %3154 = vmatprep.subr.bf16.mxu0 %v4294_v35  ;;  %v3358_v35 = vcombine.high %v5651_v28, %v5656_v29 }
 0x11f   :  { %2837 = vmatpush1.bf16.msra.mxu1 %v4289_v36  ;;  %v4361_v36 = vld [vmem:[%s5872_s2 + $0x530] ss:$8 sps:$4 sm:$0xff]  }
 0x120   :  { %3155 = vmatpush1.bf16.msra.mxu0 %v4292_v37  ;;  %2838 = vmatprep.subr.bf16.mxu1 %v4297_v38  ;;  %v4364_v37 = vld [vmem:[%s5872_s2 + $0xb30] ss:$8 sps:$4 sm:$0xff]   ;;  %v4369_v38 = vld [vmem:[%s5872_s2 + $0x544] ss:$8 sps:$4 sm:$0xff]  }
 0x121   :  { %3156 = vmatprep.subr.bf16.mxu0 %v4300_v39  ;;  %v4372_v39 = vld [vmem:[%s5872_s2 + $0xb44] ss:$8 sps:$4 sm:$0xff]  }
 0x123   :  { %2839 = vmatpush1.bf16.msra.mxu1 %v4295_v40  ;;  %v4367_v40 = vld [vmem:[%s5872_s2 + $0x540] ss:$8 sps:$4 sm:$0xff]  }
 0x124   :  { %3157 = vmatpush1.bf16.msra.mxu0 %v4298_v41  ;;  %2840 = vmatprep.subr.bf16.mxu1 %v4303_v43  ;;  %v4370_v41 = vld [vmem:[%s5872_s2 + $0xb40] ss:$8 sps:$4 sm:$0xff]   ;;  %v4375_v43 = vld [vmem:[%s5872_s2 + $0x554] ss:$8 sps:$4 sm:$0xff]  }
 0x125   :  { %3158 = vmatprep.subr.bf16.mxu0 %v4306_v44  ;;  %v4378_v44 = vld [vmem:[%s5872_s2 + $0xb54] ss:$8 sps:$4 sm:$0xff]  }
 0x127   :  { %2841 = vmatpush1.bf16.msra.mxu1 %v4301_v48  ;;  %v4373_v48 = vld [vmem:[%s5872_s2 + $0x550] ss:$8 sps:$4 sm:$0xff]  }
 0x128   :  { %3159 = vmatpush1.bf16.msra.mxu0 %v4304_v49  ;;  %2842 = vmatprep.subr.bf16.mxu1 %v4309_v50  ;;  %v4376_v49 = vld [vmem:[%s5872_s2 + $0xb50] ss:$8 sps:$4 sm:$0xff]   ;;  %v4381_v50 = vld [vmem:[%s5872_s2 + $0x564] ss:$8 sps:$4 sm:$0xff]  }
 0x129   :  { %3160 = vmatprep.subr.bf16.mxu0 %v4312_v51  ;;  %v4384_v51 = vld [vmem:[%s5872_s2 + $0xb64] ss:$8 sps:$4 sm:$0xff]  }
 0x12b   :  { %2843 = vmatpush1.bf16.msra.mxu1 %v4307_v52  ;;  %v4379_v52 = vld [vmem:[%s5872_s2 + $0x560] ss:$8 sps:$4 sm:$0xff]  }
 0x12c   :  { %3161 = vmatpush1.bf16.msra.mxu0 %v4310_v42  ;;  %2844 = vmatprep.subr.bf16.mxu1 %v4315_v45  ;;  %v4382_v42 = vld [vmem:[%s5872_s2 + $0xb60] ss:$8 sps:$4 sm:$0xff]   ;;  %v4387_v45 = vld [vmem:[%s5872_s2 + $0x574] ss:$8 sps:$4 sm:$0xff]  }
 0x12d   :  { %3162 = vmatprep.subr.bf16.mxu0 %v4318_v46  ;;  %v4390_v46 = vld [vmem:[%s5872_s2 + $0xb74] ss:$8 sps:$4 sm:$0xff]  }
 0x12f   :  { %2845 = vmatpush1.bf16.msra.mxu1 %v4313_v47  ;;  %v4385_v47 = vld [vmem:[%s5872_s2 + $0x570] ss:$8 sps:$4 sm:$0xff]  }
 0x130   :  { %3163 = vmatpush1.bf16.msra.mxu0 %v4316_v53  ;;  %2846 = vmatprep.subr.bf16.mxu1 %v4321_v54  ;;  %v4388_v53 = vld [vmem:[%s5872_s2 + $0xb70] ss:$8 sps:$4 sm:$0xff]   ;;  %v4393_v54 = vld [vmem:[%s5872_s2 + $0x584] ss:$8 sps:$4 sm:$0xff]  }
 0x131   :  { %3164 = vmatprep.subr.bf16.mxu0 %v4324_v55  ;;  %v4396_v55 = vld [vmem:[%s5872_s2 + $0xb84] ss:$8 sps:$4 sm:$0xff]  }
 0x133   :  { %2847 = vmatpush1.bf16.msra.mxu1 %v4319_v56  ;;  %v4391_v56 = vld [vmem:[%s5872_s2 + $0x580] ss:$8 sps:$4 sm:$0xff]  }
 0x134   :  { %3165 = vmatpush1.bf16.msra.mxu0 %v4322_v57  ;;  %2848 = vmatprep.subr.bf16.mxu1 %v4327_v60  ;;  %v4394_v57 = vld [vmem:[%s5872_s2 + $0xb80] ss:$8 sps:$4 sm:$0xff]   ;;  %v4399_v60 = vld [vmem:[%s5872_s2 + $0x594] ss:$8 sps:$4 sm:$0xff]  }
 0x135   :  { %3166 = vmatprep.subr.bf16.mxu0 %v4330_v61  ;;  %v4402_v61 = vld [vmem:[%s5872_s2 + $0xb94] ss:$8 sps:$4 sm:$0xff]  }
 0x137   :  { %2849 = vmatpush1.bf16.msra.mxu1 %v4325_v0  ;;  %v4397_v0 = vld [vmem:[%s5872_s2 + $0x590] ss:$8 sps:$4 sm:$0xff]  }
 0x138   :  { %3167 = vmatpush1.bf16.msra.mxu0 %v4328_v1  ;;  %2850 = vmatprep.subr.bf16.mxu1 %v4333_v2  ;;  %v4400_v1 = vld [vmem:[%s5872_s2 + $0xb90] ss:$8 sps:$4 sm:$0xff]   ;;  %v4405_v2 = vld [vmem:[%s5872_s2 + $0x5a4] ss:$8 sps:$4 sm:$0xff]  }
 0x139   :  { %3168 = vmatprep.subr.bf16.mxu0 %v4336_v3  ;;  %v4408_v3 = vld [vmem:[%s5872_s2 + $0xba4] ss:$8 sps:$4 sm:$0xff]  }
 0x13b   :  { %2851 = vmatpush1.bf16.msra.mxu1 %v4331_v4  ;;  %v4403_v4 = vld [vmem:[%s5872_s2 + $0x5a0] ss:$8 sps:$4 sm:$0xff]  }
 0x13c   :  { %3169 = vmatpush1.bf16.msra.mxu0 %v4334_v58  ;;  %2852 = vmatprep.subr.bf16.mxu1 %v4339_v59  ;;  %v4406_v58 = vld [vmem:[%s5872_s2 + $0xba0] ss:$8 sps:$4 sm:$0xff]   ;;  %v4411_v59 = vld [vmem:[%s5872_s2 + $0x5b4] ss:$8 sps:$4 sm:$0xff]  }
 0x13d   :  { %3170 = vmatprep.subr.bf16.mxu0 %v4342_v62  ;;  %v4414_v62 = vld [vmem:[%s5872_s2 + $0xbb4] ss:$8 sps:$4 sm:$0xff]  }
 0x13f   :  { %2853 = vmatpush1.bf16.msra.mxu1 %v4337_v63  ;;  %v4409_v63 = vld [vmem:[%s5872_s2 + $0x5b0] ss:$8 sps:$4 sm:$0xff]  }
 0x140   :  { %3171 = vmatpush1.bf16.msra.mxu0 %v4340_v5  ;;  %2875 = vmatprep.subr.bf16.mxu1 %v4345_v6  ;;  %v4412_v5 = vld [vmem:[%s5872_s2 + $0xbb0] ss:$8 sps:$4 sm:$0xff]   ;;  %v4417_v6 = vld [vmem:[%s5872_s2 + $0x5c4] ss:$8 sps:$4 sm:$0xff]  }
 0x141   :  { %3193 = vmatprep.subr.bf16.mxu0 %v4348_v7  ;;  %v4420_v7 = vld [vmem:[%s5872_s2 + $0xbc4] ss:$8 sps:$4 sm:$0xff]  }
 0x142   :  { %2855 = vmatmul.mubr.bf16.vlgmr.msra.gmra.mrb[0].mxu1 %v3343_v9  ;;  %v4418_v9 = vld [vmem:[%s5872_s2 + $0xbc0] ss:$8 sps:$4 sm:$0xff]  }
 0x143   :  { %3173 = vmatmul.mubr.bf16.vlgmr.msra.gmra.mrb[0].mxu0 %v3355_v11  ;;  %2876 = vmatpush1.bf16.msra.mxu1 %v4343_v10  ;;  %v4423_v11 = vld [vmem:[%s5872_s2 + $0x5d4] ss:$8 sps:$4 sm:$0xff]   ;;  %v4429_v10 = vld [vmem:[%s5872_s2 + $0x5e4] ss:$8 sps:$4 sm:$0xff]  }
 0x144   :  { %3194 = vmatpush1.bf16.msra.mxu0 %v4346_v13  ;;  %2877 = vmatprep.subr.bf16.mxu1 %v4351_v14  ;;  %v4432_v13 = vld [vmem:[%s5872_s2 + $0xbe4] ss:$8 sps:$4 sm:$0xff]   ;;  %v4427_v14 = vld [vmem:[%s5872_s2 + $0x5e0] ss:$8 sps:$4 sm:$0xff]  }
 0x145   :  { %3195 = vmatprep.subr.bf16.mxu0 %v4354_v15  ;;  %2864 = vmatprep.mubr.bf16.mxu1 %v3368_v18  ;;  %v4430_v15 = vld [vmem:[%s5872_s2 + $0xbe0] ss:$8 sps:$4 sm:$0xff]   ;;  %v4435_v18 = vld [vmem:[%s5872_s2 + $0x5f4] ss:$8 sps:$4 sm:$0xff]  }
 0x146   :  { %3182 = vmatprep.mubr.bf16.mxu0 %v3380_v19  ;;  %v4438_v19 = vld [vmem:[%s5872_s2 + $0xbf4] ss:$8 sps:$4 sm:$0xff]  }
 0x147   :  { %2878 = vmatpush1.bf16.msra.mxu1 %v4349_v20  ;;  %v4433_v20 = vld [vmem:[%s5872_s2 + $0x5f0] ss:$8 sps:$4 sm:$0xff]  }
 0x148   :  { %3196 = vmatpush1.bf16.msra.mxu0 %v4352_v21  ;;  %2879 = vmatprep.subr.bf16.mxu1 %v4357_v22  ;;  %v4436_v21 = vld [vmem:[%s5872_s2 + $0xbf0] ss:$8 sps:$4 sm:$0xff]   ;;  %v47_v22 = vld [vmem:[%s5873_s1 + $0xe8] sm:$0xff] }
 0x149   :  { %3197 = vmatprep.subr.bf16.mxu0 %v4360_v23  ;;  %v59_v23 = vld [vmem:[%s5873_s1 + $0x148] sm:$0xff] }
 0x14a   :  { %2865 = vmatmul.mubr.bf16.gmra.mrb[4].mxu1 %v3367_v25  ;;  %v53_v25 = vld [vmem:[%s5873_s1 + $0x118] sm:$0xff] }
 0x14b   :  { %3183 = vmatmul.mubr.bf16.gmra.mrb[4].mxu0 %v3379_v26  ;;  %2880 = vmatpush1.bf16.msra.mxu1 %v4355_v30  ;;  %v65_v26 = vld [vmem:[%s5873_s1 + $0x178] sm:$0xff]  ;;  %v3345_v30 = vcombine.low %v5641_v24, %v5646_v27  ;;  %v3256_v24 = vld [vmem:[%s5874_s3] sm:$0x3] }
 0x14c   :  { %3198 = vmatpush1.bf16.msra.mxu0 %v4358_v31  ;;  %2881 = vmatprep.subr.bf16.mxu1 %v4363_v32  ;;  %v3357_v31 = vcombine.low %v5651_v28, %v5656_v29  ;;  %v3370_v32 = vcombine.high %v47_v22, %v59_v23 }
 0x14d   :  { %3199 = vmatprep.subr.bf16.mxu0 %v4366_v33  ;;  %2907 = vmatprep.mubr.bf16.mxu1 %v3346_v34  ;;  %v3382_v33 = vcombine.high %v53_v25, %v65_v26  ;;  %v3369_v34 = vcombine.low %v47_v22, %v59_v23 }
 0x14e   :  { %3225 = vmatprep.mubr.bf16.mxu0 %v3358_v35  ;;  %v3381_v35 = vcombine.low %v53_v25, %v65_v26 }
 0x14f   :  { %2882 = vmatpush1.bf16.msra.mxu1 %v4361_v36  ;;  %v3258_v36 = vlaneseq }
 0x150   :  { %3200 = vmatpush1.bf16.msra.mxu0 %v4364_v37  ;;  %2883 = vmatprep.subr.bf16.mxu1 %v4369_v38 }
 0x151   :  { %3201 = vmatprep.subr.bf16.mxu0 %v4372_v39  ;;  %v3259_v37 = vshrl.u32 %v3258_v36, 7  ;;  %v3247_v39 = vstv %s5875_s0 }
 0x153   :  { %2884 = vmatpush1.bf16.msra.mxu1 %v4367_v40  ;;  %v3260_v38 = vsub.s32 0, %v3259_v37  ;;  %v3264_v27 = vsub.s32 1, %v3259_v37 }
 0x154   :  { %3202 = vmatpush1.bf16.msra.mxu0 %v4370_v41  ;;  %2885 = vmatprep.subr.bf16.mxu1 %v4375_v43 }
 0x155   :  { %3203 = vmatprep.subr.bf16.mxu0 %v4378_v44  ;;  %v3261_v41 = vrot.slane %v3256_v24, %v3260_v38 }
 0x157   :  { %2886 = vmatpush1.bf16.msra.mxu1 %v4373_v48 }
 0x158   :  { %3204 = vmatpush1.bf16.msra.mxu0 %v4376_v49  ;;  %2887 = vmatprep.subr.bf16.mxu1 %v4381_v50  ;;  %v3265_v49 = vrot.slane %v3256_v24, %v3264_v27 }
 0x159   :  { %3205 = vmatprep.subr.bf16.mxu0 %v4384_v51 }
 0x15b   :  { %2888 = vmatpush1.bf16.msra.mxu1 %v4379_v52 }
 0x15c   :  { %3206 = vmatpush1.bf16.msra.mxu0 %v4382_v42  ;;  %2889 = vmatprep.subr.bf16.mxu1 %v4387_v45 }
 0x15d   :  { %3207 = vmatprep.subr.bf16.mxu0 %v4390_v46 }
 0x15f   :  { %2890 = vmatpush1.bf16.msra.mxu1 %v4385_v47 }
 0x160   :  { %3208 = vmatpush1.bf16.msra.mxu0 %v4388_v53  ;;  %2891 = vmatprep.subr.bf16.mxu1 %v4393_v54 }
 0x161   :  { %3209 = vmatprep.subr.bf16.mxu0 %v4396_v55 }
 0x163   :  { %2892 = vmatpush1.bf16.msra.mxu1 %v4391_v56 }
 0x164   :  { %3210 = vmatpush1.bf16.msra.mxu0 %v4394_v57  ;;  %2893 = vmatprep.subr.bf16.mxu1 %v4399_v60 }
 0x165   :  { %3211 = vmatprep.subr.bf16.mxu0 %v4402_v61 }
 0x167   :  { %2894 = vmatpush1.bf16.msra.mxu1 %v4397_v0 }
 0x168   :  { %3212 = vmatpush1.bf16.msra.mxu0 %v4400_v1  ;;  %2895 = vmatprep.subr.bf16.mxu1 %v4405_v2 }
 0x169   :  { %3213 = vmatprep.subr.bf16.mxu0 %v4408_v3 }
 0x16b   :  { %2896 = vmatpush1.bf16.msra.mxu1 %v4403_v4 }
 0x16c   :  { %3214 = vmatpush1.bf16.msra.mxu0 %v4406_v58  ;;  %2897 = vmatprep.subr.bf16.mxu1 %v4411_v59 }
 0x16d   :  { %3215 = vmatprep.subr.bf16.mxu0 %v4414_v62 }
 0x16f   :  { %2898 = vmatpush1.bf16.msra.mxu1 %v4409_v63 }
 0x170   :  { %3216 = vmatpush1.bf16.msra.mxu0 %v4412_v5  ;;  %2899 = vmatprep.subr.bf16.mxu1 %v4417_v6 }
 0x171   :  { %3217 = vmatprep.subr.bf16.mxu0 %v4420_v7 }
 0x173   :  { %2900 = vmatpush1.bf16.msra.mxu1 %v4415_v8 }
 0x174   :  { %3218 = vmatpush1.bf16.msra.mxu0 %v4418_v9  ;;  %2901 = vmatprep.subr.bf16.mxu1 %v4423_v11 }
 0x175   :  { %3219 = vmatprep.subr.bf16.mxu0 %v4426_v12 }
 0x177   :  { %2902 = vmatpush1.bf16.msra.mxu1 %v4421_v16 }
 0x178   :  { %3220 = vmatpush1.bf16.msra.mxu0 %v4424_v17  ;;  %2903 = vmatprep.subr.bf16.mxu1 %v4429_v10 }
 0x179   :  { %3221 = vmatprep.subr.bf16.mxu0 %v4432_v13 }
 0x17b   :  { %2904 = vmatpush1.bf16.msra.mxu1 %v4427_v14 }
 0x17c   :  { %3222 = vmatpush1.bf16.msra.mxu0 %v4430_v15  ;;  %2905 = vmatprep.subr.bf16.mxu1 %v4435_v18 }
 0x17d   :  { %3223 = vmatprep.subr.bf16.mxu0 %v4438_v19 }
 0x17f   :  { %2906 = vmatpush1.bf16.msra.mxu1 %v4433_v20 }
 0x180   :  { %3224 = vmatpush1.bf16.msra.mxu0 %v4436_v21 }
 0x182   :  { %2908 = vmatmul.mubr.bf16.vlgmr.msra.gmra.mrb[0].mxu1 %v3345_v30 }
 0x183   :  { %3226 = vmatmul.mubr.bf16.vlgmr.msra.gmra.mrb[0].mxu0 %v3357_v31  ;;  %2917 = vmatprep.mubr.bf16.mxu1 %v3370_v32 }
 0x184   :  { %3235 = vmatprep.mubr.bf16.mxu0 %v3382_v33 }
 0x18a   :  { %2918 = vmatmul.mubr.bf16.gmra.mrb[4].mxu1 %v3369_v34 }
 0x18b   :  { %3236 = vmatmul.mubr.bf16.gmra.mrb[4].mxu0 %v3381_v35 }
 0x255   :  { %v2909_v28 = vpop.f32.mrb[0].mxu1 }
 0x256   :  { %v3227_v29 = vpop.f32.mrb[0].mxu0  ;;  %v2911_v43 = vpop.f32.mrb[1].mxu1 }
 0x257   :  { %v3775_v40 = vadd.f32 %v3227_v29, %v2909_v28  ;;  %v3229_v44 = vpop.f32.mrb[1].mxu0  ;;  %v2913_v50 = vpop.f32.mrb[2].mxu1 }
 0x258   :  { %v3776_v48 = vadd.f32 %v3229_v44, %v2911_v43  ;;  %v3231_v51 = vpop.f32.mrb[2].mxu0  ;;  %v2915_v45 = vpop.f32.mrb[3].mxu1 }
 0x259   :  { %v3248_v52 = vmul.f32 %v3775_v40, %v3247_v39  ;;  %v3777_v42 = vadd.f32 %v3231_v51, %v2913_v50  ;;  %v3233_v46 = vpop.f32.mrb[3].mxu0 }
 0x25a   :  { %v3249_v47 = vmul.f32 %v3776_v48, %v3247_v39  ;;  %v3778_v53 = vadd.f32 %v3233_v46, %v2915_v45 }
 0x25b   :  { %v3268_v54 = vadd.f32 %v3261_v41, %v3248_v52  ;;  %v3250_v55 = vmul.f32 %v3777_v42, %v3247_v39 }
 0x25c   :  { %v3269_v56 = vadd.f32 %v3265_v49, %v3249_v47  ;;  %v3251_v57 = vmul.f32 %v3778_v53, %v3247_v39 }
 0x25d   :  { %vm3276_vm1 = vcmp.gt.f32.partialorder %v3268_v54, 0.0  ;;  %v3284_v60 = vmul.f32 0.2, %v3268_v54  ;;  %v3270_v61 = vadd.f32 %v3261_v41, %v3250_v55  ;;  %v2919_v2 = vpop.f32.mrb[4].mxu1 }
 0x25e   :  { %vm3277_vm3 = vcmp.gt.f32.partialorder %v3269_v56, 0.0  ;;  %v3285_v0 = vmul.f32 0.2, %v3269_v56  ;;  %v3271_v1 = vadd.f32 %v3265_v49, %v3251_v57  ;;  %v3237_v3 = vpop.f32.mrb[4].mxu0  ;;  %v2921_v62 = vpop.f32.mrb[5].mxu1 }
 0x25f   :  { %v3292_v4 = vsel %vm3276_vm1, %v3268_v54, %v3284_v60  ;;  %vm3278_vm4 = vcmp.gt.f32.partialorder %v3270_v61, 0.0  ;;  %v3286_v58 = vmul.f32 0.2, %v3270_v61  ;;  %v3779_v59 = vadd.f32 %v3237_v3, %v2919_v2  ;;  %v3239_v63 = vpop.f32.mrb[5].mxu0  ;;  %v2923_v9 = vpop.f32.mrb[6].mxu1 }
 0x260   :  { %v3293_v5 = vsel %vm3277_vm3, %v3269_v56, %v3285_v0  ;;  %vm3279_vm6 = vcmp.gt.f32.partialorder %v3271_v1, 0.0  ;;  %v3287_v7 = vmul.f32 0.2, %v3271_v1  ;;  %v3780_v8 = vadd.f32 %v3239_v63, %v2921_v62  ;;  %v3241_v11 = vpop.f32.mrb[6].mxu0  ;;  %v2925_v13 = vpop.f32.mrb[7].mxu1 }
 0x261   :  { %v3771_v12 = vpack.c.bf16 %v3293_v5, %v3292_v4  ;;  %v3294_v16 = vsel %vm3278_vm4, %v3270_v61, %v3286_v58  ;;  %v3252_v17 = vmul.f32 %v3779_v59, %v3247_v39  ;;  %v3781_v10 = vadd.f32 %v3241_v11, %v2923_v9  ;;  %v3243_v14 = vpop.f32.mrb[7].mxu0 }
 0x262   :  { %v3295_v15 = vsel %vm3279_vm6, %v3271_v1, %v3287_v7  ;;  %v3253_v18 = vmul.f32 %v3780_v8, %v3247_v39  ;;  %v3782_v19 = vadd.f32 %v3243_v14, %v2925_v13 }
 0x263   :  { %3327 = vst.msk [vmem:[%s5876_s4] sm:$0xff] %vm5848_vm5, %v3771_v12  ;;  %v3772_v20 = vpack.c.bf16 %v3295_v15, %v3294_v16  ;;  %v3272_v21 = vadd.f32 %v3261_v41, %v3252_v17  ;;  %v3254_v22 = vmul.f32 %v3781_v10, %v3247_v39 }
 0x264   :  { %v3273_v23 = vadd.f32 %v3265_v49, %v3253_v18  ;;  %v3255_v25 = vmul.f32 %v3782_v19, %v3247_v39 }
 0x265   :  { %3328 = vst.msk [vmem:[%s5876_s4 + $0x8] sm:$0xff] %vm5848_vm5, %v3772_v20  ;;  %vm3280_vm7 = vcmp.gt.f32.partialorder %v3272_v21, 0.0  ;;  %v3288_v26 = vmul.f32 0.2, %v3272_v21  ;;  %v3274_v30 = vadd.f32 %v3261_v41, %v3254_v22 }
 0x266   :  { %vm3281_vm8 = vcmp.gt.f32.partialorder %v3273_v23, 0.0  ;;  %v3289_v31 = vmul.f32 0.2, %v3273_v23  ;;  %v3275_v32 = vadd.f32 %v3265_v49, %v3255_v25 }
 0x267   :  { %v3296_v33 = vsel %vm3280_vm7, %v3272_v21, %v3288_v26  ;;  %vm3282_vm9 = vcmp.gt.f32.partialorder %v3274_v30, 0.0  ;;  %v3290_v34 = vmul.f32 0.2, %v3274_v30 }
 0x268   :  { %v3297_v35 = vsel %vm3281_vm8, %v3273_v23, %v3289_v31  ;;  %vm3283_vm10 = vcmp.gt.f32.partialorder %v3275_v32, 0.0  ;;  %v3291_v36 = vmul.f32 0.2, %v3275_v32 }
 0x269   :  { %v3773_v37 = vpack.c.bf16 %v3297_v35, %v3296_v33  ;;  %v3298_v38 = vsel %vm3282_vm9, %v3274_v30, %v3290_v34 }
 0x26a   :  { %v3299_v24 = vsel %vm3283_vm10, %v3275_v32, %v3291_v36 }
 0x26b   :  { %3329 = vst.msk [vmem:[%s5876_s4 + $0x10] sm:$0xff] %vm5848_vm5, %v3773_v37  ;;  %v3774_v27 = vpack.c.bf16 %v3299_v24, %v3298_v38 }
 0x26d   :  { %3330 = vst.msk [vmem:[%s5876_s4 + $0x18] sm:$0xff] %vm5848_vm5, %v3774_v27 }

// kernel: discriminator_forward.10
= control target key start
LH: loop header
LB: loop body
LE: loop exit
PB: predicated region body
PF: predicated region fallthrough
CT: control target
= control target key end

     0   :  { %vm2942_vm1 = vcmask 1043456   ;;  %vm2943_vm2 = vcmask 523268   ;;  %s5284_s2 = inlined_call_operand.vmem [shape: bf16[3072,192], index: 2, kind: input, shape index: {}]   ;;  %s5285_s1 = inlined_call_operand.vmem [shape: bf16[8,3072], index: 1, kind: input, shape index: {}]   ;;  %s5286_s3 = inlined_call_operand.vmem [shape: f32[1,192], index: 3, kind: input, shape index: {}]   ;;  %s5287_s0 = inlined_call_operand.<no memory space> [shape: f32[1], index: 0, kind: input, shape index: {}]   ;;  %s5288_s4 = inlined_call_operand.vmem [shape: bf16[8,192], index: 4, kind: output, shape index: {}]  }
   0x1   :  { %v3402_v0 = vld [vmem:[%s5284_s2 + $0x4] ss:$8 sps:$4 sm:$0xff]   ;;  %v3406_v2 = vld [vmem:[%s5284_s2] ss:$8 sps:$4 sm:$0xff]   ;;  %v3408_v4 = vld [vmem:[%s5284_s2 + $0x14] ss:$8 sps:$4 sm:$0xff]  }
   0x2   :  { %v3404_v1 = vld [vmem:[%s5284_s2 + $0x604] ss:$8 sps:$4 sm:$0xff]   ;;  %2418 = vmatprep.subr.bf16.mxu1 %v3402_v0  ;;  %v3407_v3 = vld [vmem:[%s5284_s2 + $0x600] ss:$8 sps:$4 sm:$0xff]   ;;  %v3410_v5 = vld [vmem:[%s5284_s2 + $0x614] ss:$8 sps:$4 sm:$0xff]  }
   0x3   :  { %2664 = vmatprep.subr.bf16.mxu0 %v3404_v1  ;;  %2419 = vmatpush1.bf16.msra.mxu1 %v3406_v2  ;;  %v3412_v6 = vld [vmem:[%s5284_s2 + $0x10] ss:$8 sps:$4 sm:$0xff]   ;;  %v3414_v8 = vld [vmem:[%s5284_s2 + $0x24] ss:$8 sps:$4 sm:$0xff]   ;;  %v3418_v10 = vld [vmem:[%s5284_s2 + $0x20] ss:$8 sps:$4 sm:$0xff]  }
   0x4   :  { %2665 = vmatpush1.bf16.msra.mxu0 %v3407_v3  ;;  %2420 = vmatprep.subr.bf16.mxu1 %v3408_v4  ;;  %v3413_v7 = vld [vmem:[%s5284_s2 + $0x610] ss:$8 sps:$4 sm:$0xff]   ;;  %v3416_v9 = vld [vmem:[%s5284_s2 + $0x624] ss:$8 sps:$4 sm:$0xff]   ;;  %v3419_v11 = vld [vmem:[%s5284_s2 + $0x620] ss:$8 sps:$4 sm:$0xff]  }
   0x5   :  { %2666 = vmatprep.subr.bf16.mxu0 %v3410_v5  ;;  %v3420_v12 = vld [vmem:[%s5284_s2 + $0x34] ss:$8 sps:$4 sm:$0xff]   ;;  %v3424_v14 = vld [vmem:[%s5284_s2 + $0x30] ss:$8 sps:$4 sm:$0xff]   ;;  %v3426_v16 = vld [vmem:[%s5284_s2 + $0x44] ss:$8 sps:$4 sm:$0xff]  }
   0x6   :  { %v3422_v13 = vld [vmem:[%s5284_s2 + $0x634] ss:$8 sps:$4 sm:$0xff]   ;;  %v3425_v15 = vld [vmem:[%s5284_s2 + $0x630] ss:$8 sps:$4 sm:$0xff]   ;;  %v3428_v17 = vld [vmem:[%s5284_s2 + $0x644] ss:$8 sps:$4 sm:$0xff]  }
   0x7   :  { %2421 = vmatpush1.bf16.msra.mxu1 %v3412_v6  ;;  %v3430_v18 = vld [vmem:[%s5284_s2 + $0x40] ss:$8 sps:$4 sm:$0xff]   ;;  %v3432_v20 = vld [vmem:[%s5284_s2 + $0x54] ss:$8 sps:$4 sm:$0xff]   ;;  %v3436_v22 = vld [vmem:[%s5284_s2 + $0x50] ss:$8 sps:$4 sm:$0xff]  }
   0x8   :  { %2667 = vmatpush1.bf16.msra.mxu0 %v3413_v7  ;;  %2422 = vmatprep.subr.bf16.mxu1 %v3414_v8  ;;  %v3431_v19 = vld [vmem:[%s5284_s2 + $0x640] ss:$8 sps:$4 sm:$0xff]   ;;  %v3434_v21 = vld [vmem:[%s5284_s2 + $0x654] ss:$8 sps:$4 sm:$0xff]   ;;  %v3437_v23 = vld [vmem:[%s5284_s2 + $0x650] ss:$8 sps:$4 sm:$0xff]  }
   0x9   :  { %2668 = vmatprep.subr.bf16.mxu0 %v3416_v9  ;;  %v3438_v24 = vld [vmem:[%s5284_s2 + $0x64] ss:$8 sps:$4 sm:$0xff]   ;;  %v3442_v26 = vld [vmem:[%s5284_s2 + $0x60] ss:$8 sps:$4 sm:$0xff]   ;;  %v3444_v28 = vld [vmem:[%s5284_s2 + $0x74] ss:$8 sps:$4 sm:$0xff]  }
   0xa   :  { %v3440_v25 = vld [vmem:[%s5284_s2 + $0x664] ss:$8 sps:$4 sm:$0xff]   ;;  %v3443_v27 = vld [vmem:[%s5284_s2 + $0x660] ss:$8 sps:$4 sm:$0xff]   ;;  %v3446_v29 = vld [vmem:[%s5284_s2 + $0x674] ss:$8 sps:$4 sm:$0xff]  }
   0xb   :  { %2423 = vmatpush1.bf16.msra.mxu1 %v3418_v10  ;;  %v3448_v30 = vld [vmem:[%s5284_s2 + $0x70] ss:$8 sps:$4 sm:$0xff]   ;;  %v3450_v32 = vld [vmem:[%s5284_s2 + $0x84] ss:$8 sps:$4 sm:$0xff]   ;;  %v3454_v34 = vld [vmem:[%s5284_s2 + $0x80] ss:$8 sps:$4 sm:$0xff]  }
   0xc   :  { %2669 = vmatpush1.bf16.msra.mxu0 %v3419_v11  ;;  %2424 = vmatprep.subr.bf16.mxu1 %v3420_v12  ;;  %v3449_v31 = vld [vmem:[%s5284_s2 + $0x670] ss:$8 sps:$4 sm:$0xff]   ;;  %v3452_v33 = vld [vmem:[%s5284_s2 + $0x684] ss:$8 sps:$4 sm:$0xff]   ;;  %v3455_v35 = vld [vmem:[%s5284_s2 + $0x680] ss:$8 sps:$4 sm:$0xff]  }
   0xd   :  { %2670 = vmatprep.subr.bf16.mxu0 %v3422_v13  ;;  %v3456_v36 = vld [vmem:[%s5284_s2 + $0x94] ss:$8 sps:$4 sm:$0xff]   ;;  %v3460_v38 = vld [vmem:[%s5284_s2 + $0x90] ss:$8 sps:$4 sm:$0xff]   ;;  %v3462_v40 = vld [vmem:[%s5284_s2 + $0xa4] ss:$8 sps:$4 sm:$0xff]  }
   0xe   :  { %v3458_v37 = vld [vmem:[%s5284_s2 + $0x694] ss:$8 sps:$4 sm:$0xff]   ;;  %v3461_v39 = vld [vmem:[%s5284_s2 + $0x690] ss:$8 sps:$4 sm:$0xff]   ;;  %v3464_v41 = vld [vmem:[%s5284_s2 + $0x6a4] ss:$8 sps:$4 sm:$0xff]  }
   0xf   :  { %2425 = vmatpush1.bf16.msra.mxu1 %v3424_v14  ;;  %v3466_v42 = vld [vmem:[%s5284_s2 + $0xa0] ss:$8 sps:$4 sm:$0xff]   ;;  %v3468_v44 = vld [vmem:[%s5284_s2 + $0xb4] ss:$8 sps:$4 sm:$0xff]   ;;  %v3472_v47 = vld [vmem:[%s5284_s2 + $0xb0] ss:$8 sps:$4 sm:$0xff]  }
  0x10   :  { %2671 = vmatpush1.bf16.msra.mxu0 %v3425_v15  ;;  %2426 = vmatprep.subr.bf16.mxu1 %v3426_v16  ;;  %v3467_v43 = vld [vmem:[%s5284_s2 + $0x6a0] ss:$8 sps:$4 sm:$0xff]   ;;  %v3470_v45 = vld [vmem:[%s5284_s2 + $0x6b4] ss:$8 sps:$4 sm:$0xff]   ;;  %v3473_v49 = vld [vmem:[%s5284_s2 + $0x6b0] ss:$8 sps:$4 sm:$0xff]  }
  0x11   :  { %2672 = vmatprep.subr.bf16.mxu0 %v3428_v17  ;;  %v18_v46 = vld [vmem:[%s5285_s1] sm:$0xff]  ;;  %v24_v50 = vld [vmem:[%s5285_s1 + $0x30] sm:$0xff]  ;;  %vm2944_vm4 = vmor %vm2943_vm2, %vm2942_vm1 }
  0x12   :  { %v2951_v48 = vcombine.high %v18_v46, %v18_v46  ;;  %v3474_v51 = vld [vmem:[%s5284_s2 + $0xc4] ss:$8 sps:$4 sm:$0xff]   ;;  %v2963_v53 = vcombine.high %v24_v50, %v24_v50  ;;  %v3478_v54 = vld [vmem:[%s5284_s2 + $0xc0] ss:$8 sps:$4 sm:$0xff]   ;;  %v3480_v56 = vld [vmem:[%s5284_s2 + $0xd4] ss:$8 sps:$4 sm:$0xff]   ;;  %v2950_v6 = vcombine.low %v18_v46, %v18_v46  ;;  %v2962_v7 = vcombine.low %v24_v50, %v24_v50 }
  0x13   :  { %2427 = vmatpush1.bf16.msra.mxu1 %v3430_v18  ;;  %v3476_v52 = vld [vmem:[%s5284_s2 + $0x6c4] ss:$8 sps:$4 sm:$0xff]   ;;  %v3479_v55 = vld [vmem:[%s5284_s2 + $0x6c0] ss:$8 sps:$4 sm:$0xff]   ;;  %v3482_v57 = vld [vmem:[%s5284_s2 + $0x6d4] ss:$8 sps:$4 sm:$0xff]  }
  0x14   :  { %2673 = vmatpush1.bf16.msra.mxu0 %v3431_v19  ;;  %2428 = vmatprep.subr.bf16.mxu1 %v3432_v20  ;;  %v3484_v58 = vld [vmem:[%s5284_s2 + $0xd0] ss:$8 sps:$4 sm:$0xff]   ;;  %v3486_v60 = vld [vmem:[%s5284_s2 + $0xe4] ss:$8 sps:$4 sm:$0xff]   ;;  %v3490_v62 = vld [vmem:[%s5284_s2 + $0xe0] ss:$8 sps:$4 sm:$0xff]  }
  0x15   :  { %2674 = vmatprep.subr.bf16.mxu0 %v3434_v21  ;;  %2450 = vmatprep.mubr.bf16.mxu1 %v2951_v48  ;;  %v3485_v59 = vld [vmem:[%s5284_s2 + $0x6d0] ss:$8 sps:$4 sm:$0xff]   ;;  %v3488_v61 = vld [vmem:[%s5284_s2 + $0x6e4] ss:$8 sps:$4 sm:$0xff]   ;;  %v3491_v63 = vld [vmem:[%s5284_s2 + $0x6e0] ss:$8 sps:$4 sm:$0xff]  }
  0x16   :  { %2696 = vmatprep.mubr.bf16.mxu0 %v2963_v53  ;;  %v3492_v0 = vld [vmem:[%s5284_s2 + $0xf4] ss:$8 sps:$4 sm:$0xff]   ;;  %v3496_v2 = vld [vmem:[%s5284_s2 + $0xf0] ss:$8 sps:$4 sm:$0xff]   ;;  %v3502_v4 = vld [vmem:[%s5284_s2 + $0x104] ss:$8 sps:$4 sm:$0xff]  }
  0x17   :  { %2429 = vmatpush1.bf16.msra.mxu1 %v3436_v22  ;;  %v3494_v1 = vld [vmem:[%s5284_s2 + $0x6f4] ss:$8 sps:$4 sm:$0xff]   ;;  %v3497_v3 = vld [vmem:[%s5284_s2 + $0x6f0] ss:$8 sps:$4 sm:$0xff]   ;;  %v3507_v5 = vld [vmem:[%s5284_s2 + $0x704] ss:$8 sps:$4 sm:$0xff]  }
  0x18   :  { %2675 = vmatpush1.bf16.msra.mxu0 %v3437_v23  ;;  %2430 = vmatprep.subr.bf16.mxu1 %v3438_v24  ;;  %v3500_v8 = vld [vmem:[%s5284_s2 + $0x100] ss:$8 sps:$4 sm:$0xff]   ;;  %v3510_v10 = vld [vmem:[%s5284_s2 + $0x114] ss:$8 sps:$4 sm:$0xff]   ;;  %v3508_v12 = vld [vmem:[%s5284_s2 + $0x110] ss:$8 sps:$4 sm:$0xff]  }
  0x19   :  { %2676 = vmatprep.subr.bf16.mxu0 %v3440_v25  ;;  %v3505_v9 = vld [vmem:[%s5284_s2 + $0x700] ss:$8 sps:$4 sm:$0xff]   ;;  %v3513_v11 = vld [vmem:[%s5284_s2 + $0x714] ss:$8 sps:$4 sm:$0xff]   ;;  %v3511_v13 = vld [vmem:[%s5284_s2 + $0x710] ss:$8 sps:$4 sm:$0xff]  }
  0x1a   :  { %v3516_v14 = vld [vmem:[%s5284_s2 + $0x124] ss:$8 sps:$4 sm:$0xff]   ;;  %v3514_v16 = vld [vmem:[%s5284_s2 + $0x120] ss:$8 sps:$4 sm:$0xff]   ;;  %v3522_v18 = vld [vmem:[%s5284_s2 + $0x134] ss:$8 sps:$4 sm:$0xff]  }
  0x1b   :  { %2431 = vmatpush1.bf16.msra.mxu1 %v3442_v26  ;;  %v3519_v15 = vld [vmem:[%s5284_s2 + $0x724] ss:$8 sps:$4 sm:$0xff]   ;;  %v3517_v17 = vld [vmem:[%s5284_s2 + $0x720] ss:$8 sps:$4 sm:$0xff]   ;;  %v3525_v19 = vld [vmem:[%s5284_s2 + $0x734] ss:$8 sps:$4 sm:$0xff]  }
  0x1c   :  { %2677 = vmatpush1.bf16.msra.mxu0 %v3443_v27  ;;  %2432 = vmatprep.subr.bf16.mxu1 %v3444_v28  ;;  %v3520_v20 = vld [vmem:[%s5284_s2 + $0x130] ss:$8 sps:$4 sm:$0xff]   ;;  %v3528_v22 = vld [vmem:[%s5284_s2 + $0x144] ss:$8 sps:$4 sm:$0xff]   ;;  %v3526_v24 = vld [vmem:[%s5284_s2 + $0x140] ss:$8 sps:$4 sm:$0xff]  }
  0x1d   :  { %2678 = vmatprep.subr.bf16.mxu0 %v3446_v29  ;;  %v3523_v21 = vld [vmem:[%s5284_s2 + $0x730] ss:$8 sps:$4 sm:$0xff]   ;;  %v3531_v23 = vld [vmem:[%s5284_s2 + $0x744] ss:$8 sps:$4 sm:$0xff]   ;;  %v3529_v25 = vld [vmem:[%s5284_s2 + $0x740] ss:$8 sps:$4 sm:$0xff]  }
  0x1e   :  { %v3534_v26 = vld [vmem:[%s5284_s2 + $0x154] ss:$8 sps:$4 sm:$0xff]   ;;  %v3532_v28 = vld [vmem:[%s5284_s2 + $0x150] ss:$8 sps:$4 sm:$0xff]   ;;  %v3564_v50 = vld [vmem:[%s5284_s2 + $0x1a4] ss:$8 sps:$4 sm:$0xff]  }
  0x1f   :  { %2433 = vmatpush1.bf16.msra.mxu1 %v3448_v30  ;;  %v3537_v27 = vld [vmem:[%s5284_s2 + $0x754] ss:$8 sps:$4 sm:$0xff]   ;;  %v3535_v29 = vld [vmem:[%s5284_s2 + $0x750] ss:$8 sps:$4 sm:$0xff]   ;;  %v3540_v30 = vld [vmem:[%s5284_s2 + $0x164] ss:$8 sps:$4 sm:$0xff]  }
  0x20   :  { %2679 = vmatpush1.bf16.msra.mxu0 %v3449_v31  ;;  %2434 = vmatprep.subr.bf16.mxu1 %v3450_v32  ;;  %v3543_v31 = vld [vmem:[%s5284_s2 + $0x764] ss:$8 sps:$4 sm:$0xff]   ;;  %v3558_v46 = vld [vmem:[%s5284_s2 + $0x194] ss:$8 sps:$4 sm:$0xff]   ;;  %v3556_v48 = vld [vmem:[%s5284_s2 + $0x190] ss:$8 sps:$4 sm:$0xff]  }
  0x21   :  { %2680 = vmatprep.subr.bf16.mxu0 %v3452_v33  ;;  %v4306_v32 = vld [vmem:[%s5285_s1 + $0x8] sm:$0xff] }
  0x22   :  { %v3538_v33 = vld [vmem:[%s5284_s2 + $0x160] ss:$8 sps:$4 sm:$0xff]  }
  0x23   :  { %2435 = vmatpush1.bf16.msra.mxu1 %v3454_v34  ;;  %v3541_v34 = vld [vmem:[%s5284_s2 + $0x760] ss:$8 sps:$4 sm:$0xff]  }
  0x24   :  { %2681 = vmatpush1.bf16.msra.mxu0 %v3455_v35  ;;  %2436 = vmatprep.subr.bf16.mxu1 %v3456_v36  ;;  %v2953_v35 = vcombine.high %v4306_v32, %v4306_v32  ;;  %v4319_v36 = vld [vmem:[%s5285_s1 + $0x38] sm:$0xff]  ;;  %v3565_v53 = vld [vmem:[%s5284_s2 + $0x7a0] ss:$8 sps:$4 sm:$0xff]  }
  0x25   :  { %2682 = vmatprep.subr.bf16.mxu0 %v3458_v37  ;;  %v3546_v37 = vld [vmem:[%s5284_s2 + $0x174] ss:$8 sps:$4 sm:$0xff]  }
  0x27   :  { %2437 = vmatpush1.bf16.msra.mxu1 %v3460_v38  ;;  %v2965_v38 = vcombine.high %v4319_v36, %v4319_v36 }
  0x28   :  { %2683 = vmatpush1.bf16.msra.mxu0 %v3461_v39  ;;  %2438 = vmatprep.subr.bf16.mxu1 %v3462_v40  ;;  %v3549_v39 = vld [vmem:[%s5284_s2 + $0x774] ss:$8 sps:$4 sm:$0xff]   ;;  %v3544_v40 = vld [vmem:[%s5284_s2 + $0x170] ss:$8 sps:$4 sm:$0xff]  }
  0x29   :  { %2684 = vmatprep.subr.bf16.mxu0 %v3464_v41  ;;  %v3547_v41 = vld [vmem:[%s5284_s2 + $0x770] ss:$8 sps:$4 sm:$0xff]  }
  0x2b   :  { %2439 = vmatpush1.bf16.msra.mxu1 %v3466_v42  ;;  %v3552_v42 = vld [vmem:[%s5284_s2 + $0x184] ss:$8 sps:$4 sm:$0xff]  }
  0x2c   :  { %2685 = vmatpush1.bf16.msra.mxu0 %v3467_v43  ;;  %2440 = vmatprep.subr.bf16.mxu1 %v3468_v44  ;;  %v3555_v43 = vld [vmem:[%s5284_s2 + $0x784] ss:$8 sps:$4 sm:$0xff]   ;;  %v3550_v44 = vld [vmem:[%s5284_s2 + $0x180] ss:$8 sps:$4 sm:$0xff]  }
  0x2d   :  { %2686 = vmatprep.subr.bf16.mxu0 %v3470_v45  ;;  %v3553_v45 = vld [vmem:[%s5284_s2 + $0x780] ss:$8 sps:$4 sm:$0xff]  }
  0x2f   :  { %2441 = vmatpush1.bf16.msra.mxu1 %v3472_v47  ;;  %v3561_v47 = vld [vmem:[%s5284_s2 + $0x794] ss:$8 sps:$4 sm:$0xff]  }
  0x30   :  { %2687 = vmatpush1.bf16.msra.mxu0 %v3473_v49  ;;  %2442 = vmatprep.subr.bf16.mxu1 %v3474_v51  ;;  %v3559_v49 = vld [vmem:[%s5284_s2 + $0x790] ss:$8 sps:$4 sm:$0xff]   ;;  %v3567_v51 = vld [vmem:[%s5284_s2 + $0x7a4] ss:$8 sps:$4 sm:$0xff]  }
  0x31   :  { %2688 = vmatprep.subr.bf16.mxu0 %v3476_v52  ;;  %v3562_v52 = vld [vmem:[%s5284_s2 + $0x1a0] ss:$8 sps:$4 sm:$0xff]  }
  0x33   :  { %2443 = vmatpush1.bf16.msra.mxu1 %v3478_v54  ;;  %v3570_v54 = vld [vmem:[%s5284_s2 + $0x1b4] ss:$8 sps:$4 sm:$0xff]  }
  0x34   :  { %2689 = vmatpush1.bf16.msra.mxu0 %v3479_v55  ;;  %2444 = vmatprep.subr.bf16.mxu1 %v3480_v56  ;;  %v3573_v55 = vld [vmem:[%s5284_s2 + $0x7b4] ss:$8 sps:$4 sm:$0xff]   ;;  %v3568_v56 = vld [vmem:[%s5284_s2 + $0x1b0] ss:$8 sps:$4 sm:$0xff]  }
  0x35   :  { %2690 = vmatprep.subr.bf16.mxu0 %v3482_v57  ;;  %v3571_v57 = vld [vmem:[%s5284_s2 + $0x7b0] ss:$8 sps:$4 sm:$0xff]  }
  0x37   :  { %2445 = vmatpush1.bf16.msra.mxu1 %v3484_v58  ;;  %v3576_v58 = vld [vmem:[%s5284_s2 + $0x1c4] ss:$8 sps:$4 sm:$0xff]  }
  0x38   :  { %2691 = vmatpush1.bf16.msra.mxu0 %v3485_v59  ;;  %2446 = vmatprep.subr.bf16.mxu1 %v3486_v60  ;;  %v3579_v59 = vld [vmem:[%s5284_s2 + $0x7c4] ss:$8 sps:$4 sm:$0xff]   ;;  %v3574_v60 = vld [vmem:[%s5284_s2 + $0x1c0] ss:$8 sps:$4 sm:$0xff]  }
  0x39   :  { %2692 = vmatprep.subr.bf16.mxu0 %v3488_v61  ;;  %v3577_v61 = vld [vmem:[%s5284_s2 + $0x7c0] ss:$8 sps:$4 sm:$0xff]  }
  0x3b   :  { %2447 = vmatpush1.bf16.msra.mxu1 %v3490_v62  ;;  %v3582_v62 = vld [vmem:[%s5284_s2 + $0x1d4] ss:$8 sps:$4 sm:$0xff]  }
  0x3c   :  { %2693 = vmatpush1.bf16.msra.mxu0 %v3491_v63  ;;  %2448 = vmatprep.subr.bf16.mxu1 %v3492_v0  ;;  %v3585_v63 = vld [vmem:[%s5284_s2 + $0x7d4] ss:$8 sps:$4 sm:$0xff]   ;;  %v3580_v0 = vld [vmem:[%s5284_s2 + $0x1d0] ss:$8 sps:$4 sm:$0xff]  }
  0x3d   :  { %2694 = vmatprep.subr.bf16.mxu0 %v3494_v1  ;;  %v3583_v1 = vld [vmem:[%s5284_s2 + $0x7d0] ss:$8 sps:$4 sm:$0xff]  }
  0x3f   :  { %2449 = vmatpush1.bf16.msra.mxu1 %v3496_v2  ;;  %v3588_v2 = vld [vmem:[%s5284_s2 + $0x1e4] ss:$8 sps:$4 sm:$0xff]  }
  0x40   :  { %2695 = vmatpush1.bf16.msra.mxu0 %v3497_v3  ;;  %2459 = vmatprep.subr.bf16.mxu1 %v3502_v4  ;;  %v3591_v3 = vld [vmem:[%s5284_s2 + $0x7e4] ss:$8 sps:$4 sm:$0xff]   ;;  %v3586_v4 = vld [vmem:[%s5284_s2 + $0x1e0] ss:$8 sps:$4 sm:$0xff]  }
  0x41   :  { %2705 = vmatprep.subr.bf16.mxu0 %v3507_v5  ;;  %v3589_v5 = vld [vmem:[%s5284_s2 + $0x7e0] ss:$8 sps:$4 sm:$0xff]  }
  0x42   :  { %2451 = vmatmul.mubr.bf16.vlgmr.msra.gmra.mrb[0].mxu1 %v2950_v6  ;;  %v3594_v6 = vld [vmem:[%s5284_s2 + $0x1f4] ss:$8 sps:$4 sm:$0xff]  }
  0x43   :  { %2697 = vmatmul.mubr.bf16.vlgmr.msra.gmra.mrb[0].mxu0 %v2962_v7  ;;  %2460 = vmatpush1.bf16.msra.mxu1 %v3500_v8  ;;  %v3597_v7 = vld [vmem:[%s5284_s2 + $0x7f4] ss:$8 sps:$4 sm:$0xff]   ;;  %v3592_v8 = vld [vmem:[%s5284_s2 + $0x1f0] ss:$8 sps:$4 sm:$0xff]  }
  0x44   :  { %2706 = vmatpush1.bf16.msra.mxu0 %v3505_v9  ;;  %2461 = vmatprep.subr.bf16.mxu1 %v3510_v10  ;;  %v3595_v9 = vld [vmem:[%s5284_s2 + $0x7f0] ss:$8 sps:$4 sm:$0xff]   ;;  %v3602_v10 = vld [vmem:[%s5284_s2 + $0x204] ss:$8 sps:$4 sm:$0xff]  }
  0x45   :  { %2707 = vmatprep.subr.bf16.mxu0 %v3513_v11  ;;  %2491 = vmatprep.mubr.bf16.mxu1 %v2953_v35  ;;  %v3607_v11 = vld [vmem:[%s5284_s2 + $0x804] ss:$8 sps:$4 sm:$0xff]   ;;  %v3629_v35 = vld [vmem:[%s5284_s2 + $0x840] ss:$8 sps:$4 sm:$0xff]  }
  0x46   :  { %2737 = vmatprep.mubr.bf16.mxu0 %v2965_v38  ;;  %v3632_v38 = vld [vmem:[%s5284_s2 + $0x250] ss:$8 sps:$4 sm:$0xff]  }
  0x47   :  { %2462 = vmatpush1.bf16.msra.mxu1 %v3508_v12  ;;  %v2952_v12 = vcombine.low %v4306_v32, %v4306_v32  ;;  %v3628_v32 = vld [vmem:[%s5284_s2 + $0x244] ss:$8 sps:$4 sm:$0xff]  }
  0x48   :  { %2708 = vmatpush1.bf16.msra.mxu0 %v3511_v13  ;;  %2463 = vmatprep.subr.bf16.mxu1 %v3516_v14  ;;  %v3600_v13 = vld [vmem:[%s5284_s2 + $0x200] ss:$8 sps:$4 sm:$0xff]   ;;  %v2964_v14 = vcombine.low %v4319_v36, %v4319_v36  ;;  %v3634_v36 = vld [vmem:[%s5284_s2 + $0x254] ss:$8 sps:$4 sm:$0xff]  }
  0x49   :  { %2709 = vmatprep.subr.bf16.mxu0 %v3519_v15  ;;  %v3605_v15 = vld [vmem:[%s5284_s2 + $0x800] ss:$8 sps:$4 sm:$0xff]  }
  0x4b   :  { %2464 = vmatpush1.bf16.msra.mxu1 %v3514_v16  ;;  %v3610_v16 = vld [vmem:[%s5284_s2 + $0x214] ss:$8 sps:$4 sm:$0xff]  }
  0x4c   :  { %2710 = vmatpush1.bf16.msra.mxu0 %v3517_v17  ;;  %2465 = vmatprep.subr.bf16.mxu1 %v3522_v18  ;;  %v3613_v17 = vld [vmem:[%s5284_s2 + $0x814] ss:$8 sps:$4 sm:$0xff]  }
  0x4d   :  { %2711 = vmatprep.subr.bf16.mxu0 %v3525_v19  ;;  %v4456_v18 = vld [vmem:[%s5285_s1 + $0x10] sm:$0xff] }
  0x4e   :  { %v2955_v19 = vcombine.high %v4456_v18, %v4456_v18 }
  0x4f   :  { %2466 = vmatpush1.bf16.msra.mxu1 %v3520_v20  ;;  %v4463_v20 = vld [vmem:[%s5285_s1 + $0x40] sm:$0xff] }
  0x50   :  { %2712 = vmatpush1.bf16.msra.mxu0 %v3523_v21  ;;  %2467 = vmatprep.subr.bf16.mxu1 %v3528_v22  ;;  %v3608_v21 = vld [vmem:[%s5284_s2 + $0x210] ss:$8 sps:$4 sm:$0xff]  }
  0x51   :  { %2713 = vmatprep.subr.bf16.mxu0 %v3531_v23  ;;  %v3611_v22 = vld [vmem:[%s5284_s2 + $0x810] ss:$8 sps:$4 sm:$0xff]   ;;  %v2967_v23 = vcombine.high %v4463_v20, %v4463_v20 }
  0x53   :  { %2468 = vmatpush1.bf16.msra.mxu1 %v3526_v24  ;;  %v3616_v24 = vld [vmem:[%s5284_s2 + $0x224] ss:$8 sps:$4 sm:$0xff]  }
  0x54   :  { %2714 = vmatpush1.bf16.msra.mxu0 %v3529_v25  ;;  %2469 = vmatprep.subr.bf16.mxu1 %v3534_v26  ;;  %v3619_v25 = vld [vmem:[%s5284_s2 + $0x824] ss:$8 sps:$4 sm:$0xff]   ;;  %v3614_v26 = vld [vmem:[%s5284_s2 + $0x220] ss:$8 sps:$4 sm:$0xff]  }
  0x55   :  { %2715 = vmatprep.subr.bf16.mxu0 %v3537_v27  ;;  %v3617_v27 = vld [vmem:[%s5284_s2 + $0x820] ss:$8 sps:$4 sm:$0xff]  }
  0x57   :  { %2470 = vmatpush1.bf16.msra.mxu1 %v3532_v28  ;;  %v3622_v28 = vld [vmem:[%s5284_s2 + $0x234] ss:$8 sps:$4 sm:$0xff]  }
  0x58   :  { %2716 = vmatpush1.bf16.msra.mxu0 %v3535_v29  ;;  %2471 = vmatprep.subr.bf16.mxu1 %v3540_v30  ;;  %v3625_v29 = vld [vmem:[%s5284_s2 + $0x834] ss:$8 sps:$4 sm:$0xff]   ;;  %v3620_v30 = vld [vmem:[%s5284_s2 + $0x230] ss:$8 sps:$4 sm:$0xff]  }
  0x59   :  { %2717 = vmatprep.subr.bf16.mxu0 %v3543_v31  ;;  %v3623_v31 = vld [vmem:[%s5284_s2 + $0x830] ss:$8 sps:$4 sm:$0xff]  }
  0x5b   :  { %2472 = vmatpush1.bf16.msra.mxu1 %v3538_v33  ;;  %v3631_v33 = vld [vmem:[%s5284_s2 + $0x844] ss:$8 sps:$4 sm:$0xff]  }
  0x5c   :  { %2718 = vmatpush1.bf16.msra.mxu0 %v3541_v34  ;;  %2473 = vmatprep.subr.bf16.mxu1 %v3546_v37  ;;  %v3626_v34 = vld [vmem:[%s5284_s2 + $0x240] ss:$8 sps:$4 sm:$0xff]   ;;  %v3637_v37 = vld [vmem:[%s5284_s2 + $0x854] ss:$8 sps:$4 sm:$0xff]  }
  0x5d   :  { %2719 = vmatprep.subr.bf16.mxu0 %v3549_v39  ;;  %v3635_v39 = vld [vmem:[%s5284_s2 + $0x850] ss:$8 sps:$4 sm:$0xff]  }
  0x5f   :  { %2474 = vmatpush1.bf16.msra.mxu1 %v3544_v40  ;;  %v3640_v40 = vld [vmem:[%s5284_s2 + $0x264] ss:$8 sps:$4 sm:$0xff]  }
  0x60   :  { %2720 = vmatpush1.bf16.msra.mxu0 %v3547_v41  ;;  %2475 = vmatprep.subr.bf16.mxu1 %v3552_v42  ;;  %v3643_v41 = vld [vmem:[%s5284_s2 + $0x864] ss:$8 sps:$4 sm:$0xff]   ;;  %v3638_v42 = vld [vmem:[%s5284_s2 + $0x260] ss:$8 sps:$4 sm:$0xff]  }
  0x61   :  { %2721 = vmatprep.subr.bf16.mxu0 %v3555_v43  ;;  %v3641_v43 = vld [vmem:[%s5284_s2 + $0x860] ss:$8 sps:$4 sm:$0xff]  }
  0x63   :  { %2476 = vmatpush1.bf16.msra.mxu1 %v3550_v44  ;;  %v3646_v44 = vld [vmem:[%s5284_s2 + $0x274] ss:$8 sps:$4 sm:$0xff]  }
  0x64   :  { %2722 = vmatpush1.bf16.msra.mxu0 %v3553_v45  ;;  %2477 = vmatprep.subr.bf16.mxu1 %v3558_v46  ;;  %v3649_v45 = vld [vmem:[%s5284_s2 + $0x874] ss:$8 sps:$4 sm:$0xff]   ;;  %v3644_v46 = vld [vmem:[%s5284_s2 + $0x270] ss:$8 sps:$4 sm:$0xff]  }
  0x65   :  { %2723 = vmatprep.subr.bf16.mxu0 %v3561_v47  ;;  %v3647_v47 = vld [vmem:[%s5284_s2 + $0x870] ss:$8 sps:$4 sm:$0xff]  }
  0x67   :  { %2478 = vmatpush1.bf16.msra.mxu1 %v3556_v48  ;;  %v3652_v48 = vld [vmem:[%s5284_s2 + $0x284] ss:$8 sps:$4 sm:$0xff]  }
  0x68   :  { %2724 = vmatpush1.bf16.msra.mxu0 %v3559_v49  ;;  %2479 = vmatprep.subr.bf16.mxu1 %v3564_v50  ;;  %v3655_v49 = vld [vmem:[%s5284_s2 + $0x884] ss:$8 sps:$4 sm:$0xff]   ;;  %v3650_v50 = vld [vmem:[%s5284_s2 + $0x280] ss:$8 sps:$4 sm:$0xff]  }
  0x69   :  { %2725 = vmatprep.subr.bf16.mxu0 %v3567_v51  ;;  %v3653_v51 = vld [vmem:[%s5284_s2 + $0x880] ss:$8 sps:$4 sm:$0xff]  }
  0x6b   :  { %2480 = vmatpush1.bf16.msra.mxu1 %v3562_v52  ;;  %v3658_v52 = vld [vmem:[%s5284_s2 + $0x294] ss:$8 sps:$4 sm:$0xff]  }
  0x6c   :  { %2726 = vmatpush1.bf16.msra.mxu0 %v3565_v53  ;;  %2481 = vmatprep.subr.bf16.mxu1 %v3570_v54  ;;  %v3661_v53 = vld [vmem:[%s5284_s2 + $0x894] ss:$8 sps:$4 sm:$0xff]   ;;  %v3656_v54 = vld [vmem:[%s5284_s2 + $0x290] ss:$8 sps:$4 sm:$0xff]  }
  0x6d   :  { %2727 = vmatprep.subr.bf16.mxu0 %v3573_v55  ;;  %v3659_v55 = vld [vmem:[%s5284_s2 + $0x890] ss:$8 sps:$4 sm:$0xff]  }
  0x6f   :  { %2482 = vmatpush1.bf16.msra.mxu1 %v3568_v56  ;;  %v3664_v56 = vld [vmem:[%s5284_s2 + $0x2a4] ss:$8 sps:$4 sm:$0xff]  }
  0x70   :  { %2728 = vmatpush1.bf16.msra.mxu0 %v3571_v57  ;;  %2483 = vmatprep.subr.bf16.mxu1 %v3576_v58  ;;  %v3667_v57 = vld [vmem:[%s5284_s2 + $0x8a4] ss:$8 sps:$4 sm:$0xff]   ;;  %v3662_v58 = vld [vmem:[%s5284_s2 + $0x2a0] ss:$8 sps:$4 sm:$0xff]  }
  0x71   :  { %2729 = vmatprep.subr.bf16.mxu0 %v3579_v59  ;;  %v3665_v59 = vld [vmem:[%s5284_s2 + $0x8a0] ss:$8 sps:$4 sm:$0xff]  }
  0x73   :  { %2484 = vmatpush1.bf16.msra.mxu1 %v3574_v60  ;;  %v3670_v60 = vld [vmem:[%s5284_s2 + $0x2b4] ss:$8 sps:$4 sm:$0xff]  }
  0x74   :  { %2730 = vmatpush1.bf16.msra.mxu0 %v3577_v61  ;;  %2485 = vmatprep.subr.bf16.mxu1 %v3582_v62  ;;  %v3673_v61 = vld [vmem:[%s5284_s2 + $0x8b4] ss:$8 sps:$4 sm:$0xff]   ;;  %v3668_v62 = vld [vmem:[%s5284_s2 + $0x2b0] ss:$8 sps:$4 sm:$0xff]  }
  0x75   :  { %2731 = vmatprep.subr.bf16.mxu0 %v3585_v63  ;;  %v3671_v63 = vld [vmem:[%s5284_s2 + $0x8b0] ss:$8 sps:$4 sm:$0xff]  }
  0x77   :  { %2486 = vmatpush1.bf16.msra.mxu1 %v3580_v0  ;;  %v3676_v0 = vld [vmem:[%s5284_s2 + $0x2c4] ss:$8 sps:$4 sm:$0xff]  }
  0x78   :  { %2732 = vmatpush1.bf16.msra.mxu0 %v3583_v1  ;;  %2487 = vmatprep.subr.bf16.mxu1 %v3588_v2  ;;  %v3679_v1 = vld [vmem:[%s5284_s2 + $0x8c4] ss:$8 sps:$4 sm:$0xff]   ;;  %v3674_v2 = vld [vmem:[%s5284_s2 + $0x2c0] ss:$8 sps:$4 sm:$0xff]  }
  0x79   :  { %2733 = vmatprep.subr.bf16.mxu0 %v3591_v3  ;;  %v3677_v3 = vld [vmem:[%s5284_s2 + $0x8c0] ss:$8 sps:$4 sm:$0xff]  }
  0x7b   :  { %2488 = vmatpush1.bf16.msra.mxu1 %v3586_v4  ;;  %v3682_v4 = vld [vmem:[%s5284_s2 + $0x2d4] ss:$8 sps:$4 sm:$0xff]  }
  0x7c   :  { %2734 = vmatpush1.bf16.msra.mxu0 %v3589_v5  ;;  %2489 = vmatprep.subr.bf16.mxu1 %v3594_v6  ;;  %v3685_v5 = vld [vmem:[%s5284_s2 + $0x8d4] ss:$8 sps:$4 sm:$0xff]   ;;  %v3680_v6 = vld [vmem:[%s5284_s2 + $0x2d0] ss:$8 sps:$4 sm:$0xff]  }
  0x7d   :  { %2735 = vmatprep.subr.bf16.mxu0 %v3597_v7  ;;  %v3683_v7 = vld [vmem:[%s5284_s2 + $0x8d0] ss:$8 sps:$4 sm:$0xff]  }
  0x7f   :  { %2490 = vmatpush1.bf16.msra.mxu1 %v3592_v8  ;;  %v3688_v8 = vld [vmem:[%s5284_s2 + $0x2e4] ss:$8 sps:$4 sm:$0xff]  }
  0x80   :  { %2736 = vmatpush1.bf16.msra.mxu0 %v3595_v9  ;;  %2500 = vmatprep.subr.bf16.mxu1 %v3602_v10  ;;  %v3691_v9 = vld [vmem:[%s5284_s2 + $0x8e4] ss:$8 sps:$4 sm:$0xff]   ;;  %v3686_v10 = vld [vmem:[%s5284_s2 + $0x2e0] ss:$8 sps:$4 sm:$0xff]  }
  0x81   :  { %2746 = vmatprep.subr.bf16.mxu0 %v3607_v11  ;;  %v3689_v11 = vld [vmem:[%s5284_s2 + $0x8e0] ss:$8 sps:$4 sm:$0xff]  }
  0x82   :  { %2492 = vmatmul.mubr.bf16.vlgmr.msra.gmra.mrb[0].mxu1 %v2952_v12  ;;  %v3694_v12 = vld [vmem:[%s5284_s2 + $0x2f4] ss:$8 sps:$4 sm:$0xff]  }
  0x83   :  { %2738 = vmatmul.mubr.bf16.vlgmr.msra.gmra.mrb[0].mxu0 %v2964_v14  ;;  %2501 = vmatpush1.bf16.msra.mxu1 %v3600_v13  ;;  %v3697_v13 = vld [vmem:[%s5284_s2 + $0x8f4] ss:$8 sps:$4 sm:$0xff]   ;;  %v3692_v14 = vld [vmem:[%s5284_s2 + $0x2f0] ss:$8 sps:$4 sm:$0xff]  }
  0x84   :  { %2747 = vmatpush1.bf16.msra.mxu0 %v3605_v15  ;;  %2502 = vmatprep.subr.bf16.mxu1 %v3610_v16  ;;  %v3695_v15 = vld [vmem:[%s5284_s2 + $0x8f0] ss:$8 sps:$4 sm:$0xff]   ;;  %v3702_v16 = vld [vmem:[%s5284_s2 + $0x304] ss:$8 sps:$4 sm:$0xff]  }
  0x85   :  { %2748 = vmatprep.subr.bf16.mxu0 %v3613_v17  ;;  %2532 = vmatprep.mubr.bf16.mxu1 %v2955_v19  ;;  %v3707_v17 = vld [vmem:[%s5284_s2 + $0x904] ss:$8 sps:$4 sm:$0xff]   ;;  %v3700_v19 = vld [vmem:[%s5284_s2 + $0x300] ss:$8 sps:$4 sm:$0xff]  }
  0x86   :  { %2778 = vmatprep.mubr.bf16.mxu0 %v2967_v23  ;;  %v2966_v23 = vcombine.low %v4463_v20, %v4463_v20 }
  0x87   :  { %2503 = vmatpush1.bf16.msra.mxu1 %v3608_v21  ;;  %v3705_v21 = vld [vmem:[%s5284_s2 + $0x900] ss:$8 sps:$4 sm:$0xff]  }
  0x88   :  { %2749 = vmatpush1.bf16.msra.mxu0 %v3611_v22  ;;  %2504 = vmatprep.subr.bf16.mxu1 %v3616_v24  ;;  %v2954_v22 = vcombine.low %v4456_v18, %v4456_v18  ;;  %v4660_v24 = vld [vmem:[%s5285_s1 + $0x18] sm:$0xff] }
  0x89   :  { %2750 = vmatprep.subr.bf16.mxu0 %v3619_v25  ;;  %v4665_v25 = vld [vmem:[%s5285_s1 + $0x48] sm:$0xff]  ;;  %v3713_v18 = vld [vmem:[%s5284_s2 + $0x914] ss:$8 sps:$4 sm:$0xff]   ;;  %v2957_v20 = vcombine.high %v4660_v24, %v4660_v24 }
  0x8b   :  { %2505 = vmatpush1.bf16.msra.mxu1 %v3614_v26  ;;  %v3710_v26 = vld [vmem:[%s5284_s2 + $0x314] ss:$8 sps:$4 sm:$0xff]  }
  0x8c   :  { %2751 = vmatpush1.bf16.msra.mxu0 %v3617_v27  ;;  %2506 = vmatprep.subr.bf16.mxu1 %v3622_v28  ;;  %v2969_v27 = vcombine.high %v4665_v25, %v4665_v25  ;;  %v3708_v28 = vld [vmem:[%s5284_s2 + $0x310] ss:$8 sps:$4 sm:$0xff]  }
  0x8d   :  { %2752 = vmatprep.subr.bf16.mxu0 %v3625_v29  ;;  %v3711_v29 = vld [vmem:[%s5284_s2 + $0x910] ss:$8 sps:$4 sm:$0xff]  }
  0x8f   :  { %2507 = vmatpush1.bf16.msra.mxu1 %v3620_v30  ;;  %v3716_v30 = vld [vmem:[%s5284_s2 + $0x324] ss:$8 sps:$4 sm:$0xff]  }
  0x90   :  { %2753 = vmatpush1.bf16.msra.mxu0 %v3623_v31  ;;  %2508 = vmatprep.subr.bf16.mxu1 %v3628_v32  ;;  %v3719_v31 = vld [vmem:[%s5284_s2 + $0x924] ss:$8 sps:$4 sm:$0xff]   ;;  %v3714_v32 = vld [vmem:[%s5284_s2 + $0x320] ss:$8 sps:$4 sm:$0xff]  }
  0x91   :  { %2754 = vmatprep.subr.bf16.mxu0 %v3631_v33  ;;  %v3717_v33 = vld [vmem:[%s5284_s2 + $0x920] ss:$8 sps:$4 sm:$0xff]  }
  0x93   :  { %2509 = vmatpush1.bf16.msra.mxu1 %v3626_v34  ;;  %v3722_v34 = vld [vmem:[%s5284_s2 + $0x334] ss:$8 sps:$4 sm:$0xff]  }
  0x94   :  { %2755 = vmatpush1.bf16.msra.mxu0 %v3629_v35  ;;  %2510 = vmatprep.subr.bf16.mxu1 %v3634_v36  ;;  %v3725_v35 = vld [vmem:[%s5284_s2 + $0x934] ss:$8 sps:$4 sm:$0xff]   ;;  %v3720_v36 = vld [vmem:[%s5284_s2 + $0x330] ss:$8 sps:$4 sm:$0xff]  }
  0x95   :  { %2756 = vmatprep.subr.bf16.mxu0 %v3637_v37  ;;  %v3723_v37 = vld [vmem:[%s5284_s2 + $0x930] ss:$8 sps:$4 sm:$0xff]  }
  0x97   :  { %2511 = vmatpush1.bf16.msra.mxu1 %v3632_v38  ;;  %v3728_v38 = vld [vmem:[%s5284_s2 + $0x344] ss:$8 sps:$4 sm:$0xff]  }
  0x98   :  { %2757 = vmatpush1.bf16.msra.mxu0 %v3635_v39  ;;  %2512 = vmatprep.subr.bf16.mxu1 %v3640_v40  ;;  %v3731_v39 = vld [vmem:[%s5284_s2 + $0x944] ss:$8 sps:$4 sm:$0xff]   ;;  %v3726_v40 = vld [vmem:[%s5284_s2 + $0x340] ss:$8 sps:$4 sm:$0xff]  }
  0x99   :  { %2758 = vmatprep.subr.bf16.mxu0 %v3643_v41  ;;  %v3729_v41 = vld [vmem:[%s5284_s2 + $0x940] ss:$8 sps:$4 sm:$0xff]  }
  0x9b   :  { %2513 = vmatpush1.bf16.msra.mxu1 %v3638_v42  ;;  %v3734_v42 = vld [vmem:[%s5284_s2 + $0x354] ss:$8 sps:$4 sm:$0xff]  }
  0x9c   :  { %2759 = vmatpush1.bf16.msra.mxu0 %v3641_v43  ;;  %2514 = vmatprep.subr.bf16.mxu1 %v3646_v44  ;;  %v3737_v43 = vld [vmem:[%s5284_s2 + $0x954] ss:$8 sps:$4 sm:$0xff]   ;;  %v3732_v44 = vld [vmem:[%s5284_s2 + $0x350] ss:$8 sps:$4 sm:$0xff]  }
  0x9d   :  { %2760 = vmatprep.subr.bf16.mxu0 %v3649_v45  ;;  %v3735_v45 = vld [vmem:[%s5284_s2 + $0x950] ss:$8 sps:$4 sm:$0xff]  }
  0x9f   :  { %2515 = vmatpush1.bf16.msra.mxu1 %v3644_v46  ;;  %v3740_v46 = vld [vmem:[%s5284_s2 + $0x364] ss:$8 sps:$4 sm:$0xff]  }
  0xa0   :  { %2761 = vmatpush1.bf16.msra.mxu0 %v3647_v47  ;;  %2516 = vmatprep.subr.bf16.mxu1 %v3652_v48  ;;  %v3743_v47 = vld [vmem:[%s5284_s2 + $0x964] ss:$8 sps:$4 sm:$0xff]   ;;  %v3738_v48 = vld [vmem:[%s5284_s2 + $0x360] ss:$8 sps:$4 sm:$0xff]  }
  0xa1   :  { %2762 = vmatprep.subr.bf16.mxu0 %v3655_v49  ;;  %v3741_v49 = vld [vmem:[%s5284_s2 + $0x960] ss:$8 sps:$4 sm:$0xff]  }
  0xa3   :  { %2517 = vmatpush1.bf16.msra.mxu1 %v3650_v50  ;;  %v3746_v50 = vld [vmem:[%s5284_s2 + $0x374] ss:$8 sps:$4 sm:$0xff]  }
  0xa4   :  { %2763 = vmatpush1.bf16.msra.mxu0 %v3653_v51  ;;  %2518 = vmatprep.subr.bf16.mxu1 %v3658_v52  ;;  %v3749_v51 = vld [vmem:[%s5284_s2 + $0x974] ss:$8 sps:$4 sm:$0xff]   ;;  %v3744_v52 = vld [vmem:[%s5284_s2 + $0x370] ss:$8 sps:$4 sm:$0xff]  }
  0xa5   :  { %2764 = vmatprep.subr.bf16.mxu0 %v3661_v53  ;;  %v3747_v53 = vld [vmem:[%s5284_s2 + $0x970] ss:$8 sps:$4 sm:$0xff]  }
  0xa7   :  { %2519 = vmatpush1.bf16.msra.mxu1 %v3656_v54  ;;  %v3752_v54 = vld [vmem:[%s5284_s2 + $0x384] ss:$8 sps:$4 sm:$0xff]  }
  0xa8   :  { %2765 = vmatpush1.bf16.msra.mxu0 %v3659_v55  ;;  %2520 = vmatprep.subr.bf16.mxu1 %v3664_v56  ;;  %v3755_v55 = vld [vmem:[%s5284_s2 + $0x984] ss:$8 sps:$4 sm:$0xff]   ;;  %v3750_v56 = vld [vmem:[%s5284_s2 + $0x380] ss:$8 sps:$4 sm:$0xff]  }
  0xa9   :  { %2766 = vmatprep.subr.bf16.mxu0 %v3667_v57  ;;  %v3753_v57 = vld [vmem:[%s5284_s2 + $0x980] ss:$8 sps:$4 sm:$0xff]  }
  0xab   :  { %2521 = vmatpush1.bf16.msra.mxu1 %v3662_v58  ;;  %v3758_v58 = vld [vmem:[%s5284_s2 + $0x394] ss:$8 sps:$4 sm:$0xff]  }
  0xac   :  { %2767 = vmatpush1.bf16.msra.mxu0 %v3665_v59  ;;  %2522 = vmatprep.subr.bf16.mxu1 %v3670_v60  ;;  %v3761_v59 = vld [vmem:[%s5284_s2 + $0x994] ss:$8 sps:$4 sm:$0xff]   ;;  %v3756_v60 = vld [vmem:[%s5284_s2 + $0x390] ss:$8 sps:$4 sm:$0xff]  }
  0xad   :  { %2768 = vmatprep.subr.bf16.mxu0 %v3673_v61  ;;  %v3759_v61 = vld [vmem:[%s5284_s2 + $0x990] ss:$8 sps:$4 sm:$0xff]  }
  0xaf   :  { %2523 = vmatpush1.bf16.msra.mxu1 %v3668_v62  ;;  %v3764_v62 = vld [vmem:[%s5284_s2 + $0x3a4] ss:$8 sps:$4 sm:$0xff]  }
  0xb0   :  { %2769 = vmatpush1.bf16.msra.mxu0 %v3671_v63  ;;  %2524 = vmatprep.subr.bf16.mxu1 %v3676_v0  ;;  %v3767_v63 = vld [vmem:[%s5284_s2 + $0x9a4] ss:$8 sps:$4 sm:$0xff]   ;;  %v3762_v0 = vld [vmem:[%s5284_s2 + $0x3a0] ss:$8 sps:$4 sm:$0xff]  }
  0xb1   :  { %2770 = vmatprep.subr.bf16.mxu0 %v3679_v1  ;;  %v3765_v1 = vld [vmem:[%s5284_s2 + $0x9a0] ss:$8 sps:$4 sm:$0xff]  }
  0xb3   :  { %2525 = vmatpush1.bf16.msra.mxu1 %v3674_v2  ;;  %v3770_v2 = vld [vmem:[%s5284_s2 + $0x3b4] ss:$8 sps:$4 sm:$0xff]  }
  0xb4   :  { %2771 = vmatpush1.bf16.msra.mxu0 %v3677_v3  ;;  %2526 = vmatprep.subr.bf16.mxu1 %v3682_v4  ;;  %v3773_v3 = vld [vmem:[%s5284_s2 + $0x9b4] ss:$8 sps:$4 sm:$0xff]   ;;  %v3768_v4 = vld [vmem:[%s5284_s2 + $0x3b0] ss:$8 sps:$4 sm:$0xff]  }
  0xb5   :  { %2772 = vmatprep.subr.bf16.mxu0 %v3685_v5  ;;  %v3771_v5 = vld [vmem:[%s5284_s2 + $0x9b0] ss:$8 sps:$4 sm:$0xff]  }
  0xb7   :  { %2527 = vmatpush1.bf16.msra.mxu1 %v3680_v6  ;;  %v3776_v6 = vld [vmem:[%s5284_s2 + $0x3c4] ss:$8 sps:$4 sm:$0xff]  }
  0xb8   :  { %2773 = vmatpush1.bf16.msra.mxu0 %v3683_v7  ;;  %2528 = vmatprep.subr.bf16.mxu1 %v3688_v8  ;;  %v3779_v7 = vld [vmem:[%s5284_s2 + $0x9c4] ss:$8 sps:$4 sm:$0xff]   ;;  %v3774_v8 = vld [vmem:[%s5284_s2 + $0x3c0] ss:$8 sps:$4 sm:$0xff]  }
  0xb9   :  { %2774 = vmatprep.subr.bf16.mxu0 %v3691_v9  ;;  %v3777_v9 = vld [vmem:[%s5284_s2 + $0x9c0] ss:$8 sps:$4 sm:$0xff]  }
  0xbb   :  { %2529 = vmatpush1.bf16.msra.mxu1 %v3686_v10  ;;  %v3782_v10 = vld [vmem:[%s5284_s2 + $0x3d4] ss:$8 sps:$4 sm:$0xff]  }
  0xbc   :  { %2775 = vmatpush1.bf16.msra.mxu0 %v3689_v11  ;;  %2530 = vmatprep.subr.bf16.mxu1 %v3694_v12  ;;  %v3785_v11 = vld [vmem:[%s5284_s2 + $0x9d4] ss:$8 sps:$4 sm:$0xff]   ;;  %v3780_v12 = vld [vmem:[%s5284_s2 + $0x3d0] ss:$8 sps:$4 sm:$0xff]  }
  0xbd   :  { %2776 = vmatprep.subr.bf16.mxu0 %v3697_v13  ;;  %v3783_v13 = vld [vmem:[%s5284_s2 + $0x9d0] ss:$8 sps:$4 sm:$0xff]  }
  0xbf   :  { %2531 = vmatpush1.bf16.msra.mxu1 %v3692_v14  ;;  %v3788_v14 = vld [vmem:[%s5284_s2 + $0x3e4] ss:$8 sps:$4 sm:$0xff]  }
  0xc0   :  { %2777 = vmatpush1.bf16.msra.mxu0 %v3695_v15  ;;  %2541 = vmatprep.subr.bf16.mxu1 %v3702_v16  ;;  %v3791_v15 = vld [vmem:[%s5284_s2 + $0x9e4] ss:$8 sps:$4 sm:$0xff]   ;;  %v3786_v16 = vld [vmem:[%s5284_s2 + $0x3e0] ss:$8 sps:$4 sm:$0xff]  }
  0xc1   :  { %2787 = vmatprep.subr.bf16.mxu0 %v3707_v17  ;;  %v3789_v17 = vld [vmem:[%s5284_s2 + $0x9e0] ss:$8 sps:$4 sm:$0xff]  }
  0xc2   :  { %2533 = vmatmul.mubr.bf16.vlgmr.msra.gmra.mrb[0].mxu1 %v2954_v22  ;;  %v3792_v22 = vld [vmem:[%s5284_s2 + $0x3f0] ss:$8 sps:$4 sm:$0xff]  }
  0xc3   :  { %2779 = vmatmul.mubr.bf16.vlgmr.msra.gmra.mrb[0].mxu0 %v2966_v23  ;;  %2542 = vmatpush1.bf16.msra.mxu1 %v3700_v19  ;;  %v3794_v19 = vld [vmem:[%s5284_s2 + $0x3f4] ss:$8 sps:$4 sm:$0xff]   ;;  %v3795_v23 = vld [vmem:[%s5284_s2 + $0x9f0] ss:$8 sps:$4 sm:$0xff]  }
  0xc4   :  { %2788 = vmatpush1.bf16.msra.mxu0 %v3705_v21  ;;  %2543 = vmatprep.subr.bf16.mxu1 %v3710_v26  ;;  %v3797_v21 = vld [vmem:[%s5284_s2 + $0x9f4] ss:$8 sps:$4 sm:$0xff]   ;;  %v3802_v26 = vld [vmem:[%s5284_s2 + $0x404] ss:$8 sps:$4 sm:$0xff]  }
  0xc5   :  { %2789 = vmatprep.subr.bf16.mxu0 %v3713_v18  ;;  %2573 = vmatprep.mubr.bf16.mxu1 %v2957_v20  ;;  %v3807_v18 = vld [vmem:[%s5284_s2 + $0xa04] ss:$8 sps:$4 sm:$0xff]  }
  0xc6   :  { %2819 = vmatprep.mubr.bf16.mxu0 %v2969_v27  ;;  %v4860_v20 = vld [vmem:[%s5285_s1 + $0x20] sm:$0xff]  ;;  %v2956_v27 = vcombine.low %v4660_v24, %v4660_v24  ;;  %v3810_v24 = vld [vmem:[%s5284_s2 + $0x414] ss:$8 sps:$4 sm:$0xff]  }
  0xc7   :  { %2544 = vmatpush1.bf16.msra.mxu1 %v3708_v28  ;;  %v2968_v28 = vcombine.low %v4665_v25, %v4665_v25  ;;  %v3813_v25 = vld [vmem:[%s5284_s2 + $0xa14] ss:$8 sps:$4 sm:$0xff]  }
  0xc8   :  { %2790 = vmatpush1.bf16.msra.mxu0 %v3711_v29  ;;  %2545 = vmatprep.subr.bf16.mxu1 %v3716_v30  ;;  %v4869_v29 = vld [vmem:[%s5285_s1 + $0x50] sm:$0xff]  ;;  %v3800_v30 = vld [vmem:[%s5284_s2 + $0x400] ss:$8 sps:$4 sm:$0xff]  }
  0xc9   :  { %2791 = vmatprep.subr.bf16.mxu0 %v3719_v31  ;;  %v3805_v31 = vld [vmem:[%s5284_s2 + $0xa00] ss:$8 sps:$4 sm:$0xff]  }
  0xcb   :  { %2546 = vmatpush1.bf16.msra.mxu1 %v3714_v32  ;;  %v2959_v32 = vcombine.high %v4860_v20, %v4860_v20 }
  0xcc   :  { %2792 = vmatpush1.bf16.msra.mxu0 %v3717_v33  ;;  %2547 = vmatprep.subr.bf16.mxu1 %v3722_v34  ;;  %v2971_v33 = vcombine.high %v4869_v29, %v4869_v29  ;;  %v3808_v34 = vld [vmem:[%s5284_s2 + $0x410] ss:$8 sps:$4 sm:$0xff]  }
  0xcd   :  { %2793 = vmatprep.subr.bf16.mxu0 %v3725_v35  ;;  %v3811_v35 = vld [vmem:[%s5284_s2 + $0xa10] ss:$8 sps:$4 sm:$0xff]  }
  0xcf   :  { %2548 = vmatpush1.bf16.msra.mxu1 %v3720_v36  ;;  %v3816_v36 = vld [vmem:[%s5284_s2 + $0x424] ss:$8 sps:$4 sm:$0xff]  }
  0xd0   :  { %2794 = vmatpush1.bf16.msra.mxu0 %v3723_v37  ;;  %2549 = vmatprep.subr.bf16.mxu1 %v3728_v38  ;;  %v3819_v37 = vld [vmem:[%s5284_s2 + $0xa24] ss:$8 sps:$4 sm:$0xff]   ;;  %v3814_v38 = vld [vmem:[%s5284_s2 + $0x420] ss:$8 sps:$4 sm:$0xff]  }
  0xd1   :  { %2795 = vmatprep.subr.bf16.mxu0 %v3731_v39  ;;  %v3817_v39 = vld [vmem:[%s5284_s2 + $0xa20] ss:$8 sps:$4 sm:$0xff]  }
  0xd3   :  { %2550 = vmatpush1.bf16.msra.mxu1 %v3726_v40  ;;  %v3822_v40 = vld [vmem:[%s5284_s2 + $0x434] ss:$8 sps:$4 sm:$0xff]  }
  0xd4   :  { %2796 = vmatpush1.bf16.msra.mxu0 %v3729_v41  ;;  %2551 = vmatprep.subr.bf16.mxu1 %v3734_v42  ;;  %v3825_v41 = vld [vmem:[%s5284_s2 + $0xa34] ss:$8 sps:$4 sm:$0xff]   ;;  %v3820_v42 = vld [vmem:[%s5284_s2 + $0x430] ss:$8 sps:$4 sm:$0xff]  }
  0xd5   :  { %2797 = vmatprep.subr.bf16.mxu0 %v3737_v43  ;;  %v3823_v43 = vld [vmem:[%s5284_s2 + $0xa30] ss:$8 sps:$4 sm:$0xff]  }
  0xd7   :  { %2552 = vmatpush1.bf16.msra.mxu1 %v3732_v44  ;;  %v3828_v44 = vld [vmem:[%s5284_s2 + $0x444] ss:$8 sps:$4 sm:$0xff]  }
  0xd8   :  { %2798 = vmatpush1.bf16.msra.mxu0 %v3735_v45  ;;  %2553 = vmatprep.subr.bf16.mxu1 %v3740_v46  ;;  %v3831_v45 = vld [vmem:[%s5284_s2 + $0xa44] ss:$8 sps:$4 sm:$0xff]   ;;  %v3826_v46 = vld [vmem:[%s5284_s2 + $0x440] ss:$8 sps:$4 sm:$0xff]  }
  0xd9   :  { %2799 = vmatprep.subr.bf16.mxu0 %v3743_v47  ;;  %v3829_v47 = vld [vmem:[%s5284_s2 + $0xa40] ss:$8 sps:$4 sm:$0xff]  }
  0xdb   :  { %2554 = vmatpush1.bf16.msra.mxu1 %v3738_v48  ;;  %v3834_v48 = vld [vmem:[%s5284_s2 + $0x454] ss:$8 sps:$4 sm:$0xff]  }
  0xdc   :  { %2800 = vmatpush1.bf16.msra.mxu0 %v3741_v49  ;;  %2555 = vmatprep.subr.bf16.mxu1 %v3746_v50  ;;  %v3837_v49 = vld [vmem:[%s5284_s2 + $0xa54] ss:$8 sps:$4 sm:$0xff]   ;;  %v3832_v50 = vld [vmem:[%s5284_s2 + $0x450] ss:$8 sps:$4 sm:$0xff]  }
  0xdd   :  { %2801 = vmatprep.subr.bf16.mxu0 %v3749_v51  ;;  %v3835_v51 = vld [vmem:[%s5284_s2 + $0xa50] ss:$8 sps:$4 sm:$0xff]  }
  0xdf   :  { %2556 = vmatpush1.bf16.msra.mxu1 %v3744_v52  ;;  %v3840_v52 = vld [vmem:[%s5284_s2 + $0x464] ss:$8 sps:$4 sm:$0xff]  }
  0xe0   :  { %2802 = vmatpush1.bf16.msra.mxu0 %v3747_v53  ;;  %2557 = vmatprep.subr.bf16.mxu1 %v3752_v54  ;;  %v3843_v53 = vld [vmem:[%s5284_s2 + $0xa64] ss:$8 sps:$4 sm:$0xff]   ;;  %v3838_v54 = vld [vmem:[%s5284_s2 + $0x460] ss:$8 sps:$4 sm:$0xff]  }
  0xe1   :  { %2803 = vmatprep.subr.bf16.mxu0 %v3755_v55  ;;  %v3841_v55 = vld [vmem:[%s5284_s2 + $0xa60] ss:$8 sps:$4 sm:$0xff]  }
  0xe3   :  { %2558 = vmatpush1.bf16.msra.mxu1 %v3750_v56  ;;  %v3846_v56 = vld [vmem:[%s5284_s2 + $0x474] ss:$8 sps:$4 sm:$0xff]  }
  0xe4   :  { %2804 = vmatpush1.bf16.msra.mxu0 %v3753_v57  ;;  %2559 = vmatprep.subr.bf16.mxu1 %v3758_v58  ;;  %v3849_v57 = vld [vmem:[%s5284_s2 + $0xa74] ss:$8 sps:$4 sm:$0xff]   ;;  %v3844_v58 = vld [vmem:[%s5284_s2 + $0x470] ss:$8 sps:$4 sm:$0xff]  }
  0xe5   :  { %2805 = vmatprep.subr.bf16.mxu0 %v3761_v59  ;;  %v3847_v59 = vld [vmem:[%s5284_s2 + $0xa70] ss:$8 sps:$4 sm:$0xff]  }
  0xe7   :  { %2560 = vmatpush1.bf16.msra.mxu1 %v3756_v60  ;;  %v3852_v60 = vld [vmem:[%s5284_s2 + $0x484] ss:$8 sps:$4 sm:$0xff]  }
  0xe8   :  { %2806 = vmatpush1.bf16.msra.mxu0 %v3759_v61  ;;  %2561 = vmatprep.subr.bf16.mxu1 %v3764_v62  ;;  %v3855_v61 = vld [vmem:[%s5284_s2 + $0xa84] ss:$8 sps:$4 sm:$0xff]   ;;  %v3850_v62 = vld [vmem:[%s5284_s2 + $0x480] ss:$8 sps:$4 sm:$0xff]  }
  0xe9   :  { %2807 = vmatprep.subr.bf16.mxu0 %v3767_v63  ;;  %v3853_v63 = vld [vmem:[%s5284_s2 + $0xa80] ss:$8 sps:$4 sm:$0xff]  }
  0xeb   :  { %2562 = vmatpush1.bf16.msra.mxu1 %v3762_v0  ;;  %v3858_v0 = vld [vmem:[%s5284_s2 + $0x494] ss:$8 sps:$4 sm:$0xff]  }
  0xec   :  { %2808 = vmatpush1.bf16.msra.mxu0 %v3765_v1  ;;  %2563 = vmatprep.subr.bf16.mxu1 %v3770_v2  ;;  %v3861_v1 = vld [vmem:[%s5284_s2 + $0xa94] ss:$8 sps:$4 sm:$0xff]   ;;  %v3856_v2 = vld [vmem:[%s5284_s2 + $0x490] ss:$8 sps:$4 sm:$0xff]  }
  0xed   :  { %2809 = vmatprep.subr.bf16.mxu0 %v3773_v3  ;;  %v3859_v3 = vld [vmem:[%s5284_s2 + $0xa90] ss:$8 sps:$4 sm:$0xff]  }
  0xef   :  { %2564 = vmatpush1.bf16.msra.mxu1 %v3768_v4  ;;  %v3864_v4 = vld [vmem:[%s5284_s2 + $0x4a4] ss:$8 sps:$4 sm:$0xff]  }
  0xf0   :  { %2810 = vmatpush1.bf16.msra.mxu0 %v3771_v5  ;;  %2565 = vmatprep.subr.bf16.mxu1 %v3776_v6  ;;  %v3867_v5 = vld [vmem:[%s5284_s2 + $0xaa4] ss:$8 sps:$4 sm:$0xff]   ;;  %v3862_v6 = vld [vmem:[%s5284_s2 + $0x4a0] ss:$8 sps:$4 sm:$0xff]  }
  0xf1   :  { %2811 = vmatprep.subr.bf16.mxu0 %v3779_v7  ;;  %v3865_v7 = vld [vmem:[%s5284_s2 + $0xaa0] ss:$8 sps:$4 sm:$0xff]  }
  0xf3   :  { %2566 = vmatpush1.bf16.msra.mxu1 %v3774_v8  ;;  %v3870_v8 = vld [vmem:[%s5284_s2 + $0x4b4] ss:$8 sps:$4 sm:$0xff]  }
  0xf4   :  { %2812 = vmatpush1.bf16.msra.mxu0 %v3777_v9  ;;  %2567 = vmatprep.subr.bf16.mxu1 %v3782_v10  ;;  %v3873_v9 = vld [vmem:[%s5284_s2 + $0xab4] ss:$8 sps:$4 sm:$0xff]   ;;  %v3868_v10 = vld [vmem:[%s5284_s2 + $0x4b0] ss:$8 sps:$4 sm:$0xff]  }
  0xf5   :  { %2813 = vmatprep.subr.bf16.mxu0 %v3785_v11  ;;  %v3871_v11 = vld [vmem:[%s5284_s2 + $0xab0] ss:$8 sps:$4 sm:$0xff]  }
  0xf7   :  { %2568 = vmatpush1.bf16.msra.mxu1 %v3780_v12  ;;  %v3876_v12 = vld [vmem:[%s5284_s2 + $0x4c4] ss:$8 sps:$4 sm:$0xff]  }
  0xf8   :  { %2814 = vmatpush1.bf16.msra.mxu0 %v3783_v13  ;;  %2569 = vmatprep.subr.bf16.mxu1 %v3788_v14  ;;  %v3879_v13 = vld [vmem:[%s5284_s2 + $0xac4] ss:$8 sps:$4 sm:$0xff]   ;;  %v3874_v14 = vld [vmem:[%s5284_s2 + $0x4c0] ss:$8 sps:$4 sm:$0xff]  }
  0xf9   :  { %2815 = vmatprep.subr.bf16.mxu0 %v3791_v15  ;;  %v3877_v15 = vld [vmem:[%s5284_s2 + $0xac0] ss:$8 sps:$4 sm:$0xff]  }
  0xfb   :  { %2570 = vmatpush1.bf16.msra.mxu1 %v3786_v16  ;;  %v3882_v16 = vld [vmem:[%s5284_s2 + $0x4d4] ss:$8 sps:$4 sm:$0xff]  }
  0xfc   :  { %2816 = vmatpush1.bf16.msra.mxu0 %v3789_v17  ;;  %2571 = vmatprep.subr.bf16.mxu1 %v3794_v19  ;;  %v3885_v17 = vld [vmem:[%s5284_s2 + $0xad4] ss:$8 sps:$4 sm:$0xff]   ;;  %v3880_v19 = vld [vmem:[%s5284_s2 + $0x4d0] ss:$8 sps:$4 sm:$0xff]  }
  0xfd   :  { %2817 = vmatprep.subr.bf16.mxu0 %v3797_v21  ;;  %v3883_v21 = vld [vmem:[%s5284_s2 + $0xad0] ss:$8 sps:$4 sm:$0xff]  }
  0xff   :  { %2572 = vmatpush1.bf16.msra.mxu1 %v3792_v22  ;;  %v3888_v22 = vld [vmem:[%s5284_s2 + $0x4e4] ss:$8 sps:$4 sm:$0xff]  }
 0x100   :  { %2818 = vmatpush1.bf16.msra.mxu0 %v3795_v23  ;;  %2582 = vmatprep.subr.bf16.mxu1 %v3802_v26  ;;  %v3891_v23 = vld [vmem:[%s5284_s2 + $0xae4] ss:$8 sps:$4 sm:$0xff]   ;;  %v3886_v26 = vld [vmem:[%s5284_s2 + $0x4e0] ss:$8 sps:$4 sm:$0xff]  }
 0x101   :  { %2828 = vmatprep.subr.bf16.mxu0 %v3807_v18  ;;  %v3889_v18 = vld [vmem:[%s5284_s2 + $0xae0] ss:$8 sps:$4 sm:$0xff]  }
 0x102   :  { %2574 = vmatmul.mubr.bf16.vlgmr.msra.gmra.mrb[0].mxu1 %v2956_v27  ;;  %v3894_v27 = vld [vmem:[%s5284_s2 + $0x4f4] ss:$8 sps:$4 sm:$0xff]  }
 0x103   :  { %2820 = vmatmul.mubr.bf16.vlgmr.msra.gmra.mrb[0].mxu0 %v2968_v28  ;;  %2583 = vmatpush1.bf16.msra.mxu1 %v3800_v30  ;;  %v3897_v28 = vld [vmem:[%s5284_s2 + $0xaf4] ss:$8 sps:$4 sm:$0xff]   ;;  %v3892_v30 = vld [vmem:[%s5284_s2 + $0x4f0] ss:$8 sps:$4 sm:$0xff]  }
 0x104   :  { %2829 = vmatpush1.bf16.msra.mxu0 %v3805_v31  ;;  %2584 = vmatprep.subr.bf16.mxu1 %v3810_v24  ;;  %v3895_v31 = vld [vmem:[%s5284_s2 + $0xaf0] ss:$8 sps:$4 sm:$0xff]   ;;  %v3902_v24 = vld [vmem:[%s5284_s2 + $0x504] ss:$8 sps:$4 sm:$0xff]  }
 0x105   :  { %2830 = vmatprep.subr.bf16.mxu0 %v3813_v25  ;;  %2614 = vmatprep.mubr.bf16.mxu1 %v2959_v32  ;;  %v3907_v25 = vld [vmem:[%s5284_s2 + $0xb04] ss:$8 sps:$4 sm:$0xff]   ;;  %v2958_v32 = vcombine.low %v4860_v20, %v4860_v20  ;;  %v3905_v20 = vld [vmem:[%s5284_s2 + $0xb00] ss:$8 sps:$4 sm:$0xff]  }
 0x106   :  { %2860 = vmatprep.mubr.bf16.mxu0 %v2971_v33  ;;  %v2970_v33 = vcombine.low %v4869_v29, %v4869_v29  ;;  %v3910_v29 = vld [vmem:[%s5284_s2 + $0x514] ss:$8 sps:$4 sm:$0xff]  }
 0x107   :  { %2585 = vmatpush1.bf16.msra.mxu1 %v3808_v34  ;;  %v5074_v34 = vld [vmem:[%s5285_s1 + $0x28] sm:$0xff] }
 0x108   :  { %2831 = vmatpush1.bf16.msra.mxu0 %v3811_v35  ;;  %2586 = vmatprep.subr.bf16.mxu1 %v3816_v36  ;;  %v5079_v35 = vld [vmem:[%s5285_s1 + $0x58] sm:$0xff]  ;;  %v3900_v36 = vld [vmem:[%s5284_s2 + $0x500] ss:$8 sps:$4 sm:$0xff]  }
 0x109   :  { %2832 = vmatprep.subr.bf16.mxu0 %v3819_v37  ;;  %v3913_v37 = vld [vmem:[%s5284_s2 + $0xb14] ss:$8 sps:$4 sm:$0xff]  }
 0x10b   :  { %2587 = vmatpush1.bf16.msra.mxu1 %v3814_v38  ;;  %v2961_v38 = vcombine.high %v5074_v34, %v5074_v34 }
 0x10c   :  { %2833 = vmatpush1.bf16.msra.mxu0 %v3817_v39  ;;  %2588 = vmatprep.subr.bf16.mxu1 %v3822_v40  ;;  %v2973_v39 = vcombine.high %v5079_v35, %v5079_v35  ;;  %v3908_v40 = vld [vmem:[%s5284_s2 + $0x510] ss:$8 sps:$4 sm:$0xff]  }
 0x10d   :  { %2834 = vmatprep.subr.bf16.mxu0 %v3825_v41  ;;  %v3911_v41 = vld [vmem:[%s5284_s2 + $0xb10] ss:$8 sps:$4 sm:$0xff]  }
 0x10f   :  { %2589 = vmatpush1.bf16.msra.mxu1 %v3820_v42  ;;  %v3916_v42 = vld [vmem:[%s5284_s2 + $0x524] ss:$8 sps:$4 sm:$0xff]  }
 0x110   :  { %2835 = vmatpush1.bf16.msra.mxu0 %v3823_v43  ;;  %2590 = vmatprep.subr.bf16.mxu1 %v3828_v44  ;;  %v3919_v43 = vld [vmem:[%s5284_s2 + $0xb24] ss:$8 sps:$4 sm:$0xff]   ;;  %v3914_v44 = vld [vmem:[%s5284_s2 + $0x520] ss:$8 sps:$4 sm:$0xff]  }
 0x111   :  { %2836 = vmatprep.subr.bf16.mxu0 %v3831_v45  ;;  %v3917_v45 = vld [vmem:[%s5284_s2 + $0xb20] ss:$8 sps:$4 sm:$0xff]  }
 0x113   :  { %2591 = vmatpush1.bf16.msra.mxu1 %v3826_v46  ;;  %v3922_v46 = vld [vmem:[%s5284_s2 + $0x534] ss:$8 sps:$4 sm:$0xff]  }
 0x114   :  { %2837 = vmatpush1.bf16.msra.mxu0 %v3829_v47  ;;  %2592 = vmatprep.subr.bf16.mxu1 %v3834_v48  ;;  %v3925_v47 = vld [vmem:[%s5284_s2 + $0xb34] ss:$8 sps:$4 sm:$0xff]   ;;  %v3920_v48 = vld [vmem:[%s5284_s2 + $0x530] ss:$8 sps:$4 sm:$0xff]  }
 0x115   :  { %2838 = vmatprep.subr.bf16.mxu0 %v3837_v49  ;;  %v3923_v49 = vld [vmem:[%s5284_s2 + $0xb30] ss:$8 sps:$4 sm:$0xff]  }
 0x117   :  { %2593 = vmatpush1.bf16.msra.mxu1 %v3832_v50  ;;  %v3928_v50 = vld [vmem:[%s5284_s2 + $0x544] ss:$8 sps:$4 sm:$0xff]  }
 0x118   :  { %2839 = vmatpush1.bf16.msra.mxu0 %v3835_v51  ;;  %2594 = vmatprep.subr.bf16.mxu1 %v3840_v52  ;;  %v3931_v51 = vld [vmem:[%s5284_s2 + $0xb44] ss:$8 sps:$4 sm:$0xff]   ;;  %v3926_v52 = vld [vmem:[%s5284_s2 + $0x540] ss:$8 sps:$4 sm:$0xff]  }
 0x119   :  { %2840 = vmatprep.subr.bf16.mxu0 %v3843_v53  ;;  %v3929_v53 = vld [vmem:[%s5284_s2 + $0xb40] ss:$8 sps:$4 sm:$0xff]  }
 0x11b   :  { %2595 = vmatpush1.bf16.msra.mxu1 %v3838_v54  ;;  %v3934_v54 = vld [vmem:[%s5284_s2 + $0x554] ss:$8 sps:$4 sm:$0xff]  }
 0x11c   :  { %2841 = vmatpush1.bf16.msra.mxu0 %v3841_v55  ;;  %2596 = vmatprep.subr.bf16.mxu1 %v3846_v56  ;;  %v3937_v55 = vld [vmem:[%s5284_s2 + $0xb54] ss:$8 sps:$4 sm:$0xff]   ;;  %v3932_v56 = vld [vmem:[%s5284_s2 + $0x550] ss:$8 sps:$4 sm:$0xff]  }
 0x11d   :  { %2842 = vmatprep.subr.bf16.mxu0 %v3849_v57  ;;  %v3935_v57 = vld [vmem:[%s5284_s2 + $0xb50] ss:$8 sps:$4 sm:$0xff]  }
 0x11f   :  { %2597 = vmatpush1.bf16.msra.mxu1 %v3844_v58  ;;  %v3940_v58 = vld [vmem:[%s5284_s2 + $0x564] ss:$8 sps:$4 sm:$0xff]  }
 0x120   :  { %2843 = vmatpush1.bf16.msra.mxu0 %v3847_v59  ;;  %2598 = vmatprep.subr.bf16.mxu1 %v3852_v60  ;;  %v3943_v59 = vld [vmem:[%s5284_s2 + $0xb64] ss:$8 sps:$4 sm:$0xff]   ;;  %v3938_v60 = vld [vmem:[%s5284_s2 + $0x560] ss:$8 sps:$4 sm:$0xff]  }
 0x121   :  { %2844 = vmatprep.subr.bf16.mxu0 %v3855_v61  ;;  %v3941_v61 = vld [vmem:[%s5284_s2 + $0xb60] ss:$8 sps:$4 sm:$0xff]  }
 0x123   :  { %2599 = vmatpush1.bf16.msra.mxu1 %v3850_v62  ;;  %v3946_v62 = vld [vmem:[%s5284_s2 + $0x574] ss:$8 sps:$4 sm:$0xff]  }
 0x124   :  { %2845 = vmatpush1.bf16.msra.mxu0 %v3853_v63  ;;  %2600 = vmatprep.subr.bf16.mxu1 %v3858_v0  ;;  %v3949_v63 = vld [vmem:[%s5284_s2 + $0xb74] ss:$8 sps:$4 sm:$0xff]   ;;  %v3944_v0 = vld [vmem:[%s5284_s2 + $0x570] ss:$8 sps:$4 sm:$0xff]  }
 0x125   :  { %2846 = vmatprep.subr.bf16.mxu0 %v3861_v1  ;;  %v3947_v1 = vld [vmem:[%s5284_s2 + $0xb70] ss:$8 sps:$4 sm:$0xff]  }
 0x127   :  { %2601 = vmatpush1.bf16.msra.mxu1 %v3856_v2  ;;  %v3952_v2 = vld [vmem:[%s5284_s2 + $0x584] ss:$8 sps:$4 sm:$0xff]  }
 0x128   :  { %2847 = vmatpush1.bf16.msra.mxu0 %v3859_v3  ;;  %2602 = vmatprep.subr.bf16.mxu1 %v3864_v4  ;;  %v3955_v3 = vld [vmem:[%s5284_s2 + $0xb84] ss:$8 sps:$4 sm:$0xff]   ;;  %v3950_v4 = vld [vmem:[%s5284_s2 + $0x580] ss:$8 sps:$4 sm:$0xff]  }
 0x129   :  { %2848 = vmatprep.subr.bf16.mxu0 %v3867_v5  ;;  %v3953_v5 = vld [vmem:[%s5284_s2 + $0xb80] ss:$8 sps:$4 sm:$0xff]  }
 0x12b   :  { %2603 = vmatpush1.bf16.msra.mxu1 %v3862_v6  ;;  %v3958_v6 = vld [vmem:[%s5284_s2 + $0x594] ss:$8 sps:$4 sm:$0xff]  }
 0x12c   :  { %2849 = vmatpush1.bf16.msra.mxu0 %v3865_v7  ;;  %2604 = vmatprep.subr.bf16.mxu1 %v3870_v8  ;;  %v3961_v7 = vld [vmem:[%s5284_s2 + $0xb94] ss:$8 sps:$4 sm:$0xff]   ;;  %v3956_v8 = vld [vmem:[%s5284_s2 + $0x590] ss:$8 sps:$4 sm:$0xff]  }
 0x12d   :  { %2850 = vmatprep.subr.bf16.mxu0 %v3873_v9  ;;  %v3959_v9 = vld [vmem:[%s5284_s2 + $0xb90] ss:$8 sps:$4 sm:$0xff]  }
 0x12f   :  { %2605 = vmatpush1.bf16.msra.mxu1 %v3868_v10  ;;  %v3964_v10 = vld [vmem:[%s5284_s2 + $0x5a4] ss:$8 sps:$4 sm:$0xff]  }
 0x130   :  { %2851 = vmatpush1.bf16.msra.mxu0 %v3871_v11  ;;  %2606 = vmatprep.subr.bf16.mxu1 %v3876_v12  ;;  %v3967_v11 = vld [vmem:[%s5284_s2 + $0xba4] ss:$8 sps:$4 sm:$0xff]   ;;  %v3962_v12 = vld [vmem:[%s5284_s2 + $0x5a0] ss:$8 sps:$4 sm:$0xff]  }
 0x131   :  { %2852 = vmatprep.subr.bf16.mxu0 %v3879_v13  ;;  %v3965_v13 = vld [vmem:[%s5284_s2 + $0xba0] ss:$8 sps:$4 sm:$0xff]  }
 0x133   :  { %2607 = vmatpush1.bf16.msra.mxu1 %v3874_v14  ;;  %v3970_v14 = vld [vmem:[%s5284_s2 + $0x5b4] ss:$8 sps:$4 sm:$0xff]  }
 0x134   :  { %2853 = vmatpush1.bf16.msra.mxu0 %v3877_v15  ;;  %2608 = vmatprep.subr.bf16.mxu1 %v3882_v16  ;;  %v3973_v15 = vld [vmem:[%s5284_s2 + $0xbb4] ss:$8 sps:$4 sm:$0xff]   ;;  %v3968_v16 = vld [vmem:[%s5284_s2 + $0x5b0] ss:$8 sps:$4 sm:$0xff]  }
 0x135   :  { %2854 = vmatprep.subr.bf16.mxu0 %v3885_v17  ;;  %v3971_v17 = vld [vmem:[%s5284_s2 + $0xbb0] ss:$8 sps:$4 sm:$0xff]  }
 0x137   :  { %2609 = vmatpush1.bf16.msra.mxu1 %v3880_v19  ;;  %v3976_v19 = vld [vmem:[%s5284_s2 + $0x5c4] ss:$8 sps:$4 sm:$0xff]  }
 0x138   :  { %2855 = vmatpush1.bf16.msra.mxu0 %v3883_v21  ;;  %2610 = vmatprep.subr.bf16.mxu1 %v3888_v22  ;;  %v3979_v21 = vld [vmem:[%s5284_s2 + $0xbc4] ss:$8 sps:$4 sm:$0xff]   ;;  %v3974_v22 = vld [vmem:[%s5284_s2 + $0x5c0] ss:$8 sps:$4 sm:$0xff]  }
 0x139   :  { %2856 = vmatprep.subr.bf16.mxu0 %v3891_v23  ;;  %v3977_v23 = vld [vmem:[%s5284_s2 + $0xbc0] ss:$8 sps:$4 sm:$0xff]  }
 0x13b   :  { %2611 = vmatpush1.bf16.msra.mxu1 %v3886_v26  ;;  %v3982_v26 = vld [vmem:[%s5284_s2 + $0x5d4] ss:$8 sps:$4 sm:$0xff]  }
 0x13c   :  { %2857 = vmatpush1.bf16.msra.mxu0 %v3889_v18  ;;  %2612 = vmatprep.subr.bf16.mxu1 %v3894_v27  ;;  %v3985_v18 = vld [vmem:[%s5284_s2 + $0xbd4] ss:$8 sps:$4 sm:$0xff]   ;;  %v3980_v27 = vld [vmem:[%s5284_s2 + $0x5d0] ss:$8 sps:$4 sm:$0xff]  }
 0x13d   :  { %2858 = vmatprep.subr.bf16.mxu0 %v3897_v28  ;;  %v3983_v28 = vld [vmem:[%s5284_s2 + $0xbd0] ss:$8 sps:$4 sm:$0xff]  }
 0x13f   :  { %2613 = vmatpush1.bf16.msra.mxu1 %v3892_v30  ;;  %v3988_v30 = vld [vmem:[%s5284_s2 + $0x5e4] ss:$8 sps:$4 sm:$0xff]  }
 0x140   :  { %2859 = vmatpush1.bf16.msra.mxu0 %v3895_v31  ;;  %2623 = vmatprep.subr.bf16.mxu1 %v3902_v24  ;;  %v3991_v31 = vld [vmem:[%s5284_s2 + $0xbe4] ss:$8 sps:$4 sm:$0xff]   ;;  %v3986_v24 = vld [vmem:[%s5284_s2 + $0x5e0] ss:$8 sps:$4 sm:$0xff]  }
 0x141   :  { %2869 = vmatprep.subr.bf16.mxu0 %v3907_v25  ;;  %v3989_v25 = vld [vmem:[%s5284_s2 + $0xbe0] ss:$8 sps:$4 sm:$0xff]  }
 0x142   :  { %2615 = vmatmul.mubr.bf16.vlgmr.msra.gmra.mrb[0].mxu1 %v2958_v32  ;;  %v3994_v32 = vld [vmem:[%s5284_s2 + $0x5f4] ss:$8 sps:$4 sm:$0xff]  }
 0x143   :  { %2861 = vmatmul.mubr.bf16.vlgmr.msra.gmra.mrb[0].mxu0 %v2970_v33  ;;  %2624 = vmatpush1.bf16.msra.mxu1 %v3900_v36  ;;  %v3997_v33 = vld [vmem:[%s5284_s2 + $0xbf4] ss:$8 sps:$4 sm:$0xff]   ;;  %v3992_v36 = vld [vmem:[%s5284_s2 + $0x5f0] ss:$8 sps:$4 sm:$0xff]  }
 0x144   :  { %2870 = vmatpush1.bf16.msra.mxu0 %v3905_v20  ;;  %2625 = vmatprep.subr.bf16.mxu1 %v3910_v29  ;;  %v3995_v20 = vld [vmem:[%s5284_s2 + $0xbf0] ss:$8 sps:$4 sm:$0xff]   ;;  %v2960_v29 = vcombine.low %v5074_v34, %v5074_v34  ;;  %v2911_v34 = vstv %s5287_s0 }
 0x145   :  { %2871 = vmatprep.subr.bf16.mxu0 %v3913_v37  ;;  %2655 = vmatprep.mubr.bf16.mxu1 %v2961_v38  ;;  %v2972_v37 = vcombine.low %v5079_v35, %v5079_v35  ;;  %v2916_v38 = vlaneseq }
 0x146   :  { %2901 = vmatprep.mubr.bf16.mxu0 %v2973_v39 }
 0x147   :  { %2626 = vmatpush1.bf16.msra.mxu1 %v3908_v40  ;;  %v2917_v39 = vshrl.u32 %v2916_v38, 7 }
 0x148   :  { %2872 = vmatpush1.bf16.msra.mxu0 %v3911_v41  ;;  %2627 = vmatprep.subr.bf16.mxu1 %v3916_v42  ;;  %v2914_v41 = vld [vmem:[%s5286_s3] sm:$0x3] }
 0x149   :  { %2873 = vmatprep.subr.bf16.mxu0 %v3919_v43  ;;  %v2918_v40 = vsub.s32 0, %v2917_v39  ;;  %v2922_v42 = vsub.s32 1, %v2917_v39 }
 0x14b   :  { %2628 = vmatpush1.bf16.msra.mxu1 %v3914_v44  ;;  %v2919_v35 = vrot.slane %v2914_v41, %v2918_v40 }
 0x14c   :  { %2874 = vmatpush1.bf16.msra.mxu0 %v3917_v45  ;;  %2629 = vmatprep.subr.bf16.mxu1 %v3922_v46 }
 0x14d   :  { %2875 = vmatprep.subr.bf16.mxu0 %v3925_v47 }
 0x14f   :  { %2630 = vmatpush1.bf16.msra.mxu1 %v3920_v48 }
 0x150   :  { %2876 = vmatpush1.bf16.msra.mxu0 %v3923_v49  ;;  %2631 = vmatprep.subr.bf16.mxu1 %v3928_v50  ;;  %v2923_v49 = vrot.slane %v2914_v41, %v2922_v42 }
 0x151   :  { %2877 = vmatprep.subr.bf16.mxu0 %v3931_v51 }
 0x153   :  { %2632 = vmatpush1.bf16.msra.mxu1 %v3926_v52 }
 0x154   :  { %2878 = vmatpush1.bf16.msra.mxu0 %v3929_v53  ;;  %2633 = vmatprep.subr.bf16.mxu1 %v3934_v54 }
 0x155   :  { %2879 = vmatprep.subr.bf16.mxu0 %v3937_v55 }
 0x157   :  { %2634 = vmatpush1.bf16.msra.mxu1 %v3932_v56 }
 0x158   :  { %2880 = vmatpush1.bf16.msra.mxu0 %v3935_v57  ;;  %2635 = vmatprep.subr.bf16.mxu1 %v3940_v58 }
 0x159   :  { %2881 = vmatprep.subr.bf16.mxu0 %v3943_v59 }
 0x15b   :  { %2636 = vmatpush1.bf16.msra.mxu1 %v3938_v60 }
 0x15c   :  { %2882 = vmatpush1.bf16.msra.mxu0 %v3941_v61  ;;  %2637 = vmatprep.subr.bf16.mxu1 %v3946_v62 }
 0x15d   :  { %2883 = vmatprep.subr.bf16.mxu0 %v3949_v63 }
 0x15f   :  { %2638 = vmatpush1.bf16.msra.mxu1 %v3944_v0 }
 0x160   :  { %2884 = vmatpush1.bf16.msra.mxu0 %v3947_v1  ;;  %2639 = vmatprep.subr.bf16.mxu1 %v3952_v2 }
 0x161   :  { %2885 = vmatprep.subr.bf16.mxu0 %v3955_v3 }
 0x163   :  { %2640 = vmatpush1.bf16.msra.mxu1 %v3950_v4 }
 0x164   :  { %2886 = vmatpush1.bf16.msra.mxu0 %v3953_v5  ;;  %2641 = vmatprep.subr.bf16.mxu1 %v3958_v6 }
 0x165   :  { %2887 = vmatprep.subr.bf16.mxu0 %v3961_v7 }
 0x167   :  { %2642 = vmatpush1.bf16.msra.mxu1 %v3956_v8 }
 0x168   :  { %2888 = vmatpush1.bf16.msra.mxu0 %v3959_v9  ;;  %2643 = vmatprep.subr.bf16.mxu1 %v3964_v10 }
 0x169   :  { %2889 = vmatprep.subr.bf16.mxu0 %v3967_v11 }
 0x16b   :  { %2644 = vmatpush1.bf16.msra.mxu1 %v3962_v12 }
 0x16c   :  { %2890 = vmatpush1.bf16.msra.mxu0 %v3965_v13  ;;  %2645 = vmatprep.subr.bf16.mxu1 %v3970_v14 }
 0x16d   :  { %2891 = vmatprep.subr.bf16.mxu0 %v3973_v15 }
 0x16f   :  { %2646 = vmatpush1.bf16.msra.mxu1 %v3968_v16 }
 0x170   :  { %2892 = vmatpush1.bf16.msra.mxu0 %v3971_v17  ;;  %2647 = vmatprep.subr.bf16.mxu1 %v3976_v19 }
 0x171   :  { %2893 = vmatprep.subr.bf16.mxu0 %v3979_v21 }
 0x173   :  { %2648 = vmatpush1.bf16.msra.mxu1 %v3974_v22 }
 0x174   :  { %2894 = vmatpush1.bf16.msra.mxu0 %v3977_v23  ;;  %2649 = vmatprep.subr.bf16.mxu1 %v3982_v26 }
 0x175   :  { %2895 = vmatprep.subr.bf16.mxu0 %v3985_v18 }
 0x177   :  { %2650 = vmatpush1.bf16.msra.mxu1 %v3980_v27 }
 0x178   :  { %2896 = vmatpush1.bf16.msra.mxu0 %v3983_v28  ;;  %2651 = vmatprep.subr.bf16.mxu1 %v3988_v30 }
 0x179   :  { %2897 = vmatprep.subr.bf16.mxu0 %v3991_v31 }
 0x17b   :  { %2652 = vmatpush1.bf16.msra.mxu1 %v3986_v24 }
 0x17c   :  { %2898 = vmatpush1.bf16.msra.mxu0 %v3989_v25  ;;  %2653 = vmatprep.subr.bf16.mxu1 %v3994_v32 }
 0x17d   :  { %2899 = vmatprep.subr.bf16.mxu0 %v3997_v33 }
 0x17f   :  { %2654 = vmatpush1.bf16.msra.mxu1 %v3992_v36 }
 0x180   :  { %2900 = vmatpush1.bf16.msra.mxu0 %v3995_v20 }
 0x182   :  { %2656 = vmatmul.mubr.bf16.vlgmr.msra.gmra.mrb[0].mxu1 %v2960_v29 }
 0x183   :  { %2902 = vmatmul.mubr.bf16.vlgmr.msra.gmra.mrb[0].mxu0 %v2972_v37 }
 0x255   :  { %v2657_v43 = vpop.f32.mrb[0].mxu1 }
 0x256   :  { %v2903_v44 = vpop.f32.mrb[0].mxu0  ;;  %v2659_v46 = vpop.f32.mrb[1].mxu1 }
 0x257   :  { %v3360_v45 = vadd.f32 %v2903_v44, %v2657_v43  ;;  %v2905_v47 = vpop.f32.mrb[1].mxu0  ;;  %v2661_v50 = vpop.f32.mrb[2].mxu1 }
 0x258   :  { %v3361_v48 = vadd.f32 %v2905_v47, %v2659_v46  ;;  %v2907_v51 = vpop.f32.mrb[2].mxu0  ;;  %v2662_v53 = vpop.f32.mrb[3].mxu1 }
 0x259   :  { %v2912_v52 = vmul.f32 %v3360_v45, %v2911_v34  ;;  %v2908_v54 = vpop.f32.mrb[3].mxu0 }
 0x25a   :  { %v2913_v55 = vmul.f32 %v3361_v48, %v2911_v34 }
 0x25b   :  { %v2926_v56 = vadd.f32 %v2919_v35, %v2912_v52 }
 0x25c   :  { %v2927_v57 = vadd.f32 %v2923_v49, %v2913_v55 }
 0x25d   :  { %vm2928_vm0 = vcmp.gt.f32.partialorder %v2926_v56, 0.0  ;;  %v2930_v58 = vmul.f32 0.2, %v2926_v56 }
 0x25e   :  { %vm2929_vm3 = vcmp.gt.f32.partialorder %v2927_v57, 0.0  ;;  %v2931_v59 = vmul.f32 0.2, %v2927_v57 }
 0x25f   :  { %v2932_v60 = vsel %vm2928_vm0, %v2926_v56, %v2930_v58 }
 0x260   :  { %v2933_v61 = vsel %vm2929_vm3, %v2927_v57, %v2931_v59 }
 0x261   :  { %v3359_v62 = vpack.c.bf16 %v2933_v61, %v2932_v60 }
 0x263   :  { %2945 = vst.msk [vmem:[%s5288_s4] sm:$0xff] %vm2944_vm4, %v3359_v62 }

</bundles_post_ra>
